<compile_context>
chip_gen: v7x
topology: tpu7x:2x2x1
jax: 0.10.0
libtpu: 0.0.40
codegen_flags: <defaults>
</compile_context>

<pallas_src>
import functools

import jax
import jax.numpy as jnp
from jax.experimental import pallas as pl
from jax.experimental.pallas import tpu as pltpu


def _round_up(v, m):
    return ((v + m - 1) // m) * m


def _vmem_limit_bytes():
    """Generation-aware VMEM budget (leave ~1/8 headroom)."""
    phys = 64 * 1024 * 1024
    try:
        info = pltpu.get_tpu_info()
        cap = getattr(info, "vmem_capacity_bytes", None)
        if cap:
            phys = int(cap)
    except Exception:
        pass
    return max(32 * 1024 * 1024, (phys * 7) // 8)


# ----------------------------------------------------------------------------
# Pallas kernels
# ----------------------------------------------------------------------------

def _zero_halo(xpad_ref, H, W, cp_in):
    """Zero only the 1-pixel conv halo border (lane-dense strips)."""
    zrow = jnp.zeros((1, W + 2, cp_in), jnp.bfloat16)
    zcol = jnp.zeros((H + 2, 1, cp_in), jnp.bfloat16)
    xpad_ref[0:1] = zrow
    xpad_ref[H + 1:H + 2] = zrow
    xpad_ref[:, 0:1] = zcol
    xpad_ref[:, W + 1:W + 2] = zcol


def _conv_body(xpad_ref, col_ref, w_ref, b_ref, y_ref, st_ref, *, H, W, cp_in, cp_out):
    """3x3 conv as ONE K-fused MXU matmul over an im2col operand built in VMEM,
    fused bias + ReLU, bf16 output, plus per-image partial BatchNorm sums."""
    # im2col build: 9 lane-aligned stores (k*cp_in offsets are multiples of 128).
    for dy in range(3):
        for dx in range(3):
            k = dy * 3 + dx
            col_ref[:, k * cp_in:(k + 1) * cp_in] = (
                xpad_ref[dy:dy + H, dx:dx + W, :].reshape(H * W, cp_in))
    # Single bf16 x bf16 -> f32 matmul: accumulation stays inside the MXU.
    y = jnp.dot(col_ref[...], w_ref[...], preferred_element_type=jnp.float32)
    y = jnp.maximum(y + b_ref[...], 0.0)                       # bias + ReLU (f32)
    # Partial BN statistics from the f32 values (post-ReLU, so E[x^2]-E[x]^2
    # cancellation is benign).
    st_ref[0] = jnp.concatenate(
        [jnp.sum(y, axis=0, keepdims=True),
         jnp.sum(y * y, axis=0, keepdims=True)], axis=0)
    y_ref[0] = y.reshape(H, W, cp_out).astype(jnp.bfloat16)


def _conv1_kernel(x2_ref, x1u_ref, w_ref, b_ref, y_ref, st_ref, xpad_ref, col_ref, *,
                  H, W, c2, c1, h_up, w_up, py0, px0, cin, cp_in, cp_out):
    """Fused: conv zero-pad + F.pad placement + channel concat + channel padding
    (assembled in a bf16 VMEM scratch) + conv3x3 + bias + ReLU + partial BN stats.

    Only regions NOT overwritten by data below are zeroed (halo, pad lanes,
    F.pad gaps) — never the whole scratch."""
    _zero_halo(xpad_ref, H, W, cp_in)
    if cp_in > cin:  # channel-pad lanes
        xpad_ref[1:H + 1, 1:W + 1, cin:cp_in] = jnp.zeros((H, W, cp_in - cin), jnp.bfloat16)
    # F.pad gap strips around the upsampled x1 placement (skipped when dY=dX=0).
    if py0 > 0:
        xpad_ref[1:1 + py0, 1:W + 1, c2:c2 + c1] = jnp.zeros((py0, W, c1), jnp.bfloat16)
    if H - (py0 + h_up) > 0:
        g = H - (py0 + h_up)
        xpad_ref[1 + py0 + h_up:H + 1, 1:W + 1, c2:c2 + c1] = jnp.zeros((g, W, c1), jnp.bfloat16)
    if px0 > 0:
        xpad_ref[1 + py0:1 + py0 + h_up, 1:1 + px0, c2:c2 + c1] = (
            jnp.zeros((h_up, px0, c1), jnp.bfloat16))
    if W - (px0 + w_up) > 0:
        g = W - (px0 + w_up)
        xpad_ref[1 + py0:1 + py0 + h_up, 1 + px0 + w_up:W + 1, c2:c2 + c1] = (
            jnp.zeros((h_up, g, c1), jnp.bfloat16))
    # Channel concat: [x2 skip channels | upsampled x1 channels] (bf16 inputs).
    xpad_ref[1:H + 1, 1:W + 1, 0:c2] = x2_ref[0]
    xpad_ref[1 + py0:1 + py0 + h_up, 1 + px0:1 + px0 + w_up, c2:c2 + c1] = x1u_ref[0]
    _conv_body(xpad_ref, col_ref, w_ref, b_ref, y_ref, st_ref,
               H=H, W=W, cp_in=cp_in, cp_out=cp_out)


def _conv2_kernel(y1_ref, sc_ref, sh_ref, w_ref, b_ref, y_ref, st_ref, xpad_ref, col_ref, *,
                  H, W, cp_in, cp_out):
    """Fused: BN1 per-channel affine on the (bf16) input + conv zero-pad
    + conv3x3 + bias + ReLU + partial BN stats. Interior is fully overwritten,
    so only the halo border is zeroed."""
    _zero_halo(xpad_ref, H, W, cp_in)
    xin = y1_ref[0].astype(jnp.float32) * sc_ref[...] + sh_ref[...]   # BN1 affine (f32)
    xpad_ref[1:H + 1, 1:W + 1, :] = xin.astype(jnp.bfloat16)
    _conv_body(xpad_ref, col_ref, w_ref, b_ref, y_ref, st_ref,
               H=H, W=W, cp_in=cp_in, cp_out=cp_out)


# ----------------------------------------------------------------------------
# pallas_call wrappers
# ----------------------------------------------------------------------------

def _conv1_call(x2n, x1u, wp, bp, *, py0, px0, cin, cp_in, cp_out, vmem_limit):
    n, H, W, c2 = x2n.shape
    _, h_up, w_up, c1 = x1u.shape
    kern = functools.partial(_conv1_kernel, H=H, W=W, c2=c2, c1=c1,
                             h_up=h_up, w_up=w_up, py0=py0, px0=px0,
                             cin=cin, cp_in=cp_in, cp_out=cp_out)
    return pl.pallas_call(
        kern,
        grid=(n,),
        in_specs=[
            pl.BlockSpec((1, H, W, c2), lambda i: (i, 0, 0, 0)),
            pl.BlockSpec((1, h_up, w_up, c1), lambda i: (i, 0, 0, 0)),
            pl.BlockSpec(wp.shape, lambda i: (0, 0)),
            pl.BlockSpec(bp.shape, lambda i: (0, 0)),
        ],
        out_specs=[
            pl.BlockSpec((1, H, W, cp_out), lambda i: (i, 0, 0, 0)),
            pl.BlockSpec((1, 2, cp_out), lambda i: (i, 0, 0)),
        ],
        out_shape=[
            jax.ShapeDtypeStruct((n, H, W, cp_out), jnp.bfloat16),
            jax.ShapeDtypeStruct((n, 2, cp_out), jnp.float32),
        ],
        scratch_shapes=[
            pltpu.VMEM((H + 2, W + 2, cp_in), jnp.bfloat16),   # padded/concat input
            pltpu.VMEM((H * W, 9 * cp_in), jnp.bfloat16),      # im2col (fused K)
        ],
        compiler_params=pltpu.CompilerParams(
            dimension_semantics=("parallel",),
            vmem_limit_bytes=vmem_limit),
    )(x2n, x1u, wp, bp)


def _conv2_call(y1, sc1, sh1, wp, bp, *, cp_in, cp_out, vmem_limit):
    n, H, W, _ = y1.shape
    kern = functools.partial(_conv2_kernel, H=H, W=W, cp_in=cp_in, cp_out=cp_out)
    return pl.pallas_call(
        kern,
        grid=(n,),
        in_specs=[
            pl.BlockSpec((1, H, W, cp_in), lambda i: (i, 0, 0, 0)),
            pl.BlockSpec((1, 1, cp_in), lambda i: (0, 0, 0)),
            pl.BlockSpec((1, 1, cp_in), lambda i: (0, 0, 0)),
            pl.BlockSpec(wp.shape, lambda i: (0, 0)),
            pl.BlockSpec(bp.shape, lambda i: (0, 0)),
        ],
        out_specs=[
            pl.BlockSpec((1, H, W, cp_out), lambda i: (i, 0, 0, 0)),
            pl.BlockSpec((1, 2, cp_out), lambda i: (i, 0, 0)),
        ],
        out_shape=[
            jax.ShapeDtypeStruct((n, H, W, cp_out), jnp.bfloat16),
            jax.ShapeDtypeStruct((n, 2, cp_out), jnp.float32),
        ],
        scratch_shapes=[
            pltpu.VMEM((H + 2, W + 2, cp_in), jnp.bfloat16),
            pltpu.VMEM((H * W, 9 * cp_in), jnp.bfloat16),
        ],
        compiler_params=pltpu.CompilerParams(
            dimension_semantics=("parallel",),
            vmem_limit_bytes=vmem_limit),
    )(y1, sc1, sh1, wp, bp)


# ----------------------------------------------------------------------------
# Plain-JAX glue (layout + tiny finalize only)
# ----------------------------------------------------------------------------

def _interp_matrix(n_out, n_in):
    """1-D linear interpolation matrix, align_corners=True: (n_out, n_in)."""
    if n_in == 1:
        return jnp.ones((n_out, 1), jnp.float32)
    o = jnp.arange(n_out, dtype=jnp.float32)
    src = o * (n_in - 1) / (n_out - 1)
    i = jnp.arange(n_in, dtype=jnp.float32)
    return jnp.maximum(0.0, 1.0 - jnp.abs(src[:, None] - i[None, :]))


def _pad_weights(w, cp_in, cp_out):
    """(3,3,Cin,Cout) -> zero-padded (9*cp_in, cp_out) bf16 for the fused-K GEMM."""
    kh, kw, ci, co = w.shape
    wp = jnp.zeros((kh, kw, cp_in, cp_out), jnp.float32).at[:, :, :ci, :co].set(w)
    return wp.reshape(kh * kw * cp_in, cp_out).astype(jnp.bfloat16)


def _pad_bias(b, cp_out):
    return jnp.zeros((1, cp_out), jnp.float32).at[:, :b.shape[-1]].set(b)


def _bn_affine(st, gamma, beta, count, cout, cp):
    """Finalize BatchNorm batch statistics (biased var) into a per-channel affine."""
    s = jnp.sum(st, axis=0)                                     # (2, cp)
    mean = s[0] / count
    var = jnp.maximum(s[1] / count - mean * mean, 0.0)
    g = jnp.zeros((cp,), jnp.float32).at[:cout].set(gamma.reshape(-1))
    b = jnp.zeros((cp,), jnp.float32).at[:cout].set(beta.reshape(-1))
    scale = g * jax.lax.rsqrt(var + 1e-5)
    shift = b - mean * scale
    return scale.reshape(1, 1, cp), shift.reshape(1, 1, cp)


def up_forward(x1, x2, params):
    """Forward of Up(in_channels=C1+C2, out_channels, bilinear=True).

    x1: (N, C1, H1, W1) f32 NCHW (decoder feature, upsampled)
    x2: (N, C2, H2, W2) f32 NCHW (encoder skip feature)
    returns: (N, Cout, H2, W2) f32 NCHW
    """
    n, c1, h1, w1 = x1.shape
    _, c2, H, W = x2.shape
    h_up, w_up = 2 * h1, 2 * w1
    dY, dX = H - h_up, W - w_up
    # TODO(synk): negative diffY/diffX (F.pad crop path) not implemented.
    assert dY >= 0 and dX >= 0

    cin = c1 + c2
    cout = params["w1"].shape[-1]
    cp_in = _round_up(cin, 128)      # lane-dense GEMM K dim
    cp_out = _round_up(cout, 128)    # lane-dense GEMM N dim / output stores
    vmem_limit = _vmem_limit_bytes()

    # --- separable bilinear upsample (align_corners=True), emitted NHWC bf16 in
    # one fused XLA pass (no standalone Pallas kernel, no transpose pass) ---
    ah = _interp_matrix(h_up, h1)                       # (h_up, h1)
    aw = _interp_matrix(w_up, w1)                       # (w_up, w1)
    x1u = jnp.einsum("ik,nckw,jw->nijc", ah, x1, aw).astype(jnp.bfloat16)
    x2n = jnp.transpose(x2, (0, 2, 3, 1)).astype(jnp.bfloat16)          # NHWC bf16

    # --- conv1: pad + concat + conv + bias + ReLU + partial BN1 stats (fused) ---
    w1p = _pad_weights(params["w1"], cp_in, cp_out)
    b1p = _pad_bias(params["b1"], cp_out)
    y1, st1 = _conv1_call(x2n, x1u, w1p, b1p,
                          py0=dY // 2, px0=dX // 2,
                          cin=cin, cp_in=cp_in, cp_out=cp_out, vmem_limit=vmem_limit)
    sc1, sh1 = _bn_affine(st1, params["g1"], params["beta1"], n * H * W, cout, cp_out)

    # --- conv2 with BN1 affine folded into its input path ---
    w2p = _pad_weights(params["w2"], cp_out, cp_out)
    b2p = _pad_bias(params["b2"], cp_out)
    y2, st2 = _conv2_call(y1, sc1, sh1, w2p, b2p,
                          cp_in=cp_out, cp_out=cp_out, vmem_limit=vmem_limit)
    sc2, sh2 = _bn_affine(st2, params["g2"], params["beta2"], n * H * W, cout, cp_out)

    # --- BN2 + un-pad (:cout) + NCHW: single fused XLA epilogue pass over y2 ---
    z = y2[..., :cout].astype(jnp.float32) * sc2[0, :, :cout] + sh2[0, :, :cout]
    return jnp.transpose(z, (0, 3, 1, 2))

    # TODO(synk): bilinear=False branch (ConvTranspose2d upsampling) not implemented.
    # TODO(synk): H-row spatial tiling with halo DMAs for large images
    # (pipeline depth and VMEM scaling beyond one full-image block per step).


def init_params(key, in_channels, out_channels):
    """Deterministic synthetic parameters for DoubleConv(in_channels, out_channels)."""
    k = jax.random.split(key, 8)
    scale1 = 1.0 / jnp.sqrt(9.0 * in_channels)
    scale2 = 1.0 / jnp.sqrt(9.0 * out_channels)
    return {
        # conv weights stored HWIO: (3, 3, Cin, Cout); Cin order = [x2 ch, x1 ch]
        "w1": scale1 * jax.random.normal(k[0], (3, 3, in_channels, out_channels), jnp.float32),
        "b1": scale1 * jax.random.normal(k[1], (1, out_channels), jnp.float32),
        "g1": 1.0 + 0.1 * jax.random.normal(k[2], (1, out_channels), jnp.float32),
        "beta1": 0.1 * jax.random.normal(k[3], (1, out_channels), jnp.float32),
        "w2": scale2 * jax.random.normal(k[4], (3, 3, out_channels, out_channels), jnp.float32),
        "b2": scale2 * jax.random.normal(k[5], (1, out_channels), jnp.float32),
        "g2": 1.0 + 0.1 * jax.random.normal(k[6], (1, out_channels), jnp.float32),
        "beta2": 0.1 * jax.random.normal(k[7], (1, out_channels), jnp.float32),
    }


if __name__ == "__main__":
    key = jax.random.PRNGKey(0)
    k1, k2, kp = jax.random.split(key, 3)

    # UNet-style shapes: x1 is the coarser decoder map, x2 the encoder skip.
    # in_channels = C1 + C2 = 8, out_channels = 4, bilinear=True.
    x1 = jax.random.normal(k1, (2, 4, 8, 8), jnp.float32)     # (N, C1, H1, W1)
    x2 = jax.random.normal(k2, (2, 4, 16, 16), jnp.float32)   # (N, C2, H2, W2)
    params = init_params(kp, in_channels=8, out_channels=4)

    out = jax.jit(up_forward)(x1, x2, params)
    jax.block_until_ready(out)
    assert out.shape == (2, 4, 16, 16) and out.dtype == jnp.float32
    print("KERNEL_OK")
</pallas_src>

<mosaic_0001>
module attributes {stable_mosaic.version = 11 : i64} {
  func.func @_conv1_kernel(%arg0: i32, %arg1: memref<1x16x16x4xbf16, #tpu.memory_space<vmem>>, %arg2: memref<1x16x16x4xbf16, #tpu.memory_space<vmem>>, %arg3: memref<1152x128xbf16, #tpu.memory_space<vmem>>, %arg4: memref<1x128xf32, #tpu.memory_space<vmem>>, %arg5: memref<1x16x16x128xbf16, #tpu.memory_space<vmem>>, %arg6: memref<1x2x128xf32, #tpu.memory_space<vmem>>, %arg7: memref<18x18x128xbf16, #tpu.memory_space<vmem>>, %arg8: memref<256x1152xbf16, #tpu.memory_space<vmem>>) attributes {dimension_semantics = [#tpu.dimension_semantics<parallel>], iteration_bounds = array<i64: 2>, scalar_prefetch = 0 : i64, scratch_operands = 2 : i64, tpu.core_type = #tpu.core_type<tc>, window_params = [{transform_indices = @transform_0, window_bounds = array<i64: 1, 16, 16, 4>}, {transform_indices = @transform_1, window_bounds = array<i64: 1, 16, 16, 4>}, {pipeline_mode = #tpu.pipeline_mode<synchronous>, transform_indices = @transform_2, window_bounds = array<i64: 1152, 128>}, {pipeline_mode = #tpu.pipeline_mode<synchronous>, transform_indices = @transform_3, window_bounds = array<i64: 1, 128>}, {transform_indices = @transform_4, window_bounds = array<i64: 1, 16, 16, 128>}, {transform_indices = @transform_5, window_bounds = array<i64: 1, 2, 128>}]} {
    %cst = arith.constant 0.000000e+00 : bf16
    %0 = vector.broadcast %cst : bf16 to vector<1x18x128xbf16>
    %cst_0 = arith.constant 0.000000e+00 : bf16
    %1 = vector.broadcast %cst_0 : bf16 to vector<18x1x128xbf16>
    %c0 = arith.constant 0 : index
    %c0_1 = arith.constant 0 : index
    %c0_2 = arith.constant 0 : index
    %2 = vector.load %arg7[%c0, %c0_1, %c0_2] : memref<18x18x128xbf16, #tpu.memory_space<vmem>>, vector<1x18x128xbf16>
    tpu.vector_store %arg7[%c0, %c0_1, %c0_2], %0 {strides = array<i32>} : memref<18x18x128xbf16, #tpu.memory_space<vmem>>, vector<1x18x128xbf16>,
    %c17 = arith.constant 17 : index
    %c0_3 = arith.constant 0 : index
    %c0_4 = arith.constant 0 : index
    %3 = vector.load %arg7[%c17, %c0_3, %c0_4] : memref<18x18x128xbf16, #tpu.memory_space<vmem>>, vector<1x18x128xbf16>
    tpu.vector_store %arg7[%c17, %c0_3, %c0_4], %0 {strides = array<i32>} : memref<18x18x128xbf16, #tpu.memory_space<vmem>>, vector<1x18x128xbf16>,
    %c0_5 = arith.constant 0 : index
    %c0_6 = arith.constant 0 : index
    %c0_7 = arith.constant 0 : index
    %4 = vector.load %arg7[%c0_5, %c0_6, %c0_7] : memref<18x18x128xbf16, #tpu.memory_space<vmem>>, vector<18x1x128xbf16>
    tpu.vector_store %arg7[%c0_5, %c0_6, %c0_7], %1 {strides = array<i32>} : memref<18x18x128xbf16, #tpu.memory_space<vmem>>, vector<18x1x128xbf16>,
    %c0_8 = arith.constant 0 : index
    %c17_9 = arith.constant 17 : index
    %c0_10 = arith.constant 0 : index
    %5 = vector.load %arg7[%c0_8, %c17_9, %c0_10] : memref<18x18x128xbf16, #tpu.memory_space<vmem>>, vector<18x1x128xbf16>
    tpu.vector_store %arg7[%c0_8, %c17_9, %c0_10], %1 {strides = array<i32>} : memref<18x18x128xbf16, #tpu.memory_space<vmem>>, vector<18x1x128xbf16>,
    %cst_11 = arith.constant 0.000000e+00 : bf16
    %6 = vector.broadcast %cst_11 : bf16 to vector<16x16x120xbf16>
    %c1 = arith.constant 1 : index
    %c1_12 = arith.constant 1 : index
    %c8 = arith.constant 8 : index
    %7 = vector.load %arg7[%c1, %c1_12, %c8] : memref<18x18x128xbf16, #tpu.memory_space<vmem>>, vector<16x16x120xbf16>
    tpu.vector_store %arg7[%c1, %c1_12, %c8], %6 {strides = array<i32>} : memref<18x18x128xbf16, #tpu.memory_space<vmem>>, vector<16x16x120xbf16>,
    %c0_13 = arith.constant 0 : index
    %c0_14 = arith.constant 0 : index
    %c0_15 = arith.constant 0 : index
    %c0_16 = arith.constant 0 : index
    %8 = vector.load %arg1[%c0_13, %c0_14, %c0_15, %c0_16] : memref<1x16x16x4xbf16, #tpu.memory_space<vmem>>, vector<1x16x16x4xbf16>
    %9 = vector.shape_cast %8 : vector<1x16x16x4xbf16> to vector<16x16x4xbf16>
    %c1_17 = arith.constant 1 : index
    %c1_18 = arith.constant 1 : index
    %c0_19 = arith.constant 0 : index
    %10 = vector.load %arg7[%c1_17, %c1_18, %c0_19] : memref<18x18x128xbf16, #tpu.memory_space<vmem>>, vector<16x16x4xbf16>
    tpu.vector_store %arg7[%c1_17, %c1_18, %c0_19], %9 {strides = array<i32>} : memref<18x18x128xbf16, #tpu.memory_space<vmem>>, vector<16x16x4xbf16>,
    %c0_20 = arith.constant 0 : index
    %c0_21 = arith.constant 0 : index
    %c0_22 = arith.constant 0 : index
    %c0_23 = arith.constant 0 : index
    %11 = vector.load %arg2[%c0_20, %c0_21, %c0_22, %c0_23] : memref<1x16x16x4xbf16, #tpu.memory_space<vmem>>, vector<1x16x16x4xbf16>
    %12 = vector.shape_cast %11 : vector<1x16x16x4xbf16> to vector<16x16x4xbf16>
    %c1_24 = arith.constant 1 : index
    %c1_25 = arith.constant 1 : index
    %c4 = arith.constant 4 : index
    %13 = vector.load %arg7[%c1_24, %c1_25, %c4] : memref<18x18x128xbf16, #tpu.memory_space<vmem>>, vector<16x16x4xbf16>
    tpu.vector_store %arg7[%c1_24, %c1_25, %c4], %12 {strides = array<i32>} : memref<18x18x128xbf16, #tpu.memory_space<vmem>>, vector<16x16x4xbf16>,
    %c0_26 = arith.constant 0 : index
    %c0_27 = arith.constant 0 : index
    %c0_28 = arith.constant 0 : index
    %14 = vector.load %arg7[%c0_26, %c0_27, %c0_28] : memref<18x18x128xbf16, #tpu.memory_space<vmem>>, vector<16x16x128xbf16>
    %15 = vector.shape_cast %14 : vector<16x16x128xbf16> to vector<256x128xbf16>
    %c0_29 = arith.constant 0 : index
    %c0_30 = arith.constant 0 : index
    %16 = vector.load %arg8[%c0_29, %c0_30] : memref<256x1152xbf16, #tpu.memory_space<vmem>>, vector<256x128xbf16>
    tpu.vector_store %arg8[%c0_29, %c0_30], %15 {strides = array<i32>} : memref<256x1152xbf16, #tpu.memory_space<vmem>>, vector<256x128xbf16>,
    %c0_31 = arith.constant 0 : index
    %c1_32 = arith.constant 1 : index
    %c0_33 = arith.constant 0 : index
    %17 = vector.load %arg7[%c0_31, %c1_32, %c0_33] : memref<18x18x128xbf16, #tpu.memory_space<vmem>>, vector<16x16x128xbf16>
    %18 = vector.shape_cast %17 : vector<16x16x128xbf16> to vector<256x128xbf16>
    %c0_34 = arith.constant 0 : index
    %c128 = arith.constant 128 : index
    %19 = vector.load %arg8[%c0_34, %c128] : memref<256x1152xbf16, #tpu.memory_space<vmem>>, vector<256x128xbf16>
    tpu.vector_store %arg8[%c0_34, %c128], %18 {strides = array<i32>} : memref<256x1152xbf16, #tpu.memory_space<vmem>>, vector<256x128xbf16>,
    %c0_35 = arith.constant 0 : index
    %c2 = arith.constant 2 : index
    %c0_36 = arith.constant 0 : index
    %20 = vector.load %arg7[%c0_35, %c2, %c0_36] : memref<18x18x128xbf16, #tpu.memory_space<vmem>>, vector<16x16x128xbf16>
    %21 = vector.shape_cast %20 : vector<16x16x128xbf16> to vector<256x128xbf16>
    %c0_37 = arith.constant 0 : index
    %c256 = arith.constant 256 : index
    %22 = vector.load %arg8[%c0_37, %c256] : memref<256x1152xbf16, #tpu.memory_space<vmem>>, vector<256x128xbf16>
    tpu.vector_store %arg8[%c0_37, %c256], %21 {strides = array<i32>} : memref<256x1152xbf16, #tpu.memory_space<vmem>>, vector<256x128xbf16>,
    %c1_38 = arith.constant 1 : index
    %c0_39 = arith.constant 0 : index
    %c0_40 = arith.constant 0 : index
    %23 = vector.load %arg7[%c1_38, %c0_39, %c0_40] : memref<18x18x128xbf16, #tpu.memory_space<vmem>>, vector<16x16x128xbf16>
    %24 = vector.shape_cast %23 : vector<16x16x128xbf16> to vector<256x128xbf16>
    %c0_41 = arith.constant 0 : index
    %c384 = arith.constant 384 : index
    %25 = vector.load %arg8[%c0_41, %c384] : memref<256x1152xbf16, #tpu.memory_space<vmem>>, vector<256x128xbf16>
    tpu.vector_store %arg8[%c0_41, %c384], %24 {strides = array<i32>} : memref<256x1152xbf16, #tpu.memory_space<vmem>>, vector<256x128xbf16>,
    %c1_42 = arith.constant 1 : index
    %c1_43 = arith.constant 1 : index
    %c0_44 = arith.constant 0 : index
    %26 = vector.load %arg7[%c1_42, %c1_43, %c0_44] : memref<18x18x128xbf16, #tpu.memory_space<vmem>>, vector<16x16x128xbf16>
    %27 = vector.shape_cast %26 : vector<16x16x128xbf16> to vector<256x128xbf16>
    %c0_45 = arith.constant 0 : index
    %c512 = arith.constant 512 : index
    %28 = vector.load %arg8[%c0_45, %c512] : memref<256x1152xbf16, #tpu.memory_space<vmem>>, vector<256x128xbf16>
    tpu.vector_store %arg8[%c0_45, %c512], %27 {strides = array<i32>} : memref<256x1152xbf16, #tpu.memory_space<vmem>>, vector<256x128xbf16>,
    %c1_46 = arith.constant 1 : index
    %c2_47 = arith.constant 2 : index
    %c0_48 = arith.constant 0 : index
    %29 = vector.load %arg7[%c1_46, %c2_47, %c0_48] : memref<18x18x128xbf16, #tpu.memory_space<vmem>>, vector<16x16x128xbf16>
    %30 = vector.shape_cast %29 : vector<16x16x128xbf16> to vector<256x128xbf16>
    %c0_49 = arith.constant 0 : index
    %c640 = arith.constant 640 : index
    %31 = vector.load %arg8[%c0_49, %c640] : memref<256x1152xbf16, #tpu.memory_space<vmem>>, vector<256x128xbf16>
    tpu.vector_store %arg8[%c0_49, %c640], %30 {strides = array<i32>} : memref<256x1152xbf16, #tpu.memory_space<vmem>>, vector<256x128xbf16>,
    %c2_50 = arith.constant 2 : index
    %c0_51 = arith.constant 0 : index
    %c0_52 = arith.constant 0 : index
    %32 = vector.load %arg7[%c2_50, %c0_51, %c0_52] : memref<18x18x128xbf16, #tpu.memory_space<vmem>>, vector<16x16x128xbf16>
    %33 = vector.shape_cast %32 : vector<16x16x128xbf16> to vector<256x128xbf16>
    %c0_53 = arith.constant 0 : index
    %c768 = arith.constant 768 : index
    %34 = vector.load %arg8[%c0_53, %c768] : memref<256x1152xbf16, #tpu.memory_space<vmem>>, vector<256x128xbf16>
    tpu.vector_store %arg8[%c0_53, %c768], %33 {strides = array<i32>} : memref<256x1152xbf16, #tpu.memory_space<vmem>>, vector<256x128xbf16>,
    %c2_54 = arith.constant 2 : index
    %c1_55 = arith.constant 1 : index
    %c0_56 = arith.constant 0 : index
    %35 = vector.load %arg7[%c2_54, %c1_55, %c0_56] : memref<18x18x128xbf16, #tpu.memory_space<vmem>>, vector<16x16x128xbf16>
    %36 = vector.shape_cast %35 : vector<16x16x128xbf16> to vector<256x128xbf16>
    %c0_57 = arith.constant 0 : index
    %c896 = arith.constant 896 : index
    %37 = vector.load %arg8[%c0_57, %c896] : memref<256x1152xbf16, #tpu.memory_space<vmem>>, vector<256x128xbf16>
    tpu.vector_store %arg8[%c0_57, %c896], %36 {strides = array<i32>} : memref<256x1152xbf16, #tpu.memory_space<vmem>>, vector<256x128xbf16>,
    %c2_58 = arith.constant 2 : index
    %c2_59 = arith.constant 2 : index
    %c0_60 = arith.constant 0 : index
    %38 = vector.load %arg7[%c2_58, %c2_59, %c0_60] : memref<18x18x128xbf16, #tpu.memory_space<vmem>>, vector<16x16x128xbf16>
    %39 = vector.shape_cast %38 : vector<16x16x128xbf16> to vector<256x128xbf16>
    %c0_61 = arith.constant 0 : index
    %c1024 = arith.constant 1024 : index
    %40 = vector.load %arg8[%c0_61, %c1024] : memref<256x1152xbf16, #tpu.memory_space<vmem>>, vector<256x128xbf16>
    tpu.vector_store %arg8[%c0_61, %c1024], %39 {strides = array<i32>} : memref<256x1152xbf16, #tpu.memory_space<vmem>>, vector<256x128xbf16>,
    %c0_62 = arith.constant 0 : index
    %c0_63 = arith.constant 0 : index
    %41 = vector.load %arg8[%c0_62, %c0_63] : memref<256x1152xbf16, #tpu.memory_space<vmem>>, vector<256x1152xbf16>
    %c0_64 = arith.constant 0 : index
    %c0_65 = arith.constant 0 : index
    %42 = vector.load %arg3[%c0_64, %c0_65] : memref<1152x128xbf16, #tpu.memory_space<vmem>>, vector<1152x128xbf16>
    %cst_66 = arith.constant dense<0.000000e+00> : vector<256x128xf32>
    %43 = tpu.matmul %41, %42, %cst_66 {dimension_numbers = #tpu.dot_dimension_numbers<[1], [0], [0], [1], [0, 0, 1, 1], [], []>} : vector<256x1152xbf16>, vector<1152x128xbf16>, vector<256x128xf32> -> vector<256x128xf32>
    %c0_67 = arith.constant 0 : index
    %c0_68 = arith.constant 0 : index
    %44 = vector.load %arg4[%c0_67, %c0_68] : memref<1x128xf32, #tpu.memory_space<vmem>>, vector<1x128xf32>
    %45 = vector.broadcast %44 : vector<1x128xf32> to vector<256x128xf32>
    %46 = arith.addf %43, %45 : vector<256x128xf32>
    %cst_69 = arith.constant 0.000000e+00 : f32
    %47 = vector.broadcast %cst_69 : f32 to vector<256x128xf32>
    %48 = arith.maximumf %46, %47 : vector<256x128xf32>
    %cst_70 = arith.constant dense<0.000000e+00> : vector<128xf32>
    %49 = vector.multi_reduction <add>, %48, %cst_70 [0] : vector<256x128xf32> to vector<128xf32>
    %50 = vector.shape_cast %49 : vector<128xf32> to vector<1x128xf32>
    %51 = arith.mulf %48, %48 : vector<256x128xf32>
    %cst_71 = arith.constant dense<0.000000e+00> : vector<128xf32>
    %52 = vector.multi_reduction <add>, %51, %cst_71 [0] : vector<256x128xf32> to vector<128xf32>
    %53 = vector.shape_cast %52 : vector<128xf32> to vector<1x128xf32>
    %54 = tpu.concatenate %50, %53 in 0 : vector<1x128xf32>, vector<1x128xf32> -> vector<2x128xf32>
    %c0_72 = arith.constant 0 : index
    %c0_73 = arith.constant 0 : index
    %c0_74 = arith.constant 0 : index
    %55 = vector.load %arg6[%c0_72, %c0_73, %c0_74] : memref<1x2x128xf32, #tpu.memory_space<vmem>>, vector<1x2x128xf32>
    %56 = vector.shape_cast %55 : vector<1x2x128xf32> to vector<2x128xf32>
    %57 = vector.shape_cast %54 : vector<2x128xf32> to vector<1x2x128xf32>
    tpu.vector_store %arg6[%c0_72, %c0_73, %c0_74], %57 {strides = array<i32>} : memref<1x2x128xf32, #tpu.memory_space<vmem>>, vector<1x2x128xf32>,
    %58 = vector.shape_cast %48 : vector<256x128xf32> to vector<16x16x128xf32>
    %59 = arith.truncf %58 : vector<16x16x128xf32> to vector<16x16x128xbf16>
    %c0_75 = arith.constant 0 : index
    %c0_76 = arith.constant 0 : index
    %c0_77 = arith.constant 0 : index
    %c0_78 = arith.constant 0 : index
    %60 = vector.load %arg5[%c0_75, %c0_76, %c0_77, %c0_78] : memref<1x16x16x128xbf16, #tpu.memory_space<vmem>>, vector<1x16x16x128xbf16>
    %61 = vector.shape_cast %60 : vector<1x16x16x128xbf16> to vector<16x16x128xbf16>
    %62 = vector.shape_cast %59 : vector<16x16x128xbf16> to vector<1x16x16x128xbf16>
    tpu.vector_store %arg5[%c0_75, %c0_76, %c0_77, %c0_78], %62 {strides = array<i32>} : memref<1x16x16x128xbf16, #tpu.memory_space<vmem>>, vector<1x16x16x128xbf16>,
    return
  }
  func.func @transform_0(%arg0: i32) -> (i32, i32, i32, i32) {
    %c0_i32 = arith.constant 0 : i32
    %c0_i32_0 = arith.constant 0 : i32
    %c0_i32_1 = arith.constant 0 : i32
    %c0_i32_2 = arith.constant 0 : i32
    return %arg0, %c0_i32, %c0_i32_0, %c0_i32_1 : i32, i32, i32, i32
  }
  func.func @transform_1(%arg0: i32) -> (i32, i32, i32, i32) {
    %c0_i32 = arith.constant 0 : i32
    %c0_i32_0 = arith.constant 0 : i32
    %c0_i32_1 = arith.constant 0 : i32
    %c0_i32_2 = arith.constant 0 : i32
    return %arg0, %c0_i32, %c0_i32_0, %c0_i32_1 : i32, i32, i32, i32
  }
  func.func @transform_2(%arg0: i32) -> (i32, i32) {
    %c0_i32 = arith.constant 0 : i32
    %c0_i32_0 = arith.constant 0 : i32
    %c0_i32_1 = arith.constant 0 : i32
    return %c0_i32, %c0_i32_0 : i32, i32
  }
  func.func @transform_3(%arg0: i32) -> (i32, i32) {
    %c0_i32 = arith.constant 0 : i32
    %c0_i32_0 = arith.constant 0 : i32
    %c0_i32_1 = arith.constant 0 : i32
    return %c0_i32, %c0_i32_0 : i32, i32
  }
  func.func @transform_4(%arg0: i32) -> (i32, i32, i32, i32) {
    %c0_i32 = arith.constant 0 : i32
    %c0_i32_0 = arith.constant 0 : i32
    %c0_i32_1 = arith.constant 0 : i32
    %c0_i32_2 = arith.constant 0 : i32
    return %arg0, %c0_i32, %c0_i32_0, %c0_i32_1 : i32, i32, i32, i32
  }
  func.func @transform_5(%arg0: i32) -> (i32, i32, i32) {
    %c0_i32 = arith.constant 0 : i32
    %c0_i32_0 = arith.constant 0 : i32
    %c0_i32_1 = arith.constant 0 : i32
    return %arg0, %c0_i32, %c0_i32_0 : i32, i32, i32
  }
}

module attributes {stable_mosaic.version = 11 : i64} {
  func.func @_conv2_kernel(%arg0: i32, %arg1: memref<1x16x16x128xbf16, #tpu.memory_space<vmem>>, %arg2: memref<1x1x128xf32, #tpu.memory_space<vmem>>, %arg3: memref<1x1x128xf32, #tpu.memory_space<vmem>>, %arg4: memref<1152x128xbf16, #tpu.memory_space<vmem>>, %arg5: memref<1x128xf32, #tpu.memory_space<vmem>>, %arg6: memref<1x16x16x128xbf16, #tpu.memory_space<vmem>>, %arg7: memref<1x2x128xf32, #tpu.memory_space<vmem>>, %arg8: memref<18x18x128xbf16, #tpu.memory_space<vmem>>, %arg9: memref<256x1152xbf16, #tpu.memory_space<vmem>>) attributes {dimension_semantics = [#tpu.dimension_semantics<parallel>], iteration_bounds = array<i64: 2>, scalar_prefetch = 0 : i64, scratch_operands = 2 : i64, tpu.core_type = #tpu.core_type<tc>, window_params = [{transform_indices = @transform_0, window_bounds = array<i64: 1, 16, 16, 128>}, {pipeline_mode = #tpu.pipeline_mode<synchronous>, transform_indices = @transform_1, window_bounds = array<i64: 1, 1, 128>}, {pipeline_mode = #tpu.pipeline_mode<synchronous>, transform_indices = @transform_2, window_bounds = array<i64: 1, 1, 128>}, {pipeline_mode = #tpu.pipeline_mode<synchronous>, transform_indices = @transform_3, window_bounds = array<i64: 1152, 128>}, {pipeline_mode = #tpu.pipeline_mode<synchronous>, transform_indices = @transform_4, window_bounds = array<i64: 1, 128>}, {transform_indices = @transform_5, window_bounds = array<i64: 1, 16, 16, 128>}, {transform_indices = @transform_6, window_bounds = array<i64: 1, 2, 128>}]} {
    %cst = arith.constant 0.000000e+00 : bf16
    %0 = vector.broadcast %cst : bf16 to vector<1x18x128xbf16>
    %cst_0 = arith.constant 0.000000e+00 : bf16
    %1 = vector.broadcast %cst_0 : bf16 to vector<18x1x128xbf16>
    %c0 = arith.constant 0 : index
    %c0_1 = arith.constant 0 : index
    %c0_2 = arith.constant 0 : index
    %2 = vector.load %arg8[%c0, %c0_1, %c0_2] : memref<18x18x128xbf16, #tpu.memory_space<vmem>>, vector<1x18x128xbf16>
    tpu.vector_store %arg8[%c0, %c0_1, %c0_2], %0 {strides = array<i32>} : memref<18x18x128xbf16, #tpu.memory_space<vmem>>, vector<1x18x128xbf16>,
    %c17 = arith.constant 17 : index
    %c0_3 = arith.constant 0 : index
    %c0_4 = arith.constant 0 : index
    %3 = vector.load %arg8[%c17, %c0_3, %c0_4] : memref<18x18x128xbf16, #tpu.memory_space<vmem>>, vector<1x18x128xbf16>
    tpu.vector_store %arg8[%c17, %c0_3, %c0_4], %0 {strides = array<i32>} : memref<18x18x128xbf16, #tpu.memory_space<vmem>>, vector<1x18x128xbf16>,
    %c0_5 = arith.constant 0 : index
    %c0_6 = arith.constant 0 : index
    %c0_7 = arith.constant 0 : index
    %4 = vector.load %arg8[%c0_5, %c0_6, %c0_7] : memref<18x18x128xbf16, #tpu.memory_space<vmem>>, vector<18x1x128xbf16>
    tpu.vector_store %arg8[%c0_5, %c0_6, %c0_7], %1 {strides = array<i32>} : memref<18x18x128xbf16, #tpu.memory_space<vmem>>, vector<18x1x128xbf16>,
    %c0_8 = arith.constant 0 : index
    %c17_9 = arith.constant 17 : index
    %c0_10 = arith.constant 0 : index
    %5 = vector.load %arg8[%c0_8, %c17_9, %c0_10] : memref<18x18x128xbf16, #tpu.memory_space<vmem>>, vector<18x1x128xbf16>
    tpu.vector_store %arg8[%c0_8, %c17_9, %c0_10], %1 {strides = array<i32>} : memref<18x18x128xbf16, #tpu.memory_space<vmem>>, vector<18x1x128xbf16>,
    %c0_11 = arith.constant 0 : index
    %c0_12 = arith.constant 0 : index
    %c0_13 = arith.constant 0 : index
    %c0_14 = arith.constant 0 : index
    %6 = vector.load %arg1[%c0_11, %c0_12, %c0_13, %c0_14] : memref<1x16x16x128xbf16, #tpu.memory_space<vmem>>, vector<1x16x16x128xbf16>
    %7 = vector.shape_cast %6 : vector<1x16x16x128xbf16> to vector<16x16x128xbf16>
    %8 = arith.extf %7 : vector<16x16x128xbf16> to vector<16x16x128xf32>
    %c0_15 = arith.constant 0 : index
    %c0_16 = arith.constant 0 : index
    %c0_17 = arith.constant 0 : index
    %9 = vector.load %arg2[%c0_15, %c0_16, %c0_17] : memref<1x1x128xf32, #tpu.memory_space<vmem>>, vector<1x1x128xf32>
    %10 = vector.broadcast %9 : vector<1x1x128xf32> to vector<16x16x128xf32>
    %11 = arith.mulf %8, %10 : vector<16x16x128xf32>
    %c0_18 = arith.constant 0 : index
    %c0_19 = arith.constant 0 : index
    %c0_20 = arith.constant 0 : index
    %12 = vector.load %arg3[%c0_18, %c0_19, %c0_20] : memref<1x1x128xf32, #tpu.memory_space<vmem>>, vector<1x1x128xf32>
    %13 = vector.broadcast %12 : vector<1x1x128xf32> to vector<16x16x128xf32>
    %14 = arith.addf %11, %13 : vector<16x16x128xf32>
    %15 = arith.truncf %14 : vector<16x16x128xf32> to vector<16x16x128xbf16>
    %c1 = arith.constant 1 : index
    %c1_21 = arith.constant 1 : index
    %c0_22 = arith.constant 0 : index
    %16 = vector.load %arg8[%c1, %c1_21, %c0_22] : memref<18x18x128xbf16, #tpu.memory_space<vmem>>, vector<16x16x128xbf16>
    tpu.vector_store %arg8[%c1, %c1_21, %c0_22], %15 {strides = array<i32>} : memref<18x18x128xbf16, #tpu.memory_space<vmem>>, vector<16x16x128xbf16>,
    %c0_23 = arith.constant 0 : index
    %c0_24 = arith.constant 0 : index
    %c0_25 = arith.constant 0 : index
    %17 = vector.load %arg8[%c0_23, %c0_24, %c0_25] : memref<18x18x128xbf16, #tpu.memory_space<vmem>>, vector<16x16x128xbf16>
    %18 = vector.shape_cast %17 : vector<16x16x128xbf16> to vector<256x128xbf16>
    %c0_26 = arith.constant 0 : index
    %c0_27 = arith.constant 0 : index
    %19 = vector.load %arg9[%c0_26, %c0_27] : memref<256x1152xbf16, #tpu.memory_space<vmem>>, vector<256x128xbf16>
    tpu.vector_store %arg9[%c0_26, %c0_27], %18 {strides = array<i32>} : memref<256x1152xbf16, #tpu.memory_space<vmem>>, vector<256x128xbf16>,
    %c0_28 = arith.constant 0 : index
    %c1_29 = arith.constant 1 : index
    %c0_30 = arith.constant 0 : index
    %20 = vector.load %arg8[%c0_28, %c1_29, %c0_30] : memref<18x18x128xbf16, #tpu.memory_space<vmem>>, vector<16x16x128xbf16>
    %21 = vector.shape_cast %20 : vector<16x16x128xbf16> to vector<256x128xbf16>
    %c0_31 = arith.constant 0 : index
    %c128 = arith.constant 128 : index
    %22 = vector.load %arg9[%c0_31, %c128] : memref<256x1152xbf16, #tpu.memory_space<vmem>>, vector<256x128xbf16>
    tpu.vector_store %arg9[%c0_31, %c128], %21 {strides = array<i32>} : memref<256x1152xbf16, #tpu.memory_space<vmem>>, vector<256x128xbf16>,
    %c0_32 = arith.constant 0 : index
    %c2 = arith.constant 2 : index
    %c0_33 = arith.constant 0 : index
    %23 = vector.load %arg8[%c0_32, %c2, %c0_33] : memref<18x18x128xbf16, #tpu.memory_space<vmem>>, vector<16x16x128xbf16>
    %24 = vector.shape_cast %23 : vector<16x16x128xbf16> to vector<256x128xbf16>
    %c0_34 = arith.constant 0 : index
    %c256 = arith.constant 256 : index
    %25 = vector.load %arg9[%c0_34, %c256] : memref<256x1152xbf16, #tpu.memory_space<vmem>>, vector<256x128xbf16>
    tpu.vector_store %arg9[%c0_34, %c256], %24 {strides = array<i32>} : memref<256x1152xbf16, #tpu.memory_space<vmem>>, vector<256x128xbf16>,
    %c1_35 = arith.constant 1 : index
    %c0_36 = arith.constant 0 : index
    %c0_37 = arith.constant 0 : index
    %26 = vector.load %arg8[%c1_35, %c0_36, %c0_37] : memref<18x18x128xbf16, #tpu.memory_space<vmem>>, vector<16x16x128xbf16>
    %27 = vector.shape_cast %26 : vector<16x16x128xbf16> to vector<256x128xbf16>
    %c0_38 = arith.constant 0 : index
    %c384 = arith.constant 384 : index
    %28 = vector.load %arg9[%c0_38, %c384] : memref<256x1152xbf16, #tpu.memory_space<vmem>>, vector<256x128xbf16>
    tpu.vector_store %arg9[%c0_38, %c384], %27 {strides = array<i32>} : memref<256x1152xbf16, #tpu.memory_space<vmem>>, vector<256x128xbf16>,
    %c1_39 = arith.constant 1 : index
    %c1_40 = arith.constant 1 : index
    %c0_41 = arith.constant 0 : index
    %29 = vector.load %arg8[%c1_39, %c1_40, %c0_41] : memref<18x18x128xbf16, #tpu.memory_space<vmem>>, vector<16x16x128xbf16>
    %30 = vector.shape_cast %29 : vector<16x16x128xbf16> to vector<256x128xbf16>
    %c0_42 = arith.constant 0 : index
    %c512 = arith.constant 512 : index
    %31 = vector.load %arg9[%c0_42, %c512] : memref<256x1152xbf16, #tpu.memory_space<vmem>>, vector<256x128xbf16>
    tpu.vector_store %arg9[%c0_42, %c512], %30 {strides = array<i32>} : memref<256x1152xbf16, #tpu.memory_space<vmem>>, vector<256x128xbf16>,
    %c1_43 = arith.constant 1 : index
    %c2_44 = arith.constant 2 : index
    %c0_45 = arith.constant 0 : index
    %32 = vector.load %arg8[%c1_43, %c2_44, %c0_45] : memref<18x18x128xbf16, #tpu.memory_space<vmem>>, vector<16x16x128xbf16>
    %33 = vector.shape_cast %32 : vector<16x16x128xbf16> to vector<256x128xbf16>
    %c0_46 = arith.constant 0 : index
    %c640 = arith.constant 640 : index
    %34 = vector.load %arg9[%c0_46, %c640] : memref<256x1152xbf16, #tpu.memory_space<vmem>>, vector<256x128xbf16>
    tpu.vector_store %arg9[%c0_46, %c640], %33 {strides = array<i32>} : memref<256x1152xbf16, #tpu.memory_space<vmem>>, vector<256x128xbf16>,
    %c2_47 = arith.constant 2 : index
    %c0_48 = arith.constant 0 : index
    %c0_49 = arith.constant 0 : index
    %35 = vector.load %arg8[%c2_47, %c0_48, %c0_49] : memref<18x18x128xbf16, #tpu.memory_space<vmem>>, vector<16x16x128xbf16>
    %36 = vector.shape_cast %35 : vector<16x16x128xbf16> to vector<256x128xbf16>
    %c0_50 = arith.constant 0 : index
    %c768 = arith.constant 768 : index
    %37 = vector.load %arg9[%c0_50, %c768] : memref<256x1152xbf16, #tpu.memory_space<vmem>>, vector<256x128xbf16>
    tpu.vector_store %arg9[%c0_50, %c768], %36 {strides = array<i32>} : memref<256x1152xbf16, #tpu.memory_space<vmem>>, vector<256x128xbf16>,
    %c2_51 = arith.constant 2 : index
    %c1_52 = arith.constant 1 : index
    %c0_53 = arith.constant 0 : index
    %38 = vector.load %arg8[%c2_51, %c1_52, %c0_53] : memref<18x18x128xbf16, #tpu.memory_space<vmem>>, vector<16x16x128xbf16>
    %39 = vector.shape_cast %38 : vector<16x16x128xbf16> to vector<256x128xbf16>
    %c0_54 = arith.constant 0 : index
    %c896 = arith.constant 896 : index
    %40 = vector.load %arg9[%c0_54, %c896] : memref<256x1152xbf16, #tpu.memory_space<vmem>>, vector<256x128xbf16>
    tpu.vector_store %arg9[%c0_54, %c896], %39 {strides = array<i32>} : memref<256x1152xbf16, #tpu.memory_space<vmem>>, vector<256x128xbf16>,
    %c2_55 = arith.constant 2 : index
    %c2_56 = arith.constant 2 : index
    %c0_57 = arith.constant 0 : index
    %41 = vector.load %arg8[%c2_55, %c2_56, %c0_57] : memref<18x18x128xbf16, #tpu.memory_space<vmem>>, vector<16x16x128xbf16>
    %42 = vector.shape_cast %41 : vector<16x16x128xbf16> to vector<256x128xbf16>
    %c0_58 = arith.constant 0 : index
    %c1024 = arith.constant 1024 : index
    %43 = vector.load %arg9[%c0_58, %c1024] : memref<256x1152xbf16, #tpu.memory_space<vmem>>, vector<256x128xbf16>
    tpu.vector_store %arg9[%c0_58, %c1024], %42 {strides = array<i32>} : memref<256x1152xbf16, #tpu.memory_space<vmem>>, vector<256x128xbf16>,
    %c0_59 = arith.constant 0 : index
    %c0_60 = arith.constant 0 : index
    %44 = vector.load %arg9[%c0_59, %c0_60] : memref<256x1152xbf16, #tpu.memory_space<vmem>>, vector<256x1152xbf16>
    %c0_61 = arith.constant 0 : index
    %c0_62 = arith.constant 0 : index
    %45 = vector.load %arg4[%c0_61, %c0_62] : memref<1152x128xbf16, #tpu.memory_space<vmem>>, vector<1152x128xbf16>
    %cst_63 = arith.constant dense<0.000000e+00> : vector<256x128xf32>
    %46 = tpu.matmul %44, %45, %cst_63 {dimension_numbers = #tpu.dot_dimension_numbers<[1], [0], [0], [1], [0, 0, 1, 1], [], []>} : vector<256x1152xbf16>, vector<1152x128xbf16>, vector<256x128xf32> -> vector<256x128xf32>
    %c0_64 = arith.constant 0 : index
    %c0_65 = arith.constant 0 : index
    %47 = vector.load %arg5[%c0_64, %c0_65] : memref<1x128xf32, #tpu.memory_space<vmem>>, vector<1x128xf32>
    %48 = vector.broadcast %47 : vector<1x128xf32> to vector<256x128xf32>
    %49 = arith.addf %46, %48 : vector<256x128xf32>
    %cst_66 = arith.constant 0.000000e+00 : f32
    %50 = vector.broadcast %cst_66 : f32 to vector<256x128xf32>
    %51 = arith.maximumf %49, %50 : vector<256x128xf32>
    %cst_67 = arith.constant dense<0.000000e+00> : vector<128xf32>
    %52 = vector.multi_reduction <add>, %51, %cst_67 [0] : vector<256x128xf32> to vector<128xf32>
    %53 = vector.shape_cast %52 : vector<128xf32> to vector<1x128xf32>
    %54 = arith.mulf %51, %51 : vector<256x128xf32>
    %cst_68 = arith.constant dense<0.000000e+00> : vector<128xf32>
    %55 = vector.multi_reduction <add>, %54, %cst_68 [0] : vector<256x128xf32> to vector<128xf32>
    %56 = vector.shape_cast %55 : vector<128xf32> to vector<1x128xf32>
    %57 = tpu.concatenate %53, %56 in 0 : vector<1x128xf32>, vector<1x128xf32> -> vector<2x128xf32>
    %c0_69 = arith.constant 0 : index
    %c0_70 = arith.constant 0 : index
    %c0_71 = arith.constant 0 : index
    %58 = vector.load %arg7[%c0_69, %c0_70, %c0_71] : memref<1x2x128xf32, #tpu.memory_space<vmem>>, vector<1x2x128xf32>
    %59 = vector.shape_cast %58 : vector<1x2x128xf32> to vector<2x128xf32>
    %60 = vector.shape_cast %57 : vector<2x128xf32> to vector<1x2x128xf32>
    tpu.vector_store %arg7[%c0_69, %c0_70, %c0_71], %60 {strides = array<i32>} : memref<1x2x128xf32, #tpu.memory_space<vmem>>, vector<1x2x128xf32>,
    %61 = vector.shape_cast %51 : vector<256x128xf32> to vector<16x16x128xf32>
    %62 = arith.truncf %61 : vector<16x16x128xf32> to vector<16x16x128xbf16>
    %c0_72 = arith.constant 0 : index
    %c0_73 = arith.constant 0 : index
    %c0_74 = arith.constant 0 : index
    %c0_75 = arith.constant 0 : index
    %63 = vector.load %arg6[%c0_72, %c0_73, %c0_74, %c0_75] : memref<1x16x16x128xbf16, #tpu.memory_space<vmem>>, vector<1x16x16x128xbf16>
    %64 = vector.shape_cast %63 : vector<1x16x16x128xbf16> to vector<16x16x128xbf16>
    %65 = vector.shape_cast %62 : vector<16x16x128xbf16> to vector<1x16x16x128xbf16>
    tpu.vector_store %arg6[%c0_72, %c0_73, %c0_74, %c0_75], %65 {strides = array<i32>} : memref<1x16x16x128xbf16, #tpu.memory_space<vmem>>, vector<1x16x16x128xbf16>,
    return
  }
  func.func @transform_0(%arg0: i32) -> (i32, i32, i32, i32) {
    %c0_i32 = arith.constant 0 : i32
    %c0_i32_0 = arith.constant 0 : i32
    %c0_i32_1 = arith.constant 0 : i32
    %c0_i32_2 = arith.constant 0 : i32
    return %arg0, %c0_i32, %c0_i32_0, %c0_i32_1 : i32, i32, i32, i32
  }
  func.func @transform_1(%arg0: i32) -> (i32, i32, i32) {
    %c0_i32 = arith.constant 0 : i32
    %c0_i32_0 = arith.constant 0 : i32
    %c0_i32_1 = arith.constant 0 : i32
    %c0_i32_2 = arith.constant 0 : i32
    return %c0_i32, %c0_i32_0, %c0_i32_1 : i32, i32, i32
  }
  func.func @transform_2(%arg0: i32) -> (i32, i32, i32) {
    %c0_i32 = arith.constant 0 : i32
    %c0_i32_0 = arith.constant 0 : i32
    %c0_i32_1 = arith.constant 0 : i32
    %c0_i32_2 = arith.constant 0 : i32
    return %c0_i32, %c0_i32_0, %c0_i32_1 : i32, i32, i32
  }
  func.func @transform_3(%arg0: i32) -> (i32, i32) {
    %c0_i32 = arith.constant 0 : i32
    %c0_i32_0 = arith.constant 0 : i32
    %c0_i32_1 = arith.constant 0 : i32
    return %c0_i32, %c0_i32_0 : i32, i32
  }
  func.func @transform_4(%arg0: i32) -> (i32, i32) {
    %c0_i32 = arith.constant 0 : i32
    %c0_i32_0 = arith.constant 0 : i32
    %c0_i32_1 = arith.constant 0 : i32
    return %c0_i32, %c0_i32_0 : i32, i32
  }
  func.func @transform_5(%arg0: i32) -> (i32, i32, i32, i32) {
    %c0_i32 = arith.constant 0 : i32
    %c0_i32_0 = arith.constant 0 : i32
    %c0_i32_1 = arith.constant 0 : i32
    %c0_i32_2 = arith.constant 0 : i32
    return %arg0, %c0_i32, %c0_i32_0, %c0_i32_1 : i32, i32, i32, i32
  }
  func.func @transform_6(%arg0: i32) -> (i32, i32, i32) {
    %c0_i32 = arith.constant 0 : i32
    %c0_i32_0 = arith.constant 0 : i32
    %c0_i32_1 = arith.constant 0 : i32
    return %arg0, %c0_i32, %c0_i32_0 : i32, i32, i32
  }
}

</mosaic_0001>

<bundles_post_ra>
// kernel: up_forward.2
= control target key start
LH: loop header
LB: loop body
LE: loop exit
PB: predicated region body
PF: predicated region fallthrough
CT: control target
= control target key end

     0   :  { %s7450_s18 = smov 0   ;;  %s9866_s0 = inlined_call_operand.vmem [shape: bf16[2,16,16,4], index: 0, kind: input, shape index: {}]   ;;  %s9867_s1 = inlined_call_operand.vmem [shape: bf16[2,16,16,4], index: 1, kind: input, shape index: {}]   ;;  %s9868_s2 = inlined_call_operand.vmem [shape: bf16[1152,128], index: 2, kind: input, shape index: {}]   ;;  %s9869_s3 = inlined_call_operand.vmem [shape: f32[1,128], index: 3, kind: input, shape index: {}]   ;;  %s9870_s4 = inlined_call_operand.vmem [shape: bf16[2,16,16,128], index: 4, kind: output, shape index: {0}]   ;;  %s9871_s5 = inlined_call_operand.vmem [shape: f32[2,2,128], index: 5, kind: output, shape index: {1}]  }
   0x1 LB: > { %s6301_s19 = sadd.s32 4294967295, %s7416_s18   ;;  %p6305_p0 = scmp.ge.s32.totalorder %s7416_s18, 1  ;;  %s7416_s18 = sphi %s7450_s18, %s16_s18  }
   0x2   : > { %p200_p1 = scmp.lt.s32.totalorder %s7416_s18, 3 }
   0x4   : > { %p201_p2 = pnand %p6305_p0, %p200_p1 }
   0x6   : > { %204 = sbr.rel (%p201_p2) target bundleno = 767 (0x2ff), region = 36 }
   0xd   : > { %p237_p3 = scmp.lt.s32.totalorder %s6301_s19, 1  ;;  %v7288_v0 = vld [vmem:[%s9868_s2 + $0x40] sm:$0xff]   ;;  %v7290_v2 = vld [vmem:[%s9868_s2 + $0x48] sm:$0xff]   ;;  %vm265_vm0 = vsmask.f32 256  ;;  %s7418_s7 = smov 4  }
   0xe   : > { %v7289_v1 = vld [vmem:[%s9868_s2] sm:$0xff]   ;;  %6742 = vmatprep.subr.bf16.mxu0 %v7288_v0  ;;  %7262 = vmatprep.subr.bf16.mxu1 %v7288_v0  ;;  %v7291_v3 = vld [vmem:[%s9868_s2 + $0x8] sm:$0xff]   ;;  %vm527_vm1 = vsmask.f32 4368  ;;  %v7292_v31 = vld [vmem:[%s9868_s2 + $0x50] sm:$0xff]   ;;  %vm264_vm4 = vcmask 1040384  }
   0xf   : > { %s9959_s19 = smov (!%p237_p3, %s6301_s19), 1  ;;  %6743 = vmatpush3.bf16.msra.mxu0 %v7289_v1  ;;  %7270 = vmatpush3.bf16.msra.mxu1 %v7289_v1  ;;  %vm7493_vm2 = vmor %vm265_vm0, %vm527_vm1  ;;  %v7293_v37 = vld [vmem:[%s9868_s2 + $0x10] sm:$0xff]   ;;  %v7294_v39 = vld [vmem:[%s9868_s2 + $0x58] sm:$0xff]   ;;  %vm321_vm3 = vsmask.f32 7938  ;;  %vm385_vm5 = vcmask 1040448  }
  0x10   : > { %s7467_s24 = sshll.u32 %s9959_s19, 7  ;;  %6744 = vmatprep.subr.bf16.mxu0 %v7290_v2  ;;  %7263 = vmatprep.subr.bf16.mxu1 %v7290_v2  ;;  %v7295_v41 = vld [vmem:[%s9868_s2 + $0x18] sm:$0xff]   ;;  %v7296_v51 = vld [vmem:[%s9868_s2 + $0x60] sm:$0xff]   ;;  %v7298_v63 = vld [vmem:[%s9868_s2 + $0x68] sm:$0xff]   ;;  %vm856_vm8 = vcmask 24576   ;;  %vm378_vm9 = vcmask 1043520  }
  0x11   : > { %s7476_s29 = scalar_lea.vmem %s9867_s1, %s7467_s24  ;;  %v7297_v54 = vld [vmem:[%s9868_s2 + $0x20] sm:$0xff]   ;;  %s7678_s20 = scalar_lea.vmem %s9866_s0, %s7467_s24  ;;  %vm7705_vm6 = vmand %vm264_vm4, %vm321_vm3  ;;  %vm849_vm11 = vcmask 27648   ;;  %vm1723_vm15 = vsmask.f32 3328  ;;  %vm1724_vm1 = vsmask.f32 7440 }
  0x12   : > { %v989_v4 = vld [vmem:[%s7476_s29 + $0x5c] sm:$0xf]  ;;  %v988_v5 = vld [vmem:[%s7476_s29 + $0x58] sm:$0xf]  ;;  %v990_v6 = vld [vmem:[%s7476_s29 + $0x60] sm:$0xf]  ;;  %s9800_s9 = scalar_lea.vmem %s9870_s4, %s7467_s24 }
  0x13   : > { %v1194_v7 = vshrl.u32 %v989_v4, 16  ;;  %v1186_v8 = vshrl.u32 %v988_v5, 16  ;;  %v1189_v9 = vshll.u32 %v988_v5, 16  ;;  %v966_v10 = vld [vmem:[%s7476_s29] sm:$0xf]  ;;  %v1197_v11 = vshll.u32 %v989_v4, 16  ;;  %6745 = vmatpush3.bf16.msra.mxu0 %v7291_v3  ;;  %7271 = vmatpush3.bf16.msra.mxu1 %v7291_v3  ;;  %vm7715_vm7 = vmand %vm264_vm4, %vm265_vm0 }
  0x14   : > { %v1203_v12 = vshrl.u32 %v990_v6, 16  ;;  %v1206_v13 = vshll.u32 %v990_v6, 16  ;;  %v999_v14 = vshrl.u32 %v966_v10, 16  ;;  %v967_v15 = vld [vmem:[%s7476_s29 + $0x4] sm:$0xf]  ;;  %v1002_v18 = vshll.u32 %v966_v10, 16  ;;  %6746 = vmatprep.subr.bf16.mxu0 %v7292_v31  ;;  %7264 = vmatprep.subr.bf16.mxu1 %v7292_v31  ;;  %vm7783_vm10 = vmand %vm385_vm5, %vm265_vm0 }
  0x15   : > { %v1196_v16 = vrot.slane %v1194_v7, 7  ;;  %v1188_v17 = vrot.slane %v1186_v8, 7  ;;  %v1007_v19 = vshrl.u32 %v967_v15, 16  ;;  %v991_v20 = vld [vmem:[%s7476_s29 + $0x64] sm:$0xf]  ;;  %v1010_v35 = vshll.u32 %v967_v15, 16  ;;  %vm7801_vm12 = vmand %vm378_vm9, %vm321_vm3 }
  0x16   : > { %v1205_v21 = vrot.slane %v1203_v12, 7  ;;  %v1001_v22 = vrot.slane %v999_v14, 7  ;;  %v1211_v23 = vshrl.u32 %v991_v20, 16  ;;  %v1214_v34 = vshll.u32 %v991_v20, 16  ;;  %v968_v36 = vld [vmem:[%s7476_s29 + $0x8] sm:$0xf]  ;;  %vm7890_vm13 = vmand %vm856_vm8, %vm265_vm0 }
  0x17   : > { %v1201_v24 = vrot.slane %v1196_v16, 4  ;;  %v1191_v25 = vor.u32 %v1189_v9, %v1188_v17  ;;  %v1199_v26 = vor.u32 %v1197_v11, %v1196_v16  ;;  %v1192_v27 = vrot.slane %v1188_v17, 4  ;;  %v969_v38 = vld [vmem:[%s7476_s29 + $0xc] sm:$0xf]  ;;  %v992_v40 = vld [vmem:[%s7476_s29 + $0x68] sm:$0xf]  ;;  %6747 = vmatpush3.bf16.msra.mxu0 %v7293_v37  ;;  %7272 = vmatpush3.bf16.msra.mxu1 %v7293_v37  ;;  %vm7905_vm14 = vmand %vm849_vm11, %vm321_vm3 }
  0x18   : > { %v1208_v28 = vor.u32 %v1206_v13, %v1205_v21  ;;  %v1004_v29 = vor.u32 %v1002_v18, %v1001_v22  ;;  %v1009_v30 = vrot.slane %v1007_v19, 7  ;;  %v7497_v33 = vrot.slane %v1211_v23, 7  ;;  %v993_v46 = vld [vmem:[%s7476_s29 + $0x6c] sm:$0xf]  ;;  %6748 = vmatprep.subr.bf16.mxu0 %v7294_v39  ;;  %7265 = vmatprep.subr.bf16.mxu1 %v7294_v39  ;;  %v7526_v57 = vld [vmem:[%s7476_s29 + $0x10] sm:$0xf]  ;;  %vm8043_vm5 = vmor %vm1723_vm15, %vm1724_vm1 }
  0x19   : > { %1340 = vrot.lane.b32.xlu1 %v1201_v24, %s7418_s7  ;;  %1336 = vrot.lane.b32.xlu0 %v1191_v25, %s7418_s7  ;;  %v1200_v42 = vsel %vm7493_vm2, %v1192_v27, %v1199_v26  ;;  %v1209_v44 = vrot.slane %v1205_v21, 4  ;;  %v1016_v45 = vshrl.u32 %v968_v36, 16  ;;  %v1005_v48 = vrot.slane %v1001_v22, 4  ;;  %v7535_v62 = vld [vmem:[%s7476_s29 + $0x70] sm:$0xf]  ;;  %v7299_v5 = vld [vmem:[%s9868_s2 + $0x28] sm:$0xff]  }
  0x1a   : > { %v1014_v43 = vrot.slane %v1009_v30, 4  ;;  %v1216_v47 = vor.u32 %v1214_v34, %v7497_v33  ;;  %v1012_v49 = vor.u32 %v1010_v35, %v1009_v30  ;;  %v1024_v50 = vshrl.u32 %v969_v38, 16  ;;  %v7541_v0 = vld [vmem:[%s7476_s29 + $0x14] sm:$0xf]  ;;  %v7563_v18 = vld [vmem:[%s7476_s29 + $0x18] sm:$0xf] }
  0x1b   : > { %v1220_v52 = vshrl.u32 %v992_v40, 16  ;;  %v1228_v53 = vshrl.u32 %v993_v46, 16  ;;  %6749 = vmatpush3.bf16.msra.mxu0 %v7295_v41  ;;  %7273 = vmatpush3.bf16.msra.mxu1 %v7295_v41  ;;  %v1018_v55 = vrot.slane %v1016_v45, 7  ;;  %v1019_v56 = vshll.u32 %v968_v36, 16  ;;  %v7300_v13 = vld [vmem:[%s9868_s2 + $0x70] sm:$0xff]   ;;  %v7302_v31 = vld [vmem:[%s9868_s2 + $0x78] sm:$0xff]  }
  0x1c   : > { %v1217_v58 = vsel %vm7493_vm2, %v1209_v44, %v1216_v47  ;;  %v1013_v59 = vsel %vm7493_vm2, %v1005_v48, %v1012_v49  ;;  %v7532_v60 = vrot.slane %v1024_v50, 7  ;;  %v1027_v61 = vshll.u32 %v969_v38, 16  ;;  %6750 = vmatprep.subr.bf16.mxu0 %v7296_v51  ;;  %7266 = vmatprep.subr.bf16.mxu1 %v7296_v51  ;;  %v7559_v14 = vld [vmem:[%s7476_s29 + $0x74] sm:$0xf]  ;;  %v7566_v19 = vld [vmem:[%s7476_s29 + $0x1c] sm:$0xf] }
  0x1d   : > { %1342 = vrot.lane.b32.xlu0 %v1208_v28, %s7418_s7  ;;  %1270 = vrot.lane.b32.xlu1 %v1004_v29, %s7418_s7  ;;  %v1222_v1 = vrot.slane %v1220_v52, 7  ;;  %v1223_v2 = vshll.u32 %v992_v40, 16  ;;  %v7543_v3 = vrot.slane %v1228_v53, 7  ;;  %v1231_v4 = vshll.u32 %v993_v46, 16  ;;  %v7301_v20 = vld [vmem:[%s9868_s2 + $0x30] sm:$0xff]   ;;  %v7303_v38 = vld [vmem:[%s9868_s2 + $0x38] sm:$0xff]  }
  0x1e   : > { %v1218_v6 = vrot.slane %v7497_v33, 4  ;;  %v1021_v7 = vor.u32 %v1019_v56, %v1018_v55  ;;  %v1033_v8 = vshrl.u32 %v7526_v57, 16  ;;  %v1237_v9 = vshrl.u32 %v7535_v62, 16  ;;  %v7580_v25 = vld [vmem:[%s7476_s29 + $0x20] sm:$0xf]  ;;  %s6312_s24 = sshll.u32 %s9959_s19, 1 }
  0x1f   : > { %6751 = vmatpush3.bf16.msra.mxu0 %v7297_v54  ;;  %7274 = vmatpush3.bf16.msra.mxu1 %v7297_v54  ;;  %v1022_v10 = vrot.slane %v1018_v55, 4  ;;  %v1029_v11 = vor.u32 %v1027_v61, %v7532_v60  ;;  %v1041_v12 = vshrl.u32 %v7541_v0, 16  ;;  %v1225_v15 = vor.u32 %v1223_v2, %v1222_v1  ;;  %v7589_v30 = vld [vmem:[%s7476_s29 + $0x28] sm:$0xf]  ;;  %v7596_v34 = vld [vmem:[%s7476_s29 + $0x24] sm:$0xf]  ;;  %s255_s12 = scalar_lea.vmem %s9871_s5, %s6312_s24 }
  0x20   : > { %6752 = vmatprep.subr.bf16.mxu0 %v7298_v63  ;;  %7267 = vmatprep.subr.bf16.mxu1 %v7298_v63  ;;  %v1226_v16 = vrot.slane %v1222_v1, 4  ;;  %v1233_v17 = vor.u32 %v1231_v4, %v7543_v3  ;;  %v7573_v21 = vrot.slane %v1033_v8, 7  ;;  %v1036_v22 = vshll.u32 %v7526_v57, 16  ;;  %v7599_v35 = vld [vmem:[%s7476_s29 + $0x30] sm:$0xf]  ;;  %v7307_v49 = vld [vmem:[%s9868_s2 + $0xc0] sm:$0xff]  }
  0x21   : > { %1338 = vrot.lane.b32.xlu0 %v1200_v42, %s7418_s7  ;;  %1274 = vrot.lane.b32.xlu1 %v1014_v43, %s7418_s7  ;;  %v7576_v23 = vrot.slane %v1237_v9, 7  ;;  %v1240_v24 = vshll.u32 %v7535_v62, 16  ;;  %v1030_v26 = vsel %vm7493_vm2, %v1022_v10, %v1029_v11  ;;  %v7584_v27 = vrot.slane %v1041_v12, 7  ;;  %v7614_v43 = vld [vmem:[%s7476_s29 + $0x2c] sm:$0xf]  ;;  %v7308_v50 = vld [vmem:[%s9868_s2 + $0x140] sm:$0xff]  }
  0x22   : > { %v1044_v28 = vshll.u32 %v7541_v0, 16  ;;  %v1245_v29 = vshrl.u32 %v7559_v14, 16  ;;  %v1031_v33 = vrot.slane %v7532_v60, 4  ;;  %v1234_v36 = vsel %vm7493_vm2, %v1226_v16, %v1233_v17  ;;  %v7624_v48 = vld [vmem:[%s7476_s29 + $0x34] sm:$0xf] }
  0x23   : > { %6753 = vmatpush3.bf16.msra.mxu0 %v7299_v5  ;;  %7275 = vmatpush3.bf16.msra.mxu1 %v7299_v5  ;;  %v1235_v37 = vrot.slane %v7543_v3, 4  ;;  %v1038_v39 = vor.u32 %v1036_v22, %v7573_v21  ;;  %v1050_v40 = vshrl.u32 %v7563_v18, 16  ;;  %v1058_v41 = vshrl.u32 %v7566_v19, 16  ;;  %v7637_v55 = vld [vmem:[%s7476_s29 + $0x38] sm:$0xf] }
  0x24   : > { %6754 = vmatprep.subr.bf16.mxu0 %v7300_v13  ;;  %7268 = vmatprep.subr.bf16.mxu1 %v7300_v13  ;;  %v1067_v42 = vshrl.u32 %v7580_v25, 16  ;;  %v7617_v44 = vor.u32 %v1240_v24, %v7576_v23  ;;  %v1039_v45 = vrot.slane %v7573_v21, 4  ;;  %v1046_v46 = vor.u32 %v1044_v28, %v7584_v27  ;;  %v7644_v60 = vld [vmem:[%s7476_s29 + $0x3c] sm:$0xf]  ;;  %v7656_v1 = vld [vmem:[%s7476_s29 + $0x40] sm:$0xf] }
  0x25   : > { %1344 = vrot.lane.b32.xlu0 %v1217_v58, %s7418_s7  ;;  %1272 = vrot.lane.b32.xlu1 %v1013_v59, %s7418_s7  ;;  %v7621_v47 = vrot.slane %v1245_v29, 7  ;;  %v1243_v51 = vrot.slane %v7576_v23, 4  ;;  %v1248_v52 = vshll.u32 %v7559_v14, 16  ;;  %v1048_v53 = vrot.slane %v7584_v27, 4  ;;  %v7696_v28 = vld [vmem:[%s7678_s20 + $0x5c] sm:$0xf] }
  0x26   : > { %v1084_v54 = vshrl.u32 %v7589_v30, 16  ;;  %v1053_v57 = vshll.u32 %v7563_v18, 16  ;;  %v1075_v58 = vshrl.u32 %v7596_v34, 16  ;;  %v1101_v59 = vshrl.u32 %v7599_v35, 16  ;;  %v303_v29 = vld [vmem:[#allocation2 + $0x90] sm:$0x1] }
  0x27   : > { %6755 = vmatpush3.bf16.msra.mxu0 %v7301_v20  ;;  %7276 = vmatpush3.bf16.msra.mxu1 %v7301_v20  ;;  %v1252_v56 = vrot.slane %v7621_v47, 4  ;;  %v7648_v61 = vrot.slane %v1050_v40, 7  ;;  %v7650_v62 = vrot.slane %v1058_v41, 7  ;;  %v1061_v63 = vshll.u32 %v7566_v19, 16  ;;  %v359_v19 = vld [vmem:[#allocation2 + $0x98] sm:$0x1] }
  0x28   : > { %6756 = vmatprep.subr.bf16.mxu0 %v7302_v31  ;;  %7269 = vmatprep.subr.bf16.mxu1 %v7302_v31  ;;  %v7653_v0 = vrot.slane %v1067_v42, 7  ;;  %v1070_v2 = vshll.u32 %v7580_v25, 16  ;;  %v1078_v3 = vshll.u32 %v7596_v34, 16  ;;  %v1092_v4 = vshrl.u32 %v7614_v43, 16 }
  0x29   : > { %1346 = vrot.lane.b32.xlu0 %v1218_v6, %s7418_s7  ;;  %1276 = vrot.lane.b32.xlu1 %v1021_v7, %s7418_s7  ;;  %v1118_v5 = vshrl.u32 %v7637_v55, 16  ;;  %v1056_v6 = vrot.slane %v7648_v61, 4  ;;  %v1065_v7 = vrot.slane %v7650_v62, 4  ;;  %v7664_v8 = vrot.slane %v1084_v54, 7 }
  0x2a   : > { %v1109_v9 = vshrl.u32 %v7624_v48, 16  ;;  %v1047_v10 = vsel %vm7493_vm2, %v1039_v45, %v1046_v46  ;;  %v1250_v11 = vor.u32 %v1248_v52, %v7621_v47  ;;  %v7670_v12 = vrot.slane %v1075_v58, 7  ;;  %v7720_v46 = vld [vmem:[%s7678_s20 + $0x58] sm:$0xf]  ;;  %v306_v58 = vld [vmem:[#allocation2 + $0x9c] sm:$0x1] }
  0x2b   : > { %6757 = vmatpush3.bf16.msra.mxu0 %v7303_v38  ;;  %7277 = vmatpush3.bf16.msra.mxu1 %v7303_v38  ;;  %v7672_v13 = vrot.slane %v1101_v59, 7  ;;  %v1073_v14 = vrot.slane %v7653_v0, 4  ;;  %v1095_v16 = vshll.u32 %v7614_v43, 16  ;;  %v1126_v17 = vshrl.u32 %v7644_v60, 16  ;;  %v7734_v59 = vld [vmem:[%s7678_s20 + $0x60] sm:$0xf] }
  0x2c   : > { %6854 = vmatprep.subr.bf16.mxu1 %v7307_v49  ;;  %6966 = vmatprep.subr.bf16.mxu0 %v7308_v50  ;;  %v1082_v20 = vrot.slane %v7670_v12, 4  ;;  %v7687_v21 = vrot.slane %v1092_v4, 7  ;;  %v7689_v22 = vrot.slane %v1118_v5, 7  ;;  %v1135_v24 = vshrl.u32 %v7656_v1, 16  ;;  %v7838_v5 = vld [vmem:[%s7678_s20 + $0x8] sm:$0xf] }
  0x2d   : > { %1348 = vrot.lane.b32.xlu0 %v1225_v15, %s7418_s7  ;;  %1278 = vrot.lane.b32.xlu1 %v1030_v26, %s7418_s7  ;;  %v1087_v15 = vshll.u32 %v7589_v30, 16  ;;  %v7693_v26 = vld [vmem:[%s7476_s29 + $0x44] sm:$0xf]  ;;  %v1090_v31 = vrot.slane %v7664_v8, 4  ;;  %v9876_v38 = vmov 0  ;;  %v1107_v40 = vrot.slane %v7672_v13, 4 }
  0x2e   : > { %v9877_v38 = vsel %vm7705_vm6, 4294967295, %v9876_v38  ;;  %v1121_v41 = vshll.u32 %v7637_v55, 16  ;;  %v1129_v42 = vshll.u32 %v7644_v60, 16  ;;  %v9879_v45 = vmov 0 }
  0x2f   : > { %9878 = vst [vmem:[#allocation4_spill] sm:$0xff] %v9877_v38  ;;  %v9880_v45 = vsel %vm7715_vm7, 4294967295, %v9879_v45  ;;  %v1251_v49 = vsel %vm7493_vm2, %v1243_v51, %v1250_v11  ;;  %v1063_v50 = vor.u32 %v1061_v63, %v7650_v62  ;;  %v7731_v54 = vrot.slane %v1126_v17, 7  ;;  %v270_v51 = vld [vmem:[#allocation2 + $0xc] sm:$0x1] }
  0x30   : > { %9881 = vst [vmem:[#allocation5_spill] sm:$0xff] %v9880_v45  ;;  %v360_v23 = vsel %vm7705_vm6, 0, %v359_v19  ;;  %v304_v11 = vsel %vm7715_vm7, 0, %v303_v29  ;;  %v7748_v17 = vld [vmem:[%s7678_s20] sm:$0xf]  ;;  %v1080_v29 = vor.u32 %v1078_v3, %v7670_v12  ;;  %v717_v18 = vshrl.u32 %v7720_v46, 16 }
  0x31   : > { %1350 = vrot.lane.b32.xlu0 %v1234_v36, %s7418_s7  ;;  %1280 = vrot.lane.b32.xlu1 %v1031_v33, %s7418_s7  ;;  %v1104_v33 = vshll.u32 %v7599_v35, 16  ;;  %v7700_v36 = vrot.slane %v1109_v9, 7  ;;  %v1143_v9 = vshrl.u32 %v7693_v26, 16  ;;  %361 = vst [vmem:[#allocation2 + $0x98] sm:$0x1] %v360_v23  ;;  %v7759_v23 = vsel %vm7493_vm2, %v1056_v6, %v1063_v50 }
  0x32   : > { %305 = vst [vmem:[#allocation2 + $0x90] sm:$0x1] %v304_v11  ;;  %v326_v19 = vld [vmem:[#allocation2 + $0x14] sm:$0x1]  ;;  %v307_v27 = vsel %vm7715_vm7, 0, %v306_v58  ;;  %v7777_v3 = vrot.slane %v717_v18, 7 }
  0x33   : > { %v7773_v6 = vrot.slane %v1143_v9, 7  ;;  %308 = vst [vmem:[#allocation2 + $0x9c] sm:$0x1] %v307_v27  ;;  %v362_v50 = vld [vmem:[#allocation2 + $0xa4] sm:$0x1]  ;;  %v720_v58 = vshll.u32 %v7720_v46, 16 }
  0x34   : > { %v530_v9 = vshrl.u32 %v7748_v17, 16  ;;  %v728_v47 = vshll.u32 %v7696_v28, 16  ;;  %vm1421_vm8 = vcmask 57376  }
  0x35   : > { %1352 = vrot.lane.b32.xlu0 %v1235_v37, %s7418_s7  ;;  %1282 = vrot.lane.b32.xlu1 %v1038_v39, %s7418_s7  ;;  %v1112_v37 = vshll.u32 %v7624_v48, 16  ;;  %v1099_v39 = vrot.slane %v7687_v21, 4  ;;  %v722_v43 = vor.u32 %v720_v58, %v7777_v3  ;;  %vm8247_vm15 = vmand %vm1421_vm8, %vm265_vm0  ;;  %vm2286_vm0 = vcmask 1042432  }
  0x36   : > { %v7842_v25 = vrot.slane %v530_v9, 7 }
  0x38   : > { %v464_v63 = vld [vmem:[#allocation2 + $0x98] sm:$0x1] }
  0x39   : > { %1354 = vrot.lane.b32.xlu0 %v7617_v44, %s7418_s7  ;;  %1284 = vrot.lane.b32.xlu1 %v1047_v10, %s7418_s7  ;;  %v7737_v44 = vrot.slane %v1135_v24, 7  ;;  %v725_v10 = vshrl.u32 %v7696_v28, 16  ;;  %v1055_v24 = vor.u32 %v1053_v57, %v7648_v61  ;;  %v7767_v57 = vld [vmem:[%s7678_s20 + $0x4] sm:$0xf]  ;;  %v723_v61 = vrot.slane %v7777_v3, 4 }
  0x3a   : > { %v273_v28 = vld [vmem:[#allocation2 + $0x18] sm:$0x1]  ;;  %v538_v52 = vshrl.u32 %v7767_v57, 16  ;;  %v460_v4 = vld [vmem:[#allocation2 + $0x90] sm:$0xf] }
  0x3b   : > { %v7775_v34 = vrot.slane %v725_v10, 7  ;;  %v7790_v10 = vld [vmem:[%s7678_s20 + $0x64] sm:$0xf]  ;;  %v274_v62 = vsel %vm7715_vm7, 0, %v273_v28  ;;  %v1097_v28 = vor.u32 %v1095_v16, %v7687_v21 }
  0x3c   : > { %275 = vst [vmem:[#allocation2 + $0x18] sm:$0x1] %v274_v62 }
  0x3d   : > { %1356 = vrot.lane.b32.xlu0 %v1251_v49, %s7418_s7  ;;  %1286 = vrot.lane.b32.xlu1 %v1048_v53, %s7418_s7  ;;  %v734_v53 = vshrl.u32 %v7734_v59, 16  ;;  %v271_v49 = vsel %vm7715_vm7, 0, %v270_v51  ;;  %v7797_v51 = vld [vmem:[%s7476_s29 + $0x48] sm:$0xf] }
  0x3e   : > { %272 = vst [vmem:[#allocation2 + $0xc] sm:$0x1] %v271_v49  ;;  %v7419_v49 = vmov 0  }
  0x3f   : > { %v7805_v27 = vrot.slane %v734_v53, 7  ;;  %463 = vst.msk [vmem:[#allocation2 + $0x94] sm:$0xf] %vm378_vm9, %v7419_v49  ;;  %257 = vst [vmem:[#allocation2] sm:$0xf] %v7419_v49  ;;  %v1081_v53 = vsel %vm7493_vm2, %v1073_v14, %v1080_v29  ;;  %v461_v14 = vsel %vm7801_vm12, 0, %v460_v4 }
  0x40   : > { %258 = vst [vmem:[#allocation2 + $0x4] sm:$0xf] %v7419_v49  ;;  %259 = vst [vmem:[#allocation2 + $0x8] sm:$0x1] %v7419_v49  ;;  %v7848_v29 = vrot.slane %v538_v52, 7  ;;  %v536_v52 = vrot.slane %v7842_v25, 4 }
  0x41   : > { %1358 = vrot.lane.b32.xlu0 %v1252_v56, %s7418_s7  ;;  %1288 = vrot.lane.b32.xlu1 %v1055_v24, %s7418_s7  ;;  %261 = vst [vmem:[#allocation2 + $0xcc] sm:$0xf] %v7419_v49  ;;  %262 = vst [vmem:[#allocation2 + $0xd0] sm:$0xf] %v7419_v49  ;;  %v327_v56 = vsel %vm7705_vm6, 0, %v326_v19  ;;  %v1072_v24 = vor.u32 %v1070_v2, %v7653_v0  ;;  %v465_v19 = vsel %vm7783_vm10, 0, %v464_v63 }
  0x42   : > { %263 = vst [vmem:[#allocation2 + $0xd4] sm:$0x1] %v7419_v49  ;;  %384 = vst.msk [vmem:[#allocation2 + $0x10] sm:$0xf] %vm378_vm9, %v7419_v49  ;;  %v730_v0 = vor.u32 %v728_v47, %v7775_v34  ;;  %v742_v2 = vshrl.u32 %v7790_v10, 16  ;;  %v541_v4 = vshll.u32 %v7767_v57, 16 }
  0x43   : > { %393 = vst.msk [vmem:[#allocation2 + $0x1c] sm:$0xf] %vm378_vm9, %v7419_v49  ;;  %400 = vst.msk [vmem:[#allocation2 + $0x28] sm:$0xf] %vm378_vm9, %v7419_v49  ;;  %v1152_v47 = vshrl.u32 %v7797_v51, 16  ;;  %v545_v3 = vrot.slane %v7848_v29, 4 }
  0x44   : > { %407 = vst.msk [vmem:[#allocation2 + $0x34] sm:$0xf] %vm378_vm9, %v7419_v49  ;;  %414 = vst.msk [vmem:[#allocation2 + $0x40] sm:$0xf] %vm378_vm9, %v7419_v49  ;;  %v731_v63 = vsel %vm7493_vm2, %v723_v61, %v730_v0  ;;  %v7859_v9 = vrot.slane %v742_v2, 7  ;;  %v737_v61 = vshll.u32 %v7734_v59, 16  ;;  %v543_v0 = vor.u32 %v541_v4, %v7848_v29 }
  0x45   : > { %421 = vst.msk [vmem:[#allocation2 + $0x4c] sm:$0xf] %vm378_vm9, %v7419_v49  ;;  %428 = vst.msk [vmem:[#allocation2 + $0x58] sm:$0xf] %vm378_vm9, %v7419_v49  ;;  %1290 = vrot.lane.b32.xlu0 %v7759_v23, %s7418_s7  ;;  %1292 = vrot.lane.b32.xlu1 %v1065_v7, %s7418_s7  ;;  %v547_v7 = vshrl.u32 %v7838_v5, 16  ;;  %v533_v59 = vshll.u32 %v7748_v17, 16 }
  0x46   : > { %435 = vst.msk [vmem:[#allocation2 + $0x64] sm:$0xf] %vm378_vm9, %v7419_v49  ;;  %442 = vst.msk [vmem:[#allocation2 + $0x70] sm:$0xf] %vm378_vm9, %v7419_v49  ;;  %v544_v17 = vsel %vm7493_vm2, %v536_v52, %v543_v0  ;;  %v390_v12 = vld [vmem:[#allocation2 + $0x18] sm:$0xf] }
  0x47   : > { %449 = vst.msk [vmem:[#allocation2 + $0x7c] sm:$0xf] %vm378_vm9, %v7419_v49  ;;  %456 = vst.msk [vmem:[#allocation2 + $0x88] sm:$0xf] %vm378_vm9, %v7419_v49  ;;  %v749_v35 = vrot.slane %v7859_v9, 4 }
  0x48   : > { %470 = vst.msk [vmem:[#allocation2 + $0xa0] sm:$0xf] %vm378_vm9, %v7419_v49  ;;  %477 = vst.msk [vmem:[#allocation2 + $0xac] sm:$0xf] %vm378_vm9, %v7419_v49 }
  0x49   : > { %484 = vst.msk [vmem:[#allocation2 + $0xb8] sm:$0xf] %vm378_vm9, %v7419_v49  ;;  %491 = vst.msk [vmem:[#allocation2 + $0xc4] sm:$0xf] %vm378_vm9, %v7419_v49  ;;  %v363_v49 = vsel %vm7705_vm6, 0, %v362_v50  ;;  %v740_v50 = vrot.slane %v7805_v27, 4  ;;  %1294 = vrot.lane.b32.xlu0 %v1072_v24, %s7418_s7  ;;  %1296 = vrot.lane.b32.xlu1 %v1081_v53, %s7418_s7 }
  0x4a   : > { %328 = vst [vmem:[#allocation2 + $0x14] sm:$0x1] %v327_v56  ;;  %364 = vst [vmem:[#allocation2 + $0xa4] sm:$0x1] %v363_v49  ;;  %v745_v56 = vshll.u32 %v7790_v10, 16  ;;  %v732_v10 = vrot.slane %v7775_v34, 4  ;;  %v1089_v34 = vor.u32 %v1087_v15, %v7664_v8  ;;  %v7950_v8 = vor.u32 %v1121_v41, %v7689_v22 }
  0x4b   : > { %466 = vst [vmem:[#allocation2 + $0x98] sm:$0x1] %v465_v19  ;;  %462 = vst [vmem:[#allocation2 + $0x90] sm:$0xf] %v461_v14  ;;  %v467_v49 = vld [vmem:[#allocation2 + $0x9c] sm:$0xf] }
  0x4c   : > { %934 = vst.msk [vmem:[#allocation2 + $0x94] sm:$0xf] %vm849_vm11, %v731_v63  ;;  %v468_v23 = vsel %vm7801_vm12, 0, %v467_v49  ;;  %v380_v19 = vld [vmem:[#allocation2 + $0xc] sm:$0xf]  ;;  %v747_v57 = vor.u32 %v745_v56, %v7859_v9  ;;  %v739_v49 = vor.u32 %v737_v61, %v7805_v27  ;;  %v535_v61 = vor.u32 %v533_v59, %v7842_v25 }
  0x4d   : > { %469 = vst [vmem:[#allocation2 + $0x9c] sm:$0xf] %v468_v23  ;;  %v381_v2 = vsel %vm7801_vm12, 0, %v380_v19  ;;  %v309_v14 = vld [vmem:[#allocation2 + $0xa8] sm:$0x1]  ;;  %1298 = vrot.lane.b32.xlu0 %v1082_v20, %s7418_s7  ;;  %1300 = vrot.lane.b32.xlu1 %v1089_v34, %s7418_s7  ;;  %v1106_v25 = vor.u32 %v1104_v33, %v7672_v13  ;;  %vm1414_vm9 = vcmask 60448  }
  0x4e   : > { %v7884_v63 = vld [vmem:[%s7678_s20 + $0x68] sm:$0xf]  ;;  %382 = vst [vmem:[#allocation2 + $0xc] sm:$0xf] %v381_v2  ;;  %v748_v16 = vsel %vm7493_vm2, %v740_v50, %v747_v57  ;;  %v310_v24 = vsel %vm7715_vm7, 0, %v309_v14  ;;  %v7914_v50 = vrot.slane %v547_v7, 7  ;;  %vm8253_vm1 = vmand %vm1414_vm9, %vm321_vm3 }
  0x4f   : > { %v329_v53 = vld [vmem:[#allocation2 + $0x20] sm:$0x1]  ;;  %941 = vst.msk [vmem:[#allocation2 + $0xa0] sm:$0xf] %vm849_vm11, %v748_v16  ;;  %855 = vst.msk [vmem:[#allocation2 + $0x10] sm:$0xf] %vm849_vm11, %v544_v17  ;;  %v1114_v16 = vor.u32 %v1112_v37, %v7700_v36 }
  0x50   : > { %311 = vst [vmem:[#allocation2 + $0xa8] sm:$0x1] %v310_v24  ;;  %v330_v52 = vsel %vm7705_vm6, 0, %v329_v53  ;;  %v751_v23 = vshrl.u32 %v7884_v63, 16  ;;  %v498_v19 = vld [vmem:[%s7678_s20 + $0xc] sm:$0xf] }
  0x51   : > { %v387_v15 = vld [vmem:[#allocation2 + $0x14] sm:$0x1]  ;;  %v471_v58 = vld [vmem:[#allocation2 + $0xa4] sm:$0x1]  ;;  %331 = vst [vmem:[#allocation2 + $0x20] sm:$0x1] %v330_v52  ;;  %1304 = vrot.lane.b32.xlu1 %v1099_v39, %s7418_s7  ;;  %v1115_v21 = vsel %vm7493_vm2, %v1107_v40, %v1114_v16 }
  0x52   : > { %v388_v46 = vsel %vm7783_vm10, 0, %v387_v15  ;;  %v935_v4 = vld [vmem:[#allocation2 + $0x98] sm:$0x1]  ;;  %v472_v62 = vsel %vm7783_vm10, 0, %v471_v58  ;;  %v931_v7 = vld [vmem:[#allocation2 + $0x90] sm:$0xf]  ;;  %v1098_v15 = vsel %vm7493_vm2, %v1090_v31, %v1097_v28 }
  0x53   : > { %389 = vst [vmem:[#allocation2 + $0x14] sm:$0x1] %v388_v46  ;;  %v936_v57 = vsel %vm7890_vm13, %v732_v10, %v935_v4  ;;  %473 = vst [vmem:[#allocation2 + $0xa4] sm:$0x1] %v472_v62  ;;  %v553_v0 = vrot.slane %v7914_v50, 4  ;;  %v555_v2 = vshrl.u32 %v498_v19, 16  ;;  %v932_v27 = vsel %vm7905_vm14, %v722_v43, %v931_v7  ;;  %1302 = vrot.lane.b32.xlu0 %v1098_v15, %s7418_s7 }
  0x54   : > { %v558_v14 = vshll.u32 %v498_v19, 16  ;;  %937 = vst [vmem:[#allocation2 + $0x98] sm:$0x1] %v936_v57  ;;  %v267_v10 = vld [vmem:[#allocation2] sm:$0x1]  ;;  %v391_v37 = vsel %vm7801_vm12, 0, %v390_v12 }
  0x55   : > { %933 = vst [vmem:[#allocation2 + $0x90] sm:$0xf] %v932_v27  ;;  %v7940_v20 = vrot.slane %v555_v2, 7  ;;  %v268_v34 = vsel %vm7715_vm7, 0, %v267_v10  ;;  %v7953_v31 = vld [vmem:[%s7476_s29 + $0x4c] sm:$0xf]  ;;  %1308 = vrot.lane.b32.xlu1 %v1115_v21, %s7418_s7 }
  0x56   : > { %v938_v48 = vld [vmem:[#allocation2 + $0x9c] sm:$0xf]  ;;  %v550_v28 = vshll.u32 %v7838_v5, 16  ;;  %269 = vst [vmem:[#allocation2] sm:$0x1] %v268_v34  ;;  %v754_v55 = vshll.u32 %v7884_v63, 16  ;;  %v1131_v5 = vor.u32 %v1129_v42, %v7731_v54 }
  0x57   : > { %v939_v59 = vsel %vm7905_vm14, %v739_v49, %v938_v48  ;;  %v851_v43 = vld [vmem:[#allocation2 + $0xc] sm:$0xf]  ;;  %392 = vst [vmem:[#allocation2 + $0x18] sm:$0xf] %v391_v37  ;;  %v560_v33 = vor.u32 %v558_v14, %v7940_v20  ;;  %v323_v41 = vld [vmem:[#allocation2 + $0x8] sm:$0x1]  ;;  %1306 = vrot.lane.b32.xlu0 %v1106_v25, %s7418_s7 }
  0x58   : > { %940 = vst [vmem:[#allocation2 + $0x9c] sm:$0xf] %v939_v59  ;;  %v852_v9 = vsel %vm7905_vm14, %v535_v61, %v851_v43  ;;  %v474_v17 = vld [vmem:[#allocation2 + $0xa8] sm:$0xf]  ;;  %v7972_v24 = vrot.slane %v751_v23, 7  ;;  %v324_v63 = vsel %vm7705_vm6, 0, %v323_v41  ;;  %v552_v29 = vor.u32 %v550_v28, %v7914_v50 }
  0x59   : > { %v1676_v53 = vld [vmem:[#allocation2 + $0x4] sm:$0xf]  ;;  %853 = vst [vmem:[#allocation2 + $0xc] sm:$0xf] %v852_v9  ;;  %v475_v39 = vsel %vm7801_vm12, 0, %v474_v17  ;;  %v561_v46 = vsel %vm7493_vm2, %v553_v0, %v560_v33  ;;  %v1155_v52 = vshll.u32 %v7797_v51, 16  ;;  %1312 = vrot.lane.b32.xlu1 %v7950_v8, %s7418_s7 }
  0x5a   : > { %v858_v60 = vld [vmem:[#allocation2 + $0x14] sm:$0x1]  ;;  %v394_v42 = vld [vmem:[#allocation2 + $0x20] sm:$0x1]  ;;  %325 = vst [vmem:[#allocation2 + $0x8] sm:$0x1] %v324_v63  ;;  %v756_v10 = vor.u32 %v754_v55, %v7972_v24 }
  0x5b   : > { %v1736_v58 = vshll.u32 %v1676_v53, 16  ;;  %v859_v13 = vsel %vm7890_vm13, %v545_v3, %v858_v60  ;;  %v942_v40 = vld [vmem:[#allocation2 + $0xa4] sm:$0x1]  ;;  %476 = vst [vmem:[#allocation2 + $0xa8] sm:$0xf] %v475_v39  ;;  %v395_v4 = vsel %vm7783_vm10, 0, %v394_v42 }
  0x5c   : > { %864 = vst.msk [vmem:[#allocation2 + $0x1c] sm:$0xf] %vm849_vm11, %v561_v46  ;;  %v1740_v49 = vshrl.u32 %v1676_v53, 16  ;;  %v1160_v62 = vshrl.u32 %v7953_v31, 16  ;;  %v7994_v23 = vld [vmem:[%s7476_s29 + $0x50] sm:$0xf]  ;;  %v943_v19 = vsel %vm7890_vm13, %v749_v35, %v942_v40 }
  0x5d   : > { %860 = vst [vmem:[#allocation2 + $0x14] sm:$0x1] %v859_v13  ;;  %396 = vst [vmem:[#allocation2 + $0x20] sm:$0x1] %v395_v4  ;;  %v7999_v3 = vrot.slane %v1736_v58, 5  ;;  %v9890_v57 = vrot.slane %v7689_v22, 4 }
  0x5e   : > { %v1163_v0 = vshll.u32 %v7953_v31, 16  ;;  %944 = vst [vmem:[#allocation2 + $0xa4] sm:$0x1] %v943_v19  ;;  %v1742_v2 = vrot.slane %v1740_v49, 4  ;;  %v365_v50 = vld [vmem:[#allocation2 + $0xb0] sm:$0x1] }
  0x5f   : > { %v1132_v7 = vsel %vm7493_vm2, %v9890_v57, %v1131_v5  ;;  %v9891_v14 = vshll.u32 %v7693_v26, 16  ;;  %v1150_v61 = vrot.slane %v7773_v6, 4  ;;  %v1675_v15 = vld [vmem:[#allocation2] sm:$0xf]  ;;  %v366_v22 = vsel %vm7705_vm6, 0, %v365_v50  ;;  %v7321_v31 = vld [vmem:[%s9868_s2 + $0x108] sm:$0xff]  }
  0x60   : > { %v522_v16 = vld [vmem:[%s7678_s20 + $0x6c] sm:$0xf]  ;;  %v8017_v12 = vld [vmem:[%s7476_s29 + $0x54] sm:$0xf]  ;;  %v861_v34 = vld [vmem:[#allocation2 + $0x18] sm:$0xf]  ;;  %v1743_v37 = vor.u32 %v1742_v2, %v7999_v3 }
  0x61   : > { %v1148_v27 = vor.u32 %v9891_v14, %v7773_v6  ;;  %v1727_v25 = vshrl.u32 %v1675_v15, 16  ;;  %v1730_v48 = vshll.u32 %v1675_v15, 16  ;;  %367 = vst [vmem:[#allocation2 + $0xb0] sm:$0x1] %v366_v22  ;;  %v759_v28 = vshrl.u32 %v522_v16, 16  ;;  %v7304_v22 = vld [vmem:[#allocation2] sm:$0xff]  }
  0x62   : > { %v862_v26 = vsel %vm7905_vm14, %v552_v29, %v861_v34  ;;  %v562_v59 = vrot.slane %v7940_v20, 4  ;;  %v762_v43 = vshll.u32 %v522_v16, 16  ;;  %v9892_v35 = vrot.slane %v7700_v36, 4  ;;  %v1677_v41 = vld [vmem:[#allocation2 + $0x8] sm:$0x1]  ;;  %v7331_v6 = vld [vmem:[%s9868_s2 + $0x110] sm:$0xff]  }
  0x63   : > { %v8030_v55 = vrot.slane %v1152_v47, 7  ;;  %v1169_v33 = vshrl.u32 %v7994_v23, 16  ;;  %863 = vst [vmem:[#allocation2 + $0x18] sm:$0xf] %v862_v26  ;;  %v1729_v5 = vrot.slane %v1727_v25, 4  ;;  %v1732_v9 = vrot.slane %v1730_v48, 5 }
  0x64   : > { %1310 = vrot.lane.b32.xlu0 %v9892_v35, %s7418_s7  ;;  %v945_v20 = vld [vmem:[#allocation2 + $0xa8] sm:$0xf]  ;;  %v1744_v17 = vrot.slane %v1743_v37, 4  ;;  %v1746_v63 = vshll.u32 %v1677_v41, 16  ;;  %v757_v53 = vrot.slane %v7972_v24, 4  ;;  %v8034_v36 = vrot.slane %v759_v28, 7 }
  0x65   : > { %v8036_v21 = vrot.slane %v1160_v62, 7  ;;  %v1172_v8 = vshll.u32 %v7994_v23, 16  ;;  %v946_v47 = vsel %vm7905_vm14, %v756_v10, %v945_v20  ;;  %v865_v60 = vld [vmem:[#allocation2 + $0x20] sm:$0x1]  ;;  %v1733_v42 = vor.u32 %v1732_v9, %v1729_v5  ;;  %v276_v40 = vld [vmem:[#allocation2 + $0x24] sm:$0x1] }
  0x66   : > { %v1177_v24 = vshrl.u32 %v8017_v12, 16  ;;  %947 = vst [vmem:[#allocation2 + $0xa8] sm:$0xf] %v946_v47  ;;  %v866_v46 = vsel %vm7890_vm13, %v562_v59, %v865_v60  ;;  %v1748_v58 = vrot.slane %v1746_v63, 5  ;;  %v764_v13 = vor.u32 %v762_v43, %v8034_v36  ;;  %v8061_v57 = vld [vmem:[%s7678_s20 + $0x10] sm:$0xf] }
  0x67   : > { %v9895_v4 = vrot.slane %v7731_v54, 4  ;;  %v9896_v49 = vshll.u32 %v7656_v1, 16  ;;  %867 = vst [vmem:[#allocation2 + $0x20] sm:$0x1] %v866_v46  ;;  %v1734_v19 = vrot.slane %v1733_v42, 4  ;;  %v277_v29 = vsel %vm7715_vm7, 0, %v276_v40 }
  0x68   : > { %1314 = vrot.lane.b32.xlu0 %v1132_v7, %s7418_s7  ;;  %v312_v2 = vld [vmem:[#allocation2 + $0xb4] sm:$0x1]  ;;  %v9897_v50 = vrot.slane %v7737_v44, 4  ;;  %v1749_v54 = vsel %vm8043_vm5, %v1744_v17, %v1748_v58  ;;  %v478_v14 = vld [vmem:[#allocation2 + $0xb0] sm:$0x1]  ;;  %v765_v1 = vsel %vm7493_vm2, %v757_v53, %v764_v13  ;;  %v564_v10 = vshrl.u32 %v8061_v57, 16 }
  0x69   : > { %1316 = vrot.lane.b32.xlu1 %v9895_v4, %s7418_s7  ;;  %v1140_v62 = vor.u32 %v9896_v49, %v7737_v44  ;;  %278 = vst [vmem:[#allocation2 + $0x24] sm:$0x1] %v277_v29  ;;  %v8072_v15 = vrot.slane %v1169_v33, 7  ;;  %v1739_v44 = vsel %vm8043_vm5, %v1734_v19, %v7999_v3  ;;  %948 = vst.msk [vmem:[#allocation2 + $0xac] sm:$0xf] %vm849_vm11, %v765_v1  ;;  %v313_v16 = vsel %vm7715_vm7, 0, %v312_v2 }
  0x6a   : > { %v1149_v7 = vsel %vm7493_vm2, %v9897_v50, %v1148_v27  ;;  %v479_v27 = vsel %vm7783_vm10, 0, %v478_v14  ;;  %v332_v34 = vld [vmem:[#allocation2 + $0x2c] sm:$0x1]  ;;  %v1158_v25 = vrot.slane %v8030_v55, 4  ;;  %v1180_v48 = vshll.u32 %v8017_v12, 16  ;;  %v7310_v26 = vld [vmem:[%s9868_s2 + $0x100] sm:$0xff]  }
  0x6b   : > { %v6329_v37 = vcombine.low %v1739_v44, %v1749_v54  ;;  %480 = vst [vmem:[#allocation2 + $0xb0] sm:$0x1] %v479_v27  ;;  %314 = vst [vmem:[#allocation2 + $0xb4] sm:$0x1] %v313_v16  ;;  %v8085_v28 = vld [vmem:[%s7678_s20 + $0x70] sm:$0xf]  ;;  %v1157_v12 = vor.u32 %v1155_v52, %v8030_v55  ;;  %v1165_v59 = vor.u32 %v1163_v0, %v8036_v21 }
  0x6c   : > { %v333_v3 = vsel %vm7705_vm6, 0, %v332_v34  ;;  %1318 = vrot.lane.b32.xlu0 %v1140_v62, %s7418_s7  ;;  %v1167_v43 = vrot.slane %v8036_v21, 4  ;;  %v8101_v35 = vrot.slane %v1177_v24, 7  ;;  %v500_v33 = vld [vmem:[%s7678_s20 + $0x14] sm:$0xf]  ;;  %v566_v41 = vrot.slane %v564_v10, 7 }
  0x6d   : > { %1320 = vrot.lane.b32.xlu1 %v1149_v7, %s7418_s7  ;;  %334 = vst [vmem:[#allocation2 + $0x2c] sm:$0x1] %v333_v3  ;;  %5129 = vmatprep.mubr.bf16.mxu0 %v6329_v37  ;;  %v572_v5 = vshrl.u32 %v500_v33, 16  ;;  %v575_v9 = vshll.u32 %v500_v33, 16  ;;  %v7317_v20 = vld [vmem:[%s9868_s2 + $0x148] sm:$0xff]   ;;  %v1175_v51 = vrot.slane %v8072_v15, 4  ;;  %v1166_v53 = vsel %vm7493_vm2, %v1158_v25, %v1165_v59 }
  0x6e   : > { %5130 = vmatmul.mubr.bf16.vlgmr.msra.gmra.mrb[0].mxu0 %v7304_v22  ;;  %v766_v52 = vrot.slane %v8034_v36, 4  ;;  %v768_v0 = vshrl.u32 %v8085_v28, 16  ;;  %v570_v55 = vrot.slane %v566_v41, 4  ;;  %v7327_v63 = vld [vmem:[%s9868_s2 + $0x150] sm:$0xff]   ;;  %v1182_v21 = vor.u32 %v1180_v48, %v8101_v35  ;;  %v368_v24 = vld [vmem:[#allocation2 + $0xbc] sm:$0x1] }
  0x6f   : > { %v8113_v17 = vrot.slane %v572_v5, 7  ;;  %6967 = vmatpush3.bf16.msra.mxu0 %v7310_v26  ;;  %v567_v60 = vshll.u32 %v8061_v57, 16  ;;  %v771_v58 = vshll.u32 %v8085_v28, 16  ;;  %v369_v13 = vsel %vm7705_vm6, 0, %v368_v24  ;;  %v524_v29 = vld [vmem:[%s7678_s20 + $0x74] sm:$0xf] }
  0x70   : > { %1322 = vrot.lane.b32.xlu0 %v1150_v61, %s7418_s7  ;;  %v397_v36 = vld [vmem:[#allocation2 + $0x24] sm:$0xf]  ;;  %6968 = vmatprep.subr.bf16.mxu0 %v7317_v20  ;;  %v1174_v40 = vor.u32 %v1172_v8, %v8072_v15  ;;  %370 = vst [vmem:[#allocation2 + $0xbc] sm:$0x1] %v369_v13  ;;  %v7339_v57 = vld [vmem:[%s9868_s2 + $0x158] sm:$0xff]   ;;  %v770_v23 = vrot.slane %v768_v0, 7  ;;  %v1183_v7 = vsel %vm7493_vm2, %v1175_v51, %v1182_v21 }
  0x71   : > { %1324 = vrot.lane.b32.xlu1 %v1157_v12, %s7418_s7  ;;  %v398_v47 = vsel %vm7801_vm12, 0, %v397_v36  ;;  %v577_v42 = vor.u32 %v575_v9, %v8113_v17  ;;  %v776_v2 = vshrl.u32 %v524_v29, 16  ;;  %v779_v50 = vshll.u32 %v524_v29, 16  ;;  %v279_v10 = vld [vmem:[#allocation2 + $0x30] sm:$0x1]  ;;  %v7340_v27 = vld [vmem:[%s9868_s2 + $0x118] sm:$0xff]  }
  0x72   : > { %v949_v61 = vld [vmem:[#allocation2 + $0xb0] sm:$0x1]  ;;  %399 = vst [vmem:[#allocation2 + $0x24] sm:$0xf] %v398_v47  ;;  %v481_v46 = vld [vmem:[#allocation2 + $0xb4] sm:$0xf]  ;;  %v569_v54 = vor.u32 %v567_v60, %v566_v41  ;;  %v773_v34 = vor.u32 %v771_v58, %v770_v23 }
  0x73   : > { %v950_v4 = vsel %vm7890_vm13, %v766_v52, %v949_v61  ;;  %v482_v49 = vsel %vm7801_vm12, 0, %v481_v46  ;;  %v578_v19 = vsel %vm7493_vm2, %v570_v55, %v577_v42  ;;  %6969 = vmatpush3.bf16.msra.mxu0 %v7321_v31  ;;  %v774_v14 = vrot.slane %v770_v23, 4  ;;  %v8158_v15 = vld [vmem:[%s7678_s20 + $0x18] sm:$0xf]  ;;  %v7343_v22 = vld [vmem:[%s9868_s2 + $0x160] sm:$0xff]   ;;  %v7351_v13 = vld [vmem:[%s9868_s2 + $0x168] sm:$0xff]  }
  0x74   : > { %v401_v62 = vld [vmem:[#allocation2 + $0x2c] sm:$0x1]  ;;  %1326 = vrot.lane.b32.xlu0 %v1166_v53, %s7418_s7  ;;  %951 = vst [vmem:[#allocation2 + $0xb0] sm:$0x1] %v950_v4  ;;  %483 = vst [vmem:[#allocation2 + $0xb4] sm:$0xf] %v482_v49  ;;  %6970 = vmatprep.subr.bf16.mxu0 %v7327_v63 }
  0x75   : > { %1328 = vrot.lane.b32.xlu1 %v1167_v43, %s7418_s7  ;;  %v402_v8 = vsel %vm7783_vm10, 0, %v401_v62  ;;  %871 = vst.msk [vmem:[#allocation2 + $0x28] sm:$0xf] %vm849_vm11, %v578_v19  ;;  %v8155_v1 = vrot.slane %v776_v2, 7  ;;  %v280_v44 = vsel %vm7715_vm7, 0, %v279_v10  ;;  %v1184_v16 = vrot.slane %v8101_v35, 4 }
  0x76   : > { %403 = vst [vmem:[#allocation2 + $0x2c] sm:$0x1] %v402_v8  ;;  %281 = vst [vmem:[#allocation2 + $0x30] sm:$0x1] %v280_v44  ;;  %v581_v48 = vshrl.u32 %v8158_v15, 16  ;;  %v579_v28 = vrot.slane %v8113_v17, 4 }
  0x77   : > { %6971 = vmatpush3.bf16.msra.mxu0 %v7331_v6  ;;  %v781_v25 = vor.u32 %v779_v50, %v8155_v1  ;;  %v485_v26 = vld [vmem:[#allocation2 + $0xbc] sm:$0x1]  ;;  %v335_v59 = vld [vmem:[#allocation2 + $0x38] sm:$0x1]  ;;  %v7346_v5 = vld [vmem:[%s9868_s2 + $0x120] sm:$0xff]   ;;  %v783_v53 = vrot.slane %v8155_v1, 4 }
  0x78   : > { %1330 = vrot.lane.b32.xlu0 %v1174_v40, %s7418_s7  ;;  %6972 = vmatprep.subr.bf16.mxu0 %v7339_v57  ;;  %v502_v43 = vld [vmem:[%s7678_s20 + $0x1c] sm:$0xf]  ;;  %v486_v33 = vsel %vm7783_vm10, 0, %v485_v26  ;;  %v336_v41 = vsel %vm7705_vm6, 0, %v335_v59  ;;  %v583_v51 = vrot.slane %v581_v48, 7  ;;  %v584_v60 = vshll.u32 %v8158_v15, 16 }
  0x79   : > { %1332 = vrot.lane.b32.xlu1 %v1183_v7, %s7418_s7  ;;  %v868_v37 = vld [vmem:[#allocation2 + $0x24] sm:$0xf]  ;;  %v782_v12 = vsel %vm7493_vm2, %v774_v14, %v781_v25  ;;  %487 = vst [vmem:[#allocation2 + $0xbc] sm:$0x1] %v486_v33  ;;  %337 = vst [vmem:[#allocation2 + $0x38] sm:$0x1] %v336_v41 }
  0x7a   : > { %v869_v3 = vsel %vm7905_vm14, %v569_v54, %v868_v37  ;;  %955 = vst.msk [vmem:[#allocation2 + $0xb8] sm:$0xf] %vm849_vm11, %v782_v12  ;;  %v589_v31 = vshrl.u32 %v502_v43, 16  ;;  %v592_v52 = vshll.u32 %v502_v43, 16  ;;  %v587_v55 = vrot.slane %v583_v51, 4  ;;  %v7352_v23 = vld [vmem:[%s9868_s2 + $0x128] sm:$0xff]  }
  0x7b   : > { %870 = vst [vmem:[#allocation2 + $0x24] sm:$0xf] %v869_v3  ;;  %v952_v35 = vld [vmem:[#allocation2 + $0xb4] sm:$0xf]  ;;  %6973 = vmatpush3.bf16.msra.mxu0 %v7340_v27  ;;  %v282_v47 = vld [vmem:[#allocation2 + $0x3c] sm:$0x1]  ;;  %v586_v8 = vor.u32 %v584_v60, %v583_v51 }
  0x7c   : > { %1334 = vrot.lane.b32.xlu0 %v1184_v16, %s7418_s7  ;;  %v953_v9 = vsel %vm7905_vm14, %v773_v34, %v952_v35  ;;  %6974 = vmatprep.subr.bf16.mxu0 %v7343_v22  ;;  %v591_v17 = vrot.slane %v589_v31, 7  ;;  %v283_v42 = vsel %vm7715_vm7, 0, %v282_v47  ;;  %v503_v24 = vld [vmem:[%s7678_s20 + $0x20] sm:$0xf]  ;;  %v338_v6 = vld [vmem:[#allocation2 + $0x44] sm:$0x1] }
  0x7d   : > { %v872_v20 = vld [vmem:[#allocation2 + $0x2c] sm:$0x1]  ;;  %954 = vst [vmem:[#allocation2 + $0xb4] sm:$0xf] %v953_v9  ;;  %v404_v63 = vld [vmem:[#allocation2 + $0x30] sm:$0xf] }
  0x7e   : > { %v873_v0 = vsel %vm7890_vm13, %v579_v28, %v872_v20  ;;  %v405_v36 = vsel %vm7801_vm12, 0, %v404_v63  ;;  %v594_v21 = vor.u32 %v592_v52, %v591_v17  ;;  %284 = vst [vmem:[#allocation2 + $0x3c] sm:$0x1] %v283_v42  ;;  %v598_v46 = vshrl.u32 %v503_v24, 16  ;;  %v504_v49 = vld [vmem:[%s7678_s20 + $0x24] sm:$0xf] }
  0x7f   : > { %874 = vst [vmem:[#allocation2 + $0x2c] sm:$0x1] %v873_v0  ;;  %6975 = vmatpush3.bf16.msra.mxu0 %v7346_v5  ;;  %406 = vst [vmem:[#allocation2 + $0x30] sm:$0xf] %v405_v36  ;;  %v339_v58 = vsel %vm7705_vm6, 0, %v338_v6  ;;  %v606_v57 = vshrl.u32 %v504_v49, 16 }
  0x80   : > { %v595_v61 = vsel %vm7493_vm2, %v587_v55, %v594_v21  ;;  %v956_v40 = vld [vmem:[#allocation2 + $0xbc] sm:$0x1]  ;;  %v408_v4 = vld [vmem:[#allocation2 + $0x38] sm:$0x1]  ;;  %340 = vst [vmem:[#allocation2 + $0x44] sm:$0x1] %v339_v58  ;;  %6976 = vmatprep.subr.bf16.mxu0 %v7351_v13 }
  0x81   : > { %878 = vst.msk [vmem:[#allocation2 + $0x34] sm:$0xf] %vm849_vm11, %v595_v61  ;;  %v957_v62 = vsel %vm7890_vm13, %v783_v53, %v956_v40  ;;  %v409_v19 = vsel %vm7783_vm10, 0, %v408_v4  ;;  %v600_v29 = vrot.slane %v598_v46, 7  ;;  %v609_v2 = vshll.u32 %v504_v49, 16  ;;  %v7358_v21 = vld [vmem:[%s9868_s2 + $0x170] sm:$0xff]  }
  0x82   : > { %958 = vst [vmem:[#allocation2 + $0xbc] sm:$0x1] %v957_v62  ;;  %410 = vst [vmem:[#allocation2 + $0x38] sm:$0x1] %v409_v19  ;;  %v8215_v7 = vrot.slane %v606_v57, 7  ;;  %v596_v14 = vrot.slane %v591_v17, 4 }
  0x83   : > { %v604_v50 = vrot.slane %v600_v29, 4  ;;  %6977 = vmatpush3.bf16.msra.mxu0 %v7352_v23  ;;  %v996_v44 = vld [vmem:[%s7476_s29 + $0x78] sm:$0xf]  ;;  %v601_v48 = vshll.u32 %v503_v24, 16  ;;  %v997_v28 = vld [vmem:[%s7476_s29 + $0x7c] sm:$0xf] }
  0x84   : > { %v611_v1 = vor.u32 %v609_v2, %v8215_v7  ;;  %v1254_v34 = vshrl.u32 %v996_v44, 16  ;;  %v1257_v25 = vshll.u32 %v996_v44, 16  ;;  %v285_v3 = vld [vmem:[#allocation2 + $0x48] sm:$0x1]  ;;  %v1262_v59 = vshrl.u32 %v997_v28, 16  ;;  %6978 = vmatprep.subr.bf16.mxu0 %v7358_v21 }
  0x85   : > { %v411_v15 = vld [vmem:[#allocation2 + $0x3c] sm:$0xf]  ;;  %v1265_v35 = vshll.u32 %v997_v28, 16  ;;  %v286_v33 = vsel %vm7715_vm7, 0, %v285_v3  ;;  %v8234_v41 = vld [vmem:[%s7678_s20 + $0x28] sm:$0xf]  ;;  %v603_v31 = vor.u32 %v601_v48, %v600_v29 }
  0x86   : > { %v875_v54 = vld [vmem:[#allocation2 + $0x30] sm:$0xf]  ;;  %v412_v27 = vsel %vm7801_vm12, 0, %v411_v15  ;;  %v612_v16 = vsel %vm7493_vm2, %v604_v50, %v611_v1  ;;  %v1256_v12 = vrot.slane %v1254_v34, 7  ;;  %v1264_v20 = vrot.slane %v1262_v59, 7 }
  0x87   : > { %v876_v10 = vsel %vm7905_vm14, %v586_v8, %v875_v54  ;;  %v415_v22 = vld [vmem:[#allocation2 + $0x44] sm:$0x1]  ;;  %413 = vst [vmem:[#allocation2 + $0x3c] sm:$0xf] %v412_v27  ;;  %885 = vst.msk [vmem:[#allocation2 + $0x40] sm:$0xf] %vm849_vm11, %v612_v16 }
  0x88   : > { %877 = vst [vmem:[#allocation2 + $0x30] sm:$0xf] %v876_v10  ;;  %v416_v37 = vsel %vm7783_vm10, 0, %v415_v22  ;;  %v1259_v5 = vor.u32 %v1257_v25, %v1256_v12  ;;  %v1260_v9 = vrot.slane %v1256_v12, 4  ;;  %287 = vst [vmem:[#allocation2 + $0x48] sm:$0x1] %v286_v33  ;;  %v1267_v17 = vor.u32 %v1265_v35, %v1264_v20 }
  0x89   : > { %v879_v26 = vld [vmem:[#allocation2 + $0x38] sm:$0x1]  ;;  %417 = vst [vmem:[#allocation2 + $0x44] sm:$0x1] %v416_v37  ;;  %v615_v51 = vshrl.u32 %v8234_v41, 16  ;;  %v613_v52 = vrot.slane %v8215_v7, 4 }
  0x8a   : > { %v880_v43 = vsel %vm7890_vm13, %v596_v14, %v879_v26  ;;  %v341_v0 = vld [vmem:[#allocation2 + $0x50] sm:$0x1]  ;;  %v506_v55 = vld [vmem:[%s7678_s20 + $0x2c] sm:$0xf]  ;;  %1360 = vrot.lane.b32.xlu1 %v1259_v5, %s7418_s7  ;;  %v1269_v42 = vrot.slane %v1264_v20, 4  ;;  %v1268_v58 = vsel %vm7493_vm2, %v1260_v9, %v1267_v17  ;;  %v618_v54 = vshll.u32 %v8234_v41, 16 }
  0x8b   : > { %881 = vst [vmem:[#allocation2 + $0x38] sm:$0x1] %v880_v43  ;;  %v617_v63 = vrot.slane %v615_v51, 7  ;;  %v342_v53 = vsel %vm7705_vm6, 0, %v341_v0  ;;  %v623_v36 = vshrl.u32 %v506_v55, 16  ;;  %v626_v60 = vshll.u32 %v506_v55, 16  ;;  %1362 = vrot.lane.b32.xlu0 %v1268_v58, %s7418_s7  ;;  %v1341_v23 = vpop.permute.xlu1 %1340  ;;  %v1337_v8 = vpop.permute.xlu0 %1336 }
  0x8c   : > { %343 = vst [vmem:[#allocation2 + $0x50] sm:$0x1] %v342_v53  ;;  %v1500_v24 = vld [vmem:[#allocation2 + $0x98] sm:$0x1]  ;;  %v1496_v61 = vld [vmem:[#allocation2 + $0x90] sm:$0xf] }
  0x8d   : > { %v621_v13 = vrot.slane %v617_v63, 4  ;;  %v8259_v40 = vrot.slane %v623_v36, 7  ;;  %v7359_v29 = vld [vmem:[%s9868_s2 + $0x130] sm:$0xff]   ;;  %v1503_v2 = vld [vmem:[#allocation2 + $0x9c] sm:$0xf]  ;;  %v1501_v1 = vsel %vm8247_vm15, %v1341_v23, %v1500_v24  ;;  %v1497_v10 = vsel %vm8253_vm1, %v1337_v8, %v1496_v61 }
  0x8e   : > { %v882_v46 = vld [vmem:[#allocation2 + $0x3c] sm:$0xf]  ;;  %1364 = vrot.lane.b32.xlu1 %v1269_v42, %s7418_s7  ;;  %v1416_v50 = vld [vmem:[#allocation2 + $0xc] sm:$0xf]  ;;  %6979 = vmatpush3.bf16.msra.mxu0 %v7359_v29  ;;  %v288_v15 = vld [vmem:[#allocation2 + $0x54] sm:$0x1]  ;;  %v620_v33 = vor.u32 %v618_v54, %v617_v63 }
  0x8f   : > { %v883_v4 = vsel %vm7905_vm14, %v603_v31, %v882_v46  ;;  %v628_v19 = vor.u32 %v626_v60, %v8259_v40  ;;  %v418_v57 = vld [vmem:[#allocation2 + $0x48] sm:$0xf]  ;;  %v8282_v44 = vld [vmem:[%s7678_s20 + $0x30] sm:$0xf]  ;;  %v344_v27 = vld [vmem:[#allocation2 + $0x5c] sm:$0x1]  ;;  %v1343_v28 = vpop.permute.xlu0 %1342  ;;  %v1271_v3 = vpop.permute.xlu1 %1270 }
  0x90   : > { %v886_v49 = vld [vmem:[#allocation2 + $0x44] sm:$0x1]  ;;  %884 = vst [vmem:[#allocation2 + $0x3c] sm:$0xf] %v883_v4  ;;  %v419_v7 = vsel %vm7801_vm12, 0, %v418_v57  ;;  %v289_v16 = vsel %vm7715_vm7, 0, %v288_v15  ;;  %v1504_v43 = vsel %vm8253_vm1, %v1343_v28, %v1503_v2  ;;  %v1417_v35 = vsel %vm8253_vm1, %v1271_v3, %v1416_v50 }
  0x91   : > { %v887_v62 = vsel %vm7890_vm13, %v613_v52, %v886_v49  ;;  %v629_v14 = vsel %vm7493_vm2, %v621_v13, %v628_v19  ;;  %420 = vst [vmem:[#allocation2 + $0x48] sm:$0xf] %v419_v7  ;;  %1502 = vst [vmem:[#allocation2 + $0x98] sm:$0x1] %v1501_v1  ;;  %v632_v34 = vshrl.u32 %v8282_v44, 16  ;;  %v345_v25 = vsel %vm7705_vm6, 0, %v344_v27 }
  0x92   : > { %888 = vst [vmem:[#allocation2 + $0x44] sm:$0x1] %v887_v62  ;;  %892 = vst.msk [vmem:[#allocation2 + $0x4c] sm:$0xf] %vm849_vm11, %v629_v14  ;;  %v508_v37 = vld [vmem:[%s7678_s20 + $0x34] sm:$0xf] }
  0x93   : > { %1498 = vst [vmem:[#allocation2 + $0x90] sm:$0xf] %v1497_v10  ;;  %v422_v22 = vld [vmem:[#allocation2 + $0x50] sm:$0x1]  ;;  %290 = vst [vmem:[#allocation2 + $0x54] sm:$0x1] %v289_v16  ;;  %v1339_v20 = vpop.permute.xlu0 %1338  ;;  %v1275_v51 = vpop.permute.xlu1 %1274 }
  0x94   : > { %v423_v48 = vsel %vm7783_vm10, 0, %v422_v22  ;;  %346 = vst [vmem:[#allocation2 + $0x5c] sm:$0x1] %v345_v25  ;;  %v634_v26 = vrot.slane %v632_v34, 7  ;;  %v640_v12 = vshrl.u32 %v508_v37, 16  ;;  %v643_v59 = vshll.u32 %v508_v37, 16 }
  0x95   : > { %424 = vst [vmem:[#allocation2 + $0x50] sm:$0x1] %v423_v48  ;;  %1505 = vst [vmem:[#allocation2 + $0x9c] sm:$0xf] %v1504_v43  ;;  %v1423_v41 = vld [vmem:[#allocation2 + $0x14] sm:$0x1] }
  0x96   : > { %1418 = vst [vmem:[#allocation2 + $0xc] sm:$0xf] %v1417_v35  ;;  %v638_v5 = vrot.slane %v634_v26, 4  ;;  %v8296_v9 = vrot.slane %v640_v12, 7  ;;  %v630_v52 = vrot.slane %v8259_v40, 4  ;;  %v1424_v55 = vsel %vm8247_vm15, %v1275_v51, %v1423_v41  ;;  %v7365_v57 = vld [vmem:[%s9868_s2 + $0x178] sm:$0xff]  }
  0x97   : > { %1499 = vst.msk [vmem:[#allocation2 + $0x94] sm:$0xf] %vm1414_vm9, %v1339_v20  ;;  %1425 = vst [vmem:[#allocation2 + $0x14] sm:$0x1] %v1424_v55  ;;  %v1345_v58 = vpop.permute.xlu0 %1344  ;;  %v1273_v13 = vpop.permute.xlu1 %1272  ;;  %v1507_v40 = vld [vmem:[#allocation2 + $0xa4] sm:$0x1]  ;;  %6980 = vmatprep.subr.bf16.mxu0 %v7365_v57 }
  0x98   : > { %v889_v31 = vld [vmem:[#allocation2 + $0x48] sm:$0xf]  ;;  %v645_v0 = vor.u32 %v643_v59, %v8296_v9  ;;  %v1713_v42 = vld [vmem:[#allocation2 + $0x98] sm:$0x1]  ;;  %v635_v29 = vshll.u32 %v8282_v44, 16  ;;  %vm2287_vm3 = vcmask 1046532  }
  0x99   : > { %v890_v63 = vsel %vm7905_vm14, %v620_v33, %v889_v31  ;;  %v1426_v4 = vld [vmem:[#allocation2 + $0x18] sm:$0xf]  ;;  %1506 = vst.msk [vmem:[#allocation2 + $0xa0] sm:$0xf] %vm1414_vm9, %v1345_v58  ;;  %1420 = vst.msk [vmem:[#allocation2 + $0x10] sm:$0xf] %vm1414_vm9, %v1273_v13 }
  0x9a   : > { %v1711_v17 = vld [vmem:[#allocation2 + $0x90] sm:$0xf]  ;;  %891 = vst [vmem:[#allocation2 + $0x48] sm:$0xf] %v890_v63  ;;  %v425_v21 = vld [vmem:[#allocation2 + $0x54] sm:$0xf]  ;;  %v646_v60 = vsel %vm7493_vm2, %v638_v5, %v645_v0  ;;  %v637_v22 = vor.u32 %v635_v29, %v634_v26  ;;  %vm8448_vm8 = vmor %vm2286_vm0, %vm2287_vm3 }
  0x9b   : > { %v2015_v53 = vshrl.u32 %v1711_v17, 16  ;;  %v2018_v36 = vshll.u32 %v1711_v17, 16  ;;  %v426_v61 = vsel %vm7801_vm12, 0, %v425_v21  ;;  %v429_v46 = vld [vmem:[#allocation2 + $0x5c] sm:$0x1]  ;;  %v1347_v10 = vpop.permute.xlu0 %1346  ;;  %v1277_v15 = vpop.permute.xlu1 %1276  ;;  %v2034_v27 = vshll.u32 %v1713_v42, 16 }
  0x9c   : > { %v893_v24 = vld [vmem:[#allocation2 + $0x50] sm:$0x1]  ;;  %899 = vst.msk [vmem:[#allocation2 + $0x58] sm:$0xf] %vm849_vm11, %v646_v60  ;;  %427 = vst [vmem:[#allocation2 + $0x54] sm:$0xf] %v426_v61  ;;  %v1508_v16 = vsel %vm8247_vm15, %v1347_v10, %v1507_v40  ;;  %v1427_v34 = vsel %vm8253_vm1, %v1277_v15, %v1426_v4 }
  0x9d   : > { %v2017_v49 = vrot.slane %v2015_v53, 4  ;;  %v2020_v62 = vrot.slane %v2018_v36, 5  ;;  %v894_v19 = vsel %vm7890_vm13, %v630_v52, %v893_v24  ;;  %v1678_v23 = vld [vmem:[#allocation2 + $0xc] sm:$0xf]  ;;  %v1714_v8 = vld [vmem:[#allocation2 + $0x9c] sm:$0xf] }
  0x9e   : > { %895 = vst [vmem:[#allocation2 + $0x50] sm:$0x1] %v894_v19  ;;  %v1751_v2 = vshrl.u32 %v1678_v23, 16  ;;  %v1754_v50 = vshll.u32 %v1678_v23, 16  ;;  %v2039_v7 = vshrl.u32 %v1714_v8, 16  ;;  %v7366_v54 = vld [vmem:[%s9868_s2 + $0x138] sm:$0xff]  }
  0x9f   : > { %v2042_v14 = vshll.u32 %v1714_v8, 16  ;;  %v430_v1 = vsel %vm7783_vm10, 0, %v429_v46  ;;  %v1712_v44 = vld [vmem:[#allocation2 + $0x94] sm:$0xf]  ;;  %6981 = vmatpush3.bf16.msra.mxu0 %v7366_v54  ;;  %v1510_v25 = vld [vmem:[#allocation2 + $0xa8] sm:$0xf]  ;;  %v2021_v3 = vor.u32 %v2020_v62, %v2017_v49  ;;  %v1349_v20 = vpop.permute.xlu0 %1348  ;;  %v1279_v51 = vpop.permute.xlu1 %1278 }
  0xa0   : > { %431 = vst [vmem:[#allocation2 + $0x5c] sm:$0x1] %v430_v1  ;;  %v2024_v48 = vshll.u32 %v1712_v44, 16  ;;  %v2028_v37 = vshrl.u32 %v1712_v44, 16  ;;  %v1680_v28 = vld [vmem:[#allocation2 + $0x14] sm:$0x1]  ;;  %v1511_v63 = vsel %vm8253_vm1, %v1349_v20, %v1510_v25 }
  0xa1   : > { %1509 = vst [vmem:[#allocation2 + $0xa4] sm:$0x1] %v1508_v16  ;;  %1428 = vst [vmem:[#allocation2 + $0x18] sm:$0xf] %v1427_v34  ;;  %v1753_v12 = vrot.slane %v1751_v2, 4  ;;  %v1756_v59 = vrot.slane %v1754_v50, 5 }
  0xa2   : > { %v2041_v43 = vrot.slane %v2039_v7, 4  ;;  %v2026_v35 = vrot.slane %v2024_v48, 5  ;;  %v2030_v26 = vrot.slane %v2028_v37, 4  ;;  %v1770_v33 = vshll.u32 %v1680_v28, 16  ;;  %v1430_v31 = vld [vmem:[#allocation2 + $0x20] sm:$0x1] }
  0xa3   : > { %v2044_v41 = vrot.slane %v2042_v14, 5  ;;  %v896_v5 = vld [vmem:[#allocation2 + $0x54] sm:$0xf]  ;;  %v1679_v52 = vld [vmem:[#allocation2 + $0x10] sm:$0xf]  ;;  %v1757_v0 = vor.u32 %v1756_v59, %v1753_v12  ;;  %v647_v17 = vrot.slane %v8296_v9, 4  ;;  %v1351_v9 = vpop.permute.xlu0 %1350  ;;  %v1281_v49 = vpop.permute.xlu1 %1280 }
  0xa4   : > { %v897_v55 = vsel %vm7905_vm14, %v637_v22, %v896_v5  ;;  %1429 = vst.msk [vmem:[#allocation2 + $0x1c] sm:$0xf] %vm1414_vm9, %v1279_v51  ;;  %v2031_v53 = vor.u32 %v2030_v26, %v2026_v35  ;;  %v2036_v36 = vrot.slane %v2034_v27, 5  ;;  %v1760_v21 = vshll.u32 %v1679_v52, 16  ;;  %v1715_v60 = vld [vmem:[#allocation2 + $0xa0] sm:$0xf] }
  0xa5   : > { %898 = vst [vmem:[#allocation2 + $0x54] sm:$0xf] %v897_v55  ;;  %1512 = vst [vmem:[#allocation2 + $0xa8] sm:$0xf] %v1511_v63  ;;  %v2022_v42 = vrot.slane %v2021_v3, 4  ;;  %v1764_v24 = vshrl.u32 %v1679_v52, 16  ;;  %v2045_v61 = vor.u32 %v2044_v41, %v2041_v43  ;;  %v1431_v50 = vsel %vm8247_vm15, %v1281_v49, %v1430_v31 }
  0xa6   : > { %v2048_v46 = vshll.u32 %v1715_v60, 16  ;;  %v2032_v58 = vrot.slane %v2031_v53, 4  ;;  %v1762_v13 = vrot.slane %v1760_v21, 5  ;;  %v1772_v40 = vrot.slane %v1770_v33, 5  ;;  %v1514_v62 = vld [vmem:[#allocation2 + $0xb0] sm:$0x1] }
  0xa7   : > { %v2052_v4 = vshrl.u32 %v1715_v60, 16  ;;  %v1433_v19 = vld [vmem:[#allocation2 + $0x24] sm:$0xf]  ;;  %v1758_v29 = vrot.slane %v1757_v0, 4  ;;  %v1766_v57 = vrot.slane %v1764_v24, 4  ;;  %v2027_v7 = vsel %vm8043_vm5, %v2022_v42, %v2026_v35  ;;  %v7305_v34 = vld [vmem:[#allocation2 + $0x90] sm:$0xff]   ;;  %v1353_v12 = vpop.permute.xlu0 %1352  ;;  %v1283_v59 = vpop.permute.xlu1 %1282 }
  0xa8   : > { %v2050_v23 = vrot.slane %v2048_v46, 5  ;;  %v900_v8 = vld [vmem:[#allocation2 + $0x5c] sm:$0x1]  ;;  %v7370_v2 = vld [vmem:[%s9868_s2 + $0x200] sm:$0xff]   ;;  %1513 = vst.msk [vmem:[#allocation2 + $0xac] sm:$0xf] %vm1414_vm9, %v1351_v9  ;;  %v2037_v54 = vsel %vm8043_vm5, %v2032_v58, %v2036_v36  ;;  %v1515_v5 = vsel %vm8247_vm15, %v1353_v12, %v1514_v62  ;;  %v1434_v20 = vsel %vm8253_vm1, %v1283_v59, %v1433_v19 }
  0xa9   : > { %v1716_v14 = vld [vmem:[#allocation2 + $0xa4] sm:$0x1]  ;;  %v2054_v1 = vrot.slane %v2052_v4, 4  ;;  %v1681_v15 = vld [vmem:[#allocation2 + $0x18] sm:$0xf]  ;;  %v6341_v44 = vcombine.low %v2027_v7, %v2037_v54  ;;  %v1767_v27 = vor.u32 %v1766_v57, %v1762_v13  ;;  %v2046_v22 = vrot.slane %v2045_v61, 4  ;;  %7214 = vmatprep.subr.bf16.mxu0 %v7370_v2 }
  0xaa   : > { %v7309_v10 = vld [vmem:[%s9868_s2 + $0x80] sm:$0xff]   ;;  %1432 = vst [vmem:[#allocation2 + $0x20] sm:$0x1] %v1431_v50  ;;  %v2058_v16 = vshll.u32 %v1716_v14, 16  ;;  %v7312_v48 = vld [vmem:[%s9868_s2 + $0xc8] sm:$0xff]   ;;  %v1775_v37 = vshrl.u32 %v1681_v15, 16  ;;  %v901_v3 = vsel %vm7890_vm13, %v647_v17, %v900_v8  ;;  %v1763_v43 = vsel %vm8043_vm5, %v1758_v29, %v1762_v13 }
  0xab   : > { %v2055_v25 = vor.u32 %v2054_v1, %v2050_v23  ;;  %v1778_v28 = vshll.u32 %v1681_v15, 16  ;;  %5225 = vmatprep.mubr.bf16.mxu1 %v6341_v44  ;;  %v1768_v35 = vrot.slane %v1767_v27, 4  ;;  %v2051_v26 = vsel %vm8043_vm5, %v2046_v22, %v2050_v23  ;;  %v1682_v41 = vld [vmem:[#allocation2 + $0x1c] sm:$0xf]  ;;  %902 = vst [vmem:[#allocation2 + $0x5c] sm:$0x1] %v901_v3  ;;  %v1285_v4 = vpop.permute.xlu1 %1284 }
  0xac   : > { %v2060_v33 = vrot.slane %v2058_v16, 5  ;;  %5226 = vmatmul.mubr.bf16.vlgmr.msra.gmra.mrb[0].mxu1 %v7305_v34  ;;  %v1517_v51 = vld [vmem:[#allocation2 + $0xb4] sm:$0xf]  ;;  %v7313_v52 = vld [vmem:[%s9868_s2 + $0x88] sm:$0xff]   ;;  %v1777_v0 = vrot.slane %v1775_v37, 4  ;;  %v1784_v36 = vshll.u32 %v1682_v41, 16 }
  0xad   : > { %v2056_v31 = vrot.slane %v2055_v25, 4  ;;  %v1717_v55 = vld [vmem:[#allocation2 + $0xa8] sm:$0xf]  ;;  %1516 = vst [vmem:[#allocation2 + $0xb0] sm:$0x1] %v1515_v5  ;;  %v1773_v17 = vsel %vm8043_vm5, %v1768_v35, %v1772_v40  ;;  %v7306_v63 = vld [vmem:[#allocation2 + $0xc] sm:$0xff]   ;;  %6855 = vmatpush3.bf16.msra.mxu1 %v7309_v10  ;;  %v1355_v40 = vpop.permute.xlu0 %1354 }
  0xae   : > { %1435 = vst [vmem:[#allocation2 + $0x24] sm:$0xf] %v1434_v20  ;;  %v1780_v53 = vrot.slane %v1778_v28, 5  ;;  %v1788_v21 = vshrl.u32 %v1682_v41, 16  ;;  %v7314_v60 = vld [vmem:[%s9868_s2 + $0xd0] sm:$0xff]   ;;  %v6330_v24 = vcombine.low %v1763_v43, %v1773_v17  ;;  %6856 = vmatprep.subr.bf16.mxu1 %v7312_v48  ;;  %v2063_v46 = vshrl.u32 %v1717_v55, 16 }
  0xaf   : > { %v8367_v42 = vld [vmem:[#allocation2] sm:$0xe]  ;;  %v2061_v61 = vsel %vm8043_vm5, %v2056_v31, %v2060_v33  ;;  %v2066_v58 = vshll.u32 %v1717_v55, 16  ;;  %v291_v13 = vld [vmem:[#allocation2 + $0x60] sm:$0x1]  ;;  %v1786_v19 = vrot.slane %v1784_v36, 5  ;;  %v1518_v23 = vsel %vm8253_vm1, %v1355_v40, %v1517_v51  ;;  %v1287_v28 = vpop.permute.xlu1 %1286 }
  0xb0   : > { %v6342_v9 = vcombine.low %v2051_v26, %v2061_v61  ;;  %v1437_v49 = vld [vmem:[#allocation2 + $0x2c] sm:$0x1]  ;;  %v1781_v62 = vor.u32 %v1780_v53, %v1777_v0  ;;  %v1790_v29 = vrot.slane %v1788_v21, 4  ;;  %1436 = vst.msk [vmem:[#allocation2 + $0x28] sm:$0xf] %vm1414_vm9, %v1285_v4  ;;  %5137 = vmatprep.mubr.bf16.mxu0 %v6330_v24  ;;  %v2065_v2 = vrot.slane %v2063_v46, 4 }
  0xb1   : > { %v1718_v57 = vld [vmem:[#allocation2 + $0xac] sm:$0xf]  ;;  %v1683_v8 = vld [vmem:[#allocation2 + $0x20] sm:$0x1]  ;;  %v2068_v50 = vrot.slane %v2066_v58, 5  ;;  %5138 = vmatmul.mubr.bf16.gmra.mrb[4].mxu0 %v7306_v63  ;;  %v7316_v10 = vld [vmem:[%s9868_s2 + $0x90] sm:$0xff]   ;;  %6857 = vmatpush3.bf16.msra.mxu1 %v7313_v52  ;;  %v1357_v37 = vpop.permute.xlu0 %1356  ;;  %v1438_v41 = vsel %vm8247_vm15, %v1287_v28, %v1437_v49 }
  0xb2   : > { %v2072_v7 = vshll.u32 %v1718_v57, 16  ;;  %1519 = vst [vmem:[#allocation2 + $0xb4] sm:$0xf] %v1518_v23  ;;  %5233 = vmatprep.mubr.bf16.mxu1 %v6342_v9  ;;  %v1782_v54 = vrot.slane %v1781_v62, 4  ;;  %v1791_v14 = vor.u32 %v1790_v29, %v1786_v19  ;;  %v1794_v1 = vshll.u32 %v1683_v8, 16  ;;  %v7311_v27 = vld [vmem:[#allocation2 + $0x9c] sm:$0xff]   ;;  %6858 = vmatprep.subr.bf16.mxu1 %v7314_v60 }
  0xb3   : > { %v2076_v15 = vshrl.u32 %v1718_v57, 16  ;;  %v8377_v44 = vld [vmem:[#allocation2 + $0x4] sm:$0xf]  ;;  %v2069_v22 = vor.u32 %v2068_v50, %v2065_v2  ;;  %v8381_v34 = vld [vmem:[#allocation2 + $0x8] sm:$0x1]  ;;  %v6345_v25 = vrot.slane %v8367_v42, 9  ;;  %v1289_v58 = vpop.permute.xlu1 %1288 }
  0xb4   : > { %v8379_v16 = vrot.slane %v2072_v7, 5  ;;  %v292_v48 = vsel %vm7715_vm7, 0, %v291_v13  ;;  %v1521_v3 = vld [vmem:[#allocation2 + $0xbc] sm:$0x1]  ;;  %v1787_v12 = vsel %vm8043_vm5, %v1782_v54, %v1786_v19  ;;  %v1792_v59 = vrot.slane %v1791_v14, 4  ;;  %5234 = vmatmul.mubr.bf16.gmra.mrb[4].mxu1 %v7311_v27  ;;  %v7322_v21 = vld [vmem:[%s9868_s2 + $0xe0] sm:$0xff]  }
  0xb5   : > { %v1796_v43 = vrot.slane %v1794_v1, 5  ;;  %v2078_v35 = vrot.slane %v2076_v15, 4  ;;  %v7318_v26 = vld [vmem:[%s9868_s2 + $0xd8] sm:$0xff]   ;;  %293 = vst [vmem:[#allocation2 + $0x60] sm:$0x1] %v292_v48  ;;  %v2070_v20 = vrot.slane %v2069_v22, 4  ;;  %6859 = vmatpush3.bf16.msra.mxu1 %v7316_v10  ;;  %v1359_v46 = vpop.permute.xlu0 %1358 }
  0xb6   : > { %v8392_v33 = vld [vmem:[%s7678_s20 + $0x38] sm:$0xf]  ;;  %1520 = vst.msk [vmem:[#allocation2 + $0xb8] sm:$0xf] %vm1414_vm9, %v1357_v37  ;;  %v1719_v5 = vld [vmem:[#allocation2 + $0xb0] sm:$0x1]  ;;  %6860 = vmatprep.subr.bf16.mxu1 %v7318_v26  ;;  %v1522_v29 = vsel %vm8247_vm15, %v1359_v46, %v1521_v3 }
  0xb7   : > { %v1684_v51 = vld [vmem:[#allocation2 + $0x24] sm:$0xf]  ;;  %v2291_v31 = vrot.slane %v8377_v44, 5  ;;  %1439 = vst [vmem:[#allocation2 + $0x2c] sm:$0x1] %v1438_v41  ;;  %v1797_v0 = vsel %vm8043_vm5, %v1792_v59, %v1796_v43  ;;  %v2079_v55 = vor.u32 %v2078_v35, %v8379_v16  ;;  %v2082_v17 = vshll.u32 %v1719_v5, 16 }
  0xb8   : > { %v1440_v52 = vld [vmem:[#allocation2 + $0x30] sm:$0xf]  ;;  %v1799_v63 = vshrl.u32 %v1684_v51, 16  ;;  %v6331_v53 = vcombine.low %v1787_v12, %v1797_v0  ;;  %v7320_v36 = vld [vmem:[%s9868_s2 + $0x98] sm:$0xff]   ;;  %v1802_v60 = vshll.u32 %v1684_v51, 16  ;;  %v2294_v24 = vrot.slane %v8381_v34, 5  ;;  %v1293_v12 = vpop.permute.xlu1 %1292 }
  0xb9   : > { %v649_v61 = vshrl.u32 %v8392_v33, 16  ;;  %v7315_v13 = vld [vmem:[#allocation2 + $0x18] sm:$0xff]   ;;  %v2075_v4 = vsel %vm8043_vm5, %v2070_v20, %v8379_v16  ;;  %v2080_v9 = vrot.slane %v2079_v55, 4  ;;  %v2084_v49 = vrot.slane %v2082_v17, 5  ;;  %v1685_v62 = vld [vmem:[#allocation2 + $0x28] sm:$0xf]  ;;  %6861 = vmatpush3.bf16.msra.mxu1 %v7320_v36  ;;  %v1291_v3 = vpop.permute.xlu0 %1290 }
  0xba   : > { %v1444_v40 = vld [vmem:[#allocation2 + $0x38] sm:$0x1]  ;;  %v1801_v19 = vrot.slane %v1799_v63, 4  ;;  %v1441_v57 = vsel %vm8253_vm1, %v1289_v58, %v1440_v52  ;;  %5145 = vmatprep.mubr.bf16.mxu0 %v6331_v53  ;;  %v7323_v23 = vld [vmem:[%s9868_s2 + $0xa0] sm:$0xff]   ;;  %v1804_v8 = vrot.slane %v1802_v60, 5  ;;  %v1808_v2 = vshll.u32 %v1685_v62, 16  ;;  %6862 = vmatprep.subr.bf16.mxu1 %v7322_v21 }
  0xbb   : > { %v1720_v50 = vld [vmem:[#allocation2 + $0xb4] sm:$0xf]  ;;  %1523 = vst [vmem:[#allocation2 + $0xbc] sm:$0x1] %v1522_v29  ;;  %1442 = vst [vmem:[#allocation2 + $0x30] sm:$0xf] %v1441_v57  ;;  %5146 = vmatmul.mubr.bf16.gmra.mrb[8].mxu0 %v7315_v13  ;;  %v2085_v7 = vsel %vm8043_vm5, %v2080_v9, %v2084_v49  ;;  %v1445_v20 = vsel %vm8247_vm15, %v1293_v12, %v1444_v40 }
  0xbc   : > { %v7319_v54 = vld [vmem:[#allocation2 + $0xa8] sm:$0xff]   ;;  %v1812_v14 = vshrl.u32 %v1685_v62, 16  ;;  %v2087_v10 = vshrl.u32 %v1720_v50, 16  ;;  %v2090_v15 = vshll.u32 %v1720_v50, 16  ;;  %v6343_v27 = vcombine.low %v2075_v4, %v2085_v7  ;;  %v432_v48 = vld [vmem:[#allocation2 + $0x60] sm:$0xf]  ;;  %v1297_v13 = vpop.permute.xlu1 %1296 }
  0xbd   : > { %v7324_v1 = vld [vmem:[%s9868_s2 + $0xe8] sm:$0xff]   ;;  %v1805_v22 = vor.u32 %v1804_v8, %v1801_v19  ;;  %v1810_v16 = vrot.slane %v1808_v2, 5  ;;  %v8424_v37 = vrot.slane %v649_v61, 7  ;;  %v1447_v59 = vld [vmem:[#allocation2 + $0x3c] sm:$0xf]  ;;  %v652_v5 = vshll.u32 %v8392_v33, 16  ;;  %6863 = vmatpush3.bf16.msra.mxu1 %v7323_v23  ;;  %v1295_v58 = vpop.permute.xlu0 %1294 }
  0xbe   : > { %v347_v28 = vld [vmem:[#allocation2 + $0x68] sm:$0x1]  ;;  %v1814_v43 = vrot.slane %v1812_v14, 4  ;;  %v1721_v35 = vld [vmem:[#allocation2 + $0xb8] sm:$0xf]  ;;  %v2089_v26 = vrot.slane %v2087_v10, 4  ;;  %5241 = vmatprep.mubr.bf16.mxu1 %v6343_v27  ;;  %6864 = vmatprep.subr.bf16.mxu1 %v7324_v1  ;;  %v1448_v8 = vsel %vm8253_vm1, %v1295_v58, %v1447_v59  ;;  %v8468_v14 = vsel %vm8448_vm8, %v6345_v25, %v2291_v31 }
  0xbf   : > { %v2092_v41 = vrot.slane %v2090_v15, 5  ;;  %1443 = vst.msk [vmem:[#allocation2 + $0x34] sm:$0xf] %vm1414_vm9, %v1291_v3  ;;  %v1686_v51 = vld [vmem:[#allocation2 + $0x2c] sm:$0x1]  ;;  %v1806_v52 = vrot.slane %v1805_v22, 4  ;;  %5242 = vmatmul.mubr.bf16.gmra.mrb[8].mxu1 %v7319_v54  ;;  %v654_v1 = vor.u32 %v652_v5, %v8424_v37 }
  0xc0   : > { %v7326_v0 = vld [vmem:[%s9868_s2 + $0xa8] sm:$0xff]   ;;  %v2096_v55 = vshll.u32 %v1721_v35, 16  ;;  %v2100_v17 = vshrl.u32 %v1721_v35, 16  ;;  %1446 = vst [vmem:[#allocation2 + $0x38] sm:$0x1] %v1445_v20  ;;  %v1815_v63 = vor.u32 %v1814_v43, %v1810_v16  ;;  %v1818_v53 = vshll.u32 %v1686_v51, 16  ;;  %v1301_v3 = vpop.permute.xlu1 %1300 }
  0xc1   : > { %v2093_v36 = vor.u32 %v2092_v41, %v2089_v26  ;;  %v433_v33 = vsel %vm7801_vm12, 0, %v432_v48  ;;  %v2293_v61 = vrot.slane %v2291_v31, 4  ;;  %v348_v46 = vsel %vm7705_vm6, 0, %v347_v28  ;;  %v1451_v40 = vld [vmem:[#allocation2 + $0x44] sm:$0x1]  ;;  %v7328_v29 = vld [vmem:[%s9868_s2 + $0xf0] sm:$0xff]   ;;  %6865 = vmatpush3.bf16.msra.mxu1 %v7326_v0  ;;  %v1299_v28 = vpop.permute.xlu0 %1298 }
  0xc2   : > { %v8435_v21 = vrot.slane %v2096_v55, 5  ;;  %v2102_v60 = vrot.slane %v2100_v17, 4  ;;  %434 = vst [vmem:[#allocation2 + $0x60] sm:$0xf] %v433_v33  ;;  %v1811_v4 = vsel %vm8043_vm5, %v1806_v52, %v1810_v16  ;;  %v1816_v9 = vrot.slane %v1815_v63, 4  ;;  %v7330_v7 = vld [vmem:[%s9868_s2 + $0xb0] sm:$0xff]   ;;  %6866 = vmatprep.subr.bf16.mxu1 %v7328_v29 }
  0xc3   : > { %v1820_v49 = vrot.slane %v1818_v53, 5  ;;  %v1454_v62 = vld [vmem:[#allocation2 + $0x48] sm:$0xf]  ;;  %v2094_v19 = vrot.slane %v2093_v36, 4  ;;  %349 = vst [vmem:[#allocation2 + $0x68] sm:$0x1] %v348_v46  ;;  %v8485_v26 = vsel %vm8448_vm8, %v2293_v61, %v2294_v24  ;;  %v1452_v41 = vsel %vm8247_vm15, %v1299_v28, %v1451_v40 }
  0xc4   : > { %v8453_v23 = vld [vmem:[%s7678_s20 + $0x3c] sm:$0xf]  ;;  %1450 = vst.msk [vmem:[#allocation2 + $0x40] sm:$0xf] %vm1414_vm9, %v1297_v13  ;;  %v2103_v50 = vor.u32 %v2102_v60, %v8435_v21  ;;  %v1687_v54 = vld [vmem:[#allocation2 + $0x30] sm:$0xf]  ;;  %v1455_v5 = vsel %vm8253_vm1, %v1301_v3, %v1454_v62  ;;  %v1305_v40 = vpop.permute.xlu1 %1304 }
  0xc5   : > { %v1722_v2 = vld [vmem:[#allocation2 + $0xbc] sm:$0x1]  ;;  %1449 = vst [vmem:[#allocation2 + $0x3c] sm:$0xf] %v1448_v8  ;;  %v1821_v10 = vsel %vm8043_vm5, %v1816_v9, %v1820_v49  ;;  %v1823_v22 = vshrl.u32 %v1687_v54, 16  ;;  %v655_v44 = vrot.slane %v8424_v37, 4  ;;  %v2099_v12 = vsel %vm8043_vm5, %v2094_v19, %v8435_v21  ;;  %6867 = vmatpush3.bf16.msra.mxu1 %v7330_v7  ;;  %v1303_v13 = vpop.permute.xlu0 %1302 }
  0xc6   : > { %v2106_v15 = vshll.u32 %v1722_v2, 16  ;;  %v7333_v27 = vld [vmem:[%s9868_s2 + $0xf8] sm:$0xff]   ;;  %v6332_v16 = vcombine.low %v1811_v4, %v1821_v10  ;;  %v7325_v42 = vld [vmem:[#allocation2 + $0x24] sm:$0xff]   ;;  %v2104_v48 = vrot.slane %v2103_v50, 4  ;;  %v1826_v25 = vshll.u32 %v1687_v54, 16  ;;  %v7332_v2 = vld [vmem:[#allocation2 + $0xc] sm:$0xff]  }
  0xc7   : > { %v657_v31 = vshrl.u32 %v8453_v23, 16  ;;  %v1688_v43 = vld [vmem:[#allocation2 + $0x34] sm:$0xf]  ;;  %v1825_v35 = vrot.slane %v1823_v22, 4  ;;  %v1458_v20 = vld [vmem:[#allocation2 + $0x50] sm:$0x1]  ;;  %6868 = vmatprep.subr.bf16.mxu1 %v7333_v27 }
  0xc8   : > { %v2108_v59 = vrot.slane %v2106_v15, 5  ;;  %5153 = vmatprep.mubr.bf16.mxu0 %v6332_v16  ;;  %v1689_v51 = vld [vmem:[#allocation2 + $0x38] sm:$0x1]  ;;  %v1828_v52 = vrot.slane %v1826_v25, 5  ;;  %v1832_v0 = vshll.u32 %v1688_v43, 16  ;;  %v1836_v55 = vshrl.u32 %v1688_v43, 16  ;;  %v1309_v3 = vpop.permute.xlu1 %1308 }
  0xc9   : > { %1453 = vst [vmem:[#allocation2 + $0x44] sm:$0x1] %v1452_v41  ;;  %5154 = vmatmul.mubr.bf16.gmra.mrb[12].mxu0 %v7325_v42  ;;  %1456 = vst [vmem:[#allocation2 + $0x48] sm:$0xf] %v1455_v5  ;;  %v7334_v24 = vld [vmem:[%s9868_s2 + $0xb8] sm:$0xff]   ;;  %v1842_v17 = vshll.u32 %v1689_v51, 16  ;;  %v1459_v50 = vsel %vm8247_vm15, %v1305_v40, %v1458_v20  ;;  %v6361_v16 = vcombine.low %v8468_v14, %v8485_v26 }
  0xca   : > { %v2109_v34 = vsel %vm8043_vm5, %v2104_v48, %v2108_v59  ;;  %v903_v63 = vld [vmem:[#allocation2 + $0x60] sm:$0xf]  ;;  %v8496_v53 = vrot.slane %v657_v31, 7  ;;  %v7329_v33 = vld [vmem:[#allocation2 + $0xb4] sm:$0xff]   ;;  %v1829_v21 = vor.u32 %v1828_v52, %v1825_v35  ;;  %v1834_v60 = vrot.slane %v1832_v0, 5  ;;  %6869 = vmatpush3.bf16.msra.mxu1 %v7334_v24  ;;  %v1307_v31 = vpop.permute.xlu0 %1306 }
  0xcb   : > { %v6344_v36 = vcombine.low %v2099_v12, %v2109_v34  ;;  %v7336_v61 = vld [vmem:[%s9868_s2 + $0x1c0] sm:$0xff]   ;;  %v904_v46 = vsel %vm7905_vm14, %v654_v1, %v903_v63  ;;  %v436_v58 = vld [vmem:[#allocation2 + $0x68] sm:$0x1]  ;;  %v1461_v4 = vld [vmem:[#allocation2 + $0x54] sm:$0xf]  ;;  %v1838_v9 = vrot.slane %v1836_v55, 4 }
  0xcc   : > { %v1844_v49 = vrot.slane %v1842_v17, 5  ;;  %v1691_v62 = vld [vmem:[#allocation2 + $0x40] sm:$0xf]  ;;  %905 = vst [vmem:[#allocation2 + $0x60] sm:$0xf] %v904_v46  ;;  %v437_v19 = vsel %vm7783_vm10, 0, %v436_v58  ;;  %7078 = vmatprep.subr.bf16.mxu1 %v7336_v61  ;;  %v1462_v41 = vsel %vm8253_vm1, %v1307_v31, %v1461_v4 }
  0xcd   : > { %v660_v29 = vshll.u32 %v8453_v23, 16  ;;  %v8506_v8 = vld [vmem:[#allocation2 + $0x10] sm:$0xf]  ;;  %1457 = vst.msk [vmem:[#allocation2 + $0x4c] sm:$0xf] %vm1414_vm9, %v1303_v13  ;;  %5249 = vmatprep.mubr.bf16.mxu1 %v6344_v36  ;;  %v1830_v7 = vrot.slane %v1829_v21, 4  ;;  %v1839_v15 = vor.u32 %v1838_v9, %v1834_v60  ;;  %v1313_v13 = vpop.permute.xlu1 %1312 }
  0xce   : > { %v1690_v54 = vld [vmem:[#allocation2 + $0x3c] sm:$0xf]  ;;  %v1856_v1 = vshll.u32 %v1691_v62, 16  ;;  %v1860_v10 = vshrl.u32 %v1691_v62, 16  ;;  %438 = vst [vmem:[#allocation2 + $0x68] sm:$0x1] %v437_v19  ;;  %5250 = vmatmul.mubr.bf16.gmra.mrb[12].mxu1 %v7329_v33 }
  0xcf   : > { %1460 = vst [vmem:[#allocation2 + $0x50] sm:$0x1] %v1459_v50  ;;  %v1847_v27 = vshrl.u32 %v1690_v54, 16  ;;  %v1850_v22 = vshll.u32 %v1690_v54, 16  ;;  %v662_v23 = vor.u32 %v660_v29, %v8496_v53  ;;  %5290 = vmatprep.mubr.bf16.mxu1 %v7332_v2  ;;  %v8514_v25 = vld [vmem:[#allocation2 + $0x14] sm:$0x1]  ;;  %v1835_v51 = vsel %vm8043_vm5, %v1830_v7, %v1834_v60 }
  0xd0   : > { %v1858_v42 = vrot.slane %v1856_v1, 5  ;;  %v1862_v48 = vrot.slane %v1860_v10, 4  ;;  %v1840_v28 = vrot.slane %v1839_v15, 4  ;;  %v1465_v12 = vld [vmem:[#allocation2 + $0x5c] sm:$0x1]  ;;  %v7337_v14 = vld [vmem:[%s9868_s2 + $0x180] sm:$0xff]  }
  0xd1   : > { %v1849_v59 = vrot.slane %v1847_v27, 4  ;;  %v1852_v43 = vrot.slane %v1850_v22, 5  ;;  %v663_v35 = vsel %vm7493_vm2, %v655_v44, %v662_v23  ;;  %1464 = vst.msk [vmem:[#allocation2 + $0x58] sm:$0xf] %vm1414_vm9, %v1309_v3  ;;  %v1692_v26 = vld [vmem:[#allocation2 + $0x44] sm:$0x1] }
  0xd2   : > { %v1863_v5 = vor.u32 %v1862_v48, %v1858_v42  ;;  %v664_v20 = vrot.slane %v8496_v53, 4  ;;  %906 = vst.msk [vmem:[#allocation2 + $0x64] sm:$0xf] %vm849_vm11, %v663_v35  ;;  %v8528_v37 = vld [vmem:[#allocation2 + $0xc] sm:$0xe]  ;;  %v2298_v44 = vrot.slane %v8506_v8, 5  ;;  %v1845_v52 = vsel %vm8043_vm5, %v1840_v28, %v1844_v49 }
  0xd3   : > { %1463 = vst [vmem:[#allocation2 + $0x54] sm:$0xf] %v1462_v41  ;;  %v7335_v0 = vld [vmem:[#allocation2 + $0x30] sm:$0xff]   ;;  %v1853_v34 = vor.u32 %v1852_v43, %v1849_v59  ;;  %v1866_v24 = vshll.u32 %v1692_v26, 16  ;;  %v7345_v55 = vld [vmem:[%s9868_s2 + $0x1c8] sm:$0xff]   ;;  %v6333_v17 = vcombine.low %v1835_v51, %v1845_v52  ;;  %v2301_v36 = vrot.slane %v8514_v25, 5 }
  0xd4   : > { %v1864_v63 = vrot.slane %v1863_v5, 4  ;;  %v1468_v53 = vld [vmem:[#allocation2 + $0x60] sm:$0xf]  ;;  %v1693_v33 = vld [vmem:[#allocation2 + $0x48] sm:$0xf]  ;;  %v7338_v9 = vld [vmem:[#allocation2 + $0x18] sm:$0xff]  }
  0xd5   : > { %v294_v21 = vld [vmem:[#allocation2 + $0x6c] sm:$0x1]  ;;  %v8540_v61 = vld [vmem:[%s7678_s20 + $0x40] sm:$0xf]  ;;  %v1854_v46 = vrot.slane %v1853_v34, 4  ;;  %v1868_v58 = vrot.slane %v1866_v24, 5  ;;  %5161 = vmatprep.mubr.bf16.mxu0 %v6333_v17  ;;  %v1469_v62 = vsel %vm8253_vm1, %v1313_v13, %v1468_v53 }
  0xd6   : > { %v1311_v60 = vpop.permute.xlu0 %1310  ;;  %v907_v40 = vld [vmem:[#allocation2 + $0x68] sm:$0x1]  ;;  %v1694_v4 = vld [vmem:[#allocation2 + $0x4c] sm:$0xf]  ;;  %v2300_v29 = vrot.slane %v2298_v44, 4  ;;  %5162 = vmatmul.mubr.bf16.gmra.mrb[16].mxu0 %v7335_v0  ;;  %5291 = vmatmul.mubr.bf16.vlgmr.msra.gmra.mrb[16].mxu1 %v6361_v16  ;;  %v6346_v1 = vrot.slane %v8528_v37, 9 }
  0xd7   : > { %v1466_v49 = vsel %vm8247_vm15, %v1311_v60, %v1465_v12  ;;  %v908_v19 = vsel %vm7890_vm13, %v664_v20, %v907_v40  ;;  %v1695_v2 = vld [vmem:[#allocation2 + $0x50] sm:$0x1]  ;;  %v7347_v50 = vld [vmem:[%s9868_s2 + $0x188] sm:$0xff]   ;;  %v1859_v7 = vsel %vm8043_vm5, %v1854_v46, %v1858_v42  ;;  %v1869_v54 = vsel %vm8043_vm5, %v1864_v63, %v1868_v58  ;;  %1470 = vst [vmem:[#allocation2 + $0x60] sm:$0xf] %v1469_v62  ;;  %v7362_v24 = vld [vmem:[%s9868_s2 + $0x1d8] sm:$0xff]  }
  0xd8   : > { %1467 = vst [vmem:[#allocation2 + $0x5c] sm:$0x1] %v1466_v49  ;;  %909 = vst [vmem:[#allocation2 + $0x68] sm:$0x1] %v908_v19  ;;  %v1871_v10 = vshrl.u32 %v1693_v33, 16  ;;  %7079 = vmatpush3.bf16.msra.mxu1 %v7337_v14  ;;  %5298 = vmatprep.mubr.bf16.mxu1 %v7338_v9  ;;  %v6334_v22 = vcombine.low %v1859_v7, %v1869_v54  ;;  %v1874_v23 = vshll.u32 %v1693_v33, 16 }
  0xd9   : > { %v350_v15 = vld [vmem:[#allocation2 + $0x74] sm:$0x1]  ;;  %v512_v27 = vld [vmem:[%s7678_s20 + $0x44] sm:$0xf]  ;;  %v1880_v48 = vshll.u32 %v1694_v4, 16  ;;  %v1884_v16 = vshrl.u32 %v1694_v4, 16  ;;  %7080 = vmatprep.subr.bf16.mxu1 %v7345_v55  ;;  %v2302_v35 = vsel %vm8448_vm8, %v2300_v29, %v2301_v36  ;;  %v2299_v51 = vsel %vm8448_vm8, %v6346_v1, %v2298_v44 }
  0xda   : > { %v8559_v25 = vld [vmem:[#allocation2 + $0x1c] sm:$0xf]  ;;  %v7354_v42 = vld [vmem:[%s9868_s2 + $0x1d0] sm:$0xff]   ;;  %v1315_v31 = vpop.permute.xlu0 %1314  ;;  %v1873_v28 = vrot.slane %v1871_v10, 4  ;;  %v1890_v3 = vshll.u32 %v1695_v2, 16  ;;  %v295_v12 = vsel %vm7715_vm7, 0, %v294_v21  ;;  %5169 = vmatprep.mubr.bf16.mxu0 %v6334_v22  ;;  %v6362_v33 = vcombine.low %v2299_v51, %v2302_v35 }
  0xdb   : > { %v666_v59 = vshrl.u32 %v8540_v61, 16  ;;  %v8567_v43 = vld [vmem:[#allocation2 + $0x20] sm:$0x1]  ;;  %1471 = vst.msk [vmem:[#allocation2 + $0x64] sm:$0xf] %vm1414_vm9, %v1315_v31  ;;  %v1317_v41 = vpop.permute.xlu1 %1316  ;;  %v1876_v14 = vrot.slane %v1874_v23, 5 }
  0xdc   : > { %v1882_v26 = vrot.slane %v1880_v48, 5  ;;  %v1886_v5 = vrot.slane %v1884_v16, 4  ;;  %296 = vst [vmem:[#allocation2 + $0x6c] sm:$0x1] %v295_v12  ;;  %v8572_v20 = vld [vmem:[#allocation2 + $0x18] sm:$0xe]  ;;  %7081 = vmatpush3.bf16.msra.mxu1 %v7347_v50 }
  0xdd   : > { %v7355_v37 = vld [vmem:[%s9868_s2 + $0x190] sm:$0xff]   ;;  %v8581_v52 = vrot.slane %v666_v59, 7  ;;  %v351_v0 = vsel %vm7705_vm6, 0, %v350_v15  ;;  %v674_v34 = vshrl.u32 %v512_v27, 16  ;;  %v7342_v55 = vld [vmem:[#allocation2 + $0x24] sm:$0xff]   ;;  %v1877_v17 = vor.u32 %v1876_v14, %v1873_v28  ;;  %v7341_v8 = vld [vmem:[#allocation2 + $0x3c] sm:$0xff]   ;;  %7082 = vmatprep.subr.bf16.mxu1 %v7354_v42 }
  0xde   : > { %v1887_v63 = vor.u32 %v1886_v5, %v1882_v26  ;;  %v1892_v53 = vrot.slane %v1890_v3, 5  ;;  %352 = vst [vmem:[#allocation2 + $0x74] sm:$0x1] %v351_v0  ;;  %v677_v36 = vshll.u32 %v512_v27, 16  ;;  %v2305_v60 = vrot.slane %v8559_v25, 5  ;;  %v8592_v4 = vpop.permute.xlu0 %1318  ;;  %v7363_v62 = vld [vmem:[%s9868_s2 + $0x198] sm:$0xff]   ;;  %5170 = vmatmul.mubr.bf16.gmra.mrb[20].mxu0 %v7341_v8  ;;  %5299 = vmatmul.mubr.bf16.gmra.mrb[20].mxu1 %v6362_v33 }
  0xdf   : > { %v672_v44 = vrot.slane %v8581_v52, 4  ;;  %v8589_v21 = vrot.slane %v674_v34, 7  ;;  %v1696_v46 = vld [vmem:[#allocation2 + $0x54] sm:$0xf]  ;;  %v1472_v58 = vld [vmem:[#allocation2 + $0x68] sm:$0x1]  ;;  %5306 = vmatprep.mubr.bf16.mxu1 %v7342_v55  ;;  %v1321_v27 = vpop.permute.xlu1 %1320 }
  0xe0   : > { %v1878_v13 = vrot.slane %v1877_v17, 4  ;;  %v1888_v40 = vrot.slane %v1887_v63, 4  ;;  %v2308_v9 = vrot.slane %v8567_v43, 5  ;;  %v1895_v49 = vshrl.u32 %v1696_v46, 16  ;;  %v1697_v7 = vld [vmem:[#allocation2 + $0x58] sm:$0xf]  ;;  %7083 = vmatpush3.bf16.msra.mxu1 %v7355_v37 }
  0xe1   : > { %v1473_v19 = vsel %vm8247_vm15, %v1317_v41, %v1472_v58  ;;  %v669_v29 = vshll.u32 %v8540_v61, 16  ;;  %v679_v2 = vor.u32 %v677_v36, %v8589_v21  ;;  %v6347_v50 = vrot.slane %v8572_v20, 9  ;;  %v1698_v54 = vld [vmem:[#allocation2 + $0x5c] sm:$0x1]  ;;  %v7369_v1 = vld [vmem:[%s9868_s2 + $0x1e0] sm:$0xff]   ;;  %7084 = vmatprep.subr.bf16.mxu1 %v7362_v24  ;;  %v7374_v0 = vld [vmem:[%s9868_s2 + $0x1e8] sm:$0xff]  }
  0xe2   : > { %1474 = vst [vmem:[#allocation2 + $0x68] sm:$0x1] %v1473_v19  ;;  %v1883_v10 = vsel %vm8043_vm5, %v1878_v13, %v1882_v26  ;;  %v1893_v15 = vsel %vm8043_vm5, %v1888_v40, %v1892_v53  ;;  %v2307_v61 = vrot.slane %v2305_v60, 4  ;;  %v1897_v22 = vrot.slane %v1895_v49, 4  ;;  %v297_v23 = vld [vmem:[#allocation2 + $0x78] sm:$0x1]  ;;  %v8634_v17 = vpop.permute.xlu0 %1322 }
  0xe3   : > { %v8611_v48 = vld [vmem:[%s7678_s20 + $0x48] sm:$0xf]  ;;  %v6335_v16 = vcombine.low %v1883_v10, %v1893_v15  ;;  %v439_v25 = vld [vmem:[#allocation2 + $0x6c] sm:$0xf]  ;;  %v680_v42 = vsel %vm7493_vm2, %v672_v44, %v679_v2  ;;  %v1898_v31 = vshll.u32 %v1696_v46, 16  ;;  %v1904_v28 = vshll.u32 %v1697_v7, 16 }
  0xe4   : > { %v353_v3 = vld [vmem:[#allocation2 + $0x80] sm:$0x1]  ;;  %v440_v12 = vsel %vm7801_vm12, 0, %v439_v25  ;;  %913 = vst.msk [vmem:[#allocation2 + $0x70] sm:$0xf] %vm849_vm11, %v680_v42  ;;  %v2309_v59 = vsel %vm8448_vm8, %v2307_v61, %v2308_v9  ;;  %v1908_v43 = vshrl.u32 %v1697_v7, 16  ;;  %v2306_v5 = vsel %vm8448_vm8, %v6347_v50, %v2305_v60  ;;  %7085 = vmatpush3.bf16.msra.mxu1 %v7363_v62 }
  0xe5   : > { %v1914_v35 = vshll.u32 %v1698_v54, 16  ;;  %v514_v41 = vld [vmem:[%s7678_s20 + $0x4c] sm:$0xf]  ;;  %v7371_v14 = vld [vmem:[%s9868_s2 + $0x1a0] sm:$0xff]   ;;  %5177 = vmatprep.mubr.bf16.mxu0 %v6335_v16  ;;  %441 = vst [vmem:[#allocation2 + $0x6c] sm:$0xf] %v440_v12  ;;  %v6363_v24 = vcombine.low %v2306_v5, %v2309_v59  ;;  %7086 = vmatprep.subr.bf16.mxu1 %v7369_v1  ;;  %v671_v46 = vor.u32 %v669_v29, %v8581_v52 }
  0xe6   : > { %v443_v26 = vld [vmem:[#allocation2 + $0x74] sm:$0x1]  ;;  %1478 = vst.msk [vmem:[#allocation2 + $0x70] sm:$0xf] %vm1414_vm9, %v1321_v27  ;;  %v1900_v20 = vrot.slane %v1898_v31, 5  ;;  %v1906_v37 = vrot.slane %v1904_v28, 5  ;;  %v1327_v42 = vpop.permute.xlu0 %1326 }
  0xe7   : > { %v298_v51 = vsel %vm7715_vm7, 0, %v297_v23  ;;  %v444_v34 = vsel %vm7783_vm10, 0, %v443_v26  ;;  %v7348_v55 = vld [vmem:[#allocation2 + $0x30] sm:$0xff]   ;;  %v1910_v63 = vrot.slane %v1908_v43, 4  ;;  %v683_v53 = vshrl.u32 %v8611_v48, 16  ;;  %v7344_v36 = vld [vmem:[#allocation2 + $0x48] sm:$0xff]   ;;  %5307 = vmatmul.mubr.bf16.gmra.mrb[24].mxu1 %v6363_v24 }
  0xe8   : > { %299 = vst [vmem:[#allocation2 + $0x78] sm:$0x1] %v298_v51  ;;  %445 = vst [vmem:[#allocation2 + $0x74] sm:$0x1] %v444_v34  ;;  %v1901_v8 = vor.u32 %v1900_v20, %v1897_v22  ;;  %v1916_v33 = vrot.slane %v1914_v35, 5  ;;  %v354_v44 = vsel %vm7705_vm6, 0, %v353_v3  ;;  %5178 = vmatmul.mubr.bf16.gmra.mrb[24].mxu0 %v7344_v36  ;;  %5314 = vmatprep.mubr.bf16.mxu1 %v7348_v55  ;;  %v8677_v55 = vpop.permute.xlu1 %1324 }
  0xe9   : > { %v691_v60 = vshrl.u32 %v514_v41, 16  ;;  %v1911_v58 = vor.u32 %v1910_v63, %v1906_v37  ;;  %v8640_v13 = vrot.slane %v683_v53, 7  ;;  %355 = vst [vmem:[#allocation2 + $0x80] sm:$0x1] %v354_v44  ;;  %v694_v40 = vshll.u32 %v514_v41, 16  ;;  %v7376_v62 = vld [vmem:[%s9868_s2 + $0x1a8] sm:$0xff]   ;;  %7087 = vmatpush3.bf16.msra.mxu1 %v7371_v14 }
  0xea   : > { %v2199_v9 = vld [vmem:[#allocation2 + $0x24] sm:$0xe]  ;;  %v2200_v49 = vld [vmem:[#allocation2 + $0x28] sm:$0xf]  ;;  %v1902_v19 = vrot.slane %v1901_v8, 4  ;;  %v7379_v10 = vld [vmem:[%s9868_s2 + $0x1f0] sm:$0xff]   ;;  %7088 = vmatprep.subr.bf16.mxu1 %v7374_v0 }
  0xeb   : > { %v8645_v2 = vrot.slane %v691_v60, 7  ;;  %v2201_v50 = vld [vmem:[#allocation2 + $0x2c] sm:$0x1]  ;;  %v6348_v7 = vrot.slane %v2199_v9, 9  ;;  %v2312_v54 = vrot.slane %v2200_v49, 5  ;;  %v1912_v52 = vrot.slane %v1911_v58, 4 }
  0xec   : > { %v689_v29 = vrot.slane %v8640_v13, 4  ;;  %v2315_v1 = vrot.slane %v2201_v50, 5  ;;  %v681_v15 = vrot.slane %v8589_v21, 4  ;;  %v1907_v27 = vsel %vm8043_vm5, %v1902_v19, %v1906_v37  ;;  %v1699_v23 = vld [vmem:[#allocation2 + $0x60] sm:$0xf]  ;;  %v7381_v12 = vld [vmem:[%s9868_s2 + $0x1b0] sm:$0xff]  }
  0xed   : > { %v686_v61 = vshll.u32 %v8611_v48, 16  ;;  %v696_v22 = vor.u32 %v694_v40, %v8645_v2  ;;  %v910_v16 = vld [vmem:[#allocation2 + $0x6c] sm:$0xf]  ;;  %v1917_v25 = vsel %vm8043_vm5, %v1912_v52, %v1916_v33  ;;  %v2313_v31 = vsel %vm8448_vm8, %v6348_v7, %v2312_v54  ;;  %v1700_v3 = vld [vmem:[#allocation2 + $0x64] sm:$0xf]  ;;  %v7349_v41 = vld [vmem:[#allocation2 + $0x54] sm:$0xff]   ;;  %7089 = vmatpush3.bf16.msra.mxu1 %v7376_v62 }
  0xee   : > { %v2314_v28 = vrot.slane %v2312_v54, 4  ;;  %v1919_v21 = vshrl.u32 %v1699_v23, 16  ;;  %v911_v48 = vsel %vm7905_vm14, %v671_v46, %v910_v16  ;;  %v6336_v59 = vcombine.low %v1907_v27, %v1917_v25  ;;  %v1701_v14 = vld [vmem:[#allocation2 + $0x68] sm:$0x1]  ;;  %v7384_v34 = vld [vmem:[%s9868_s2 + $0x1f8] sm:$0xff]   ;;  %7090 = vmatprep.subr.bf16.mxu1 %v7379_v10 }
  0xef   : > { %v446_v43 = vld [vmem:[#allocation2 + $0x78] sm:$0xf]  ;;  %v697_v35 = vsel %vm7493_vm2, %v689_v29, %v696_v22  ;;  %v1922_v26 = vshll.u32 %v1699_v23, 16  ;;  %912 = vst [vmem:[#allocation2 + $0x6c] sm:$0xf] %v911_v48  ;;  %v1928_v0 = vshll.u32 %v1700_v3, 16  ;;  %v688_v9 = vor.u32 %v686_v61, %v8640_v13  ;;  %v8696_v61 = vpop.permute.xlu1 %1328 }
  0xf0   : > { %v914_v5 = vld [vmem:[#allocation2 + $0x74] sm:$0x1]  ;;  %v447_v20 = vsel %vm7801_vm12, 0, %v446_v43  ;;  %920 = vst.msk [vmem:[#allocation2 + $0x7c] sm:$0xf] %vm849_vm11, %v697_v35  ;;  %v2316_v37 = vsel %vm8448_vm8, %v2314_v28, %v2315_v1  ;;  %v1921_v51 = vrot.slane %v1919_v21, 4  ;;  %5185 = vmatprep.mubr.bf16.mxu0 %v6336_v59 }
  0xf1   : > { %v915_v24 = vsel %vm7890_vm13, %v681_v15, %v914_v5  ;;  %448 = vst [vmem:[#allocation2 + $0x78] sm:$0xf] %v447_v20  ;;  %v450_v63 = vld [vmem:[#allocation2 + $0x80] sm:$0x1]  ;;  %1485 = vst.msk [vmem:[#allocation2 + $0x7c] sm:$0xf] %vm1414_vm9, %v1327_v42  ;;  %v6364_v53 = vcombine.low %v2313_v31, %v2316_v37  ;;  %5186 = vmatmul.mubr.bf16.gmra.mrb[28].mxu0 %v7349_v41  ;;  %7091 = vmatpush3.bf16.msra.mxu1 %v7381_v12 }
  0xf2   : > { %v1924_v36 = vrot.slane %v1922_v26, 5  ;;  %v1932_v8 = vshrl.u32 %v1700_v3, 16  ;;  %916 = vst [vmem:[#allocation2 + $0x74] sm:$0x1] %v915_v24  ;;  %v451_v33 = vsel %vm7783_vm10, 0, %v450_v63  ;;  %v7350_v44 = vld [vmem:[#allocation2 + $0x3c] sm:$0xff]   ;;  %7092 = vmatprep.subr.bf16.mxu1 %v7384_v34 }
  0xf3   : > { %v1930_v60 = vrot.slane %v1928_v0, 5  ;;  %v1938_v46 = vshll.u32 %v1701_v14, 16  ;;  %452 = vst [vmem:[#allocation2 + $0x80] sm:$0x1] %v451_v33  ;;  %5315 = vmatmul.mubr.bf16.gmra.mrb[28].mxu1 %v6364_v53  ;;  %v300_v62 = vld [vmem:[#allocation2 + $0x84] sm:$0x1]  ;;  %v1333_v34 = vpop.permute.xlu1 %1332 }
  0xf4   : > { %v1925_v58 = vor.u32 %v1924_v36, %v1921_v51  ;;  %v1934_v40 = vrot.slane %v1932_v8, 4  ;;  %5322 = vmatprep.mubr.bf16.mxu1 %v7350_v44  ;;  %v8684_v19 = vld [vmem:[%s7678_s20 + $0x50] sm:$0xf]  ;;  %v7386_v50 = vld [vmem:[%s9868_s2 + $0x1b8] sm:$0xff]   ;;  %v301_v52 = vsel %vm7715_vm7, 0, %v300_v62  ;;  %v698_v27 = vrot.slane %v8645_v2, 4 }
  0xf5   : > { %v1940_v49 = vrot.slane %v1938_v46, 5  ;;  %v700_v29 = vshrl.u32 %v8684_v19, 16  ;;  %v356_v1 = vld [vmem:[#allocation2 + $0x8c] sm:$0x1]  ;;  %302 = vst [vmem:[#allocation2 + $0x84] sm:$0x1] %v301_v52  ;;  %7093 = vmatpush3.bf16.msra.mxu1 %v7386_v50 }
  0xf6   : > { %v1926_v7 = vrot.slane %v1925_v58, 4  ;;  %v1935_v54 = vor.u32 %v1934_v40, %v1930_v60  ;;  %v357_v13 = vsel %vm7705_vm6, 0, %v356_v1  ;;  %v516_v10 = vld [vmem:[%s7678_s20 + $0x54] sm:$0xf]  ;;  %v1475_v15 = vld [vmem:[#allocation2 + $0x6c] sm:$0xf] }
  0xf7   : > { %358 = vst [vmem:[#allocation2 + $0x8c] sm:$0x1] %v357_v13  ;;  %v708_v16 = vshrl.u32 %v516_v10, 16  ;;  %v1476_v25 = vsel %vm8253_vm1, %v8592_v4, %v1475_v15  ;;  %v702_v31 = vrot.slane %v700_v29, 7  ;;  %v711_v28 = vshll.u32 %v516_v10, 16  ;;  %v7353_v12 = vld [vmem:[#allocation2 + $0x60] sm:$0xff]  }
  0xf8   : > { %v1931_v22 = vsel %vm8043_vm5, %v1926_v7, %v1930_v60  ;;  %v1936_v23 = vrot.slane %v1935_v54, 4  ;;  %v917_v42 = vld [vmem:[#allocation2 + $0x78] sm:$0xf]  ;;  %1477 = vst [vmem:[#allocation2 + $0x6c] sm:$0xf] %v1476_v25  ;;  %v703_v0 = vshll.u32 %v8684_v19, 16 }
  0xf9   : > { %v1479_v3 = vld [vmem:[#allocation2 + $0x74] sm:$0x1]  ;;  %v918_v2 = vsel %vm7905_vm14, %v688_v9, %v917_v42  ;;  %v706_v43 = vrot.slane %v702_v31, 4  ;;  %v8710_v35 = vrot.slane %v708_v16, 7  ;;  %v2202_v14 = vld [vmem:[#allocation2 + $0x30] sm:$0xe] }
  0xfa   : > { %v1941_v21 = vsel %vm8043_vm5, %v1936_v23, %v1940_v49  ;;  %v1480_v48 = vsel %vm8247_vm15, %v8634_v17, %v1479_v3  ;;  %919 = vst [vmem:[#allocation2 + $0x78] sm:$0xf] %v918_v2  ;;  %v921_v59 = vld [vmem:[#allocation2 + $0x80] sm:$0x1]  ;;  %v2203_v26 = vld [vmem:[#allocation2 + $0x34] sm:$0xf]  ;;  %v705_v54 = vor.u32 %v703_v0, %v702_v31 }
  0xfb   : > { %v6337_v4 = vcombine.low %v1931_v22, %v1941_v21  ;;  %1481 = vst [vmem:[#allocation2 + $0x74] sm:$0x1] %v1480_v48  ;;  %v922_v41 = vsel %vm7890_vm13, %v698_v27, %v921_v59  ;;  %v2204_v5 = vld [vmem:[#allocation2 + $0x38] sm:$0x1]  ;;  %v713_v20 = vor.u32 %v711_v28, %v8710_v35  ;;  %v6349_v37 = vrot.slane %v2202_v14, 9  ;;  %v7356_v52 = vld [vmem:[#allocation2 + $0x48] sm:$0xff]  }
  0xfc   : > { %923 = vst [vmem:[#allocation2 + $0x80] sm:$0x1] %v922_v41  ;;  %v2319_v51 = vrot.slane %v2203_v26, 5  ;;  %v453_v17 = vld [vmem:[#allocation2 + $0x84] sm:$0xf]  ;;  %v2322_v24 = vrot.slane %v2204_v5, 5  ;;  %v1331_v41 = vpop.permute.xlu0 %1330 }
  0xfd   : > { %5193 = vmatprep.mubr.bf16.mxu0 %v6337_v4  ;;  %v454_v63 = vsel %vm7801_vm12, 0, %v453_v17  ;;  %v714_v36 = vsel %vm7493_vm2, %v706_v43, %v713_v20  ;;  %v1703_v60 = vld [vmem:[#allocation2 + $0x70] sm:$0xf]  ;;  %v715_v15 = vrot.slane %v8710_v35, 4  ;;  %v2206_v28 = vld [vmem:[#allocation2 + $0x40] sm:$0xf] }
  0xfe   : > { %5194 = vmatmul.mubr.bf16.gmra.mrb[32].mxu0 %v7353_v12  ;;  %v457_v53 = vld [vmem:[#allocation2 + $0x8c] sm:$0x1]  ;;  %v2320_v8 = vsel %vm8448_vm8, %v6349_v37, %v2319_v51  ;;  %v2321_v33 = vrot.slane %v2319_v51, 4  ;;  %455 = vst [vmem:[#allocation2 + $0x84] sm:$0xf] %v454_v63  ;;  %v1952_v40 = vshll.u32 %v1703_v60, 16 }
  0xff   : > { %v458_v44 = vsel %vm7783_vm10, 0, %v457_v53  ;;  %927 = vst.msk [vmem:[#allocation2 + $0x88] sm:$0xf] %vm849_vm11, %v714_v36  ;;  %v1702_v58 = vld [vmem:[#allocation2 + $0x6c] sm:$0xf]  ;;  %v1956_v9 = vshrl.u32 %v1703_v60, 16 }
 0x100   : > { %459 = vst [vmem:[#allocation2 + $0x8c] sm:$0x1] %v458_v44  ;;  %1492 = vst.msk [vmem:[#allocation2 + $0x88] sm:$0xf] %vm1414_vm9, %v1333_v34  ;;  %v2323_v46 = vsel %vm8448_vm8, %v2321_v33, %v2322_v24  ;;  %v1943_v19 = vshrl.u32 %v1702_v58, 16  ;;  %v1946_v50 = vshll.u32 %v1702_v58, 16 }
 0x101   : > { %v1482_v49 = vld [vmem:[#allocation2 + $0x78] sm:$0xf]  ;;  %v6365_v62 = vcombine.low %v2320_v8, %v2323_v46  ;;  %v1954_v1 = vrot.slane %v1952_v40, 5  ;;  %v1958_v13 = vrot.slane %v1956_v9, 4  ;;  %v2207_v3 = vld [vmem:[#allocation2 + $0x44] sm:$0x1] }
 0x102   : > { %v1483_v7 = vsel %vm8253_vm1, %v8677_v55, %v1482_v49  ;;  %v1704_v29 = vld [vmem:[#allocation2 + $0x74] sm:$0x1]  ;;  %v1945_v27 = vrot.slane %v1943_v19, 4  ;;  %v1948_v22 = vrot.slane %v1946_v50, 5  ;;  %v2205_v55 = vld [vmem:[#allocation2 + $0x3c] sm:$0xe] }
 0x103   : > { %1484 = vst [vmem:[#allocation2 + $0x78] sm:$0xf] %v1483_v7  ;;  %v1486_v10 = vld [vmem:[#allocation2 + $0x80] sm:$0x1]  ;;  %5323 = vmatmul.mubr.bf16.gmra.mrb[32].mxu1 %v6365_v62  ;;  %v1962_v23 = vshll.u32 %v1704_v29, 16  ;;  %v1959_v25 = vor.u32 %v1958_v13, %v1954_v1  ;;  %v6350_v2 = vrot.slane %v2205_v55, 9  ;;  %v1335_v62 = vpop.permute.xlu0 %1334 }
 0x104   : > { %v1487_v16 = vsel %vm8247_vm15, %v8696_v61, %v1486_v10  ;;  %5330 = vmatprep.mubr.bf16.mxu1 %v7356_v52  ;;  %v1949_v42 = vor.u32 %v1948_v22, %v1945_v27  ;;  %v2326_v48 = vrot.slane %v2206_v28, 5  ;;  %v2329_v59 = vrot.slane %v2207_v3, 5  ;;  %v1706_v37 = vld [vmem:[#allocation2 + $0x7c] sm:$0xf]  ;;  %v7357_v63 = vld [vmem:[#allocation2 + $0x6c] sm:$0xff]   ;;  %v7360_v36 = vld [vmem:[#allocation2 + $0x54] sm:$0xff]  }
 0x105   : > { %1488 = vst [vmem:[#allocation2 + $0x80] sm:$0x1] %v1487_v16  ;;  %v1964_v31 = vrot.slane %v1962_v23, 5  ;;  %v924_v21 = vld [vmem:[#allocation2 + $0x84] sm:$0xf]  ;;  %v1960_v12 = vrot.slane %v1959_v25, 4 }
 0x106   : > { %v925_v4 = vsel %vm7905_vm14, %v705_v54, %v924_v21  ;;  %v1950_v35 = vrot.slane %v1949_v42, 4  ;;  %v2327_v26 = vsel %vm8448_vm8, %v6350_v2, %v2326_v48  ;;  %v2328_v5 = vrot.slane %v2326_v48, 4  ;;  %v2208_v49 = vld [vmem:[#allocation2 + $0x48] sm:$0xe]  ;;  %v2209_v50 = vld [vmem:[#allocation2 + $0x4c] sm:$0xf] }
 0x107   : > { %v928_v43 = vld [vmem:[#allocation2 + $0x8c] sm:$0x1]  ;;  %926 = vst [vmem:[#allocation2 + $0x84] sm:$0xf] %v925_v4  ;;  %v1965_v14 = vsel %vm8043_vm5, %v1960_v12, %v1964_v31  ;;  %v1976_v34 = vshll.u32 %v1706_v37, 16  ;;  %v1980_v24 = vshrl.u32 %v1706_v37, 16 }
 0x108   : > { %v929_v61 = vsel %vm7890_vm13, %v715_v15, %v928_v43  ;;  %v1955_v20 = vsel %vm8043_vm5, %v1950_v35, %v1954_v1  ;;  %v2330_v17 = vsel %vm8448_vm8, %v2328_v5, %v2329_v59  ;;  %v2210_v7 = vld [vmem:[#allocation2 + $0x50] sm:$0x1]  ;;  %v6351_v54 = vrot.slane %v2208_v49, 9  ;;  %v1709_v31 = vld [vmem:[#allocation2 + $0x88] sm:$0xf]  ;;  %v7364_v21 = vld [vmem:[#allocation2 + $0x60] sm:$0xff]  }
 0x109   : > { %930 = vst [vmem:[#allocation2 + $0x8c] sm:$0x1] %v929_v61  ;;  %v6338_v51 = vcombine.low %v1955_v20, %v1965_v14  ;;  %v6366_v53 = vcombine.low %v2327_v26, %v2330_v17  ;;  %v1978_v60 = vrot.slane %v1976_v34, 5  ;;  %v1982_v46 = vrot.slane %v1980_v24, 4  ;;  %v2211_v43 = vld [vmem:[#allocation2 + $0x54] sm:$0xe] }
 0x10a   : > { %v1705_v0 = vld [vmem:[#allocation2 + $0x78] sm:$0xf]  ;;  %v2333_v13 = vrot.slane %v2209_v50, 5  ;;  %v2336_v10 = vrot.slane %v2210_v7, 5  ;;  %v2000_v12 = vshll.u32 %v1709_v31, 16  ;;  %v2004_v48 = vshrl.u32 %v1709_v31, 16 }
 0x10b   : > { %v1967_v8 = vshrl.u32 %v1705_v0, 16  ;;  %v1970_v33 = vshll.u32 %v1705_v0, 16  ;;  %5201 = vmatprep.mubr.bf16.mxu0 %v6338_v51  ;;  %5331 = vmatmul.mubr.bf16.gmra.mrb[36].mxu1 %v6366_v53  ;;  %v1983_v19 = vor.u32 %v1982_v46, %v1978_v60  ;;  %v7361_v3 = vld [vmem:[#allocation2 + $0x78] sm:$0xff]   ;;  %v6352_v26 = vrot.slane %v2211_v43, 9  ;;  %v3138_v51 = vld [vmem:[#allocation2 + $0x10] sm:$0xf] }
 0x10c   : > { %v1707_v44 = vld [vmem:[#allocation2 + $0x80] sm:$0x1]  ;;  %5202 = vmatmul.mubr.bf16.gmra.mrb[36].mxu0 %v7357_v63  ;;  %5338 = vmatprep.mubr.bf16.mxu1 %v7360_v36  ;;  %v2334_v25 = vsel %vm8448_vm8, %v6351_v54, %v2333_v13  ;;  %v2335_v55 = vrot.slane %v2333_v13, 4  ;;  %v2002_v35 = vrot.slane %v2000_v12, 5  ;;  %v2212_v61 = vld [vmem:[#allocation2 + $0x58] sm:$0xf] }
 0x10d   : > { %v1969_v58 = vrot.slane %v1967_v8, 4  ;;  %v1972_v40 = vrot.slane %v1970_v33, 5  ;;  %v1986_v9 = vshll.u32 %v1707_v44, 16  ;;  %v1984_v22 = vrot.slane %v1983_v19, 4  ;;  %v2213_v14 = vld [vmem:[#allocation2 + $0x5c] sm:$0x1] }
 0x10e   : > { %v1489_v52 = vld [vmem:[#allocation2 + $0x84] sm:$0xf]  ;;  %v2337_v2 = vsel %vm8448_vm8, %v2335_v55, %v2336_v10  ;;  %v2340_v5 = vrot.slane %v2212_v61, 5  ;;  %v2343_v20 = vrot.slane %v2213_v14, 5  ;;  %v3139_v17 = vld [vmem:[#allocation2 + $0x14] sm:$0x1] }
 0x10f   : > { %v1973_v29 = vor.u32 %v1972_v40, %v1969_v58  ;;  %v1988_v1 = vrot.slane %v1986_v9, 5  ;;  %v1490_v15 = vsel %vm8253_vm1, %v1331_v41, %v1489_v52  ;;  %v6367_v4 = vcombine.low %v2334_v25, %v2337_v2  ;;  %v3137_v49 = vld [vmem:[#allocation2 + $0xc] sm:$0xe]  ;;  %v2626_v19 = vld [vmem:[#allocation2 + $0x10] sm:$0xf] }
 0x110   : > { %v1493_v27 = vld [vmem:[#allocation2 + $0x8c] sm:$0x1]  ;;  %1491 = vst [vmem:[#allocation2 + $0x84] sm:$0xf] %v1490_v15  ;;  %v2006_v41 = vrot.slane %v2004_v48, 4  ;;  %v2341_v34 = vsel %vm8448_vm8, %v6352_v26, %v2340_v5  ;;  %v2342_v24 = vrot.slane %v2340_v5, 4 }
 0x111   : > { %v1494_v23 = vsel %vm8247_vm15, %v1335_v62, %v1493_v27  ;;  %v1974_v16 = vrot.slane %v1973_v29, 4  ;;  %v1989_v42 = vsel %vm8043_vm5, %v1984_v22, %v1988_v1  ;;  %v3235_v33 = vrot.slane %v3138_v51, 5  ;;  %v2625_v62 = vld [vmem:[#allocation2 + $0xc] sm:$0xf]  ;;  %v2627_v54 = vld [vmem:[#allocation2 + $0x14] sm:$0x1] }
 0x112   : > { %1495 = vst [vmem:[#allocation2 + $0x8c] sm:$0x1] %v1494_v23  ;;  %v2007_v37 = vor.u32 %v2006_v41, %v2002_v35  ;;  %v3238_v46 = vrot.slane %v3139_v17, 5  ;;  %v2674_v52 = vshrl.u32 %v2625_v62, 16  ;;  %v2677_v29 = vshll.u32 %v2625_v62, 16  ;;  %v7368_v13 = vld [vmem:[#allocation2 + $0x6c] sm:$0xff]  }
 0x113   : > { %v1979_v28 = vsel %vm8043_vm5, %v1974_v16, %v1978_v60  ;;  %5339 = vmatmul.mubr.bf16.gmra.mrb[40].mxu1 %v6367_v4  ;;  %v2344_v60 = vsel %vm8448_vm8, %v2342_v24, %v2343_v20  ;;  %v3237_v7 = vrot.slane %v3235_v33, 4  ;;  %v2683_v10 = vshll.u32 %v2626_v19, 16  ;;  %v2215_v12 = vld [vmem:[#allocation2 + $0x64] sm:$0xf]  ;;  %v2216_v43 = vld [vmem:[#allocation2 + $0x68] sm:$0x1] }
 0x114   : > { %v6339_v59 = vcombine.low %v1979_v28, %v1989_v42  ;;  %5346 = vmatprep.mubr.bf16.mxu1 %v7364_v21  ;;  %v2008_v8 = vrot.slane %v2007_v37, 4  ;;  %v6368_v9 = vcombine.low %v2341_v34, %v2344_v60  ;;  %v2687_v15 = vshrl.u32 %v2626_v19, 16  ;;  %v2214_v21 = vld [vmem:[#allocation2 + $0x60] sm:$0xe]  ;;  %v3141_v20 = vld [vmem:[#allocation2 + $0x1c] sm:$0xf] }
 0x115   : > { %v2693_v27 = vshll.u32 %v2627_v54, 16  ;;  %v2676_v22 = vrot.slane %v2674_v52, 4  ;;  %v2679_v23 = vrot.slane %v2677_v29, 5  ;;  %v2685_v55 = vrot.slane %v2683_v10, 5  ;;  %v3142_v37 = vld [vmem:[#allocation2 + $0x20] sm:$0x1] }
 0x116   : > { %5209 = vmatprep.mubr.bf16.mxu0 %v6339_v59  ;;  %v2689_v42 = vrot.slane %v2687_v15, 4  ;;  %v6409_v31 = vrot.slane %v3137_v49, 9  ;;  %v3239_v28 = vsel %vm8448_vm8, %v3237_v7, %v3238_v46  ;;  %v6353_v41 = vrot.slane %v2214_v21, 9  ;;  %v3140_v24 = vld [vmem:[#allocation2 + $0x18] sm:$0xe] }
 0x117   : > { %5210 = vmatmul.mubr.bf16.gmra.mrb[40].mxu0 %v7361_v3  ;;  %v1708_v0 = vld [vmem:[#allocation2 + $0x84] sm:$0xf]  ;;  %v2680_v3 = vor.u32 %v2679_v23, %v2676_v22  ;;  %v2695_v2 = vrot.slane %v2693_v27, 5  ;;  %v2347_v61 = vrot.slane %v2215_v12, 5  ;;  %v2350_v5 = vrot.slane %v2216_v43, 5 }
 0x118   : > { %v1991_v53 = vshrl.u32 %v1708_v0, 16  ;;  %v1994_v36 = vshll.u32 %v1708_v0, 16  ;;  %v7367_v59 = vld [vmem:[#allocation2 + $0x84] sm:$0xff]   ;;  %v2690_v4 = vor.u32 %v2689_v42, %v2685_v55  ;;  %v3236_v51 = vsel %vm8448_vm8, %v6409_v31, %v3235_v33  ;;  %v2628_v60 = vld [vmem:[#allocation2 + $0x18] sm:$0xf] }
 0x119   : > { %v1710_v63 = vld [vmem:[#allocation2 + $0x8c] sm:$0x1]  ;;  %v2681_v26 = vrot.slane %v2680_v3, 4  ;;  %v2348_v0 = vsel %vm8448_vm8, %v6353_v41, %v2347_v61  ;;  %v2349_v34 = vrot.slane %v2347_v61, 4  ;;  %v2629_v33 = vld [vmem:[#allocation2 + $0x1c] sm:$0xf] }
 0x11a   : > { %v2010_v44 = vshll.u32 %v1710_v63, 16  ;;  %v1993_v58 = vrot.slane %v1991_v53, 4  ;;  %v1996_v40 = vrot.slane %v1994_v36, 5  ;;  %v2691_v17 = vrot.slane %v2690_v4, 4  ;;  %v2630_v49 = vld [vmem:[#allocation2 + $0x20] sm:$0x1] }
 0x11b   : > { %5347 = vmatmul.mubr.bf16.gmra.mrb[44].mxu1 %v6368_v9  ;;  %v3242_v63 = vrot.slane %v3141_v20, 5  ;;  %v3245_v53 = vrot.slane %v3142_v37, 5  ;;  %v2686_v46 = vsel %vm8043_vm5, %v2681_v26, %v2685_v55  ;;  %v2217_v62 = vld [vmem:[#allocation2 + $0x6c] sm:$0xe]  ;;  %v2698_v19 = vshrl.u32 %v2628_v60, 16 }
 0x11c   : > { %v2012_v50 = vrot.slane %v2010_v44, 5  ;;  %v1997_v1 = vor.u32 %v1996_v40, %v1993_v58  ;;  %5354 = vmatprep.mubr.bf16.mxu1 %v7368_v13  ;;  %v2696_v36 = vsel %vm8043_vm5, %v2691_v17, %v2695_v2  ;;  %v7372_v44 = vld [vmem:[#allocation2 + $0x78] sm:$0xff]   ;;  %v6410_v40 = vrot.slane %v3140_v24, 9  ;;  %v2218_v52 = vld [vmem:[#allocation2 + $0x70] sm:$0xf]  ;;  %v7375_v4 = vld [vmem:[%s9868_s2 + $0x208] sm:$0xff]  }
 0x11d   : > { %v3244_v9 = vrot.slane %v3242_v63, 4  ;;  %v2707_v7 = vshll.u32 %v2629_v33, 16  ;;  %v2711_v54 = vshrl.u32 %v2629_v33, 16  ;;  %v6393_v29 = vcombine.low %v2686_v46, %v2696_v36  ;;  %v2219_v13 = vld [vmem:[#allocation2 + $0x74] sm:$0x1] }
 0x11e   : > { %v1998_v16 = vrot.slane %v1997_v1, 4  ;;  %v2013_v25 = vsel %vm8043_vm5, %v2008_v8, %v2012_v50  ;;  %v2351_v8 = vsel %vm8448_vm8, %v2349_v34, %v2350_v5  ;;  %v2701_v50 = vshll.u32 %v2628_v60, 16  ;;  %v3144_v3 = vld [vmem:[#allocation2 + $0x28] sm:$0xf]  ;;  %v2631_v37 = vld [vmem:[#allocation2 + $0x24] sm:$0xf] }
 0x11f   : > { %v6369_v58 = vcombine.low %v2348_v0, %v2351_v8  ;;  %v2717_v1 = vshll.u32 %v2630_v49, 16  ;;  %v6354_v10 = vrot.slane %v2217_v62, 9  ;;  %v2354_v15 = vrot.slane %v2218_v52, 5  ;;  %v7380_v17 = vld [vmem:[%s9868_s2 + $0x210] sm:$0xff]   ;;  %v7408_v0 = vld [vmem:[%s9868_s2 + $0x200] sm:$0xff]  }
 0x120   : > { %v2003_v48 = vsel %vm8043_vm5, %v1998_v16, %v2002_v35  ;;  %v6425_v35 = vcombine.low %v3236_v51, %v3239_v28  ;;  %v3246_v27 = vsel %vm8448_vm8, %v3244_v9, %v3245_v53  ;;  %v2700_v22 = vrot.slane %v2698_v19, 4  ;;  %v2632_v51 = vld [vmem:[#allocation2 + $0x28] sm:$0xf]  ;;  %v2220_v19 = vld [vmem:[#allocation2 + $0x78] sm:$0xe] }
 0x121   : > { %v6340_v14 = vcombine.low %v2003_v48, %v2013_v25  ;;  %v2703_v23 = vrot.slane %v2701_v50, 5  ;;  %v2709_v16 = vrot.slane %v2707_v7, 5  ;;  %v3143_v25 = vld [vmem:[#allocation2 + $0x24] sm:$0xe]  ;;  %v3243_v55 = vsel %vm8448_vm8, %v6410_v40, %v3242_v63  ;;  %v3145_v48 = vld [vmem:[#allocation2 + $0x2c] sm:$0x1] }
 0x122   : > { %v2713_v42 = vrot.slane %v2711_v54, 4  ;;  %v2719_v31 = vrot.slane %v2717_v1, 5  ;;  %v2356_v28 = vrot.slane %v2354_v15, 4  ;;  %v2355_v21 = vsel %vm8448_vm8, %v6354_v10, %v2354_v15  ;;  %v2633_v63 = vld [vmem:[#allocation2 + $0x2c] sm:$0x1] }
 0x123   : > { %5217 = vmatprep.mubr.bf16.mxu0 %v6340_v14  ;;  %5355 = vmatmul.mubr.bf16.gmra.mrb[48].mxu1 %v6369_v58  ;;  %v2704_v2 = vor.u32 %v2703_v23, %v2700_v22  ;;  %v2357_v12 = vrot.slane %v2219_v13, 5  ;;  %v6426_v43 = vcombine.low %v3243_v55, %v3246_v27  ;;  %v6411_v61 = vrot.slane %v3143_v25, 9  ;;  %v2221_v52 = vld [vmem:[#allocation2 + $0x7c] sm:$0xf]  ;;  %v3146_v22 = vld [vmem:[#allocation2 + $0x30] sm:$0xe] }
 0x124   : > { %5218 = vmatmul.mubr.bf16.gmra.mrb[44].mxu0 %v7367_v59  ;;  %5362 = vmatprep.mubr.bf16.mxu1 %v7372_v44  ;;  %v3249_v59 = vrot.slane %v3144_v3, 5  ;;  %v2714_v41 = vor.u32 %v2713_v42, %v2709_v16  ;;  %v3252_v14 = vrot.slane %v3145_v48, 5  ;;  %v2722_v53 = vshrl.u32 %v2631_v37, 16  ;;  %v7385_v23 = vld [vmem:[%s9868_s2 + $0x218] sm:$0xff]   ;;  %v3147_v55 = vld [vmem:[#allocation2 + $0x34] sm:$0xf] }
 0x125   : > { %5451 = vmatprep.mubr.bf16.mxu0 %v6425_v35  ;;  %v2705_v26 = vrot.slane %v2704_v2, 4  ;;  %v2358_v5 = vsel %vm8448_vm8, %v2356_v28, %v2357_v12  ;;  %v7373_v35 = vld [vmem:[#allocation2 + $0x84] sm:$0xff]   ;;  %v2725_v36 = vshll.u32 %v2631_v37, 16  ;;  %v2731_v44 = vshll.u32 %v2632_v51, 16  ;;  %v3148_v42 = vld [vmem:[#allocation2 + $0x38] sm:$0x1] }
 0x126   : > { %v3251_v20 = vrot.slane %v3249_v59, 4  ;;  %v2715_v34 = vrot.slane %v2714_v41, 4  ;;  %v6370_v24 = vcombine.low %v2355_v21, %v2358_v5  ;;  %v2735_v60 = vshrl.u32 %v2632_v51, 16  ;;  %v7377_v41 = vld [vmem:[#allocation2 + $0x90] sm:$0xff]   ;;  %v2636_v37 = vld [vmem:[#allocation2 + $0x38] sm:$0x1] }
 0x127   : > { %v2710_v8 = vsel %vm8043_vm5, %v2705_v26, %v2709_v16  ;;  %v2724_v46 = vrot.slane %v2722_v53, 4  ;;  %v2727_v58 = vrot.slane %v2725_v36, 5  ;;  %v2733_v9 = vrot.slane %v2731_v44, 5  ;;  %v7391_v53 = vld [vmem:[%s9868_s2 + $0x228] sm:$0xff]   ;;  %v4105_v45 = vld [vmem:[#allocation2 + $0x74] sm:$0x1] }
 0x128   : > { %v2720_v33 = vsel %vm8043_vm5, %v2715_v34, %v2719_v31  ;;  %v3253_v40 = vsel %vm8448_vm8, %v3251_v20, %v3252_v14  ;;  %v2737_v49 = vrot.slane %v2735_v60, 4  ;;  %v2741_v62 = vshll.u32 %v2633_v63, 16  ;;  %v7388_v14 = vld [vmem:[%s9868_s2 + $0x220] sm:$0xff]   ;;  %v2635_v20 = vld [vmem:[#allocation2 + $0x34] sm:$0xf] }
 0x129   : > { %v6394_v50 = vcombine.low %v2710_v8, %v2720_v33  ;;  %v3250_v7 = vsel %vm8448_vm8, %v6411_v61, %v3249_v59  ;;  %v2728_v54 = vor.u32 %v2727_v58, %v2724_v46  ;;  %v6355_v1 = vrot.slane %v2220_v19, 9  ;;  %v2634_v61 = vld [vmem:[#allocation2 + $0x30] sm:$0xf]  ;;  %v2223_v63 = vld [vmem:[#allocation2 + $0x84] sm:$0xe] }
 0x12a   : > { %v2738_v13 = vor.u32 %v2737_v49, %v2733_v9  ;;  %v2743_v10 = vrot.slane %v2741_v62, 5  ;;  %v2361_v15 = vrot.slane %v2221_v52, 5  ;;  %v6427_v16 = vcombine.low %v3250_v7, %v3253_v40  ;;  %v2224_v60 = vld [vmem:[#allocation2 + $0x88] sm:$0xf]  ;;  %v2225_v33 = vld [vmem:[#allocation2 + $0x8c] sm:$0x1] }
 0x12b   : > { %5363 = vmatmul.mubr.bf16.gmra.mrb[52].mxu1 %v6370_v24  ;;  %v2729_v25 = vrot.slane %v2728_v54, 4  ;;  %v6412_v31 = vrot.slane %v3146_v22, 9  ;;  %v3256_v21 = vrot.slane %v3147_v55, 5  ;;  %v3259_v12 = vrot.slane %v3148_v42, 5  ;;  %v3149_v49 = vld [vmem:[#allocation2 + $0x3c] sm:$0xe] }
 0x12c   : > { %5452 = vmatmul.mubr.bf16.vlgmr.msra.gmra.mrb[48].mxu0 %v6393_v29  ;;  %5370 = vmatprep.mubr.bf16.mxu1 %v7373_v35  ;;  %v2222_v29 = vld [vmem:[#allocation2 + $0x80] sm:$0x1]  ;;  %v2739_v28 = vrot.slane %v2738_v13, 4  ;;  %v2362_v3 = vsel %vm8448_vm8, %v6355_v1, %v2361_v15  ;;  %v2363_v2 = vrot.slane %v2361_v15, 4  ;;  %v2746_v51 = vshrl.u32 %v2634_v61, 16  ;;  %v7394_v15 = vld [vmem:[%s9868_s2 + $0x230] sm:$0xff]  }
 0x12d   : > { %5459 = vmatprep.mubr.bf16.mxu0 %v6426_v43  ;;  %7215 = vmatpush3.bf16.msra.mxu0 %v7408_v0  ;;  %v2364_v27 = vrot.slane %v2222_v29, 5  ;;  %v2734_v48 = vsel %vm8043_vm5, %v2729_v25, %v2733_v9  ;;  %v3258_v43 = vrot.slane %v3256_v21, 4  ;;  %v3257_v5 = vsel %vm8448_vm8, %v6412_v31, %v3256_v21  ;;  %v3150_v54 = vld [vmem:[#allocation2 + $0x40] sm:$0xf]  ;;  %v3151_v52 = vld [vmem:[#allocation2 + $0x44] sm:$0x1] }
 0x12e   : > { %7216 = vmatprep.subr.bf16.mxu0 %v7375_v4  ;;  %v2744_v59 = vsel %vm8043_vm5, %v2739_v28, %v2743_v10  ;;  %v2755_v34 = vshll.u32 %v2635_v20, 16  ;;  %v2759_v24 = vshrl.u32 %v2635_v20, 16  ;;  %v2765_v35 = vshll.u32 %v2636_v37, 16  ;;  %v2638_v31 = vld [vmem:[#allocation2 + $0x40] sm:$0xf] }
 0x12f   : > { %v3260_v0 = vsel %vm8448_vm8, %v3258_v43, %v3259_v12  ;;  %v6395_v36 = vcombine.low %v2734_v48, %v2744_v59  ;;  %v2748_v8 = vrot.slane %v2746_v51, 4  ;;  %v6356_v9 = vrot.slane %v2223_v63, 9  ;;  %v2639_v28 = vld [vmem:[#allocation2 + $0x44] sm:$0x1]  ;;  %v7378_v21 = vld [vmem:[#allocation2 + $0x9c] sm:$0xff]  }
 0x130   : > { %v2757_v46 = vrot.slane %v2755_v34, 5  ;;  %v2761_v58 = vrot.slane %v2759_v24, 4  ;;  %v2767_v40 = vrot.slane %v2765_v35, 5  ;;  %v6428_v62 = vcombine.low %v3257_v5, %v3260_v0  ;;  %v2226_v20 = vld [vmem:[#allocation2 + $0x90] sm:$0xe] }
 0x131   : > { %7217 = vmatpush3.bf16.msra.mxu0 %v7375_v4  ;;  %v2365_v4 = vsel %vm8448_vm8, %v2363_v2, %v2364_v27  ;;  %v2371_v7 = vrot.slane %v2225_v33, 5  ;;  %v6413_v1 = vrot.slane %v3149_v49, 9  ;;  %v3263_v13 = vrot.slane %v3150_v54, 5  ;;  %v2227_v37 = vld [vmem:[#allocation2 + $0x94] sm:$0xf] }
 0x132   : > { %7218 = vmatprep.subr.bf16.mxu0 %v7380_v17  ;;  %v6371_v26 = vcombine.low %v2362_v3, %v2365_v4  ;;  %v2762_v29 = vor.u32 %v2761_v58, %v2757_v46  ;;  %v3266_v10 = vrot.slane %v3151_v52, 5  ;;  %v2789_v0 = vshll.u32 %v2639_v28, 16  ;;  %v2228_v34 = vld [vmem:[#allocation2 + $0x98] sm:$0x1]  ;;  %v3154_v58 = vld [vmem:[#allocation2 + $0x50] sm:$0x1] }
 0x133   : > { %v3264_v55 = vsel %vm8448_vm8, %v6413_v1, %v3263_v13  ;;  %v3265_v42 = vrot.slane %v3263_v13, 4  ;;  %v6357_v24 = vrot.slane %v2226_v20, 9  ;;  %v7382_v28 = vld [vmem:[#allocation2 + $0xa8] sm:$0xff]   ;;  %v9611_v39 = vld [vmem:[%s9869_s3] ss:$0 sm:$0xff] }
 0x134   : > { %5460 = vmatmul.mubr.bf16.gmra.mrb[52].mxu0 %v6394_v50  ;;  %5371 = vmatmul.mubr.bf16.gmra.mrb[56].mxu1 %v6371_v26  ;;  %v2368_v50 = vrot.slane %v2224_v60, 5  ;;  %v2763_v25 = vrot.slane %v2762_v29, 4  ;;  %v3153_v60 = vld [vmem:[#allocation2 + $0x4c] sm:$0xf] }
 0x135   : > { %5467 = vmatprep.mubr.bf16.mxu0 %v6427_v16  ;;  %7219 = vmatpush3.bf16.msra.mxu0 %v7380_v17  ;;  %v2749_v17 = vshll.u32 %v2634_v61, 16  ;;  %v2637_v16 = vld [vmem:[#allocation2 + $0x3c] sm:$0xf]  ;;  %v3267_v43 = vsel %vm8448_vm8, %v3265_v42, %v3266_v10  ;;  %v315_v10 = vld [vmem:[#allocation2 + $0xc0] sm:$0x1] }
 0x136   : > { %7220 = vmatprep.subr.bf16.mxu0 %v7385_v23  ;;  %5378 = vmatprep.mubr.bf16.mxu1 %v7377_v41  ;;  %v2369_v22 = vsel %vm8448_vm8, %v6356_v9, %v2368_v50  ;;  %v2770_v12 = vshrl.u32 %v2637_v16, 16  ;;  %v2773_v48 = vshll.u32 %v2637_v16, 16  ;;  %v2768_v59 = vsel %vm8043_vm5, %v2763_v25, %v2767_v40  ;;  %v7397_v61 = vld [vmem:[%s9868_s2 + $0x238] sm:$0xff]   ;;  %v2641_v42 = vld [vmem:[#allocation2 + $0x4c] sm:$0xf] }
 0x137   : > { %v2751_v44 = vrot.slane %v2749_v17, 5  ;;  %v2779_v41 = vshll.u32 %v2638_v31, 16  ;;  %v2783_v17 = vshrl.u32 %v2638_v31, 16  ;;  %v6429_v35 = vcombine.low %v3264_v55, %v3267_v43  ;;  %v2640_v55 = vld [vmem:[#allocation2 + $0x48] sm:$0xf] }
 0x138   : > { %v2772_v26 = vrot.slane %v2770_v12, 4  ;;  %v2775_v5 = vrot.slane %v2773_v48, 5  ;;  %v316_v25 = vsel %vm7715_vm7, 0, %v315_v10  ;;  %v2807_v43 = vshrl.u32 %v2641_v42, 16  ;;  %v2233_v11 = vld [vmem:[#allocation2 + $0xac] sm:$0xf] }
 0x139   : > { %7221 = vmatpush3.bf16.msra.mxu0 %v7385_v23  ;;  %v2752_v19 = vor.u32 %v2751_v44, %v2748_v8  ;;  %v2370_v23 = vrot.slane %v2368_v50, 4  ;;  %v2781_v51 = vrot.slane %v2779_v41, 5  ;;  %v2378_v8 = vrot.slane %v2228_v34, 5  ;;  %v3152_v44 = vld [vmem:[#allocation2 + $0x48] sm:$0xe] }
 0x13a   : > { %7222 = vmatprep.subr.bf16.mxu0 %v7388_v14  ;;  %v2776_v63 = vor.u32 %v2775_v5, %v2772_v26  ;;  %v2785_v33 = vrot.slane %v2783_v17, 4  ;;  %v6414_v40 = vrot.slane %v3152_v44, 9  ;;  %317 = vst [vmem:[#allocation2 + $0xc0] sm:$0x1] %v316_v25  ;;  %v371_v41 = vld [vmem:[#allocation2 + $0xc8] sm:$0x1]  ;;  %v1363_v25 = vpop.permute.xlu0 %1362 }
 0x13b   : > { %v2753_v27 = vrot.slane %v2752_v19, 4  ;;  %v2372_v2 = vsel %vm8448_vm8, %v2370_v23, %v2371_v7  ;;  %v2809_v34 = vrot.slane %v2807_v43, 4  ;;  %v2230_v44 = vld [vmem:[#allocation2 + $0xa0] sm:$0xf] }
 0x13c   : > { %5468 = vmatmul.mubr.bf16.gmra.mrb[56].mxu0 %v6395_v36  ;;  %v6372_v4 = vcombine.low %v2369_v22, %v2372_v2  ;;  %v2375_v36 = vrot.slane %v2227_v37, 5  ;;  %v2777_v9 = vrot.slane %v2776_v63, 4  ;;  %v2786_v50 = vor.u32 %v2785_v33, %v2781_v51  ;;  %v2642_v2 = vld [vmem:[#allocation2 + $0x50] sm:$0x1] }
 0x13d   : > { %5475 = vmatprep.mubr.bf16.mxu0 %v6428_v62  ;;  %7223 = vmatpush3.bf16.msra.mxu0 %v7388_v14  ;;  %v2758_v3 = vsel %vm8043_vm5, %v2753_v27, %v2757_v46  ;;  %v2791_v46 = vrot.slane %v2789_v0, 5  ;;  %v3273_v62 = vrot.slane %v3154_v58, 5  ;;  %v525_v27 = vld [vmem:[%s7678_s20 + $0x78] sm:$0xf]  ;;  %v2813_v37 = vshll.u32 %v2642_v2, 16 }
 0x13e   : > { %7224 = vmatprep.subr.bf16.mxu0 %v7391_v53  ;;  %v6396_v14 = vcombine.low %v2758_v3, %v2768_v59  ;;  %5379 = vmatmul.mubr.bf16.gmra.mrb[60].mxu1 %v6372_v4  ;;  %v2377_v49 = vrot.slane %v2375_v36, 4  ;;  %v2782_v29 = vsel %vm8043_vm5, %v2777_v9, %v2781_v51  ;;  %v2376_v1 = vsel %vm8448_vm8, %v6357_v24, %v2375_v36  ;;  %v526_v51 = vld [vmem:[%s7678_s20 + $0x7c] sm:$0xf]  ;;  %v2231_v58 = vld [vmem:[#allocation2 + $0xa4] sm:$0x1] }
 0x13f   : > { %5386 = vmatprep.mubr.bf16.mxu1 %v7378_v21  ;;  %v2787_v22 = vrot.slane %v2786_v50, 4  ;;  %v785_v3 = vshrl.u32 %v525_v27, 16  ;;  %v2794_v21 = vshrl.u32 %v2640_v55, 16  ;;  %v2797_v59 = vshll.u32 %v2640_v55, 16  ;;  %v2229_v24 = vld [vmem:[#allocation2 + $0x9c] sm:$0xe] }
 0x140   : > { %v2379_v13 = vsel %vm8448_vm8, %v2377_v49, %v2378_v8  ;;  %v2803_v4 = vshll.u32 %v2641_v42, 16  ;;  %v2815_v63 = vrot.slane %v2813_v37, 5  ;;  %v793_v8 = vshrl.u32 %v526_v51, 16  ;;  %v7383_v37 = vld [vmem:[#allocation2 + $0xb4] sm:$0xff]  }
 0x141   : > { %7225 = vmatpush3.bf16.msra.mxu0 %v7391_v53  ;;  %v3270_v53 = vrot.slane %v3153_v60, 5  ;;  %v6758_v19 = vpop.f32.mrb[0].mxu0  ;;  %v6373_v23 = vcombine.low %v2376_v1, %v2379_v13  ;;  %v2792_v48 = vsel %vm8043_vm5, %v2787_v22, %v2791_v46  ;;  %v787_v5 = vrot.slane %v785_v3, 7 }
 0x142   : > { %7226 = vmatprep.subr.bf16.mxu0 %v7394_v15  ;;  %v6759_v52 = vpop.f32.mrb[1].mxu0  ;;  %v6397_v26 = vcombine.low %v2782_v29, %v2792_v48  ;;  %v2796_v20 = vrot.slane %v2794_v21, 4  ;;  %v2799_v17 = vrot.slane %v2797_v59, 5  ;;  %v2805_v0 = vrot.slane %v2803_v4, 5  ;;  %v3157_v29 = vld [vmem:[#allocation2 + $0x5c] sm:$0x1] }
 0x143   : > { %v3271_v7 = vsel %vm8448_vm8, %v6414_v40, %v3270_v53  ;;  %v3272_v54 = vrot.slane %v3270_v53, 4  ;;  %v6761_v12 = vpop.f32.mrb[2].mxu0  ;;  %v791_v36 = vrot.slane %v787_v5, 4  ;;  %v796_v46 = vshll.u32 %v526_v51, 16  ;;  %v3155_v53 = vld [vmem:[#allocation2 + $0x54] sm:$0xe] }
 0x144   : > { %5476 = vmatmul.mubr.bf16.gmra.mrb[60].mxu0 %v6396_v14  ;;  %v6762_v14 = vpop.f32.mrb[3].mxu0  ;;  %v2800_v60 = vor.u32 %v2799_v17, %v2796_v20  ;;  %v2810_v33 = vor.u32 %v2809_v34, %v2805_v0  ;;  %v6358_v40 = vrot.slane %v2229_v24, 9  ;;  %v8863_v9 = vrot.slane %v793_v8, 7  ;;  %v2645_v21 = vld [vmem:[#allocation2 + $0x5c] sm:$0x1] }
 0x145   : > { %5483 = vmatprep.mubr.bf16.mxu0 %v6429_v35  ;;  %7227 = vmatpush3.bf16.msra.mxu0 %v7394_v15  ;;  %v8852_v15 = vadd.f32 %v6759_v52, %v6758_v19  ;;  %v3274_v16 = vsel %vm8448_vm8, %v3272_v54, %v3273_v62  ;;  %v788_v35 = vshll.u32 %v525_v27, 16  ;;  %v2382_v49 = vrot.slane %v2230_v44, 5  ;;  %v3156_v19 = vld [vmem:[#allocation2 + $0x58] sm:$0xf]  ;;  %v2232_v8 = vld [vmem:[#allocation2 + $0xa8] sm:$0xe] }
 0x146   : > { %7228 = vmatprep.subr.bf16.mxu0 %v7397_v61  ;;  %v6430_v31 = vcombine.low %v3271_v7, %v3274_v16  ;;  %5387 = vmatmul.mubr.bf16.gmra.mrb[64].mxu1 %v6373_v23  ;;  %v2385_v62 = vrot.slane %v2231_v58, 5  ;;  %v6415_v50 = vrot.slane %v3155_v53, 9  ;;  %v488_v7 = vld [vmem:[#allocation2 + $0xc0] sm:$0xf]  ;;  %v2801_v54 = vrot.slane %v2800_v60, 4 }
 0x147   : > { %5394 = vmatprep.mubr.bf16.mxu1 %v7382_v28  ;;  %v2811_v52 = vrot.slane %v2810_v33, 4  ;;  %v8865_v1 = vadd.f32 %v6762_v14, %v6761_v12  ;;  %v489_v13 = vsel %vm7801_vm12, 0, %v488_v7  ;;  %v790_v10 = vor.u32 %v788_v35, %v787_v5  ;;  %v2644_v28 = vld [vmem:[#allocation2 + $0x58] sm:$0xf]  ;;  %v2234_v44 = vld [vmem:[#allocation2 + $0xb0] sm:$0x1] }
 0x148   : > { %v798_v27 = vor.u32 %v796_v46, %v8863_v9  ;;  %v2383_v22 = vsel %vm8448_vm8, %v6358_v40, %v2382_v49  ;;  %490 = vst [vmem:[#allocation2 + $0xc0] sm:$0xf] %v489_v13  ;;  %v2806_v23 = vsel %vm8043_vm5, %v2801_v54, %v2805_v0  ;;  %v2384_v55 = vrot.slane %v2382_v49, 4  ;;  %v3158_v58 = vld [vmem:[#allocation2 + $0x60] sm:$0xe] }
 0x149   : > { %7229 = vmatpush3.bf16.msra.mxu0 %v7397_v61  ;;  %v372_v61 = vsel %vm7705_vm6, 0, %v371_v41  ;;  %v2816_v16 = vsel %vm8043_vm5, %v2811_v52, %v2815_v63  ;;  %v3277_v42 = vrot.slane %v3156_v19, 5  ;;  %v3280_v2 = vrot.slane %v3157_v29, 5  ;;  %v3159_v49 = vld [vmem:[#allocation2 + $0x64] sm:$0xf] }
 0x14a   : > { %373 = vst [vmem:[#allocation2 + $0xc8] sm:$0x1] %v372_v61  ;;  %v6398_v18 = vcombine.low %v2806_v23, %v2816_v16  ;;  %v799_v3 = vsel %vm7493_vm2, %v791_v36, %v798_v27  ;;  %v2386_v59 = vsel %vm8448_vm8, %v2384_v55, %v2385_v62  ;;  %v2827_v5 = vshll.u32 %v2644_v28, 16  ;;  %v3160_v62 = vld [vmem:[#allocation2 + $0x68] sm:$0x1] }
 0x14b   : > { %962 = vst.msk [vmem:[#allocation2 + $0xc4] sm:$0xf] %vm849_vm11, %v799_v3  ;;  %v3278_v4 = vsel %vm8448_vm8, %v6415_v50, %v3277_v42  ;;  %v3279_v43 = vrot.slane %v3277_v42, 4  ;;  %v6374_v32 = vcombine.low %v2383_v22, %v2386_v59  ;;  %v2831_v17 = vshrl.u32 %v2644_v28, 16  ;;  %v2646_v16 = vld [vmem:[#allocation2 + $0x60] sm:$0xf] }
 0x14c   : > { %5484 = vmatmul.mubr.bf16.gmra.mrb[64].mxu0 %v6397_v26  ;;  %1527 = vst.msk [vmem:[#allocation2 + $0xc4] sm:$0xf] %vm1414_vm9, %v1363_v25  ;;  %v2837_v0 = vshll.u32 %v2645_v21, 16  ;;  %v800_v34 = vrot.slane %v8863_v9, 4  ;;  %v2829_v24 = vrot.slane %v2827_v5, 5  ;;  %v2389_v33 = vrot.slane %v2233_v11, 5  ;;  %v1361_v25 = vpop.permute.xlu1 %1360 }
 0x14d   : > { %5491 = vmatprep.mubr.bf16.mxu0 %v6430_v31  ;;  %v2643_v31 = vld [vmem:[#allocation2 + $0x54] sm:$0xf]  ;;  %v3281_v20 = vsel %vm8448_vm8, %v3279_v43, %v3280_v2  ;;  %v2833_v63 = vrot.slane %v2831_v17, 4  ;;  %v2392_v46 = vrot.slane %v2234_v44, 5  ;;  %v6416_v19 = vrot.slane %v3158_v58, 9 }
 0x14e   : > { %v2818_v12 = vshrl.u32 %v2643_v31, 16  ;;  %v2821_v41 = vshll.u32 %v2643_v31, 16  ;;  %5395 = vmatmul.mubr.bf16.gmra.mrb[68].mxu1 %v6374_v32  ;;  %v6431_v61 = vcombine.low %v3278_v4, %v3281_v20  ;;  %v2839_v36 = vrot.slane %v2837_v0, 5  ;;  %v2647_v28 = vld [vmem:[#allocation2 + $0x64] sm:$0xf] }
 0x14f   : > { %5402 = vmatprep.mubr.bf16.mxu1 %v7383_v37  ;;  %v959_v60 = vld [vmem:[#allocation2 + $0xc0] sm:$0xf]  ;;  %v2834_v9 = vor.u32 %v2833_v63, %v2829_v24  ;;  %v6359_v50 = vrot.slane %v2232_v8, 9  ;;  %v2391_v7 = vrot.slane %v2389_v33, 4  ;;  %v3284_v54 = vrot.slane %v3159_v49, 5 }
 0x150   : > { %v2820_v26 = vrot.slane %v2818_v12, 4  ;;  %v2823_v51 = vrot.slane %v2821_v41, 5  ;;  %v960_v40 = vsel %vm7905_vm14, %v790_v10, %v959_v60  ;;  %v3287_v52 = vrot.slane %v3160_v62, 5  ;;  %v2235_v59 = vld [vmem:[#allocation2 + $0xb4] sm:$0xe]  ;;  %v1365_v8 = vpop.permute.xlu1 %1364 }
 0x151   : > { %v492_v48 = vld [vmem:[#allocation2 + $0xc8] sm:$0x1]  ;;  %961 = vst [vmem:[#allocation2 + $0xc0] sm:$0xf] %v960_v40  ;;  %v2835_v13 = vrot.slane %v2834_v9, 4  ;;  %v2390_v22 = vsel %vm8448_vm8, %v6359_v50, %v2389_v33  ;;  %v2393_v56 = vsel %vm8448_vm8, %v2391_v7, %v2392_v46  ;;  %v3285_v10 = vsel %vm8448_vm8, %v6416_v19, %v3284_v54 }
 0x152   : > { %v493_v14 = vsel %vm7783_vm10, 0, %v492_v48  ;;  %v2824_v35 = vor.u32 %v2823_v51, %v2820_v26  ;;  %v3286_v23 = vrot.slane %v3284_v54, 4  ;;  %v6375_v31 = vcombine.low %v2390_v22, %v2393_v56  ;;  %v2236_v4 = vld [vmem:[#allocation2 + $0xb8] sm:$0xf]  ;;  %v2237_v32 = vld [vmem:[#allocation2 + $0xbc] sm:$0x1] }
 0x153   : > { %494 = vst [vmem:[#allocation2 + $0xc8] sm:$0x1] %v493_v14  ;;  %v2840_v42 = vsel %vm8043_vm5, %v2835_v13, %v2839_v36  ;;  %v2842_v3 = vshrl.u32 %v2646_v16, 16  ;;  %v2845_v12 = vshll.u32 %v2646_v16, 16  ;;  %v2851_v48 = vshll.u32 %v2647_v28, 16 }
 0x154   : > { %5492 = vmatmul.mubr.bf16.gmra.mrb[68].mxu0 %v6398_v18  ;;  %v2825_v53 = vrot.slane %v2824_v35, 4  ;;  %v2648_v18 = vld [vmem:[#allocation2 + $0x68] sm:$0x1]  ;;  %v3288_v21 = vsel %vm8448_vm8, %v3286_v23, %v3287_v52  ;;  %v2855_v41 = vshrl.u32 %v2647_v28, 16  ;;  %v2396_v20 = vrot.slane %v2236_v4, 5 }
 0x155   : > { %5499 = vmatprep.mubr.bf16.mxu0 %v6431_v61  ;;  %v6432_v43 = vcombine.low %v3285_v10, %v3288_v21  ;;  %v2844_v30 = vrot.slane %v2842_v3, 4  ;;  %v2861_v14 = vshll.u32 %v2648_v18, 16  ;;  %v2847_v26 = vrot.slane %v2845_v12, 5  ;;  %v3161_v37 = vld [vmem:[#allocation2 + $0x6c] sm:$0xe] }
 0x156   : > { %v2830_v29 = vsel %vm8043_vm5, %v2825_v53, %v2829_v24  ;;  %5403 = vmatmul.mubr.bf16.gmra.mrb[72].mxu1 %v6375_v31  ;;  %v2853_v5 = vrot.slane %v2851_v48, 5  ;;  %v2857_v17 = vrot.slane %v2855_v41, 4  ;;  %v2399_v0 = vrot.slane %v2237_v32, 5  ;;  %v3162_v63 = vld [vmem:[#allocation2 + $0x70] sm:$0xf] }
 0x157   : > { %v6399_v2 = vcombine.low %v2830_v29, %v2840_v42  ;;  %v2848_v24 = vor.u32 %v2847_v26, %v2844_v30  ;;  %v2863_v11 = vrot.slane %v2861_v14, 5  ;;  %v6360_v35 = vrot.slane %v2235_v59, 9  ;;  %v3163_v36 = vld [vmem:[#allocation2 + $0x74] sm:$0x1]  ;;  %v3570_v58 = vld [vmem:[#allocation2 + $0x18] sm:$0xf] }
 0x158   : > { %v1524_v51 = vld [vmem:[#allocation2 + $0xc0] sm:$0xf]  ;;  %v2858_v44 = vor.u32 %v2857_v17, %v2853_v5  ;;  %v2398_v60 = vrot.slane %v2396_v20, 4  ;;  %v3291_v33 = vrot.slane %v3162_v63, 5  ;;  %v3294_v46 = vrot.slane %v3163_v36, 5 }
 0x159   : > { %v1525_v61 = vsel %vm8253_vm1, %v1361_v25, %v1524_v51  ;;  %v2849_v40 = vrot.slane %v2848_v24, 4  ;;  %v2397_v53 = vsel %vm8448_vm8, %v6360_v35, %v2396_v20  ;;  %v3571_v9 = vld [vmem:[#allocation2 + $0x1c] sm:$0xf]  ;;  %v3619_v49 = vshrl.u32 %v3570_v58, 16  ;;  %v3572_v52 = vld [vmem:[#allocation2 + $0x20] sm:$0x1] }
 0x15a   : > { %v963_v27 = vld [vmem:[#allocation2 + $0xc8] sm:$0x1]  ;;  %1526 = vst [vmem:[#allocation2 + $0xc0] sm:$0xf] %v1525_v61  ;;  %v3622_v6 = vshll.u32 %v3570_v58, 16  ;;  %v2859_v19 = vrot.slane %v2858_v44, 4  ;;  %v2400_v50 = vsel %vm8448_vm8, %v2398_v60, %v2399_v0 }
 0x15b   : > { %v964_v55 = vsel %vm7890_vm13, %v800_v34, %v963_v27  ;;  %v6417_v34 = vrot.slane %v3161_v37, 9  ;;  %v3293_v54 = vrot.slane %v3291_v33, 4  ;;  %v2854_v13 = vsel %vm8043_vm5, %v2849_v40, %v2853_v5  ;;  %v2649_v56 = vld [vmem:[#allocation2 + $0x6c] sm:$0xf]  ;;  %v2650_v10 = vld [vmem:[#allocation2 + $0x70] sm:$0xf] }
 0x15c   : > { %965 = vst [vmem:[#allocation2 + $0xc8] sm:$0x1] %v964_v55  ;;  %5500 = vmatmul.mubr.bf16.gmra.mrb[72].mxu0 %v6399_v2  ;;  %v3621_v27 = vrot.slane %v3619_v49, 4  ;;  %v3624_v22 = vrot.slane %v3622_v6, 5  ;;  %v2864_v23 = vsel %vm8043_vm5, %v2859_v19, %v2863_v11  ;;  %v3628_v25 = vshll.u32 %v3571_v9, 16 }
 0x15d   : > { %5507 = vmatprep.mubr.bf16.mxu0 %v6432_v43  ;;  %v3292_v7 = vsel %vm8448_vm8, %v6417_v34, %v3291_v33  ;;  %v3295_v16 = vsel %vm8448_vm8, %v3293_v54, %v3294_v46  ;;  %v3632_v55 = vshrl.u32 %v3571_v9, 16  ;;  %v2651_v42 = vld [vmem:[#allocation2 + $0x74] sm:$0x1]  ;;  %v6400_v31 = vcombine.low %v2854_v13, %v2864_v23  ;;  %v3164_v3 = vld [vmem:[#allocation2 + $0x78] sm:$0xe] }
 0x15e   : > { %v6433_v47 = vcombine.low %v3292_v7, %v3295_v16  ;;  %v3625_v28 = vor.u32 %v3624_v22, %v3621_v27  ;;  %v3638_v18 = vshll.u32 %v3572_v52, 16  ;;  %v3165_v2 = vld [vmem:[#allocation2 + $0x7c] sm:$0xf]  ;;  %v3630_v21 = vrot.slane %v3628_v25, 5  ;;  %v3166_v4 = vld [vmem:[#allocation2 + $0x80] sm:$0x1] }
 0x15f   : > { %v3634_v12 = vrot.slane %v3632_v55, 4  ;;  %v2866_v48 = vshrl.u32 %v2649_v56, 16  ;;  %v2869_v59 = vshll.u32 %v2649_v56, 16  ;;  %v6376_v30 = vcombine.low %v2397_v53, %v2400_v50  ;;  %v3573_v63 = vld [vmem:[#allocation2 + $0x24] sm:$0xf]  ;;  %v7389_v13 = vld [vmem:[#allocation2 + $0x18] sm:$0xff]  }
 0x160   : > { %v3626_v41 = vrot.slane %v3625_v28, 4  ;;  %v3640_v14 = vrot.slane %v3638_v18, 5  ;;  %v2875_v32 = vshll.u32 %v2650_v10, 16  ;;  %v2879_v37 = vshrl.u32 %v2650_v10, 16  ;;  %v3574_v44 = vld [vmem:[#allocation2 + $0x28] sm:$0xf] }
 0x161   : > { %v7387_v43 = vld [vmem:[#allocation2 + $0xc0] sm:$0xff]   ;;  %v3635_v26 = vor.u32 %v3634_v12, %v3630_v21  ;;  %v2868_v5 = vrot.slane %v2866_v48, 4  ;;  %v2871_v20 = vrot.slane %v2869_v59, 5  ;;  %v2885_v0 = vshll.u32 %v2651_v42, 16  ;;  %v3575_v40 = vld [vmem:[#allocation2 + $0x2c] sm:$0x1] }
 0x162   : > { %5410 = vmatprep.mubr.bf16.mxu1 %v7387_v43  ;;  %v3631_v51 = vsel %vm8043_vm5, %v3626_v41, %v3630_v21  ;;  %v2877_v17 = vrot.slane %v2875_v32, 5  ;;  %v6418_v34 = vrot.slane %v3164_v3, 9  ;;  %v2881_v11 = vrot.slane %v2879_v37, 4  ;;  %v2653_v52 = vld [vmem:[#allocation2 + $0x7c] sm:$0xf] }
 0x163   : > { %v1528_v62 = vld [vmem:[#allocation2 + $0xc8] sm:$0x1]  ;;  %5411 = vmatmul.mubr.bf16.gmra.mrb[76].mxu1 %v6376_v30  ;;  %v3636_v61 = vrot.slane %v3635_v26, 4  ;;  %v2872_v24 = vor.u32 %v2871_v20, %v2868_v5  ;;  %v3298_v35 = vrot.slane %v3165_v2, 5  ;;  %v2887_v36 = vrot.slane %v2885_v0, 5 }
 0x164   : > { %v1529_v29 = vsel %vm8247_vm15, %v1365_v8, %v1528_v62  ;;  %5508 = vmatmul.mubr.bf16.gmra.mrb[76].mxu0 %v6400_v31  ;;  %v3301_v8 = vrot.slane %v3166_v4, 5  ;;  %v2882_v46 = vor.u32 %v2881_v11, %v2877_v17  ;;  %v3643_v49 = vshrl.u32 %v3573_v63, 16  ;;  %v2652_v62 = vld [vmem:[#allocation2 + $0x78] sm:$0xf]  ;;  %v2654_v10 = vld [vmem:[#allocation2 + $0x80] sm:$0x1] }
 0x165   : > { %1530 = vst [vmem:[#allocation2 + $0xc8] sm:$0x1] %v1529_v29  ;;  %5515 = vmatprep.mubr.bf16.mxu0 %v6433_v47  ;;  %v3641_v60 = vsel %vm8043_vm5, %v3636_v61, %v3640_v14  ;;  %v2873_v33 = vrot.slane %v2872_v24, 4  ;;  %v3299_v58 = vsel %vm8448_vm8, %v6418_v34, %v3298_v35  ;;  %v3300_v9 = vrot.slane %v3298_v35, 4  ;;  %v3167_v42 = vld [vmem:[#allocation2 + $0x84] sm:$0xe] }
 0x166   : > { %v6457_v53 = vcombine.low %v3631_v51, %v3641_v60  ;;  %v3646_v6 = vshll.u32 %v3573_v63, 16  ;;  %v2883_v50 = vrot.slane %v2882_v46, 4  ;;  %v3652_v7 = vshll.u32 %v3574_v44, 16  ;;  %v3168_v3 = vld [vmem:[#allocation2 + $0x88] sm:$0xf] }
 0x167   : > { %v2878_v19 = vsel %vm8043_vm5, %v2873_v33, %v2877_v17  ;;  %v3656_v54 = vshrl.u32 %v3574_v44, 16  ;;  %v3302_v29 = vsel %vm8448_vm8, %v3300_v9, %v3301_v8  ;;  %v3645_v27 = vrot.slane %v3643_v49, 4  ;;  %v3169_v59 = vld [vmem:[#allocation2 + $0x8c] sm:$0x1]  ;;  %v3576_v14 = vld [vmem:[#allocation2 + $0x30] sm:$0xf] }
 0x168   : > { %5612 = vmatprep.mubr.bf16.mxu1 %v6457_v53  ;;  %v3648_v22 = vrot.slane %v3646_v6, 5  ;;  %v3662_v56 = vshll.u32 %v3575_v40, 16  ;;  %v2888_v23 = vsel %vm8043_vm5, %v2883_v50, %v2887_v36  ;;  %v6434_v16 = vcombine.low %v3299_v58, %v3302_v29  ;;  %v3577_v34 = vld [vmem:[#allocation2 + $0x34] sm:$0xf]  ;;  %v7390_v35 = vld [vmem:[#allocation2 + $0x24] sm:$0xff]  }
 0x169   : > { %v3654_v25 = vrot.slane %v3652_v7, 5  ;;  %v3658_v55 = vrot.slane %v3656_v54, 4  ;;  %v6401_v31 = vcombine.low %v2878_v19, %v2888_v23  ;;  %v2890_v18 = vshrl.u32 %v2652_v62, 16  ;;  %v3578_v63 = vld [vmem:[#allocation2 + $0x38] sm:$0x1] }
 0x16a   : > { %v3649_v47 = vor.u32 %v3648_v22, %v3645_v27  ;;  %v3664_v28 = vrot.slane %v3662_v56, 5  ;;  %v2893_v21 = vshll.u32 %v2652_v62, 16  ;;  %v2899_v12 = vshll.u32 %v2653_v52, 16  ;;  %v2655_v46 = vld [vmem:[#allocation2 + $0x84] sm:$0xf] }
 0x16b   : > { %5613 = vmatmul.mubr.bf16.vlgmr.msra.gmra.mrb[80].mxu1 %v7389_v13  ;;  %v3659_v2 = vor.u32 %v3658_v55, %v3654_v25  ;;  %v2903_v48 = vshrl.u32 %v2653_v52, 16  ;;  %v2892_v43 = vrot.slane %v2890_v18, 4  ;;  %v2909_v30 = vshll.u32 %v2654_v10, 16  ;;  %v2656_v58 = vld [vmem:[#allocation2 + $0x88] sm:$0xf] }
 0x16c   : > { %5516 = vmatmul.mubr.bf16.gmra.mrb[80].mxu0 %v6401_v31  ;;  %v3650_v4 = vrot.slane %v3649_v47, 4  ;;  %v6419_v41 = vrot.slane %v3167_v42, 9  ;;  %v2895_v26 = vrot.slane %v2893_v21, 5  ;;  %v2901_v5 = vrot.slane %v2899_v12, 5  ;;  %v2657_v6 = vld [vmem:[#allocation2 + $0x8c] sm:$0x1] }
 0x16d   : > { %5523 = vmatprep.mubr.bf16.mxu0 %v6434_v16  ;;  %v3660_v32 = vrot.slane %v3659_v2, 4  ;;  %v2905_v20 = vrot.slane %v2903_v48, 4  ;;  %v2911_v51 = vrot.slane %v2909_v30, 5  ;;  %v3305_v17 = vrot.slane %v3168_v3, 5  ;;  %v3170_v54 = vld [vmem:[#allocation2 + $0x90] sm:$0xe] }
 0x16e   : > { %v3655_v37 = vsel %vm8043_vm5, %v3650_v4, %v3654_v25  ;;  %v3308_v0 = vrot.slane %v3169_v59, 5  ;;  %v2896_v24 = vor.u32 %v2895_v26, %v2892_v43  ;;  %v3667_v36 = vshrl.u32 %v3576_v14, 16  ;;  %v3171_v16 = vld [vmem:[#allocation2 + $0x94] sm:$0xf]  ;;  %v3172_v47 = vld [vmem:[#allocation2 + $0x98] sm:$0x1] }
 0x16f   : > { %v3665_v61 = vsel %vm8043_vm5, %v3660_v32, %v3664_v28  ;;  %v2906_v11 = vor.u32 %v2905_v20, %v2901_v5  ;;  %v3306_v44 = vsel %vm8448_vm8, %v6419_v41, %v3305_v17  ;;  %v3307_v60 = vrot.slane %v3305_v17, 4  ;;  %v3579_v21 = vld [vmem:[#allocation2 + $0x3c] sm:$0xf]  ;;  %v3580_v20 = vld [vmem:[#allocation2 + $0x40] sm:$0xf] }
 0x170   : > { %v6458_v8 = vcombine.low %v3655_v37, %v3665_v61  ;;  %v3670_v33 = vshll.u32 %v3576_v14, 16  ;;  %v2897_v40 = vrot.slane %v2896_v24, 4  ;;  %v3669_v9 = vrot.slane %v3667_v36, 4  ;;  %v3581_v37 = vld [vmem:[#allocation2 + $0x44] sm:$0x1] }
 0x171   : > { %v2907_v53 = vrot.slane %v2906_v11, 4  ;;  %v3676_v49 = vshll.u32 %v3577_v34, 16  ;;  %v3309_v62 = vsel %vm8448_vm8, %v3307_v60, %v3308_v0  ;;  %v3680_v50 = vshrl.u32 %v3577_v34, 16  ;;  %v2658_v24 = vld [vmem:[#allocation2 + $0x90] sm:$0xf] }
 0x172   : > { %5620 = vmatprep.mubr.bf16.mxu1 %v6458_v8  ;;  %v3672_v19 = vrot.slane %v3670_v33, 5  ;;  %v3686_v7 = vshll.u32 %v3578_v63, 16  ;;  %v2902_v52 = vsel %vm8043_vm5, %v2897_v40, %v2901_v5  ;;  %v6435_v13 = vcombine.low %v3306_v44, %v3309_v62  ;;  %v7392_v44 = vld [vmem:[#allocation2 + $0x30] sm:$0xff]   ;;  %v3173_v62 = vld [vmem:[#allocation2 + $0x9c] sm:$0xe] }
 0x173   : > { %v2912_v29 = vsel %vm8043_vm5, %v2907_v53, %v2911_v51  ;;  %5621 = vmatmul.mubr.bf16.gmra.mrb[84].mxu1 %v7390_v35  ;;  %v3678_v27 = vrot.slane %v3676_v49, 5  ;;  %v3682_v10 = vrot.slane %v3680_v50, 4  ;;  %v2914_v25 = vshrl.u32 %v2655_v46, 16 }
 0x174   : > { %v6402_v22 = vcombine.low %v2902_v52, %v2912_v29  ;;  %v3673_v56 = vor.u32 %v3672_v19, %v3669_v9  ;;  %v3688_v23 = vrot.slane %v3686_v7, 5  ;;  %v2917_v55 = vshll.u32 %v2655_v46, 16  ;;  %v3174_v29 = vld [vmem:[#allocation2 + $0xa0] sm:$0xf] }
 0x175   : > { %v2923_v42 = vshll.u32 %v2656_v58, 16  ;;  %v2927_v31 = vshrl.u32 %v2656_v58, 16  ;;  %v3683_v18 = vor.u32 %v3682_v10, %v3678_v27  ;;  %v2933_v3 = vshll.u32 %v2657_v6, 16  ;;  %v2659_v58 = vld [vmem:[#allocation2 + $0x94] sm:$0xf] }
 0x176   : > { %5524 = vmatmul.mubr.bf16.gmra.mrb[84].mxu0 %v6402_v22  ;;  %v3674_v28 = vrot.slane %v3673_v56, 4  ;;  %v6420_v2 = vrot.slane %v3170_v54, 9  ;;  %v2916_v12 = vrot.slane %v2914_v25, 4  ;;  %v2919_v48 = vrot.slane %v2917_v55, 5  ;;  %v2660_v6 = vld [vmem:[#allocation2 + $0x98] sm:$0x1] }
 0x177   : > { %5531 = vmatprep.mubr.bf16.mxu0 %v6435_v13  ;;  %v2925_v59 = vrot.slane %v2923_v42, 5  ;;  %v2929_v4 = vrot.slane %v2927_v31, 4  ;;  %v3684_v30 = vrot.slane %v3683_v18, 4  ;;  %v2935_v41 = vrot.slane %v2933_v3, 5  ;;  %v3175_v13 = vld [vmem:[#allocation2 + $0xa4] sm:$0x1] }
 0x178   : > { %v3679_v43 = vsel %vm8043_vm5, %v3674_v28, %v3678_v27  ;;  %v3312_v14 = vrot.slane %v3171_v16, 5  ;;  %v2920_v32 = vor.u32 %v2919_v48, %v2916_v12  ;;  %v3315_v5 = vrot.slane %v3172_v47, 5  ;;  %v3582_v27 = vld [vmem:[#allocation2 + $0x48] sm:$0xf]  ;;  %v3583_v16 = vld [vmem:[#allocation2 + $0x4c] sm:$0xf] }
 0x179   : > { %v2930_v26 = vor.u32 %v2929_v4, %v2925_v59  ;;  %v3691_v51 = vshrl.u32 %v3579_v21, 16  ;;  %v3689_v17 = vsel %vm8043_vm5, %v3684_v30, %v3688_v23  ;;  %v3694_v61 = vshll.u32 %v3579_v21, 16 }
 0x17a   : > { %v3313_v0 = vsel %vm8448_vm8, %v6420_v2, %v3312_v14  ;;  %v3314_v34 = vrot.slane %v3312_v14, 4  ;;  %v6459_v11 = vcombine.low %v3679_v43, %v3689_v17  ;;  %v2921_v35 = vrot.slane %v2920_v32, 4 }
 0x17b   : > { %v2931_v63 = vrot.slane %v2930_v26, 4  ;;  %v3693_v36 = vrot.slane %v3691_v51, 4  ;;  %v3696_v60 = vrot.slane %v3694_v61, 5  ;;  %v3700_v33 = vshll.u32 %v3580_v20, 16 }
 0x17c   : > { %v3316_v8 = vsel %vm8448_vm8, %v3314_v34, %v3315_v5  ;;  %v3704_v46 = vshrl.u32 %v3580_v20, 16  ;;  %5628 = vmatprep.mubr.bf16.mxu1 %v6459_v11  ;;  %v2926_v40 = vsel %vm8043_vm5, %v2921_v35, %v2925_v59  ;;  %v3710_v49 = vshll.u32 %v3581_v37, 16  ;;  %v3584_v20 = vld [vmem:[#allocation2 + $0x50] sm:$0x1]  ;;  %v7393_v35 = vld [vmem:[#allocation2 + $0x3c] sm:$0xff]  }
 0x17d   : > { %v2936_v53 = vsel %vm8043_vm5, %v2931_v63, %v2935_v41  ;;  %v6436_v9 = vcombine.low %v3313_v0, %v3316_v8  ;;  %5629 = vmatmul.mubr.bf16.gmra.mrb[88].mxu1 %v7392_v44  ;;  %v3697_v7 = vor.u32 %v3696_v60, %v3693_v36  ;;  %v3702_v54 = vrot.slane %v3700_v33, 5 }
 0x17e   : > { %v6403_v50 = vcombine.low %v2926_v40, %v2936_v53  ;;  %v3706_v52 = vrot.slane %v3704_v46, 4  ;;  %v3712_v22 = vrot.slane %v3710_v49, 5  ;;  %v2938_v56 = vshrl.u32 %v2658_v24, 16  ;;  %v2663_v40 = vld [vmem:[#allocation2 + $0xa4] sm:$0x1] }
 0x17f   : > { %v8957_v19 = vpop.f32.mrb[0].mxu1  ;;  %v2941_v10 = vshll.u32 %v2658_v24, 16  ;;  %v2947_v23 = vshll.u32 %v2659_v58, 16  ;;  %v3698_v25 = vrot.slane %v3697_v7, 4  ;;  %v2951_v42 = vshrl.u32 %v2659_v58, 16 }
 0x180   : > { %5532 = vmatmul.mubr.bf16.gmra.mrb[88].mxu0 %v6403_v50  ;;  %v3707_v55 = vor.u32 %v3706_v52, %v3702_v54  ;;  %v2957_v31 = vshll.u32 %v2660_v6, 16  ;;  %v8959_v47 = vpop.f32.mrb[1].mxu1  ;;  %v2940_v28 = vrot.slane %v2938_v56, 4  ;;  %v6421_v2 = vrot.slane %v3173_v62, 9  ;;  %v2661_v24 = vld [vmem:[#allocation2 + $0x9c] sm:$0xf] }
 0x181   : > { %5539 = vmatprep.mubr.bf16.mxu0 %v6436_v9  ;;  %v2943_v18 = vrot.slane %v2941_v10, 5  ;;  %v2949_v3 = vrot.slane %v2947_v23, 5  ;;  %v3703_v21 = vsel %vm8043_vm5, %v3698_v25, %v3702_v54  ;;  %v2953_v48 = vrot.slane %v2951_v42, 4  ;;  %v8963_v4 = vpop.f32.mrb[2].mxu1  ;;  %v2662_v58 = vld [vmem:[#allocation2 + $0xa0] sm:$0xf] }
 0x182   : > { %v3708_v12 = vrot.slane %v3707_v55, 4  ;;  %v2959_v59 = vrot.slane %v2957_v31, 5  ;;  %v3319_v30 = vrot.slane %v3174_v29, 5  ;;  %v3322_v41 = vrot.slane %v3175_v13, 5  ;;  %v8965_v32 = vpop.f32.mrb[3].mxu1 }
 0x183   : > { %v2944_v43 = vor.u32 %v2943_v18, %v2940_v28  ;;  %v3715_v14 = vshrl.u32 %v3582_v27, 16  ;;  %v2954_v5 = vor.u32 %v2953_v48, %v2949_v3  ;;  %v3718_v37 = vshll.u32 %v3582_v27, 16  ;;  %v3176_v62 = vld [vmem:[#allocation2 + $0xa8] sm:$0xe]  ;;  %v3177_v50 = vld [vmem:[#allocation2 + $0xac] sm:$0xf] }
 0x184   : > { %v3713_v26 = vsel %vm8043_vm5, %v3708_v12, %v3712_v22  ;;  %v3724_v51 = vshll.u32 %v3583_v16, 16  ;;  %v3320_v34 = vsel %vm8448_vm8, %v6421_v2, %v3319_v30  ;;  %v3321_v61 = vrot.slane %v3319_v30, 4  ;;  %v8977_v7 = vpop.f32.mrb[4].mxu0  ;;  %v3178_v27 = vld [vmem:[#allocation2 + $0xb0] sm:$0x1] }
 0x185   : > { %v6460_v17 = vcombine.low %v3703_v21, %v3713_v26  ;;  %v2945_v0 = vrot.slane %v2944_v43, 4  ;;  %v2955_v11 = vrot.slane %v2954_v5, 4  ;;  %v3717_v63 = vrot.slane %v3715_v14, 4  ;;  %v8979_v22 = vpop.f32.mrb[5].mxu0  ;;  %v3585_v25 = vld [vmem:[#allocation2 + $0x54] sm:$0xf] }
 0x186   : > { %v3720_v36 = vrot.slane %v3718_v37, 5  ;;  %v3726_v8 = vrot.slane %v3724_v51, 5  ;;  %v3323_v60 = vsel %vm8448_vm8, %v3321_v61, %v3322_v41  ;;  %v3728_v33 = vshrl.u32 %v3583_v16, 16  ;;  %v3586_v18 = vld [vmem:[#allocation2 + $0x58] sm:$0xf] }
 0x187   : > { %5636 = vmatprep.mubr.bf16.mxu1 %v6460_v17  ;;  %v2950_v44 = vsel %vm8043_vm5, %v2945_v0, %v2949_v3  ;;  %v3734_v46 = vshll.u32 %v3584_v20, 16  ;;  %v2960_v53 = vsel %vm8043_vm5, %v2955_v11, %v2959_v59  ;;  %v6437_v9 = vcombine.low %v3320_v34, %v3323_v60  ;;  %v8981_v3 = vpop.f32.mrb[6].mxu0  ;;  %v8987_v14 = vpop.f32.mrb[4].mxu1  ;;  %v3587_v37 = vld [vmem:[#allocation2 + $0x5c] sm:$0x1] }
 0x188   : > { %5637 = vmatmul.mubr.bf16.gmra.mrb[92].mxu1 %v7393_v35  ;;  %v3721_v49 = vor.u32 %v3720_v36, %v3717_v63  ;;  %v2962_v6 = vshrl.u32 %v2661_v24, 16  ;;  %v6404_v54 = vcombine.low %v2950_v44, %v2960_v53  ;;  %v3730_v52 = vrot.slane %v3728_v33, 4  ;;  %v8983_v48 = vpop.f32.mrb[7].mxu0  ;;  %v8991_v11 = vpop.f32.mrb[5].mxu1  ;;  %v2665_v60 = vld [vmem:[#allocation2 + $0xac] sm:$0xf] }
 0x189   : > { %v3736_v29 = vrot.slane %v3734_v46, 5  ;;  %v2965_v13 = vshll.u32 %v2661_v24, 16  ;;  %v2971_v23 = vshll.u32 %v2662_v58, 16  ;;  %v2975_v16 = vshrl.u32 %v2662_v58, 16  ;;  %v2664_v24 = vld [vmem:[#allocation2 + $0xa8] sm:$0xf] }
 0x18a   : > { %v3722_v56 = vrot.slane %v3721_v49, 4  ;;  %v2964_v10 = vrot.slane %v2962_v6, 4  ;;  %5540 = vmatmul.mubr.bf16.gmra.mrb[92].mxu0 %v6404_v54  ;;  %v3731_v55 = vor.u32 %v3730_v52, %v3726_v8  ;;  %v2981_v31 = vshll.u32 %v2663_v40, 16  ;;  %v2666_v53 = vld [vmem:[#allocation2 + $0xb0] sm:$0x1]  ;;  %v9001_v52 = vpop.f32.mrb[6].mxu1 }
 0x18b   : > { %v2967_v42 = vrot.slane %v2965_v13, 5  ;;  %v6422_v28 = vrot.slane %v3176_v62, 9  ;;  %5547 = vmatprep.mubr.bf16.mxu0 %v6437_v9  ;;  %v2973_v2 = vrot.slane %v2971_v23, 5  ;;  %v2977_v21 = vrot.slane %v2975_v16, 4  ;;  %v3180_v9 = vld [vmem:[#allocation2 + $0xb8] sm:$0xf] }
 0x18c   : > { %v3326_v12 = vrot.slane %v3177_v50, 5  ;;  %v3727_v59 = vsel %vm8043_vm5, %v3722_v56, %v3726_v8  ;;  %v3732_v43 = vrot.slane %v3731_v55, 4  ;;  %v3329_v41 = vrot.slane %v3178_v27, 5  ;;  %v7395_v8 = vld [vmem:[#allocation2 + $0x48] sm:$0xff]   ;;  %v3179_v54 = vld [vmem:[#allocation2 + $0xb4] sm:$0xe] }
 0x18d   : > { %v2968_v30 = vor.u32 %v2967_v42, %v2964_v10  ;;  %v2978_v26 = vor.u32 %v2977_v21, %v2973_v2  ;;  %v2983_v5 = vrot.slane %v2981_v31, 5  ;;  %v3739_v51 = vshrl.u32 %v3585_v25, 16  ;;  %v3181_v10 = vld [vmem:[#allocation2 + $0xbc] sm:$0x1]  ;;  %v3588_v42 = vld [vmem:[#allocation2 + $0x60] sm:$0xf] }
 0x18e   : > { %v3328_v20 = vrot.slane %v3326_v12, 4  ;;  %v3737_v17 = vsel %vm8043_vm5, %v3732_v43, %v3736_v29  ;;  %v3742_v34 = vshll.u32 %v3585_v25, 16  ;;  %v3748_v61 = vshll.u32 %v3586_v18, 16  ;;  %v3589_v21 = vld [vmem:[#allocation2 + $0x64] sm:$0xf] }
 0x18f   : > { %v2969_v0 = vrot.slane %v2968_v30, 4  ;;  %v6461_v35 = vcombine.low %v3727_v59, %v3737_v17  ;;  %v2979_v63 = vrot.slane %v2978_v26, 4  ;;  %v3327_v36 = vsel %vm8448_vm8, %v6422_v28, %v3326_v12 }
 0x190   : > { %v3741_v44 = vrot.slane %v3739_v51, 4  ;;  %v3330_v46 = vsel %vm8448_vm8, %v3328_v20, %v3329_v41  ;;  %v3744_v58 = vrot.slane %v3742_v34, 5  ;;  %v3750_v40 = vrot.slane %v3748_v61, 5  ;;  %v9003_v41 = vpop.f32.mrb[7].mxu1 }
 0x191   : > { %v2974_v33 = vsel %vm8043_vm5, %v2969_v0, %v2973_v2  ;;  %5644 = vmatprep.mubr.bf16.mxu1 %v6461_v35  ;;  %v2984_v49 = vsel %vm8043_vm5, %v2979_v63, %v2983_v5  ;;  %v3752_v6 = vshrl.u32 %v3586_v18, 16  ;;  %v3758_v62 = vshll.u32 %v3587_v37, 16 }
 0x192   : > { %v2986_v50 = vshrl.u32 %v2664_v24, 16  ;;  %v6405_v29 = vcombine.low %v2974_v33, %v2984_v49  ;;  %5645 = vmatmul.mubr.bf16.gmra.mrb[96].mxu1 %v7395_v8  ;;  %v3745_v13 = vor.u32 %v3744_v58, %v3741_v44  ;;  %v2989_v27 = vshll.u32 %v2664_v24, 16  ;;  %v3590_v33 = vld [vmem:[#allocation2 + $0x68] sm:$0x1]  ;;  %v2667_v58 = vld [vmem:[#allocation2 + $0xb4] sm:$0xf] }
 0x193   : > { %v2995_v56 = vshll.u32 %v2665_v60, 16  ;;  %v6438_v23 = vcombine.low %v3327_v36, %v3330_v46  ;;  %v3754_v16 = vrot.slane %v3752_v6, 4  ;;  %v2999_v55 = vshrl.u32 %v2665_v60, 16  ;;  %v7396_v60 = vld [vmem:[#allocation2 + $0x54] sm:$0xff]   ;;  %v9015_v6 = vpop.f32.mrb[8].mxu0 }
 0x194   : > { %v2988_v25 = vrot.slane %v2986_v50, 4  ;;  %5548 = vmatmul.mubr.bf16.gmra.mrb[96].mxu0 %v6405_v29  ;;  %v3746_v31 = vrot.slane %v3745_v13, 4  ;;  %v2991_v28 = vrot.slane %v2989_v27, 5  ;;  %v3005_v2 = vshll.u32 %v2666_v53, 16  ;;  %v2668_v13 = vld [vmem:[#allocation2 + $0xb8] sm:$0xf] }
 0x195   : > { %v2997_v18 = vrot.slane %v2995_v56, 5  ;;  %5555 = vmatprep.mubr.bf16.mxu0 %v6438_v23  ;;  %v3755_v12 = vor.u32 %v3754_v16, %v3750_v40  ;;  %v3760_v59 = vrot.slane %v3758_v62, 5  ;;  %v3001_v43 = vrot.slane %v2999_v55, 4  ;;  %v9019_v27 = vpop.f32.mrb[9].mxu0 }
 0x196   : > { %v3333_v30 = vrot.slane %v3180_v9, 5  ;;  %v3751_v26 = vsel %vm8043_vm5, %v3746_v31, %v3750_v40  ;;  %v2992_v5 = vor.u32 %v2991_v28, %v2988_v25  ;;  %v6423_v20 = vrot.slane %v3179_v54, 9  ;;  %v2669_v25 = vld [vmem:[#allocation2 + $0xbc] sm:$0x1]  ;;  %v9025_v55 = vpop.f32.mrb[10].mxu0 }
 0x197   : > { %v3336_v37 = vrot.slane %v3181_v10, 5  ;;  %v3756_v51 = vrot.slane %v3755_v12, 4  ;;  %v3002_v17 = vor.u32 %v3001_v43, %v2997_v18  ;;  %v3007_v0 = vrot.slane %v3005_v2, 5  ;;  %v3182_v2 = vld [vmem:[#allocation2 + $0xc0] sm:$0xe] }
 0x198   : > { %v3335_v34 = vrot.slane %v3333_v30, 4  ;;  %v2993_v61 = vrot.slane %v2992_v5, 4  ;;  %v3763_v24 = vshrl.u32 %v3588_v42, 16  ;;  %v3766_v35 = vshll.u32 %v3588_v42, 16 }
 0x199   : > { %v3772_v63 = vshll.u32 %v3589_v21, 16  ;;  %v3761_v36 = vsel %vm8043_vm5, %v3756_v51, %v3760_v59  ;;  %v3003_v8 = vrot.slane %v3002_v17, 4  ;;  %v3776_v46 = vshrl.u32 %v3589_v21, 16  ;;  %v3183_v21 = vld [vmem:[#allocation2 + $0xc4] sm:$0xf] }
 0x19a   : > { %v3337_v44 = vsel %vm8448_vm8, %v3335_v34, %v3336_v37  ;;  %v6462_v40 = vcombine.low %v3751_v26, %v3761_v36  ;;  %v2998_v53 = vsel %vm8043_vm5, %v2993_v61, %v2997_v18  ;;  %v3334_v9 = vsel %vm8448_vm8, %v6423_v20, %v3333_v30  ;;  %v3184_v30 = vld [vmem:[#allocation2 + $0xc8] sm:$0x1]  ;;  %v9027_v26 = vpop.f32.mrb[11].mxu0  ;;  %v9029_v37 = vpop.f32.mrb[8].mxu1 }
 0x19b   : > { %v3765_v49 = vrot.slane %v3763_v24, 4  ;;  %v3008_v62 = vsel %vm8043_vm5, %v3003_v8, %v3007_v0  ;;  %v3768_v50 = vrot.slane %v3766_v35, 5  ;;  %v3774_v54 = vrot.slane %v3772_v63, 5  ;;  %v3591_v8 = vld [vmem:[#allocation2 + $0x6c] sm:$0xf] }
 0x19c   : > { %v3778_v29 = vrot.slane %v3776_v46, 4  ;;  %5652 = vmatprep.mubr.bf16.mxu1 %v6462_v40  ;;  %v6406_v56 = vcombine.low %v2998_v53, %v3008_v62  ;;  %v6439_v10 = vcombine.low %v3334_v9, %v3337_v44  ;;  %v3782_v23 = vshll.u32 %v3590_v33, 16  ;;  %v9031_v51 = vpop.f32.mrb[12].mxu0  ;;  %v3592_v44 = vld [vmem:[#allocation2 + $0x70] sm:$0xf]  ;;  %v7398_v62 = vld [vmem:[#allocation2 + $0x60] sm:$0xff]  }
 0x19d   : > { %v9023_v16 = vadd.f32 %v8959_v47, %v8957_v19  ;;  %5653 = vmatmul.mubr.bf16.gmra.mrb[100].mxu1 %v7396_v60  ;;  %v3769_v42 = vor.u32 %v3768_v50, %v3765_v49  ;;  %v3010_v28 = vshrl.u32 %v2667_v58, 16  ;;  %v3013_v18 = vshll.u32 %v2667_v58, 16  ;;  %v9037_v60 = vpop.f32.mrb[9].mxu1 }
 0x19e   : > { %v3779_v31 = vor.u32 %v3778_v29, %v3774_v54  ;;  %5556 = vmatmul.mubr.bf16.gmra.mrb[100].mxu0 %v6406_v56  ;;  %v3784_v12 = vrot.slane %v3782_v23, 5  ;;  %v3019_v59 = vshll.u32 %v2668_v13, 16  ;;  %v3023_v43 = vshrl.u32 %v2668_v13, 16  ;;  %v9045_v56 = vpop.f32.mrb[10].mxu1  ;;  %v3593_v23 = vld [vmem:[#allocation2 + $0x74] sm:$0x1] }
 0x19f   : > { %9904 = vst [vmem:[#allocation6_spill] sm:$0xff] %v9023_v16  ;;  %5563 = vmatprep.mubr.bf16.mxu0 %v6439_v10  ;;  %v3770_v19 = vrot.slane %v3769_v42, 4  ;;  %v3012_v5 = vrot.slane %v3010_v28, 4  ;;  %v3015_v20 = vrot.slane %v3013_v18, 5  ;;  %v3029_v34 = vshll.u32 %v2669_v25, 16 }
 0x1a0   : > { %v3780_v47 = vrot.slane %v3779_v31, 4  ;;  %v3021_v17 = vrot.slane %v3019_v59, 5  ;;  %v3025_v0 = vrot.slane %v3023_v43, 4  ;;  %v6424_v61 = vrot.slane %v3182_v2, 9  ;;  %v9053_v2 = vpop.f32.mrb[11].mxu1 }
 0x1a1   : > { %v3775_v24 = vsel %vm8043_vm5, %v3770_v19, %v3774_v54  ;;  %v3016_v63 = vor.u32 %v3015_v20, %v3012_v5  ;;  %v3340_v36 = vrot.slane %v3183_v21, 5  ;;  %v3031_v58 = vrot.slane %v3029_v34, 5 }
 0x1a2   : > { %v3785_v35 = vsel %vm8043_vm5, %v3780_v47, %v3784_v12  ;;  %v3026_v46 = vor.u32 %v3025_v0, %v3021_v17  ;;  %v3343_v40 = vrot.slane %v3184_v30, 5  ;;  %v9043_v54 = vadd.f32 %v8965_v32, %v8963_v4  ;;  %v2670_v32 = vld [vmem:[#allocation2 + $0xc0] sm:$0xf]  ;;  %v9055_v30 = vpop.f32.mrb[13].mxu0 }
 0x1a3   : > { %v6463_v33 = vcombine.low %v3775_v24, %v3785_v35  ;;  %v3017_v53 = vrot.slane %v3016_v63, 4  ;;  %v3341_v9 = vsel %vm8448_vm8, %v6424_v61, %v3340_v36  ;;  %v3342_v49 = vrot.slane %v3340_v36, 4  ;;  %v9069_v0 = vpop.f32.mrb[14].mxu0  ;;  %v2672_v24 = vld [vmem:[#allocation2 + $0xc8] sm:$0x1] }
 0x1a4   : > { %v3027_v50 = vrot.slane %v3026_v46, 4  ;;  %9905 = vst [vmem:[#allocation7_spill] sm:$0xff] %v9043_v54  ;;  %v3787_v29 = vshrl.u32 %v3591_v8, 16  ;;  %v3790_v13 = vshll.u32 %v3591_v8, 16  ;;  %v3796_v25 = vshll.u32 %v3592_v44, 16  ;;  %v9071_v36 = vpop.f32.mrb[15].mxu0 }
 0x1a5   : > { %5660 = vmatprep.mubr.bf16.mxu1 %v6463_v33  ;;  %v3344_v10 = vsel %vm8448_vm8, %v3342_v49, %v3343_v40  ;;  %v3800_v42 = vshrl.u32 %v3592_v44, 16  ;;  %v3022_v31 = vsel %vm8043_vm5, %v3017_v53, %v3021_v17  ;;  %v3806_v19 = vshll.u32 %v3593_v23, 16  ;;  %v2671_v17 = vld [vmem:[#allocation2 + $0xc4] sm:$0xf] }
 0x1a6   : > { %5661 = vmatmul.mubr.bf16.gmra.mrb[104].mxu1 %v7398_v62  ;;  %v3032_v28 = vsel %vm8043_vm5, %v3027_v50, %v3031_v58  ;;  %v6440_v18 = vcombine.low %v3341_v9, %v3344_v10  ;;  %v3789_v4 = vrot.slane %v3787_v29, 4  ;;  %v3792_v12 = vrot.slane %v3790_v13, 5  ;;  %v4084_v58 = vld [vmem:[#allocation2 + $0x20] sm:$0x1]  ;;  %v3594_v62 = vld [vmem:[#allocation2 + $0x78] sm:$0xf] }
 0x1a7   : > { %v6407_v21 = vcombine.low %v3022_v31, %v3032_v28  ;;  %v3798_v59 = vrot.slane %v3796_v25, 5  ;;  %v3802_v43 = vrot.slane %v3800_v42, 4  ;;  %v9059_v47 = vadd.f32 %v8979_v22, %v8977_v7  ;;  %v4083_v22 = vld [vmem:[#allocation2 + $0x1c] sm:$0xf]  ;;  %v9077_v29 = vpop.f32.mrb[12].mxu1 }
 0x1a8   : > { %v9063_v5 = vadd.f32 %v8983_v48, %v8981_v3  ;;  %v9067_v20 = vadd.f32 %v8991_v11, %v8987_v14  ;;  %v3793_v34 = vor.u32 %v3792_v12, %v3789_v4  ;;  %v3034_v35 = vshrl.u32 %v2670_v32, 16  ;;  %v4082_v14 = vld [vmem:[#allocation2 + $0x18] sm:$0xe]  ;;  %v3595_v50 = vld [vmem:[#allocation2 + $0x7c] sm:$0xf]  ;;  %v9079_v31 = vpop.f32.mrb[13].mxu1 }
 0x1a9   : > { %5564 = vmatmul.mubr.bf16.gmra.mrb[104].mxu0 %v6407_v21  ;;  %v3803_v61 = vor.u32 %v3802_v43, %v3798_v59  ;;  %v3037_v63 = vshll.u32 %v2670_v32, 16  ;;  %v3808_v7 = vrot.slane %v3806_v19, 5  ;;  %v3043_v11 = vshll.u32 %v2671_v17, 16  ;;  %v3596_v42 = vld [vmem:[#allocation2 + $0x80] sm:$0x1]  ;;  %v7399_v4 = vld [vmem:[#allocation2 + $0x6c] sm:$0xff]  }
 0x1aa   : > { %9906 = vst [vmem:[#allocation8_spill] sm:$0xff] %v9067_v20  ;;  %5571 = vmatprep.mubr.bf16.mxu0 %v6440_v18  ;;  %v3794_v3 = vrot.slane %v3793_v34, 4  ;;  %v3036_v8 = vrot.slane %v3034_v35, 4  ;;  %v3047_v33 = vshrl.u32 %v2671_v17, 16  ;;  %v3053_v46 = vshll.u32 %v2672_v24, 16  ;;  %v9081_v12 = vpop.f32.mrb[14].mxu1 }
 0x1ab   : > { %v3804_v48 = vrot.slane %v3803_v61, 4  ;;  %v3039_v44 = vrot.slane %v3037_v63, 5  ;;  %v4180_v49 = vrot.slane %v4083_v22, 5  ;;  %v3045_v10 = vrot.slane %v3043_v11, 5  ;;  %v9087_v34 = vpop.f32.mrb[15].mxu1  ;;  %v9089_v61 = vpop.f32.mrb[16].mxu0 }
 0x1ac   : > { %v3799_v40 = vsel %vm8043_vm5, %v3794_v3, %v3798_v59  ;;  %v3049_v23 = vrot.slane %v3047_v33, 4  ;;  %v6473_v25 = vrot.slane %v4082_v14, 9  ;;  %v3055_v18 = vrot.slane %v3053_v46, 5  ;;  %v4085_v63 = vld [vmem:[#allocation2 + $0x24] sm:$0xe] }
 0x1ad   : > { %v3809_v53 = vsel %vm8043_vm5, %v3804_v48, %v3808_v7  ;;  %v3040_v9 = vor.u32 %v3039_v44, %v3036_v8  ;;  %v4182_v32 = vrot.slane %v4180_v49, 4  ;;  %v4183_v21 = vrot.slane %v4084_v58, 5  ;;  %v4088_v33 = vld [vmem:[#allocation2 + $0x30] sm:$0xe] }
 0x1ae   : > { %v6464_v13 = vcombine.low %v3799_v40, %v3809_v53  ;;  %v3050_v59 = vor.u32 %v3049_v23, %v3045_v10  ;;  %v9085_v43 = vadd.f32 %v9003_v41, %v9001_v52  ;;  %v3811_v19 = vshrl.u32 %v3594_v62, 16  ;;  %v4086_v52 = vld [vmem:[#allocation2 + $0x28] sm:$0xf]  ;;  %v4087_v41 = vld [vmem:[#allocation2 + $0x2c] sm:$0x1] }
 0x1af   : > { %v3041_v28 = vrot.slane %v3040_v9, 4  ;;  %v3814_v17 = vshll.u32 %v3594_v62, 16  ;;  %v3820_v24 = vshll.u32 %v3595_v50, 16  ;;  %v3824_v35 = vshrl.u32 %v3595_v50, 16  ;;  %v4089_v9 = vld [vmem:[#allocation2 + $0x34] sm:$0xf] }
 0x1b0   : > { %5668 = vmatprep.mubr.bf16.mxu1 %v6464_v13  ;;  %9907 = vst [vmem:[#allocation9_spill] sm:$0xff] %v9085_v43  ;;  %v3051_v22 = vrot.slane %v3050_v59, 4  ;;  %v4184_v3 = vsel %vm8448_vm8, %v4182_v32, %v4183_v21  ;;  %v3813_v48 = vrot.slane %v3811_v19, 4  ;;  %v3830_v11 = vshll.u32 %v3596_v42, 16  ;;  %v4090_v62 = vld [vmem:[#allocation2 + $0x38] sm:$0x1] }
 0x1b1   : > { %5669 = vmatmul.mubr.bf16.gmra.mrb[108].mxu1 %v7399_v4  ;;  %v3046_v7 = vsel %vm8043_vm5, %v3041_v28, %v3045_v10  ;;  %v3816_v8 = vrot.slane %v3814_v17, 5  ;;  %v3822_v44 = vrot.slane %v3820_v24, 5  ;;  %v3826_v14 = vrot.slane %v3824_v35, 4  ;;  %v9107_v50 = vpop.f32.mrb[17].mxu0  ;;  %v9112_v13 = vld [vmem:[%s9869_s3] ss:$0 sm:$0xff] }
 0x1b2   : > { %v3056_v46 = vsel %vm8043_vm5, %v3051_v22, %v3055_v18  ;;  %v4181_v58 = vsel %vm8448_vm8, %v6473_v25, %v4180_v49  ;;  %v9101_v40 = vadd.f32 %v9019_v27, %v9015_v6  ;;  %v9105_v53 = vadd.f32 %v9027_v26, %v9025_v55  ;;  %v3597_v42 = vld [vmem:[#allocation2 + $0x84] sm:$0xf]  ;;  %v9114_v6 = vpop.f32.mrb[16].mxu1  ;;  %v9116_v27 = vpop.f32.mrb[18].mxu0  ;;  %v3598_v4 = vld [vmem:[#allocation2 + $0x88] sm:$0xf] }
 0x1b3   : > { %v6408_v10 = vcombine.low %v3046_v7, %v3056_v46  ;;  %v3817_v23 = vor.u32 %v3816_v8, %v3813_v48  ;;  %v3827_v49 = vor.u32 %v3826_v14, %v3822_v44  ;;  %v3832_v25 = vrot.slane %v3830_v11, 5  ;;  %v9118_v32 = vpop.f32.mrb[17].mxu1  ;;  %v9120_v21 = vpop.f32.mrb[19].mxu0  ;;  %v3599_v35 = vld [vmem:[#allocation2 + $0x8c] sm:$0x1]  ;;  %v7400_v14 = vld [vmem:[#allocation2 + $0x78] sm:$0xff]  }
 0x1b4   : > { %v6489_v55 = vcombine.low %v4181_v58, %v4184_v3  ;;  %v6474_v26 = vrot.slane %v4085_v63, 9  ;;  %v4187_v28 = vrot.slane %v4086_v52, 5  ;;  %v4190_v18 = vrot.slane %v4087_v41, 5  ;;  %v9126_v7 = vpop.f32.mrb[18].mxu1  ;;  %v4091_v52 = vld [vmem:[#allocation2 + $0x3c] sm:$0xe] }
 0x1b5   : > { %5572 = vmatmul.mubr.bf16.gmra.mrb[108].mxu0 %v6408_v10  ;;  %v3818_v59 = vrot.slane %v3817_v23, 4  ;;  %v3828_v19 = vrot.slane %v3827_v49, 4  ;;  %v9124_v17 = vadd.f32 %v9037_v60, %v9029_v37  ;;  %v6475_v24 = vrot.slane %v4088_v33, 9  ;;  %v9132_v41 = vpop.f32.mrb[19].mxu1  ;;  %v4092_v11 = vld [vmem:[#allocation2 + $0x40] sm:$0xf] }
 0x1b6   : > { %v9130_v63 = vadd.f32 %v8852_v15, %v9112_v13  ;;  %7230 = vmatprep.mubr.bf16.mxu0 %v6489_v55  ;;  %v4189_v22 = vrot.slane %v4187_v28, 4  ;;  %v4194_v3 = vrot.slane %v4089_v9, 5  ;;  %v4197_v48 = vrot.slane %v4090_v62, 5  ;;  %v9142_v33 = vpop.f32.mrb[20].mxu0  ;;  %v4093_v62 = vld [vmem:[#allocation2 + $0x44] sm:$0x1] }
 0x1b7   : > { %9908 = vst [vmem:[#allocation10_spill] sm:$0xff] %v9124_v17  ;;  %v9136_v8 = vadd.f32 %v8865_v1, %v9112_v13  ;;  %v3823_v37 = vsel %vm8043_vm5, %v3818_v59, %v3822_v44  ;;  %v3833_v60 = vsel %vm8043_vm5, %v3828_v19, %v3832_v25  ;;  %v3835_v15 = vshrl.u32 %v3597_v42, 16  ;;  %v4094_v10 = vld [vmem:[#allocation2 + $0x48] sm:$0xe]  ;;  %v9148_v23 = vpop.f32.mrb[21].mxu0  ;;  %v9152_v19 = vpop.f32.mrb[20].mxu1 }
 0x1b8   : > { %v6465_v46 = vcombine.low %v3823_v37, %v3833_v60  ;;  %v4188_v58 = vsel %vm8448_vm8, %v6474_v26, %v4187_v28  ;;  %v4191_v9 = vsel %vm8448_vm8, %v4189_v22, %v4190_v18  ;;  %v4196_v1 = vrot.slane %v4194_v3, 4  ;;  %v4095_v59 = vld [vmem:[#allocation2 + $0x4c] sm:$0xf]  ;;  %v4096_v37 = vld [vmem:[#allocation2 + $0x50] sm:$0x1]  ;;  %v9162_v43 = vpop.f32.mrb[21].mxu1 }
 0x1b9   : > { %v4195_v44 = vsel %vm8448_vm8, %v6475_v24, %v4194_v3  ;;  %v3837_v49 = vrot.slane %v3835_v15, 4  ;;  %v3838_v25 = vshll.u32 %v3597_v42, 16  ;;  %v3844_v55 = vshll.u32 %v3598_v4, 16  ;;  %v3600_v60 = vld [vmem:[#allocation2 + $0x90] sm:$0xf]  ;;  %v9160_v15 = vpop.f32.mrb[22].mxu0 }
 0x1ba   : > { %5676 = vmatprep.mubr.bf16.mxu1 %v6465_v46  ;;  %v4198_v26 = vsel %vm8448_vm8, %v4196_v1, %v4197_v48  ;;  %v3848_v28 = vshrl.u32 %v3598_v4, 16  ;;  %v3854_v18 = vshll.u32 %v3599_v35, 16  ;;  %v9158_v22 = vadd.f32 %v9053_v2, %v9045_v56  ;;  %v9164_v35 = vpop.f32.mrb[23].mxu0  ;;  %v9166_v1 = vpop.f32.mrb[22].mxu1 }
 0x1bb   : > { %v6490_v17 = vcombine.low %v4188_v58, %v4191_v9  ;;  %5677 = vmatmul.mubr.bf16.gmra.mrb[112].mxu1 %v7400_v14  ;;  %v3840_v24 = vrot.slane %v3838_v25, 5  ;;  %v3846_v42 = vrot.slane %v3844_v55, 5  ;;  %v6476_v3 = vrot.slane %v4091_v52, 9  ;;  %v9172_v58 = vpop.f32.mrb[23].mxu1  ;;  %v9174_v9 = vpop.f32.mrb[24].mxu0 }
 0x1bc   : > { %9909 = vst [vmem:[#allocation11_spill] sm:$0xff] %v9158_v22  ;;  %v6491_v46 = vcombine.low %v4195_v44, %v4198_v26  ;;  %v3850_v20 = vrot.slane %v3848_v28, 4  ;;  %v3856_v48 = vrot.slane %v3854_v18, 5  ;;  %v4201_v4 = vrot.slane %v4092_v11, 5  ;;  %v3601_v26 = vld [vmem:[#allocation2 + $0x94] sm:$0xf] }
 0x1bd   : > { %7231 = vmatmul.mubr.bf16.vlgmr.msra.gmra.mrb[112].mxu0 %v6490_v17  ;;  %v3841_v56 = vor.u32 %v3840_v24, %v3837_v49  ;;  %v4204_v2 = vrot.slane %v4093_v62, 5  ;;  %v9170_v14 = vadd.f32 %v9055_v30, %v9031_v51  ;;  %v6477_v52 = vrot.slane %v4094_v10, 9  ;;  %v9182_v10 = vpop.f32.mrb[25].mxu0  ;;  %v3602_v24 = vld [vmem:[#allocation2 + $0x98] sm:$0x1] }
 0x1be   : > { %7234 = vmatprep.mubr.bf16.mxu0 %v6491_v46  ;;  %v3851_v44 = vor.u32 %v3850_v20, %v3846_v42  ;;  %v4202_v11 = vsel %vm8448_vm8, %v6476_v3, %v4201_v4  ;;  %v4203_v25 = vrot.slane %v4201_v4, 4  ;;  %v4208_v55 = vrot.slane %v4095_v59, 5  ;;  %v4097_v4 = vld [vmem:[#allocation2 + $0x54] sm:$0xe] }
 0x1bf   : > { %v9180_v17 = vadd.f32 %v9059_v47, %v9112_v13  ;;  %v3842_v62 = vrot.slane %v3841_v56, 4  ;;  %v4211_v51 = vrot.slane %v4096_v37, 5  ;;  %v3859_v30 = vshrl.u32 %v3600_v60, 16  ;;  %v4098_v37 = vld [vmem:[#allocation2 + $0x58] sm:$0xf] }
 0x1c0   : > { %v3852_v49 = vrot.slane %v3851_v44, 4  ;;  %v4205_v28 = vsel %vm8448_vm8, %v4203_v25, %v4204_v2  ;;  %v4209_v20 = vsel %vm8448_vm8, %v6477_v52, %v4208_v55  ;;  %v4210_v18 = vrot.slane %v4208_v55, 4  ;;  %v7401_v44 = vld [vmem:[#allocation2 + $0x84] sm:$0xff]   ;;  %v4099_v52 = vld [vmem:[#allocation2 + $0x5c] sm:$0x1] }
 0x1c1   : > { %v3847_v59 = vsel %vm8043_vm5, %v3842_v62, %v3846_v42  ;;  %v6492_v3 = vcombine.low %v4202_v11, %v4205_v28  ;;  %v3861_v47 = vrot.slane %v3859_v30, 4  ;;  %v3862_v46 = vshll.u32 %v3600_v60, 16  ;;  %v4100_v55 = vld [vmem:[#allocation2 + $0x60] sm:$0xe]  ;;  %v4101_v11 = vld [vmem:[#allocation2 + $0x64] sm:$0xf] }
 0x1c2   : > { %v3857_v56 = vsel %vm8043_vm5, %v3852_v49, %v3856_v48  ;;  %v4212_v2 = vsel %vm8448_vm8, %v4210_v18, %v4211_v51  ;;  %v3868_v25 = vshll.u32 %v3601_v26, 16  ;;  %v3872_v22 = vshrl.u32 %v3601_v26, 16  ;;  %v9194_v62 = vpop.f32.mrb[24].mxu1  ;;  %v9196_v60 = vpop.f32.mrb[26].mxu0  ;;  %v4102_v51 = vld [vmem:[#allocation2 + $0x68] sm:$0x1] }
 0x1c3   : > { %v6466_v54 = vcombine.low %v3847_v59, %v3857_v56  ;;  %v6493_v16 = vcombine.low %v4209_v20, %v4212_v2  ;;  %v3864_v38 = vrot.slane %v3862_v46, 5  ;;  %v3878_v42 = vshll.u32 %v3602_v24, 16  ;;  %v9206_v49 = vpop.f32.mrb[25].mxu1  ;;  %v9208_v20 = vpop.f32.mrb[27].mxu0  ;;  %v3603_v24 = vld [vmem:[#allocation2 + $0x9c] sm:$0xf] }
 0x1c4   : > { %v3870_v30 = vrot.slane %v3868_v25, 5  ;;  %v3874_v28 = vrot.slane %v3872_v22, 4  ;;  %v9200_v48 = vadd.f32 %v9071_v36, %v9069_v0  ;;  %v9204_v26 = vadd.f32 %v9079_v31, %v9077_v29  ;;  %v9218_v29 = vpop.f32.mrb[26].mxu1  ;;  %v9220_v31 = vpop.f32.mrb[28].mxu0  ;;  %v3604_v2 = vld [vmem:[#allocation2 + $0xa0] sm:$0xf] }
 0x1c5   : > { %v9212_v18 = vadd.f32 %v9063_v5, %v9112_v13  ;;  %5684 = vmatprep.mubr.bf16.mxu1 %v6466_v54  ;;  %7235 = vmatmul.mubr.bf16.gmra.mrb[116].mxu0 %v6492_v3  ;;  %v3865_v22 = vor.u32 %v3864_v38, %v3861_v47  ;;  %v9216_v0 = vadd.f32 %v9087_v34, %v9081_v12  ;;  %v6478_v36 = vrot.slane %v4097_v4, 9  ;;  %v9226_v38 = vpop.f32.mrb[27].mxu1  ;;  %v9232_v4 = vpop.f32.mrb[29].mxu0 }
 0x1c6   : > { %9910 = vst [vmem:[#allocation12_spill] sm:$0xff] %v9204_v26  ;;  %v9224_v59 = vadd.f32 %v9101_v40, %v9112_v13  ;;  %5685 = vmatmul.mubr.bf16.gmra.mrb[116].mxu1 %v7401_v44  ;;  %7238 = vmatprep.mubr.bf16.mxu0 %v6493_v16  ;;  %v3875_v5 = vor.u32 %v3874_v28, %v3870_v30  ;;  %v3880_v54 = vrot.slane %v3878_v42, 5  ;;  %v4215_v3 = vrot.slane %v4098_v37, 5  ;;  %v9236_v25 = vpop.f32.mrb[28].mxu1 }
 0x1c7   : > { %9911 = vst [vmem:[#allocation13_spill] sm:$0xff] %v9216_v0  ;;  %v9230_v12 = vadd.f32 %v9105_v53, %v9112_v13  ;;  %v3866_v34 = vrot.slane %v3865_v22, 4  ;;  %v4218_v47 = vrot.slane %v4099_v52, 5  ;;  %v6479_v46 = vrot.slane %v4100_v55, 9  ;;  %9912 = vst [vmem:[#allocation14_spill] sm:$0xff] %v9236_v25  ;;  %v9240_v52 = vpop.f32.mrb[30].mxu0 }
 0x1c8   : > { %v3876_v56 = vrot.slane %v3875_v5, 4  ;;  %v4216_v40 = vsel %vm8448_vm8, %v6478_v36, %v4215_v3  ;;  %v4217_v44 = vrot.slane %v4215_v3, 4  ;;  %v4222_v16 = vrot.slane %v4101_v11, 5  ;;  %v3605_v53 = vld [vmem:[#allocation2 + $0xa4] sm:$0x1]  ;;  %9913 = vst [vmem:[#allocation15_spill] sm:$0xff] %v9240_v52 }
 0x1c9   : > { %v3871_v37 = vsel %vm8043_vm5, %v3866_v34, %v3870_v30  ;;  %v4225_v42 = vrot.slane %v4102_v51, 5  ;;  %v3883_v28 = vshrl.u32 %v3603_v24, 16  ;;  %v3886_v22 = vshll.u32 %v3603_v24, 16  ;;  %v4103_v3 = vld [vmem:[#allocation2 + $0x6c] sm:$0xe]  ;;  %v9248_v0 = vpop.f32.mrb[29].mxu1 }
 0x1ca   : > { %v3881_v55 = vsel %vm8043_vm5, %v3876_v56, %v3880_v54  ;;  %v4219_v36 = vsel %vm8448_vm8, %v4217_v44, %v4218_v47  ;;  %v4223_v11 = vsel %vm8448_vm8, %v6479_v46, %v4222_v16  ;;  %v4224_v5 = vrot.slane %v4222_v16, 4  ;;  %v4104_v24 = vld [vmem:[#allocation2 + $0x70] sm:$0xf]  ;;  %v9252_v44 = vpop.f32.mrb[31].mxu0  ;;  %v9254_v46 = vpop.f32.mrb[30].mxu1 }
 0x1cb   : > { %v6467_v30 = vcombine.low %v3871_v37, %v3881_v55  ;;  %v6494_v51 = vcombine.low %v4216_v40, %v4219_v36  ;;  %v3885_v34 = vrot.slane %v3883_v28, 4  ;;  %v3888_v26 = vrot.slane %v3886_v22, 5  ;;  %v7402_v52 = vld [vmem:[#allocation2 + $0x90] sm:$0xff]   ;;  %v4106_v22 = vld [vmem:[#allocation2 + $0x78] sm:$0xe]  ;;  %v9260_v36 = vpop.f32.mrb[31].mxu1 }
 0x1cc   : > { %v4226_v54 = vsel %vm8448_vm8, %v4224_v5, %v4225_v42  ;;  %v3892_v56 = vshll.u32 %v3604_v2, 16  ;;  %v3896_v25 = vshrl.u32 %v3604_v2, 16  ;;  %v3902_v47 = vshll.u32 %v3605_v53, 16  ;;  %v4107_v55 = vld [vmem:[#allocation2 + $0x7c] sm:$0xf] }
 0x1cd   : > { %5692 = vmatprep.mubr.bf16.mxu1 %v6467_v30  ;;  %7239 = vmatmul.mubr.bf16.gmra.mrb[120].mxu0 %v6494_v51  ;;  %v6495_v16 = vcombine.low %v4223_v11, %v4226_v54  ;;  %v3889_v37 = vor.u32 %v3888_v26, %v3885_v34  ;;  %v9258_v40 = vadd.f32 %v9107_v50, %v9089_v61  ;;  %v6480_v28 = vrot.slane %v4103_v3, 9  ;;  %v4108_v30 = vld [vmem:[#allocation2 + $0x80] sm:$0x1]  ;;  %v3606_v34 = vld [vmem:[#allocation2 + $0xa8] sm:$0xf] }
 0x1ce   : > { %5693 = vmatmul.mubr.bf16.gmra.mrb[120].mxu1 %v7402_v52  ;;  %v3894_v2 = vrot.slane %v3892_v56, 5  ;;  %v3898_v42 = vrot.slane %v3896_v25, 4  ;;  %v3904_v53 = vrot.slane %v3902_v47, 5  ;;  %v6872_v5 = vadd.f32 %v9118_v32, %v9114_v6 }
 0x1cf   : > { %v9268_v26 = vadd.f32 %v9170_v14, %v9112_v13  ;;  %7242 = vmatprep.mubr.bf16.mxu0 %v6495_v16  ;;  %v3890_v61 = vrot.slane %v3889_v37, 4  ;;  %v9272_v50 = vadd.f32 %v9120_v21, %v9116_v27  ;;  %v6875_v25 = vadd.f32 %v9132_v41, %v9126_v7  ;;  %v3607_v14 = vld [vmem:[#allocation2 + $0xac] sm:$0xf]  ;;  %v3608_v41 = vld [vmem:[#allocation2 + $0xb0] sm:$0x1] }
 0x1d0   : > { %v3899_v11 = vor.u32 %v3898_v42, %v3894_v2  ;;  %v9279_v6 = vadd.f32 %v6872_v5, %v9130_v63  ;;  %v4229_v32 = vrot.slane %v4104_v24, 5  ;;  %v4232_v3 = vrot.slane %v4105_v45, 5 }
 0x1d1   : > { %v9264_v51 = vpop.f32.mrb[32].mxu0  ;;  %v9283_v54 = vadd.f32 %v9200_v48, %v9112_v13  ;;  %v3895_v27 = vsel %vm8043_vm5, %v3890_v61, %v3894_v2  ;;  %v9288_v21 = vadd.f32 %v6875_v25, %v9136_v8  ;;  %v6481_v7 = vrot.slane %v4106_v22, 9 }
 0x1d2   : > { %v9276_v52 = vpop.f32.mrb[33].mxu0  ;;  %9914 = vst [vmem:[#allocation16_spill] sm:$0xff] %v9279_v6  ;;  %v3900_v24 = vrot.slane %v3899_v11, 4  ;;  %v4230_v45 = vsel %vm8448_vm8, %v6480_v28, %v4229_v32  ;;  %v4231_v47 = vrot.slane %v4229_v32, 4  ;;  %v4236_v16 = vrot.slane %v4107_v55, 5  ;;  %v7403_v6 = vld [vmem:[#allocation2 + $0x9c] sm:$0xff]  }
 0x1d3   : > { %9915 = vst [vmem:[#allocation17_spill] sm:$0xff] %v9288_v21  ;;  %v9292_v63 = vpop.f32.mrb[34].mxu0  ;;  %v4239_v2 = vrot.slane %v4108_v30, 5  ;;  %v3907_v42 = vshrl.u32 %v3606_v34, 16  ;;  %v3910_v8 = vshll.u32 %v3606_v34, 16  ;;  %v3916_v5 = vshll.u32 %v3607_v14, 16 }
 0x1d4   : > { %9916 = vst [vmem:[#allocation18_spill] sm:$0xff] %v9292_v63  ;;  %v9298_v37 = vpop.f32.mrb[35].mxu0  ;;  %v3905_v25 = vsel %vm8043_vm5, %v3900_v24, %v3904_v53  ;;  %v4233_v28 = vsel %vm8448_vm8, %v4231_v47, %v4232_v3  ;;  %v4237_v55 = vsel %vm8448_vm8, %v6481_v7, %v4236_v16  ;;  %v4238_v11 = vrot.slane %v4236_v16, 4  ;;  %v4109_v32 = vld [vmem:[#allocation2 + $0x84] sm:$0xe] }
 0x1d5   : > { %9918 = vst [vmem:[#allocation20_spill] sm:$0xff] %v9298_v37  ;;  %v6468_v30 = vcombine.low %v3895_v27, %v3905_v25  ;;  %v6496_v34 = vcombine.low %v4230_v45, %v4233_v28  ;;  %v3909_v37 = vrot.slane %v3907_v42, 4  ;;  %v4110_v63 = vld [vmem:[#allocation2 + $0x88] sm:$0xf]  ;;  %v3918_v53 = vrot.slane %v3916_v5, 5 }
 0x1d6   : > { %v9290_v56 = vpop.f32.mrb[32].mxu1  ;;  %v3920_v24 = vshrl.u32 %v3607_v14, 16  ;;  %v4111_v3 = vld [vmem:[#allocation2 + $0x8c] sm:$0x1]  ;;  %v9318_v27 = vadd.f32 %v9148_v23, %v9142_v33  ;;  %v6482_v45 = vrot.slane %v4109_v32, 9  ;;  %v9326_v14 = vadd.f32 %v9258_v40, %v9112_v13 }
 0x1d7   : > { %v9296_v48 = vpop.f32.mrb[33].mxu1  ;;  %5700 = vmatprep.mubr.bf16.mxu1 %v6468_v30  ;;  %7243 = vmatmul.mubr.bf16.gmra.mrb[124].mxu0 %v6496_v34  ;;  %v4112_v42 = vld [vmem:[#allocation2 + $0x90] sm:$0xe]  ;;  %v6793_v33 = vadd.f32 %v9164_v35, %v9160_v15  ;;  %v4114_v23 = vld [vmem:[#allocation2 + $0x98] sm:$0x1]  ;;  %v4243_v28 = vrot.slane %v4110_v63, 5 }
 0x1d8   : > { %9917 = vst [vmem:[#allocation19_spill] sm:$0xff] %v9296_v48  ;;  %v9300_v22 = vpop.f32.mrb[34].mxu1  ;;  %v3926_v48 = vshll.u32 %v3608_v41, 16  ;;  %5701 = vmatmul.mubr.bf16.gmra.mrb[124].mxu1 %v7403_v6  ;;  %v3922_v41 = vrot.slane %v3920_v24, 4  ;;  %v6881_v6 = vadd.f32 %v9172_v58, %v9166_v1  ;;  %v3610_v32 = vld [vmem:[#allocation2 + $0xb8] sm:$0xf] }
 0x1d9   : > { %9919 = vst [vmem:[#allocation21_spill] sm:$0xff] %v9300_v22  ;;  %v9310_v21 = vpop.f32.mrb[35].mxu1  ;;  %v3912_v22 = vrot.slane %v3910_v8, 5  ;;  %v4113_v8 = vld [vmem:[#allocation2 + $0x94] sm:$0xf]  ;;  %v4244_v1 = vsel %vm8448_vm8, %v6482_v45, %v4243_v28  ;;  %v4245_v58 = vrot.slane %v4243_v28, 4 }
 0x1da   : > { %v3928_v15 = vrot.slane %v3926_v48, 5  ;;  %v9352_v34 = vadd.f32 %v6881_v6, %v9212_v18  ;;  %v3611_v63 = vld [vmem:[#allocation2 + $0xbc] sm:$0x1]  ;;  %v3940_v45 = vshll.u32 %v3610_v32, 16  ;;  %v9945_v57 = vld [vmem:[#allocation17_spill] sm:$0xff] }
 0x1db   : > { %v3913_v16 = vor.u32 %v3912_v22, %v3909_v37  ;;  %v6878_v37 = vadd.f32 %v9162_v43, %v9152_v19  ;;  %v3923_v19 = vor.u32 %v3922_v41, %v3918_v53 }
 0x1dc   : > { %9922 = vst [vmem:[#allocation24_spill] sm:$0xff] %v9352_v34 }
 0x1dd   : > { %v3914_v40 = vrot.slane %v3913_v16, 4  ;;  %v9345_v35 = vadd.f32 %v6878_v37, %v9180_v17  ;;  %v3924_v17 = vrot.slane %v3923_v19, 4  ;;  %v4253_v16 = vrot.slane %v4114_v23, 5 }
 0x1de   : > { %v9320_v25 = vpop.f32.mrb[36].mxu1 }
 0x1df   : > { %v9302_v61 = vpop.f32.mrb[36].mxu0  ;;  %v9332_v5 = vpop.f32.mrb[37].mxu1  ;;  %9921 = vst [vmem:[#allocation23_spill] sm:$0xff] %v9345_v35  ;;  %v3929_v19 = vsel %vm8043_vm5, %v3924_v17, %v3928_v15  ;;  %v3950_v15 = vshll.u32 %v3611_v63, 16  ;;  %v4115_v17 = vld [vmem:[#allocation2 + $0x9c] sm:$0xe]  ;;  %v6887_v63 = vadd.f32 %v9226_v38, %v9218_v29 }
 0x1e0   : > { %9920 = vst [vmem:[#allocation22_spill] sm:$0xff] %v9302_v61  ;;  %v4240_v61 = vsel %vm8448_vm8, %v4238_v11, %v4239_v2  ;;  %v9314_v47 = vpop.f32.mrb[37].mxu0  ;;  %v9342_v43 = vpop.f32.mrb[38].mxu1  ;;  %v4246_v11 = vrot.slane %v4111_v3, 5  ;;  %v6483_v3 = vrot.slane %v4112_v42, 9 }
 0x1e1   : > { %v6497_v7 = vcombine.low %v4237_v55, %v4240_v61  ;;  %v9322_v2 = vpop.f32.mrb[38].mxu0  ;;  %v9338_v61 = vadd.f32 %v9272_v50, %v9112_v13  ;;  %v3609_v55 = vld [vmem:[#allocation2 + $0xb4] sm:$0xf]  ;;  %v9347_v30 = vpop.f32.mrb[39].mxu1  ;;  %v3919_v50 = vsel %vm8043_vm5, %v3914_v40, %v3918_v53  ;;  %v3613_v38 = vld [vmem:[#allocation2 + $0xc4] sm:$0xf] }
 0x1e2   : > { %v9334_v22 = vpop.f32.mrb[39].mxu0  ;;  %v4247_v18 = vsel %vm8448_vm8, %v4245_v58, %v4246_v11  ;;  %v3931_v53 = vshrl.u32 %v3609_v55, 16  ;;  %v3934_v40 = vshll.u32 %v3609_v55, 16  ;;  %v6469_v11 = vcombine.low %v3919_v50, %v3929_v19  ;;  %v3612_v19 = vld [vmem:[#allocation2 + $0xc0] sm:$0xf] }
 0x1e3   : > { %7246 = vmatprep.mubr.bf16.mxu0 %v6497_v7  ;;  %v4250_v7 = vrot.slane %v4113_v8, 5  ;;  %v6498_v42 = vcombine.low %v4244_v1, %v4247_v18  ;;  %v9382_v1 = vadd.f32 %v9182_v10, %v9174_v9  ;;  %v6884_v50 = vadd.f32 %v9206_v49, %v9194_v62  ;;  %v4119_v62 = vld [vmem:[#allocation2 + $0xac] sm:$0xf]  ;;  %v4120_v49 = vld [vmem:[#allocation2 + $0xb0] sm:$0x1] }
 0x1e4   : > { %v3933_v58 = vrot.slane %v3931_v53, 4  ;;  %v3936_v55 = vrot.slane %v3934_v40, 5  ;;  %5708 = vmatprep.mubr.bf16.mxu1 %v6469_v11  ;;  %v9388_v18 = vadd.f32 %v9208_v20, %v9196_v60  ;;  %v4116_v53 = vld [vmem:[#allocation2 + $0xa0] sm:$0xf]  ;;  %v4117_v40 = vld [vmem:[#allocation2 + $0xa4] sm:$0x1]  ;;  %v9395_v9 = vadd.f32 %v6793_v33, %v9112_v13 }
 0x1e5   : > { %v4251_v8 = vsel %vm8448_vm8, %v6483_v3, %v4250_v7  ;;  %v4252_v23 = vrot.slane %v4250_v7, 4  ;;  %7247 = vmatmul.mubr.bf16.gmra.mrb[128].mxu0 %v6498_v42  ;;  %v3952_v20 = vrot.slane %v3950_v15, 5  ;;  %v4260_v29 = vrot.slane %v4117_v40, 5 }
 0x1e6   : > { %v9358_v48 = vpop.f32.mrb[40].mxu1  ;;  %v3937_v7 = vor.u32 %v3936_v55, %v3933_v58  ;;  %v4264_v58 = vrot.slane %v4119_v62, 5  ;;  %v3958_v40 = vshll.u32 %v3612_v19, 16  ;;  %v3968_v62 = vshrl.u32 %v3613_v38, 16 }
 0x1e7   : > { %9923 = vst [vmem:[#allocation25_spill] sm:$0xff] %v9358_v48  ;;  %v9362_v37 = vpop.f32.mrb[41].mxu1  ;;  %v3944_v48 = vshrl.u32 %v3610_v32, 16  ;;  %v9392_v32 = vadd.f32 %v9318_v27, %v9112_v13  ;;  %v6484_v27 = vrot.slane %v4115_v17, 9 }
 0x1e8   : > { %9924 = vst [vmem:[#allocation26_spill] sm:$0xff] %v9362_v37  ;;  %v9368_v28 = vpop.f32.mrb[42].mxu1  ;;  %v3942_v37 = vrot.slane %v3940_v45, 5  ;;  %v3938_v60 = vrot.slane %v3937_v7, 4 }
 0x1e9   : > { %9926 = vst [vmem:[#allocation28_spill] sm:$0xff] %v9368_v28  ;;  %v9376_v35 = vpop.f32.mrb[43].mxu1  ;;  %v4254_v28 = vsel %vm8448_vm8, %v4252_v23, %v4253_v16  ;;  %v4118_v16 = vld [vmem:[#allocation2 + $0xa8] sm:$0xe]  ;;  %v3946_v10 = vrot.slane %v3944_v48, 4  ;;  %v9407_v48 = vadd.f32 %v6887_v63, %v9230_v12  ;;  %v3955_v12 = vshrl.u32 %v3612_v19, 16 }
 0x1ea   : > { %v9356_v24 = vpop.f32.mrb[40].mxu0  ;;  %v6499_v3 = vcombine.low %v4251_v8, %v4254_v28  ;;  %v9402_v28 = vadd.f32 %v6884_v50, %v9224_v59  ;;  %v3943_v23 = vsel %vm8043_vm5, %v3938_v60, %v3942_v37  ;;  %v6485_v11 = vrot.slane %v4118_v16, 9 }
 0x1eb   : > { %v9360_v41 = vpop.f32.mrb[41].mxu0  ;;  %v3947_v33 = vor.u32 %v3946_v10, %v3942_v37  ;;  %9928 = vst [vmem:[#allocation30_spill] sm:$0xff] %v9407_v48  ;;  %v4267_v59 = vrot.slane %v4120_v49, 5  ;;  %v4266_v50 = vrot.slane %v4264_v58, 4  ;;  %v3964_v10 = vshll.u32 %v3613_v38, 16 }
 0x1ec   : > { %v9366_v6 = vpop.f32.mrb[42].mxu0  ;;  %7250 = vmatprep.mubr.bf16.mxu0 %v6499_v3  ;;  %9927 = vst [vmem:[#allocation29_spill] sm:$0xff] %v9402_v28  ;;  %v4265_v7 = vsel %vm8448_vm8, %v6485_v11, %v4264_v58  ;;  %v3957_v63 = vrot.slane %v3955_v12, 4  ;;  %v4121_v11 = vld [vmem:[#allocation2 + $0xb4] sm:$0xe]  ;;  %v3970_v28 = vrot.slane %v3968_v62, 4  ;;  %v6802_v38 = vadd.f32 %v9232_v4, %v9220_v31 }
 0x1ed   : > { %9925 = vst [vmem:[#allocation27_spill] sm:$0xff] %v9366_v6  ;;  %v9374_v34 = vpop.f32.mrb[43].mxu0  ;;  %v7404_v6 = vld [vmem:[#allocation2 + $0xa8] sm:$0xff]   ;;  %v3948_v15 = vrot.slane %v3947_v33, 4  ;;  %v4268_v33 = vsel %vm8448_vm8, %v4266_v50, %v4267_v59  ;;  %v3966_v48 = vrot.slane %v3964_v10, 5  ;;  %v6893_v10 = vadd.f32 %v9260_v36, %v9254_v46 }
 0x1ee   : > { %5709 = vmatmul.mubr.bf16.gmra.mrb[128].mxu1 %v7404_v6  ;;  %v9399_v45 = vpop.f32.mrb[44].mxu1  ;;  %v4257_v6 = vrot.slane %v4116_v53, 5  ;;  %v3614_v53 = vld [vmem:[#allocation2 + $0xc8] sm:$0x1]  ;;  %v6501_v19 = vcombine.low %v4265_v7, %v4268_v33 }
 0x1ef   : > { %v9404_v42 = vpop.f32.mrb[45].mxu1  ;;  %v3953_v37 = vsel %vm8043_vm5, %v3948_v15, %v3952_v20  ;;  %v4122_v20 = vld [vmem:[#allocation2 + $0xb8] sm:$0xf]  ;;  %v3971_v7 = vor.u32 %v3970_v28, %v3966_v48  ;;  %v4126_v28 = vld [vmem:[#allocation2 + $0xc8] sm:$0x1]  ;;  %v9455_v46 = vadd.f32 %v6893_v10, %v9283_v54  ;;  %v6808_v54 = vadd.f32 %v9276_v52, %v9264_v51 }
 0x1f0   : > { %v9409_v8 = vpop.f32.mrb[46].mxu1  ;;  %v4258_v17 = vsel %vm8448_vm8, %v6484_v27, %v4257_v6  ;;  %v4259_v3 = vrot.slane %v4257_v6, 4  ;;  %v6470_v49 = vcombine.low %v3943_v23, %v3953_v37  ;;  %v7405_v27 = vld [vmem:[#allocation2 + $0xb4] sm:$0xff]   ;;  %v3960_v6 = vrot.slane %v3958_v40, 5  ;;  %v9930_v23 = vld [vmem:[#allocation14_spill] sm:$0xff] }
 0x1f1   : > { %v9413_v55 = vpop.f32.mrb[47].mxu1  ;;  %v6890_v59 = vadd.f32 %v9248_v0, %v9930_v23  ;;  %v4125_v37 = vld [vmem:[#allocation2 + $0xc4] sm:$0xf]  ;;  %v4271_v62 = vrot.slane %v4122_v20, 5  ;;  %v4281_v20 = vrot.slane %v4126_v28, 5 }
 0x1f2   : > { %9929 = vst [vmem:[#allocation31_spill] sm:$0xff] %v9413_v55  ;;  %v4261_v16 = vsel %vm8448_vm8, %v4259_v3, %v4260_v29  ;;  %v3974_v55 = vshll.u32 %v3614_v53, 16  ;;  %5716 = vmatprep.mubr.bf16.mxu1 %v6470_v49  ;;  %v3961_v29 = vor.u32 %v3960_v6, %v3957_v63  ;;  %v4124_v3 = vld [vmem:[#allocation2 + $0xc0] sm:$0xe]  ;;  %v9931_v53 = vld [vmem:[#allocation15_spill] sm:$0xff]  ;;  %v6486_v63 = vrot.slane %v4121_v11, 9 }
 0x1f3   : > { %v6500_v60 = vcombine.low %v4258_v17, %v4261_v16  ;;  %v4123_v17 = vld [vmem:[#allocation2 + $0xbc] sm:$0x1]  ;;  %v9437_v40 = vadd.f32 %v9252_v44, %v9931_v53  ;;  %v9446_v16 = vadd.f32 %v6890_v59, %v9268_v26  ;;  %v9452_v44 = vadd.f32 %v9382_v1, %v9112_v13  ;;  %v7406_v59 = vld [vmem:[#allocation2 + $0xc0] sm:$0xff]   ;;  %v4127_v28 = vld [vmem:[#allocation2 + $0xcc] sm:$0xe] }
 0x1f4   : > { %v3976_v50 = vrot.slane %v3974_v55, 5  ;;  %v3962_v0 = vrot.slane %v3961_v29, 4  ;;  %v3972_v49 = vrot.slane %v3971_v7, 4  ;;  %v4274_v36 = vrot.slane %v4123_v17, 5  ;;  %v318_v29 = vld [vmem:[#allocation2 + $0xcc] sm:$0x1] }
 0x1f5   : > { %7251 = vmatmul.mubr.bf16.gmra.mrb[132].mxu0 %v6500_v60  ;;  %v4273_v33 = vrot.slane %v4271_v62, 4  ;;  %v6487_v6 = vrot.slane %v4124_v3, 9  ;;  %v9932_v17 = vld [vmem:[#allocation19_spill] sm:$0xff]  ;;  %v9933_v3 = vld [vmem:[#allocation18_spill] sm:$0xff]  ;;  %v9934_v53 = vld [vmem:[#allocation20_spill] sm:$0xff] }
 0x1f6   : > { %5717 = vmatmul.mubr.bf16.gmra.mrb[132].mxu1 %v7405_v27  ;;  %7254 = vmatprep.mubr.bf16.mxu0 %v6501_v19  ;;  %v9443_v4 = vpop.f32.mrb[48].mxu1  ;;  %v3967_v26 = vsel %vm8043_vm5, %v3962_v0, %v3966_v48  ;;  %v4272_v27 = vsel %vm8448_vm8, %v6486_v63, %v4271_v62  ;;  %v3977_v1 = vsel %vm8043_vm5, %v3972_v49, %v3976_v50  ;;  %v4278_v19 = vrot.slane %v4125_v37, 5  ;;  %v374_v0 = vld [vmem:[#allocation2 + $0xd4] sm:$0x1]  ;;  %v3616_v63 = vld [vmem:[#allocation2 + $0xd0] sm:$0xf] }
 0x1f7   : > { %v9425_v58 = vpop.f32.mrb[44].mxu0  ;;  %v9448_v55 = vpop.f32.mrb[49].mxu1  ;;  %v6471_v23 = vcombine.low %v3967_v26, %v3977_v1  ;;  %v4275_v48 = vsel %vm8448_vm8, %v4273_v33, %v4274_v36  ;;  %v6896_v7 = vadd.f32 %v9932_v17, %v9290_v56  ;;  %v6811_v10 = vadd.f32 %v9934_v53, %v9933_v3  ;;  %v4128_v49 = vld [vmem:[#allocation2 + $0xd0] sm:$0xf]  ;;  %v9935_v33 = vld [vmem:[#allocation21_spill] sm:$0xff] }
 0x1f8   : > { %v9427_v15 = vpop.f32.mrb[45].mxu0  ;;  %v9457_v60 = vpop.f32.mrb[50].mxu1  ;;  %v9479_v37 = vadd.f32 %v9388_v18, %v9112_v13  ;;  %v6502_v51 = vcombine.low %v4272_v27, %v4275_v48  ;;  %v4279_v52 = vsel %vm8448_vm8, %v6487_v6, %v4278_v19  ;;  %v4280_v62 = vrot.slane %v4278_v19, 4  ;;  %v9942_v19 = vld [vmem:[#allocation28_spill] sm:$0xff] }
 0x1f9   : > { %v9433_v12 = vpop.f32.mrb[46].mxu0  ;;  %v9463_v11 = vpop.f32.mrb[51].mxu1  ;;  %5724 = vmatprep.mubr.bf16.mxu1 %v6471_v23  ;;  %v5188_v56 = vadd.f32 %v6802_v38, %v9112_v13  ;;  %v9487_v26 = vadd.f32 %v6896_v7, %v9326_v14  ;;  %v6899_v1 = vadd.f32 %v9310_v21, %v9935_v33  ;;  %v319_v27 = vsel %vm7715_vm7, 0, %v318_v29 }
 0x1fa   : > { %v9441_v31 = vpop.f32.mrb[47].mxu0  ;;  %v4282_v6 = vsel %vm8448_vm8, %v4280_v62, %v4281_v20  ;;  %320 = vst [vmem:[#allocation2 + $0xcc] sm:$0x1] %v319_v27  ;;  %v375_v38 = vsel %vm7705_vm6, 0, %v374_v0  ;;  %v3988_v23 = vshll.u32 %v3616_v63, 16  ;;  %v3992_v14 = vshrl.u32 %v3616_v63, 16 }
 0x1fb   : > { %v6503_v21 = vcombine.low %v4279_v52, %v4282_v6  ;;  %v9502_v3 = vadd.f32 %v6899_v1, %v9338_v61  ;;  %376 = vst [vmem:[#allocation2 + $0xd4] sm:$0x1] %v375_v38  ;;  %v6488_v29 = vrot.slane %v4127_v28, 9  ;;  %v4285_v53 = vrot.slane %v4128_v49, 5  ;;  %v9938_v62 = vld [vmem:[#allocation22_spill] sm:$0xff] }
 0x1fc   : > { %v3994_v20 = vrot.slane %v3992_v14, 4  ;;  %v6814_v0 = vadd.f32 %v9314_v47, %v9938_v62  ;;  %v6902_v63 = vadd.f32 %v9332_v5, %v9320_v25  ;;  %v5191_v61 = vadd.f32 %v9437_v40, %v9112_v13 }
 0x1fd   : > { %7255 = vmatmul.mubr.bf16.gmra.mrb[136].mxu0 %v6502_v51  ;;  %v9506_v51 = vrot.slane %v3988_v23, 5  ;;  %v5196_v52 = vadd.f32 %v6808_v54, %v9112_v13  ;;  %v6817_v28 = vadd.f32 %v9334_v22, %v9322_v2  ;;  %v6905_v49 = vadd.f32 %v9347_v30, %v9342_v43  ;;  %v9939_v2 = vld [vmem:[#allocation25_spill] sm:$0xff]  ;;  %v9940_v22 = vld [vmem:[#allocation26_spill] sm:$0xff]  ;;  %v9941_v30 = vld [vmem:[#allocation27_spill] sm:$0xff] }
 0x1fe   : > { %5725 = vmatmul.mubr.bf16.gmra.mrb[136].mxu1 %v7406_v59  ;;  %v9499_v7 = vpop.f32.mrb[52].mxu1  ;;  %7258 = vmatprep.mubr.bf16.mxu0 %v6503_v21  ;;  %v5199_v47 = vadd.f32 %v6811_v10, %v9112_v13  ;;  %v9524_v25 = vadd.f32 %v6902_v63, %v9392_v32  ;;  %v6820_v5 = vadd.f32 %v9360_v41, %v9356_v24  ;;  %v4287_v6 = vrot.slane %v4285_v53, 4 }
 0x1ff   : > { %v9475_v50 = vpop.f32.mrb[48].mxu0  ;;  %v9504_v59 = vpop.f32.mrb[53].mxu1  ;;  %v3995_v18 = vor.u32 %v3994_v20, %v9506_v51  ;;  %v4286_v40 = vsel %vm8448_vm8, %v6488_v29, %v4285_v53  ;;  %v9531_v54 = vadd.f32 %v6905_v49, %v9395_v9  ;;  %v6908_v43 = vadd.f32 %v9940_v22, %v9939_v2 }
 0x200   : > { %v9483_v36 = vpop.f32.mrb[49].mxu0  ;;  %v9512_v33 = vpop.f32.mrb[54].mxu1  ;;  %v9537_v10 = vadd.f32 %v9374_v34, %v9941_v30  ;;  %v5204_v32 = vadd.f32 %v6814_v0, %v9112_v13  ;;  %v6911_v24 = vadd.f32 %v9376_v35, %v9942_v19  ;;  %v9544_v41 = vadd.f32 %v9427_v15, %v9425_v58 }
 0x201   : > { %v9493_v48 = vpop.f32.mrb[50].mxu0  ;;  %v6928_v1 = vpop.f32.mrb[55].mxu1  ;;  %v3615_v38 = vld [vmem:[#allocation2 + $0xcc] sm:$0xf]  ;;  %v3996_v23 = vrot.slane %v3995_v18, 4  ;;  %v9547_v14 = vadd.f32 %v6908_v43, %v9452_v44  ;;  %v6914_v34 = vadd.f32 %v9404_v42, %v9399_v45  ;;  %v9553_v21 = vadd.f32 %v9441_v31, %v9433_v12  ;;  %v9943_v31 = vld [vmem:[#allocation31_spill] sm:$0xff] }
 0x202   : > { %v6986_v17 = vpop.f32.mrb[51].mxu0  ;;  %v3617_v53 = vld [vmem:[#allocation2 + $0xd4] sm:$0x1]  ;;  %v3979_v35 = vshrl.u32 %v3615_v38, 16  ;;  %v3982_v20 = vshll.u32 %v3615_v38, 16  ;;  %v5207_v58 = vadd.f32 %v6817_v28, %v9112_v13  ;;  %v9557_v15 = vadd.f32 %v6911_v24, %v9479_v37  ;;  %v9944_v24 = vld [vmem:[#allocation16_spill] sm:$0xff] }
 0x203   : > { %v4129_v62 = vld [vmem:[#allocation2 + $0xd4] sm:$0x1]  ;;  %v3998_v0 = vshll.u32 %v3617_v53, 16  ;;  %v5212_v63 = vadd.f32 %v6820_v5, %v9112_v13  ;;  %v9560_v49 = vadd.f32 %v6914_v34, %v5188_v56  ;;  %v6917_v18 = vadd.f32 %v9943_v31, %v9409_v8 }
 0x204   : > { %v4288_v44 = vrot.slane %v4129_v62, 5  ;;  %v3981_v42 = vrot.slane %v3979_v35, 4  ;;  %v3984_v12 = vrot.slane %v3982_v20, 5  ;;  %v6984_v2 = vadd.f32 %v9483_v36, %v9475_v50 }
 0x205   : > { %v4000_v28 = vrot.slane %v3998_v0, 5  ;;  %v6920_v43 = vadd.f32 %v9448_v55, %v9443_v4  ;;  %v6987_v13 = vadd.f32 %v6986_v17, %v9493_v48  ;;  %v9571_v19 = vadd.f32 %v6917_v18, %v5191_v61  ;;  %v9946_v0 = vld [vmem:[#allocation23_spill] sm:$0xff] }
 0x206   : > { %v4289_v37 = vsel %vm8448_vm8, %v4287_v6, %v4288_v44  ;;  %v3985_v5 = vor.u32 %v3984_v12, %v3981_v42  ;;  %v9574_v8 = vadd.f32 %v6984_v2, %v9944_v24  ;;  %v6923_v4 = vadd.f32 %v9463_v11, %v9457_v60  ;;  %v7407_v11 = vld [vmem:[#allocation2 + $0xcc] sm:$0xff]  }
 0x207   : > { %v6988_v27 = vpop.f32.mrb[52].mxu0  ;;  %v6930_v22 = vpop.f32.mrb[56].mxu1  ;;  %v6504_v30 = vcombine.low %v4286_v40, %v4289_v37  ;;  %v4001_v50 = vsel %vm8043_vm5, %v3996_v23, %v4000_v28  ;;  %v9578_v36 = vadd.f32 %v6920_v43, %v5196_v52  ;;  %v9581_v6 = vadd.f32 %v6987_v13, %v9945_v57 }
 0x208   : > { %v6989_v9 = vpop.f32.mrb[53].mxu0  ;;  %v6931_v56 = vpop.f32.mrb[57].mxu1  ;;  %v3986_v17 = vrot.slane %v3985_v5, 4  ;;  %v6926_v40 = vadd.f32 %v9504_v59, %v9499_v7  ;;  %v9587_v35 = vadd.f32 %v6923_v4, %v5199_v47  ;;  %v6929_v52 = vadd.f32 %v6928_v1, %v9512_v33  ;;  %v9947_v7 = vld [vmem:[#allocation24_spill] sm:$0xff]  ;;  %v9948_v33 = vld [vmem:[#allocation29_spill] sm:$0xff] }
 0x209   : > { %v6991_v29 = vpop.f32.mrb[54].mxu0  ;;  %v6933_v38 = vpop.f32.mrb[58].mxu1  ;;  %7259 = vmatmul.mubr.bf16.gmra.mrb[140].mxu0 %v6504_v30  ;;  %v6990_v61 = vadd.f32 %v6989_v9, %v6988_v27  ;;  %v6932_v20 = vadd.f32 %v6931_v56, %v6930_v22  ;;  %v5220_v2 = vadd.f32 %v9611_v39, %v9544_v41 }
 0x20a   : > { %v6992_v45 = vpop.f32.mrb[55].mxu0  ;;  %v6934_v48 = vpop.f32.mrb[59].mxu1  ;;  %v3991_v60 = vsel %vm8043_vm5, %v3986_v17, %v9506_v51  ;;  %v9596_v27 = vadd.f32 %v6926_v40, %v5204_v32  ;;  %v5215_v51 = vadd.f32 %v9611_v39, %v9537_v10  ;;  %v5223_v10 = vadd.f32 %v9611_v39, %v9553_v21  ;;  %v9950_v17 = vld [vmem:[#allocation6_spill] sm:$0xff] }
 0x20b   : > { %v6993_v34 = vadd.f32 %v6992_v45, %v6991_v29  ;;  %v9594_v44 = vadd.f32 %v6990_v61, %v9946_v0  ;;  %v6472_v9 = vcombine.low %v3991_v60, %v4001_v50  ;;  %v9601_v29 = vadd.f32 %v6929_v52, %v5207_v58  ;;  %v9949_v58 = vld [vmem:[#allocation30_spill] sm:$0xff]  ;;  %v9951_v52 = vld [vmem:[#allocation7_spill] sm:$0xff] }
 0x20c   : > { %v9606_v45 = vadd.f32 %v6932_v20, %v5212_v63  ;;  %v6935_v42 = vadd.f32 %v6934_v48, %v6933_v38  ;;  %v5228_v21 = vadd.f32 %v9611_v39, %v9950_v17 }
 0x20d   : > { %v9599_v59 = vadd.f32 %v6993_v34, %v9947_v7  ;;  %5732 = vmatprep.mubr.bf16.mxu1 %v6472_v9 }
 0x20e   : > { %5733 = vmatmul.mubr.bf16.gmra.mrb[140].mxu1 %v7407_v11  ;;  %v9618_v18 = vadd.f32 %v6935_v42, %v5215_v51 }
 0x20f   : > { %v6994_v55 = vpop.f32.mrb[56].mxu0 }
 0x210   : > { %v6995_v53 = vpop.f32.mrb[57].mxu0 }
 0x211   : > { %v6996_v23 = vadd.f32 %v6995_v53, %v6994_v55  ;;  %v6997_v62 = vpop.f32.mrb[58].mxu0  ;;  %v6936_v12 = vpop.f32.mrb[60].mxu1 }
 0x212   : > { %v6998_v47 = vpop.f32.mrb[59].mxu0  ;;  %v6937_v63 = vpop.f32.mrb[61].mxu1 }
 0x213   : > { %v9604_v1 = vadd.f32 %v6996_v23, %v9948_v33  ;;  %v6999_v32 = vadd.f32 %v6998_v47, %v6997_v62  ;;  %v6938_v28 = vadd.f32 %v6937_v63, %v6936_v12  ;;  %v6939_v37 = vpop.f32.mrb[62].mxu1  ;;  %v5231_v23 = vadd.f32 %v9611_v39, %v9951_v52 }
 0x214   : > { %v6940_v13 = vpop.f32.mrb[63].mxu1 }
 0x215   : > { %v9616_v31 = vadd.f32 %v6999_v32, %v9949_v58  ;;  %v9624_v5 = vadd.f32 %v6938_v28, %v5220_v2  ;;  %v6941_v24 = vadd.f32 %v6940_v13, %v6939_v37  ;;  %v9952_v2 = vld [vmem:[#allocation8_spill] sm:$0xff] }
 0x217   : > { %v7000_v22 = vpop.f32.mrb[60].mxu0  ;;  %v9629_v4 = vadd.f32 %v6941_v24, %v5223_v10  ;;  %v9953_v10 = vld [vmem:[#allocation9_spill] sm:$0xff] }
 0x218   : > { %v7001_v43 = vpop.f32.mrb[61].mxu0 }
 0x219   : > { %v7002_v56 = vadd.f32 %v7001_v43, %v7000_v22  ;;  %v7003_v30 = vpop.f32.mrb[62].mxu0  ;;  %v6942_v55 = vpop.f32.mrb[64].mxu1  ;;  %v5236_v22 = vadd.f32 %v9611_v39, %v9952_v2 }
 0x21a   : > { %v7004_v38 = vpop.f32.mrb[63].mxu0  ;;  %v6943_v48 = vpop.f32.mrb[65].mxu1 }
 0x21b   : > { %v9627_v50 = vadd.f32 %v7002_v56, %v9446_v16  ;;  %v7005_v57 = vadd.f32 %v7004_v38, %v7003_v30  ;;  %v6944_v61 = vadd.f32 %v6943_v48, %v6942_v55  ;;  %v6945_v40 = vpop.f32.mrb[66].mxu1 }
 0x21c   : > { %v6946_v53 = vpop.f32.mrb[67].mxu1 }
 0x21d   : > { %v9632_v41 = vadd.f32 %v7005_v57, %v9455_v46  ;;  %v9638_v20 = vadd.f32 %v6944_v61, %v5228_v21  ;;  %v6947_v62 = vadd.f32 %v6946_v53, %v6945_v40 }
 0x21f   : > { %v7006_v34 = vpop.f32.mrb[64].mxu0  ;;  %v9640_v0 = vadd.f32 %v6947_v62, %v5231_v23  ;;  %v9955_v23 = vld [vmem:[#allocation11_spill] sm:$0xff] }
 0x220   : > { %v7007_v16 = vpop.f32.mrb[65].mxu0 }
 0x221   : > { %v7008_v60 = vadd.f32 %v7007_v16, %v7006_v34  ;;  %v7009_v11 = vpop.f32.mrb[66].mxu0  ;;  %v6948_v32 = vpop.f32.mrb[68].mxu1  ;;  %v5247_v16 = vadd.f32 %v9611_v39, %v9955_v23 }
 0x222   : > { %v7010_v46 = vpop.f32.mrb[67].mxu0  ;;  %v6949_v58 = vpop.f32.mrb[69].mxu1 }
 0x223   : > { %v9643_v7 = vadd.f32 %v7008_v60, %v9487_v26  ;;  %v7011_v47 = vadd.f32 %v7010_v46, %v7009_v11  ;;  %v6950_v37 = vadd.f32 %v6949_v58, %v6948_v32  ;;  %v6951_v26 = vpop.f32.mrb[70].mxu1 }
 0x224   : > { %v6952_v13 = vpop.f32.mrb[71].mxu1 }
 0x225   : > { %v9646_v9 = vadd.f32 %v7011_v47, %v9502_v3  ;;  %v5239_v3 = vadd.f32 %v9611_v39, %v9953_v10  ;;  %v9655_v56 = vadd.f32 %v6950_v37, %v5236_v22  ;;  %v6953_v24 = vadd.f32 %v6952_v13, %v6951_v26  ;;  %v9956_v26 = vld [vmem:[#allocation12_spill] sm:$0xff] }
 0x227   : > { %v7012_v33 = vpop.f32.mrb[68].mxu0  ;;  %v9660_v38 = vadd.f32 %v6953_v24, %v5239_v3  ;;  %v9957_v3 = vld [vmem:[#allocation13_spill] sm:$0xff] }
 0x228   : > { %v7013_v51 = vpop.f32.mrb[69].mxu0  ;;  %v5255_v24 = vadd.f32 %v9611_v39, %v9957_v3 }
 0x229   : > { %v7014_v42 = vadd.f32 %v7013_v51, %v7012_v33  ;;  %v7015_v12 = vpop.f32.mrb[70].mxu0  ;;  %v6954_v57 = vpop.f32.mrb[72].mxu1 }
 0x22a   : > { %v7016_v63 = vpop.f32.mrb[71].mxu0  ;;  %v6955_v48 = vpop.f32.mrb[73].mxu1 }
 0x22b   : > { %v9651_v28 = vadd.f32 %v7014_v42, %v9524_v25  ;;  %v7017_v43 = vadd.f32 %v7016_v63, %v7015_v12  ;;  %v9954_v25 = vld [vmem:[#allocation10_spill] sm:$0xff]  ;;  %v6956_v61 = vadd.f32 %v6955_v48, %v6954_v57  ;;  %v6957_v40 = vpop.f32.mrb[74].mxu1 }
 0x22c   : > { %v5244_v17 = vadd.f32 %v9611_v39, %v9954_v25  ;;  %v6958_v52 = vpop.f32.mrb[75].mxu1 }
 0x22d   : > { %v9658_v30 = vadd.f32 %v7017_v43, %v9531_v54  ;;  %v6959_v60 = vadd.f32 %v6958_v52, %v6957_v40 }
 0x22e   : > { %v9666_v54 = vadd.f32 %v6956_v61, %v5244_v17 }
 0x22f   : > { %v7018_v55 = vpop.f32.mrb[72].mxu0  ;;  %v9671_v47 = vadd.f32 %v6959_v60, %v5247_v16 }
 0x230   : > { %v7019_v21 = vpop.f32.mrb[73].mxu0 }
 0x231   : > { %v7020_v34 = vadd.f32 %v7019_v21, %v7018_v55  ;;  %v7021_v53 = vpop.f32.mrb[74].mxu0 }
 0x232   : > { %v7022_v62 = vpop.f32.mrb[75].mxu0 }
 0x233   : > { %v9669_v11 = vadd.f32 %v7020_v34, %v9547_v14  ;;  %v7023_v46 = vadd.f32 %v7022_v62, %v7021_v53  ;;  %v5252_v14 = vadd.f32 %v9611_v39, %v9956_v26 }
 0x235   : > { %v9674_v33 = vadd.f32 %v7023_v46, %v9557_v15 }
 0x236   : > { %v6960_v58 = vpop.f32.mrb[76].mxu1 }
 0x237   : > { %v7024_v51 = vpop.f32.mrb[76].mxu0  ;;  %v6961_v22 = vpop.f32.mrb[77].mxu1 }
 0x238   : > { %v7025_v32 = vpop.f32.mrb[77].mxu0  ;;  %v6962_v43 = vadd.f32 %v6961_v22, %v6960_v58  ;;  %v6963_v13 = vpop.f32.mrb[78].mxu1 }
 0x239   : > { %v7026_v42 = vadd.f32 %v7025_v32, %v7024_v51  ;;  %v7027_v12 = vpop.f32.mrb[78].mxu0  ;;  %v6964_v15 = vpop.f32.mrb[79].mxu1 }
 0x23a   : > { %v7028_v63 = vpop.f32.mrb[79].mxu0  ;;  %v9686_v57 = vadd.f32 %v6962_v43, %v5252_v14  ;;  %v6965_v55 = vadd.f32 %v6964_v15, %v6963_v13 }
 0x23b   : > { %v9677_v2 = vadd.f32 %v7026_v42, %v9560_v49  ;;  %v7029_v37 = vadd.f32 %v7028_v63, %v7027_v12 }
 0x23c   : > { %v9688_v48 = vadd.f32 %v6965_v55, %v5255_v24 }
 0x23d   : > { %v9682_v10 = vadd.f32 %v7029_v37, %v9571_v19 }
 0x23e   : > { %v7094_v49 = vpop.f32.mrb[80].mxu1 }
 0x23f   : > { %v7030_v25 = vpop.f32.mrb[80].mxu0  ;;  %v7095_v17 = vpop.f32.mrb[81].mxu1 }
 0x240   : > { %v7031_v21 = vpop.f32.mrb[81].mxu0  ;;  %v7096_v61 = vadd.f32 %v7095_v17, %v7094_v49  ;;  %v7097_v40 = vpop.f32.mrb[82].mxu1 }
 0x241   : > { %v7032_v34 = vadd.f32 %v7031_v21, %v7030_v25  ;;  %v7033_v53 = vpop.f32.mrb[82].mxu0  ;;  %v7098_v52 = vpop.f32.mrb[83].mxu1 }
 0x242   : > { %v7034_v19 = vpop.f32.mrb[83].mxu0  ;;  %v7099_v23 = vadd.f32 %v7098_v52, %v7097_v40  ;;  %v9691_v16 = vadd.f32 %v7096_v61, %v9574_v8 }
 0x243   : > { %v9694_v39 = vadd.f32 %v7032_v34, %v9578_v36  ;;  %v7035_v62 = vadd.f32 %v7034_v19, %v7033_v53 }
 0x244   : > { %v9697_v60 = vadd.f32 %v7099_v23, %v9581_v6 }
 0x245   : > { %v9700_v46 = vadd.f32 %v7035_v62, %v9587_v35 }
 0x246   : > { %v7100_v51 = vpop.f32.mrb[84].mxu1 }
 0x247   : > { %v7101_v32 = vpop.f32.mrb[85].mxu1 }
 0x248   : > { %v7102_v42 = vadd.f32 %v7101_v32, %v7100_v51  ;;  %v7103_v12 = vpop.f32.mrb[86].mxu1 }
 0x249   : > { %v7036_v58 = vpop.f32.mrb[84].mxu0  ;;  %v7104_v63 = vpop.f32.mrb[87].mxu1 }
 0x24a   : > { %v7037_v22 = vpop.f32.mrb[85].mxu0  ;;  %v7105_v37 = vadd.f32 %v7104_v63, %v7103_v12  ;;  %v9703_v8 = vadd.f32 %v7102_v42, %v9594_v44 }
 0x24b   : > { %v7038_v36 = vadd.f32 %v7037_v22, %v7036_v58  ;;  %v7039_v26 = vpop.f32.mrb[86].mxu0 }
 0x24c   : > { %v7040_v14 = vpop.f32.mrb[87].mxu0  ;;  %v9706_v6 = vadd.f32 %v7105_v37, %v9599_v59 }
 0x24d   : > { %v9709_v35 = vadd.f32 %v7038_v36, %v9596_v27  ;;  %v7041_v43 = vadd.f32 %v7040_v14, %v7039_v26 }
 0x24f   : > { %v9712_v13 = vadd.f32 %v7041_v43, %v9601_v29 }
 0x250   : > { %v7106_v15 = vpop.f32.mrb[88].mxu1 }
 0x251   : > { %v7107_v3 = vpop.f32.mrb[89].mxu1 }
 0x252   : > { %v7108_v55 = vadd.f32 %v7107_v3, %v7106_v15  ;;  %v7109_v49 = vpop.f32.mrb[90].mxu1 }
 0x253   : > { %v7042_v24 = vpop.f32.mrb[88].mxu0  ;;  %v7110_v25 = vpop.f32.mrb[91].mxu1 }
 0x254   : > { %v7043_v44 = vpop.f32.mrb[89].mxu0  ;;  %v7111_v61 = vadd.f32 %v7110_v25, %v7109_v49  ;;  %v9715_v59 = vadd.f32 %v7108_v55, %v9604_v1 }
 0x255   : > { %v7044_v17 = vadd.f32 %v7043_v44, %v7042_v24  ;;  %v7045_v21 = vpop.f32.mrb[90].mxu0 }
 0x256   : > { %v7046_v40 = vpop.f32.mrb[91].mxu0  ;;  %v9721_v29 = vadd.f32 %v7111_v61, %v9616_v31 }
 0x257   : > { %v9718_v27 = vadd.f32 %v7044_v17, %v9606_v45  ;;  %v7047_v34 = vadd.f32 %v7046_v40, %v7045_v21 }
 0x259   : > { %v9724_v53 = vadd.f32 %v7047_v34, %v9618_v18 }
 0x25b   : > { %v7112_v52 = vpop.f32.mrb[92].mxu1 }
 0x25c   : > { %v7113_v19 = vpop.f32.mrb[93].mxu1 }
 0x25d   : > { %v7114_v23 = vadd.f32 %v7113_v19, %v7112_v52  ;;  %v7115_v62 = vpop.f32.mrb[94].mxu1  ;;  %v7048_v51 = vpop.f32.mrb[92].mxu0 }
 0x25e   : > { %v7116_v32 = vpop.f32.mrb[95].mxu1  ;;  %v7049_v42 = vpop.f32.mrb[93].mxu0 }
 0x25f   : > { %v7117_v1 = vadd.f32 %v7116_v32, %v7115_v62  ;;  %v9727_v12 = vadd.f32 %v7114_v23, %v9627_v50  ;;  %v7050_v45 = vadd.f32 %v7049_v42, %v7048_v51  ;;  %v7051_v58 = vpop.f32.mrb[94].mxu0 }
 0x260   : > { %v7052_v63 = vpop.f32.mrb[95].mxu0 }
 0x261   : > { %v9730_v31 = vadd.f32 %v7117_v1, %v9632_v41  ;;  %v9733_v18 = vadd.f32 %v7050_v45, %v9624_v5  ;;  %v7053_v22 = vadd.f32 %v7052_v63, %v7051_v58 }
 0x263   : > { %v9736_v37 = vadd.f32 %v7053_v22, %v9629_v4 }
 0x265   : > { %v7118_v36 = vpop.f32.mrb[96].mxu1 }
 0x266   : > { %v7119_v26 = vpop.f32.mrb[97].mxu1 }
 0x267   : > { %v7054_v14 = vpop.f32.mrb[96].mxu0  ;;  %v7120_v43 = vadd.f32 %v7119_v26, %v7118_v36  ;;  %v7121_v15 = vpop.f32.mrb[98].mxu1 }
 0x268   : > { %v7055_v50 = vpop.f32.mrb[97].mxu0  ;;  %v7122_v3 = vpop.f32.mrb[99].mxu1 }
 0x269   : > { %v7056_v24 = vadd.f32 %v7055_v50, %v7054_v14  ;;  %v7057_v55 = vpop.f32.mrb[98].mxu0  ;;  %v7123_v49 = vadd.f32 %v7122_v3, %v7121_v15  ;;  %v9739_v41 = vadd.f32 %v7120_v43, %v9643_v7 }
 0x26a   : > { %v7058_v44 = vpop.f32.mrb[99].mxu0 }
 0x26b   : > { %v9742_v5 = vadd.f32 %v7056_v24, %v9638_v20  ;;  %v7059_v25 = vadd.f32 %v7058_v44, %v7057_v55  ;;  %v9745_v4 = vadd.f32 %v7123_v49, %v9646_v9 }
 0x26d   : > { %v9748_v17 = vadd.f32 %v7059_v25, %v9640_v0 }
 0x270   : > { %v7124_v21 = vpop.f32.mrb[100].mxu1 }
 0x271   : > { %v7060_v61 = vpop.f32.mrb[100].mxu0  ;;  %v7125_v40 = vpop.f32.mrb[101].mxu1 }
 0x272   : > { %v7061_v34 = vpop.f32.mrb[101].mxu0  ;;  %v7126_v52 = vadd.f32 %v7125_v40, %v7124_v21  ;;  %v7127_v19 = vpop.f32.mrb[102].mxu1 }
 0x273   : > { %v7062_v23 = vadd.f32 %v7061_v34, %v7060_v61  ;;  %v7063_v7 = vpop.f32.mrb[102].mxu0  ;;  %v7128_v62 = vpop.f32.mrb[103].mxu1 }
 0x274   : > { %v7064_v51 = vpop.f32.mrb[103].mxu0  ;;  %v7129_v32 = vadd.f32 %v7128_v62, %v7127_v19  ;;  %v9751_v20 = vadd.f32 %v7126_v52, %v9651_v28 }
 0x275   : > { %v9754_v9 = vadd.f32 %v7062_v23, %v9655_v56  ;;  %v7065_v42 = vadd.f32 %v7064_v51, %v7063_v7 }
 0x276   : > { %v9757_v0 = vadd.f32 %v7129_v32, %v9658_v30 }
 0x277   : > { %v9760_v1 = vadd.f32 %v7065_v42, %v9660_v38 }
 0x279   : > { %v7130_v45 = vpop.f32.mrb[104].mxu1 }
 0x27a   : > { %v7131_v58 = vpop.f32.mrb[105].mxu1 }
 0x27b   : > { %v7132_v63 = vadd.f32 %v7131_v58, %v7130_v45  ;;  %v7133_v22 = vpop.f32.mrb[106].mxu1 }
 0x27c   : > { %v7134_v36 = vpop.f32.mrb[107].mxu1  ;;  %v7066_v26 = vpop.f32.mrb[104].mxu0 }
 0x27d   : > { %v7135_v14 = vadd.f32 %v7134_v36, %v7133_v22  ;;  %v9763_v28 = vadd.f32 %v7132_v63, %v9669_v11  ;;  %v7067_v43 = vpop.f32.mrb[105].mxu0 }
 0x27e   : > { %v7068_v56 = vadd.f32 %v7067_v43, %v7066_v26  ;;  %v7069_v15 = vpop.f32.mrb[106].mxu0 }
 0x27f   : > { %v9766_v50 = vadd.f32 %v7135_v14, %v9674_v33  ;;  %v7070_v30 = vpop.f32.mrb[107].mxu0 }
 0x280   : > { %v9769_v38 = vadd.f32 %v7068_v56, %v9666_v54  ;;  %v7071_v3 = vadd.f32 %v7070_v30, %v7069_v15 }
 0x282   : > { %v9772_v24 = vadd.f32 %v7071_v3, %v9671_v47 }
 0x284   : > { %v7136_v55 = vpop.f32.mrb[108].mxu1 }
 0x285   : > { %v7137_v49 = vpop.f32.mrb[109].mxu1 }
 0x286   : > { %v7138_v44 = vadd.f32 %v7137_v49, %v7136_v55  ;;  %v7139_v25 = vpop.f32.mrb[110].mxu1 }
 0x287   : > { %v7140_v11 = vpop.f32.mrb[111].mxu1 }
 0x288   : > { %v7141_v21 = vadd.f32 %v7140_v11, %v7139_v25  ;;  %v9775_v61 = vadd.f32 %v7138_v44, %v9677_v2  ;;  %v7072_v40 = vpop.f32.mrb[108].mxu0 }
 0x289   : > { %v7073_v34 = vpop.f32.mrb[109].mxu0 }
 0x28a   : > { %v9778_v33 = vadd.f32 %v7141_v21, %v9682_v10  ;;  %v7074_v54 = vadd.f32 %v7073_v34, %v7072_v40  ;;  %v7075_v52 = vpop.f32.mrb[110].mxu0 }
 0x28b   : > { %v7076_v19 = vpop.f32.mrb[111].mxu0 }
 0x28c   : > { %v9781_v47 = vadd.f32 %v7074_v54, %v9686_v57  ;;  %v7077_v23 = vadd.f32 %v7076_v19, %v7075_v52 }
 0x28e   : > { %v9784_v7 = vadd.f32 %v7077_v23, %v9688_v48  ;;  %v7142_v62 = vpop.f32.mrb[112].mxu1 }
 0x28f   : > { %v7143_v51 = vpop.f32.mrb[113].mxu1 }
 0x290   : > { %v7232_v32 = vpop.f32.mrb[112].mxu0  ;;  %v7144_v2 = vadd.f32 %v7143_v51, %v7142_v62  ;;  %v7145_v42 = vpop.f32.mrb[114].mxu1 }
 0x291   : > { %v5784_v10 = vadd.f32 %v7232_v32, %v9703_v8  ;;  %v5775_v45 = vpop.f32.mrb[113].mxu0  ;;  %v7146_v58 = vpop.f32.mrb[115].mxu1 }
 0x292   : > { %v5776_v63 = vadd.f32 %v5775_v45, %v9691_v16  ;;  %v7233_v22 = vpop.f32.mrb[114].mxu0  ;;  %v7147_v36 = vadd.f32 %v7146_v58, %v7145_v42  ;;  %v9789_v57 = vadd.f32 %v7144_v2, %v9694_v39 }
 0x293   : > { %v5787_v48 = vadd.f32 %v7233_v22, %v9706_v6  ;;  %v5778_v26 = vpop.f32.mrb[115].mxu0  ;;  %v5904_v15 = vmax.f32 %v5784_v10, 0.0 }
 0x294   : > { %v5902_v14 = vmax.f32 %v5776_v63, 0.0  ;;  %v5779_v43 = vadd.f32 %v5778_v26, %v9697_v60  ;;  %v9794_v56 = vadd.f32 %v7147_v36, %v9700_v46 }
 0x295   : > { %v5905_v8 = vmax.f32 %v5787_v48, 0.0  ;;  %v5973_v25 = vmul.f32 %v5904_v15, %v5904_v15 }
 0x296   : > { %v5903_v16 = vmax.f32 %v5779_v43, 0.0  ;;  %v5971_v30 = vmul.f32 %v5902_v14, %v5902_v14 }
 0x297   : > { %v6655_v39 = vpack.c.bf16 %v5905_v8, %v5904_v15  ;;  %v5974_v52 = vmul.f32 %v5905_v8, %v5905_v8 }
 0x298   : > { %v5934_v6 = vadd.f32 %v5903_v16, %v5902_v14  ;;  %v5972_v3 = vmul.f32 %v5903_v16, %v5903_v16  ;;  %v6650_v55 = vpack.c.bf16 %v5903_v16, %v5902_v14  ;;  %v7236_v49 = vpop.f32.mrb[116].mxu0 }
 0x299   : > { %6727 = vst [vmem:[%s9800_s9 + $0x8] sm:$0xff] %v6655_v39   ;;  %v5800_v60 = vadd.f32 %v7236_v49, %v9727_v12  ;;  %v7148_v46 = vpop.f32.mrb[116].mxu1  ;;  %v5791_v44 = vpop.f32.mrb[117].mxu0 }
 0x29a   : > { %v5935_v11 = vadd.f32 %v5934_v6, %v5904_v15  ;;  %v6003_v21 = vadd.f32 %v5972_v3, %v5971_v30  ;;  %6651 = vst [vmem:[%s9800_s9] sm:$0xff] %v6650_v55   ;;  %v5792_v40 = vadd.f32 %v5791_v44, %v9715_v59  ;;  %v7149_v34 = vpop.f32.mrb[117].mxu1  ;;  %v7237_v54 = vpop.f32.mrb[118].mxu0 }
 0x29b   : > { %v7150_v19 = vadd.f32 %v7149_v34, %v7148_v46  ;;  %v5803_v23 = vadd.f32 %v7237_v54, %v9730_v31  ;;  %v7151_v62 = vpop.f32.mrb[118].mxu1  ;;  %v5794_v51 = vpop.f32.mrb[119].mxu0  ;;  %v5908_v45 = vmax.f32 %v5800_v60, 0.0 }
 0x29c   : > { %v6004_v32 = vadd.f32 %v6003_v21, %v5973_v25  ;;  %v5906_v2 = vmax.f32 %v5792_v40, 0.0  ;;  %v5936_v42 = vadd.f32 %v5935_v11, %v5905_v8  ;;  %v5795_v12 = vadd.f32 %v5794_v51, %v9721_v29  ;;  %v7152_v10 = vpop.f32.mrb[119].mxu1 }
 0x29d   : > { %v5909_v58 = vmax.f32 %v5803_v23, 0.0  ;;  %v7153_v63 = vadd.f32 %v7152_v10, %v7151_v62  ;;  %v9809_v59 = vadd.f32 %v7150_v19, %v9709_v35  ;;  %v5977_v6 = vmul.f32 %v5908_v45, %v5908_v45 }
 0x29e   : > { %v5937_v22 = vadd.f32 %v5936_v42, %v5906_v2  ;;  %v5975_v36 = vmul.f32 %v5906_v2, %v5906_v2  ;;  %v6005_v48 = vadd.f32 %v6004_v32, %v5974_v52  ;;  %v5907_v31 = vmax.f32 %v5795_v12, 0.0 }
 0x29f   : > { %v6665_v26 = vpack.c.bf16 %v5909_v58, %v5908_v45  ;;  %v9812_v14 = vadd.f32 %v7153_v63, %v9712_v13  ;;  %v5978_v13 = vmul.f32 %v5909_v58, %v5909_v58 }
 0x2a0   : > { %v6006_v43 = vadd.f32 %v6005_v48, %v5975_v36  ;;  %v5938_v15 = vadd.f32 %v5937_v22, %v5907_v31  ;;  %v5976_v29 = vmul.f32 %v5907_v31, %v5907_v31  ;;  %v6660_v8 = vpack.c.bf16 %v5907_v31, %v5906_v2  ;;  %v7240_v16 = vpop.f32.mrb[120].mxu0 }
 0x2a1   : > { %6729 = vst [vmem:[%s9800_s9 + $0x18] sm:$0xff] %v6665_v26   ;;  %v5816_v39 = vadd.f32 %v7240_v16, %v9751_v20  ;;  %v7154_v30 = vpop.f32.mrb[120].mxu1  ;;  %v5807_v35 = vpop.f32.mrb[121].mxu0 }
 0x2a2   : > { %v5939_v3 = vadd.f32 %v5938_v15, %v5908_v45  ;;  %v6007_v55 = vadd.f32 %v6006_v43, %v5976_v29  ;;  %6728 = vst [vmem:[%s9800_s9 + $0x10] sm:$0xff] %v6660_v8   ;;  %v5808_v49 = vadd.f32 %v5807_v35, %v9739_v41  ;;  %v7155_v60 = vpop.f32.mrb[121].mxu1  ;;  %v7241_v46 = vpop.f32.mrb[122].mxu0 }
 0x2a3   : > { %v7156_v44 = vadd.f32 %v7155_v60, %v7154_v30  ;;  %v5819_v25 = vadd.f32 %v7241_v46, %v9757_v0  ;;  %v7157_v11 = vpop.f32.mrb[122].mxu1  ;;  %v5810_v21 = vpop.f32.mrb[123].mxu0  ;;  %v5912_v19 = vmax.f32 %v5816_v39, 0.0 }
 0x2a4   : > { %v6008_v40 = vadd.f32 %v6007_v55, %v5977_v6  ;;  %v5910_v34 = vmax.f32 %v5808_v49, 0.0  ;;  %v5940_v54 = vadd.f32 %v5939_v3, %v5909_v58  ;;  %v5811_v20 = vadd.f32 %v5810_v21, %v9745_v4  ;;  %v7158_v52 = vpop.f32.mrb[123].mxu1 }
 0x2a5   : > { %v5913_v23 = vmax.f32 %v5819_v25, 0.0  ;;  %v7159_v62 = vadd.f32 %v7158_v52, %v7157_v11  ;;  %v9821_v41 = vadd.f32 %v7156_v44, %v9718_v27  ;;  %v5981_v63 = vmul.f32 %v5912_v19, %v5912_v19 }
 0x2a6   : > { %v5941_v51 = vadd.f32 %v5940_v54, %v5910_v34  ;;  %v5979_v32 = vmul.f32 %v5910_v34, %v5910_v34  ;;  %v6009_v2 = vadd.f32 %v6008_v40, %v5978_v13  ;;  %v5911_v0 = vmax.f32 %v5811_v20, 0.0 }
 0x2a7   : > { %v6675_v42 = vpack.c.bf16 %v5913_v23, %v5912_v19  ;;  %v9824_v12 = vadd.f32 %v7159_v62, %v9724_v53  ;;  %v5982_v43 = vmul.f32 %v5913_v23, %v5913_v23 }
 0x2a8   : > { %v6010_v10 = vadd.f32 %v6009_v2, %v5979_v32  ;;  %v5942_v45 = vadd.f32 %v5941_v51, %v5911_v0  ;;  %v5980_v4 = vmul.f32 %v5911_v0, %v5911_v0  ;;  %v6670_v58 = vpack.c.bf16 %v5911_v0, %v5910_v34 }
 0x2a9   : > { %6731 = vst [vmem:[%s9800_s9 + $0x28] sm:$0xff] %v6675_v42  }
 0x2aa   : > { %v5943_v22 = vadd.f32 %v5942_v45, %v5912_v19  ;;  %v6011_v36 = vadd.f32 %v6010_v10, %v5980_v4  ;;  %6730 = vst [vmem:[%s9800_s9 + $0x20] sm:$0xff] %v6670_v58   ;;  %v7244_v48 = vpop.f32.mrb[124].mxu0 }
 0x2ab   : > { %v5832_v27 = vadd.f32 %v7244_v48, %v9775_v61  ;;  %v7160_v31 = vpop.f32.mrb[124].mxu1  ;;  %v5823_v26 = vpop.f32.mrb[125].mxu0 }
 0x2ac   : > { %v6012_v15 = vadd.f32 %v6011_v36, %v5981_v63  ;;  %v5824_v29 = vadd.f32 %v5823_v26, %v9763_v28  ;;  %v5944_v53 = vadd.f32 %v5943_v22, %v5913_v23  ;;  %v7161_v8 = vpop.f32.mrb[125].mxu1  ;;  %v7245_v16 = vpop.f32.mrb[126].mxu0 }
 0x2ad   : > { %v7162_v39 = vadd.f32 %v7161_v8, %v7160_v31  ;;  %v5835_v30 = vadd.f32 %v7245_v16, %v9778_v33  ;;  %v7163_v35 = vpop.f32.mrb[126].mxu1  ;;  %v5826_v6 = vpop.f32.mrb[127].mxu0  ;;  %v5916_v60 = vmax.f32 %v5832_v27, 0.0 }
 0x2ae   : > { %v5914_v3 = vmax.f32 %v5824_v29, 0.0  ;;  %v6013_v55 = vadd.f32 %v6012_v15, %v5982_v43  ;;  %v5827_v49 = vadd.f32 %v5826_v6, %v9766_v50  ;;  %v7164_v61 = vpop.f32.mrb[127].mxu1 }
 0x2af   : > { %v5917_v46 = vmax.f32 %v5835_v30, 0.0  ;;  %v7165_v13 = vadd.f32 %v7164_v61, %v7163_v35  ;;  %v5703_v28 = vadd.f32 %v7162_v39, %v9733_v18  ;;  %v5985_v50 = vmul.f32 %v5916_v60, %v5916_v60 }
 0x2b0   : > { %v5945_v44 = vadd.f32 %v5944_v53, %v5914_v3  ;;  %v5983_v25 = vmul.f32 %v5914_v3, %v5914_v3  ;;  %v5915_v11 = vmax.f32 %v5827_v49, 0.0 }
 0x2b1   : > { %v6685_v21 = vpack.c.bf16 %v5917_v46, %v5916_v60  ;;  %v5706_v33 = vadd.f32 %v7165_v13, %v9736_v37  ;;  %v5986_v0 = vmul.f32 %v5917_v46, %v5917_v46 }
 0x2b2   : > { %v6014_v40 = vadd.f32 %v6013_v55, %v5983_v25  ;;  %v5946_v34 = vadd.f32 %v5945_v44, %v5915_v11  ;;  %v5984_v54 = vmul.f32 %v5915_v11, %v5915_v11  ;;  %v6680_v20 = vpack.c.bf16 %v5915_v11, %v5914_v3 }
 0x2b3   : > { %6733 = vst [vmem:[%s9800_s9 + $0x38] sm:$0xff] %v6685_v21  }
 0x2b4   : > { %v5947_v19 = vadd.f32 %v5946_v34, %v5916_v60  ;;  %v6015_v23 = vadd.f32 %v6014_v40, %v5984_v54  ;;  %6732 = vst [vmem:[%s9800_s9 + $0x30] sm:$0xff] %v6680_v20  }
 0x2b6   : > { %v6016_v42 = vadd.f32 %v6015_v23, %v5985_v50  ;;  %v5948_v37 = vadd.f32 %v5947_v19, %v5917_v46 }
 0x2b8   : > { %v7248_v52 = vpop.f32.mrb[128].mxu0 }
 0x2b9   : > { %v5848_v62 = vadd.f32 %v7248_v52, %v9809_v59  ;;  %v5839_v51 = vpop.f32.mrb[129].mxu0  ;;  %v6017_v59 = vadd.f32 %v6016_v42, %v5986_v0 }
 0x2ba   : > { %v5840_v32 = vadd.f32 %v5839_v51, %v9789_v57  ;;  %v7249_v2 = vpop.f32.mrb[130].mxu0 }
 0x2bb   : > { %v5851_v45 = vadd.f32 %v7249_v2, %v9812_v14  ;;  %v5842_v4 = vpop.f32.mrb[131].mxu0  ;;  %v5920_v48 = vmax.f32 %v5848_v62, 0.0 }
 0x2bc   : > { %v5918_v58 = vmax.f32 %v5840_v32, 0.0  ;;  %v5843_v36 = vadd.f32 %v5842_v4, %v9794_v56 }
 0x2bd   : > { %v5921_v27 = vmax.f32 %v5851_v45, 0.0  ;;  %v5989_v56 = vmul.f32 %v5920_v48, %v5920_v48 }
 0x2be   : > { %v5949_v57 = vadd.f32 %v5948_v37, %v5918_v58  ;;  %v5987_v26 = vmul.f32 %v5918_v58, %v5918_v58  ;;  %v5919_v43 = vmax.f32 %v5843_v36, 0.0 }
 0x2bf   : > { %v6695_v29 = vpack.c.bf16 %v5921_v27, %v5920_v48  ;;  %v5990_v55 = vmul.f32 %v5921_v27, %v5921_v27 }
 0x2c0   : > { %v6018_v14 = vadd.f32 %v6017_v59, %v5987_v26  ;;  %v5950_v8 = vadd.f32 %v5949_v57, %v5919_v43  ;;  %v5988_v16 = vmul.f32 %v5919_v43, %v5919_v43  ;;  %v6690_v39 = vpack.c.bf16 %v5919_v43, %v5918_v58 }
 0x2c1   : > { %v7166_v18 = vpop.f32.mrb[128].mxu1  ;;  %6735 = vst [vmem:[%s9800_s9 + $0x48] sm:$0xff] %v6695_v29  }
 0x2c2   : > { %v7167_v10 = vpop.f32.mrb[129].mxu1  ;;  %v5951_v35 = vadd.f32 %v5950_v8, %v5920_v48  ;;  %v6019_v6 = vadd.f32 %v6018_v14, %v5988_v16  ;;  %6734 = vst [vmem:[%s9800_s9 + $0x40] sm:$0xff] %v6690_v39  }
 0x2c3   : > { %v7168_v63 = vadd.f32 %v7167_v10, %v7166_v18  ;;  %v7169_v22 = vpop.f32.mrb[130].mxu1 }
 0x2c4   : > { %v7170_v31 = vpop.f32.mrb[131].mxu1  ;;  %v6020_v49 = vadd.f32 %v6019_v6, %v5989_v56  ;;  %v5952_v13 = vadd.f32 %v5951_v35, %v5921_v27 }
 0x2c5   : > { %v7171_v15 = vadd.f32 %v7170_v31, %v7169_v22  ;;  %v5711_v53 = vadd.f32 %v7168_v63, %v9742_v5 }
 0x2c6   : > { %v6021_v11 = vadd.f32 %v6020_v49, %v5990_v55 }
 0x2c7   : > { %v5714_v30 = vadd.f32 %v7171_v15, %v9748_v17 }
 0x2c8   : > { %v7252_v3 = vpop.f32.mrb[132].mxu0 }
 0x2c9   : > { %v5864_v61 = vadd.f32 %v7252_v3, %v5703_v28  ;;  %v7172_v60 = vpop.f32.mrb[132].mxu1  ;;  %v5855_v46 = vpop.f32.mrb[133].mxu0 }
 0x2ca   : > { %v5856_v5 = vadd.f32 %v5855_v46, %v9821_v41  ;;  %v7173_v44 = vpop.f32.mrb[133].mxu1  ;;  %v7253_v25 = vpop.f32.mrb[134].mxu0 }
 0x2cb   : > { %v7174_v21 = vadd.f32 %v7173_v44, %v7172_v60  ;;  %v5867_v40 = vadd.f32 %v7253_v25, %v5706_v33  ;;  %v7175_v34 = vpop.f32.mrb[134].mxu1  ;;  %v5858_v17 = vpop.f32.mrb[135].mxu0  ;;  %v5924_v50 = vmax.f32 %v5864_v61, 0.0 }
 0x2cc   : > { %v5922_v54 = vmax.f32 %v5856_v5, 0.0  ;;  %v5859_v20 = vadd.f32 %v5858_v17, %v9824_v12  ;;  %v7176_v52 = vpop.f32.mrb[135].mxu1 }
 0x2cd   : > { %v5925_v19 = vmax.f32 %v5867_v40, 0.0  ;;  %v7177_v28 = vadd.f32 %v7176_v52, %v7175_v34  ;;  %v5719_v23 = vadd.f32 %v7174_v21, %v9754_v9  ;;  %v5993_v10 = vmul.f32 %v5924_v50, %v5924_v50 }
 0x2ce   : > { %v5953_v62 = vadd.f32 %v5952_v13, %v5922_v54  ;;  %v5991_v41 = vmul.f32 %v5922_v54, %v5922_v54  ;;  %v5923_v51 = vmax.f32 %v5859_v20, 0.0 }
 0x2cf   : > { %v6705_v18 = vpack.c.bf16 %v5925_v19, %v5924_v50  ;;  %v5722_v32 = vadd.f32 %v7177_v28, %v9760_v1  ;;  %v5994_v27 = vmul.f32 %v5925_v19, %v5925_v19 }
 0x2d0   : > { %v6022_v33 = vadd.f32 %v6021_v11, %v5991_v41  ;;  %v5954_v2 = vadd.f32 %v5953_v62, %v5923_v51  ;;  %v5992_v0 = vmul.f32 %v5923_v51, %v5923_v51  ;;  %v6700_v42 = vpack.c.bf16 %v5923_v51, %v5922_v54  ;;  %v7256_v37 = vpop.f32.mrb[136].mxu0 }
 0x2d1   : > { %6737 = vst [vmem:[%s9800_s9 + $0x58] sm:$0xff] %v6705_v18   ;;  %v7178_v12 = vpop.f32.mrb[136].mxu1  ;;  %v5880_v58 = vadd.f32 %v7256_v37, %v5719_v23  ;;  %v5871_v9 = vpop.f32.mrb[137].mxu0 }
 0x2d2   : > { %v5955_v45 = vadd.f32 %v5954_v2, %v5924_v50  ;;  %v6023_v4 = vadd.f32 %v6022_v33, %v5992_v0  ;;  %6736 = vst [vmem:[%s9800_s9 + $0x50] sm:$0xff] %v6700_v42   ;;  %v7179_v63 = vpop.f32.mrb[137].mxu1  ;;  %v5872_v22 = vadd.f32 %v5871_v9, %v5711_v53  ;;  %v7257_v48 = vpop.f32.mrb[138].mxu0 }
 0x2d3   : > { %v7180_v36 = vadd.f32 %v7179_v63, %v7178_v12  ;;  %v7181_v59 = vpop.f32.mrb[138].mxu1  ;;  %v5883_v57 = vadd.f32 %v7257_v48, %v5722_v32  ;;  %v5874_v26 = vpop.f32.mrb[139].mxu0  ;;  %v5928_v16 = vmax.f32 %v5880_v58, 0.0 }
 0x2d4   : > { %v6024_v1 = vadd.f32 %v6023_v4, %v5993_v10  ;;  %v5956_v31 = vadd.f32 %v5955_v45, %v5925_v19  ;;  %v7182_v43 = vpop.f32.mrb[139].mxu1  ;;  %v5926_v15 = vmax.f32 %v5872_v22, 0.0  ;;  %v5875_v29 = vadd.f32 %v5874_v26, %v5714_v30 }
 0x2d5   : > { %v7183_v14 = vadd.f32 %v7182_v43, %v7181_v59  ;;  %v5727_v8 = vadd.f32 %v7180_v36, %v9769_v38  ;;  %v5929_v56 = vmax.f32 %v5883_v57, 0.0  ;;  %v5997_v13 = vmul.f32 %v5928_v16, %v5928_v16 }
 0x2d6   : > { %v6025_v39 = vadd.f32 %v6024_v1, %v5994_v27  ;;  %v5957_v53 = vadd.f32 %v5956_v31, %v5926_v15  ;;  %v5995_v35 = vmul.f32 %v5926_v15, %v5926_v15  ;;  %v5927_v6 = vmax.f32 %v5875_v29, 0.0 }
 0x2d7   : > { %v5730_v3 = vadd.f32 %v7183_v14, %v9772_v24  ;;  %v6715_v55 = vpack.c.bf16 %v5929_v56, %v5928_v16  ;;  %v5998_v38 = vmul.f32 %v5929_v56, %v5929_v56 }
 0x2d8   : > { %v6026_v49 = vadd.f32 %v6025_v39, %v5995_v35  ;;  %v5958_v61 = vadd.f32 %v5957_v53, %v5927_v6  ;;  %v5996_v60 = vmul.f32 %v5927_v6, %v5927_v6  ;;  %v6710_v46 = vpack.c.bf16 %v5927_v6, %v5926_v15 }
 0x2d9   : > { %6739 = vst [vmem:[%s9800_s9 + $0x68] sm:$0xff] %v6715_v55  }
 0x2da   : > { %v5959_v30 = vadd.f32 %v5958_v61, %v5928_v16  ;;  %v6027_v5 = vadd.f32 %v6026_v49, %v5996_v60  ;;  %6738 = vst [vmem:[%s9800_s9 + $0x60] sm:$0xff] %v6710_v46  }
 0x2dc   : > { %v6028_v44 = vadd.f32 %v6027_v5, %v5997_v13  ;;  %v5960_v25 = vadd.f32 %v5959_v30, %v5929_v56  ;;  %v7260_v11 = vpop.f32.mrb[140].mxu0 }
 0x2dd   : > { %v5887_v40 = vpop.f32.mrb[141].mxu0 }
 0x2de   : > { %v6029_v21 = vadd.f32 %v6028_v44, %v5998_v38  ;;  %v5888_v34 = vadd.f32 %v5887_v40, %v5727_v8  ;;  %v7261_v17 = vpop.f32.mrb[142].mxu0 }
 0x2df   : > { %v5890_v54 = vpop.f32.mrb[143].mxu0 }
 0x2e0   : > { %v5930_v24 = vmax.f32 %v5888_v34, 0.0  ;;  %v5891_v20 = vadd.f32 %v5890_v54, %v5730_v3 }
 0x2e1   : > { %v7184_v52 = vpop.f32.mrb[140].mxu1 }
 0x2e2   : > { %v5961_v50 = vadd.f32 %v5960_v25, %v5930_v24  ;;  %v5999_v19 = vmul.f32 %v5930_v24, %v5930_v24  ;;  %v5931_v28 = vmax.f32 %v5891_v20, 0.0  ;;  %v7185_v23 = vpop.f32.mrb[141].mxu1 }
 0x2e3   : > { %v7186_v41 = vadd.f32 %v7185_v23, %v7184_v52  ;;  %v7187_v51 = vpop.f32.mrb[142].mxu1 }
 0x2e4   : > { %v6030_v62 = vadd.f32 %v6029_v21, %v5999_v19  ;;  %v5962_v18 = vadd.f32 %v5961_v50, %v5931_v28  ;;  %v6000_v32 = vmul.f32 %v5931_v28, %v5931_v28  ;;  %v6720_v33 = vpack.c.bf16 %v5931_v28, %v5930_v24  ;;  %v7188_v2 = vpop.f32.mrb[143].mxu1 }
 0x2e5   : > { %v5735_v0 = vadd.f32 %v7186_v41, %v9781_v47  ;;  %v7189_v37 = vadd.f32 %v7188_v2, %v7187_v51 }
 0x2e6   : > { %v6031_v42 = vadd.f32 %v6030_v62, %v6000_v32  ;;  %6740 = vst [vmem:[%s9800_s9 + $0x70] sm:$0xff] %v6720_v33  }
 0x2e7   : > { %v5896_v12 = vadd.f32 %v7260_v11, %v5735_v0  ;;  %v5738_v10 = vadd.f32 %v7189_v37, %v9784_v7 }
 0x2e9   : > { %v5932_v45 = vmax.f32 %v5896_v12, 0.0  ;;  %v5899_v4 = vadd.f32 %v7261_v17, %v5738_v10 }
 0x2eb   : > { %v6001_v58 = vmul.f32 %v5932_v45, %v5932_v45  ;;  %v5963_v9 = vadd.f32 %v5962_v18, %v5932_v45  ;;  %v5933_v63 = vmax.f32 %v5899_v4, 0.0 }
 0x2ed   : > { %v6032_v22 = vadd.f32 %v6031_v42, %v6001_v58  ;;  %v5964_v36 = vadd.f32 %v5963_v9, %v5933_v63  ;;  %v6002_v48 = vmul.f32 %v5933_v63, %v5933_v63  ;;  %v6725_v59 = vpack.c.bf16 %v5933_v63, %v5932_v45 }
 0x2ef   : > { %v5965_v27 = vrot.slane %v5964_v36, 4  ;;  %v6033_v1 = vadd.f32 %v6032_v22, %v6002_v48  ;;  %6741 = vst [vmem:[%s9800_s9 + $0x78] sm:$0xff] %v6725_v59  }
 0x2f1   : > { %v5966_v47 = vadd.f32 %v5965_v27, %v5964_v36  ;;  %v6034_v31 = vrot.slane %v6033_v1, 4 }
 0x2f3   : > { %v5967_v57 = vrot.slane %v5966_v47, 2  ;;  %v6035_v26 = vadd.f32 %v6034_v31, %v6033_v1 }
 0x2f5   : > { %v5968_v43 = vadd.f32 %v5967_v57, %v5966_v47  ;;  %v6036_v15 = vrot.slane %v6035_v26, 2 }
 0x2f7   : > { %v5969_v7 = vrot.slane %v5968_v43, 1  ;;  %v6037_v29 = vadd.f32 %v6036_v15, %v6035_v26 }
 0x2f9   : > { %v6038_v14 = vrot.slane %v6037_v29, 1  ;;  %v5970_v8 = vadd.f32 %v5969_v7, %v5968_v43 }
 0x2fb   : > { %v6039_v16 = vadd.f32 %v6038_v14, %v6037_v29 }
 0x2fd   : > { %v6041_v39 = vsel %vm264_vm4, %v5970_v8, %v6039_v16 }
 0x2fe   : > { %6042 = vst [vmem:[%s255_s12] sm:$0x3] %v6041_v39 }
 0x2ff PF: > { %s16_s18 = sadd.s32 1, %s7416_s18  }
 0x300   : > { %p13_p4 = scmp.ge.s32.totalorder %s16_s18, 4  }
 0x302   :  { %15 = sbr.rel (!%p13_p4) target bundleno = 1 (0x1), region = 84 }

// kernel: up_forward.3
= control target key start
LH: loop header
LB: loop body
LE: loop exit
PB: predicated region body
PF: predicated region fallthrough
CT: control target
= control target key end

     0   :  { %s7114_s21 = smov 0   ;;  %s8945_s0 = inlined_call_operand.vmem [shape: bf16[2,16,16,128], index: 0, kind: input, shape index: {}]   ;;  %s8946_s1 = inlined_call_operand.vmem [shape: f32[1,1,128], index: 1, kind: input, shape index: {}]   ;;  %s8947_s2 = inlined_call_operand.vmem [shape: f32[1,1,128], index: 2, kind: input, shape index: {}]   ;;  %s8948_s3 = inlined_call_operand.vmem [shape: bf16[1152,128], index: 3, kind: input, shape index: {}]   ;;  %s8949_s4 = inlined_call_operand.vmem [shape: f32[1,128], index: 4, kind: input, shape index: {}]   ;;  %s8950_s5 = inlined_call_operand.vmem [shape: bf16[2,16,16,128], index: 5, kind: output, shape index: {0}]   ;;  %s8951_s6 = inlined_call_operand.vmem [shape: f32[2,2,128], index: 6, kind: output, shape index: {1}]  }
   0x1 LB: > { %s5817_s22 = sadd.s32 4294967295, %s7076_s21   ;;  %p5821_p0 = scmp.ge.s32.totalorder %s7076_s21, 1  ;;  %s7076_s21 = sphi %s7114_s21, %s17_s21  }
   0x2   : > { %p215_p1 = scmp.lt.s32.totalorder %s7076_s21, 3 }
   0x4   : > { %p216_p2 = pnand %p5821_p0, %p215_p1 }
   0x6   : > { %219 = sbr.rel (%p216_p2) target bundleno = 681 (0x2a9), region = 40 }
   0xd   : > { %v6945_v0 = vld [vmem:[%s8948_s3 + $0x40] sm:$0xff]   ;;  %v7078_v2 = vmov 0   ;;  %v6947_v3 = vld [vmem:[%s8948_s3 + $0x48] sm:$0xff]   ;;  %v6949_v5 = vld [vmem:[%s8948_s3 + $0x50] sm:$0xff]   ;;  %p249_p3 = scmp.lt.s32.totalorder %s5817_s22, 1  ;;  %vm271_vm0 = vcmask 1040384  }
   0xe   : > { %v6946_v1 = vld [vmem:[%s8948_s3] sm:$0xff]   ;;  %264 = vst [vmem:[#allocation2] sm:$0xf] %v7078_v2  ;;  %265 = vst [vmem:[#allocation2 + $0x4] sm:$0xf] %v7078_v2  ;;  %6400 = vmatprep.subr.bf16.mxu0 %v6945_v0  ;;  %6920 = vmatprep.subr.bf16.mxu1 %v6945_v0  ;;  %v6948_v4 = vld [vmem:[%s8948_s3 + $0x8] sm:$0xff]  }
   0xf   : > { %266 = vst [vmem:[#allocation2 + $0x8] sm:$0x1] %v7078_v2  ;;  %268 = vst [vmem:[#allocation2 + $0xcc] sm:$0xf] %v7078_v2  ;;  %6401 = vmatpush3.bf16.msra.mxu0 %v6946_v1  ;;  %6928 = vmatpush3.bf16.msra.mxu1 %v6946_v1  ;;  %v6950_v6 = vld [vmem:[%s8948_s3 + $0x10] sm:$0xff]   ;;  %v6951_v7 = vld [vmem:[%s8948_s3 + $0x58] sm:$0xff]  }
  0x10   : > { %269 = vst [vmem:[#allocation2 + $0xd0] sm:$0xf] %v7078_v2  ;;  %270 = vst [vmem:[#allocation2 + $0xd4] sm:$0x1] %v7078_v2  ;;  %6402 = vmatprep.subr.bf16.mxu0 %v6947_v3  ;;  %6921 = vmatprep.subr.bf16.mxu1 %v6947_v3  ;;  %s9011_s22 = smov (!%p249_p3, %s5817_s22), 1  ;;  %v6952_v8 = vld [vmem:[%s8948_s3 + $0x18] sm:$0xff]  }
  0x11   : > { %v6953_v9 = vld [vmem:[%s8948_s3 + $0x60] sm:$0xff]   ;;  %s6160_s17 = sshll.u32 %s9011_s22, 7  ;;  %v6955_v11 = vld [vmem:[%s8948_s3 + $0x68] sm:$0xff]   ;;  %vm272_vm1 = vsmask.f32 256  ;;  %v8954_v13 = vmov 0 }
  0x12   : > { %v6954_v10 = vld [vmem:[%s8948_s3 + $0x20] sm:$0xff]   ;;  %s7167_s26 = scalar_lea.vmem %s8945_s0, %s6160_s17  ;;  %vm328_vm2 = vsmask.f32 7938  ;;  %vm7171_vm3 = vmand %vm271_vm0, %vm272_vm1  ;;  %v8957_v17 = vmov 0  ;;  %vm1251_vm5 = vsmask.f32 3328  ;;  %s8876_s25 = scalar_lea.vmem %s8950_s5, %s6160_s17 }
  0x13   : > { %6403 = vmatpush3.bf16.msra.mxu0 %v6948_v4  ;;  %6929 = vmatpush3.bf16.msra.mxu1 %v6948_v4  ;;  %v8955_v13 = vsel %vm7171_vm3, 4294967295, %v8954_v13  ;;  %vm7179_vm4 = vmand %vm271_vm0, %vm328_vm2  ;;  %v6380_v20 = vld [vmem:[%s7167_s26 + $0x58] sm:$0xff]   ;;  %v6956_v21 = vld [vmem:[%s8948_s3 + $0x28] sm:$0xff]   ;;  %vm1252_vm6 = vsmask.f32 7440  ;;  %vm945_vm8 = vcmask 1043456  }
  0x14   : > { %6404 = vmatprep.subr.bf16.mxu0 %v6949_v5  ;;  %6922 = vmatprep.subr.bf16.mxu1 %v6949_v5  ;;  %8956 = vst [vmem:[#allocation4_spill] sm:$0xff] %v8955_v13  ;;  %v8958_v17 = vsel %vm7179_vm4, 4294967295, %v8957_v17  ;;  %v310_v23 = vld [vmem:[#allocation2 + $0x90] sm:$0x1]  ;;  %v6272_v24 = vunpack.c.l.bf16 %v6380_v20  ;;  %v6273_v25 = vunpack.c.h.bf16 %v6380_v20  ;;  %v366_v30 = vld [vmem:[#allocation2 + $0x98] sm:$0x1]  ;;  %vm7233_vm9 = vmor %vm1251_vm5, %vm1252_vm6 }
  0x15   : > { %v274_v12 = vld [vmem:[#allocation2] sm:$0x1]  ;;  %v1204_v15 = vld [vmem:[#allocation2 + $0x4] sm:$0xf]  ;;  %8959 = vst [vmem:[#allocation5_spill] sm:$0xff] %v8958_v17  ;;  %v6957_v26 = vld [vmem:[%s8948_s3 + $0x70] sm:$0xff]  }
  0x16   : > { %v330_v14 = vld [vmem:[#allocation2 + $0x8] sm:$0x1]  ;;  %v275_v16 = vsel %vm7171_vm3, 0, %v274_v12  ;;  %v1264_v18 = vshll.u32 %v1204_v15, 16  ;;  %v1268_v19 = vshrl.u32 %v1204_v15, 16  ;;  %v311_v29 = vsel %vm7171_vm3, 0, %v310_v23  ;;  %vm7245_vm10 = vmand %vm945_vm8, %vm328_vm2 }
  0x17   : > { %6405 = vmatpush3.bf16.msra.mxu0 %v6950_v6  ;;  %6930 = vmatpush3.bf16.msra.mxu1 %v6950_v6  ;;  %276 = vst [vmem:[#allocation2] sm:$0x1] %v275_v16  ;;  %v331_v22 = vsel %vm7179_vm4, 0, %v330_v14  ;;  %v6958_v31 = vld [vmem:[%s8948_s3 + $0x30] sm:$0xff]   ;;  %312 = vst [vmem:[#allocation2 + $0x90] sm:$0x1] %v311_v29 }
  0x18   : > { %6406 = vmatprep.subr.bf16.mxu0 %v6951_v7  ;;  %6923 = vmatprep.subr.bf16.mxu1 %v6951_v7  ;;  %332 = vst [vmem:[#allocation2 + $0x8] sm:$0x1] %v331_v22  ;;  %v7192_v27 = vrot.slane %v1264_v18, 5  ;;  %v1270_v28 = vrot.slane %v1268_v19, 4  ;;  %v367_v32 = vsel %vm7179_vm4, 0, %v366_v30  ;;  %v6959_v35 = vld [vmem:[%s8948_s3 + $0x78] sm:$0xff]  }
  0x19   : > { %v7204_v33 = vld [vmem:[%s8946_s1] ss:$0 sm:$0xff]  ;;  %368 = vst [vmem:[#allocation2 + $0x98] sm:$0x1] %v367_v32  ;;  %vm622_vm7 = vsmask.f32 4368 }
  0x1a   : > { %v7209_v34 = vld [vmem:[%s8947_s2] ss:$0 sm:$0xff]  ;;  %v1271_v36 = vor.u32 %v1270_v28, %v7192_v27  ;;  %v477_v37 = vmul.f32 %v6272_v24, %v7204_v33  ;;  %v478_v38 = vmul.f32 %v6273_v25, %v7204_v33  ;;  %v277_v41 = vld [vmem:[#allocation2 + $0xc] sm:$0x1]  ;;  %v333_v42 = vld [vmem:[#allocation2 + $0x14] sm:$0x1] }
  0x1b   : > { %6407 = vmatpush3.bf16.msra.mxu0 %v6952_v8  ;;  %6931 = vmatpush3.bf16.msra.mxu1 %v6952_v8  ;;  %v6227_v43 = vld [vmem:[%s7167_s26] sm:$0xff]   ;;  %v278_v44 = vsel %vm7171_vm3, 0, %v277_v41  ;;  %v334_v45 = vsel %vm7179_vm4, 0, %v333_v42  ;;  %v6960_v52 = vld [vmem:[%s8948_s3 + $0x38] sm:$0xff]   ;;  %vm7252_vm11 = vmor %vm272_vm1, %vm622_vm7  ;;  %vm1814_vm12 = vcmask 1042432   ;;  %vm1815_vm13 = vcmask 1046532  }
  0x1c   : > { %6408 = vmatprep.subr.bf16.mxu0 %v6953_v9  ;;  %6924 = vmatprep.subr.bf16.mxu1 %v6953_v9  ;;  %v516_v39 = vadd.f32 %v7209_v34, %v477_v37  ;;  %v517_v40 = vadd.f32 %v7209_v34, %v478_v38  ;;  %v6228_v46 = vunpack.c.l.bf16 %v6227_v43  ;;  %v6229_v47 = vunpack.c.h.bf16 %v6227_v43  ;;  %279 = vst [vmem:[#allocation2 + $0xc] sm:$0x1] %v278_v44  ;;  %v6962_v63 = vld [vmem:[%s8948_s3 + $0xc0] sm:$0xff]   ;;  %v313_v32 = vld [vmem:[#allocation2 + $0x9c] sm:$0x1]  ;;  %vm7496_vm14 = vmor %vm1814_vm12, %vm1815_vm13  ;;  %s5826_s17 = sshll.u32 %s9011_s22, 1 }
  0x1d   : > { %v7224_v49 = vrot.slane %v1271_v36, 4  ;;  %335 = vst [vmem:[#allocation2 + $0x14] sm:$0x1] %v334_v45  ;;  %v6963_v0 = vld [vmem:[%s8948_s3 + $0x140] sm:$0xff]   ;;  %v6370_v36 = vld [vmem:[%s7167_s26 + $0x8] sm:$0xff]   ;;  %s262_s29 = scalar_lea.vmem %s8951_s6, %s5826_s17 }
  0x1e   : > { %v1203_v48 = vld [vmem:[#allocation2] sm:$0xf]  ;;  %v6184_v50 = vpack.c.bf16 %v516_v39, %v516_v39  ;;  %v6185_v51 = vpack.c.bf16 %v517_v40, %v517_v40  ;;  %v455_v56 = vmul.f32 %v6228_v46, %v7204_v33  ;;  %v456_v57 = vmul.f32 %v6229_v47, %v7204_v33  ;;  %v1024_v5 = vld [vmem:[#allocation2 + $0x90] sm:$0xf]  ;;  %v369_v41 = vld [vmem:[#allocation2 + $0xa4] sm:$0x1] }
  0x1f   : > { %6409 = vmatpush3.bf16.msra.mxu0 %v6954_v10  ;;  %6932 = vmatpush3.bf16.msra.mxu1 %v6954_v10  ;;  %v1205_v53 = vld [vmem:[#allocation2 + $0x8] sm:$0x1]  ;;  %v1255_v54 = vshrl.u32 %v1203_v48, 16  ;;  %v1258_v55 = vshll.u32 %v1203_v48, 16  ;;  %v6961_v23 = vld [vmem:[#allocation2] sm:$0xff]   ;;  %v314_v46 = vsel %vm7171_vm3, 0, %v313_v32 }
  0x20   : > { %6410 = vmatprep.subr.bf16.mxu0 %v6955_v11  ;;  %6925 = vmatprep.subr.bf16.mxu1 %v6955_v11  ;;  %v1274_v59 = vshll.u32 %v1205_v53, 16  ;;  %v812_v60 = vshrl.u32 %v6184_v50, 16  ;;  %v815_v61 = vshll.u32 %v6184_v50, 16  ;;  %v820_v62 = vshrl.u32 %v6185_v51, 16  ;;  %v1028_v11 = vld [vmem:[#allocation2 + $0x98] sm:$0x1] }
  0x21   : > { %v1257_v1 = vrot.slane %v1255_v54, 4  ;;  %v1260_v2 = vrot.slane %v1258_v55, 5  ;;  %v823_v3 = vshll.u32 %v6185_v51, 16  ;;  %v494_v6 = vadd.f32 %v7209_v34, %v455_v56  ;;  %v6966_v45 = vld [vmem:[%s8948_s3 + $0x100] sm:$0xff]   ;;  %315 = vst [vmem:[#allocation2 + $0x9c] sm:$0x1] %v314_v46 }
  0x22   : > { %v1276_v7 = vrot.slane %v1274_v59, 5  ;;  %v814_v9 = vrot.slane %v812_v60, 7  ;;  %v822_v10 = vrot.slane %v820_v62, 7  ;;  %v495_v12 = vadd.f32 %v7209_v34, %v456_v57  ;;  %v280_v51 = vld [vmem:[#allocation2 + $0x18] sm:$0x1] }
  0x23   : > { %6411 = vmatpush3.bf16.msra.mxu0 %v6956_v21  ;;  %6933 = vmatpush3.bf16.msra.mxu1 %v6956_v21  ;;  %v1261_v14 = vor.u32 %v1260_v2, %v1257_v1  ;;  %v6162_v15 = vpack.c.bf16 %v494_v6, %v494_v6  ;;  %v6381_v21 = vld [vmem:[%s7167_s26 + $0x60] sm:$0xff]   ;;  %v281_v54 = vsel %vm7171_vm3, 0, %v280_v51  ;;  %v6232_v56 = vunpack.c.l.bf16 %v6370_v36  ;;  %v6975_v1 = vld [vmem:[%s8948_s3 + $0x148] sm:$0xff]  }
  0x24   : > { %6412 = vmatprep.subr.bf16.mxu0 %v6957_v26  ;;  %6926 = vmatprep.subr.bf16.mxu1 %v6957_v26  ;;  %v1277_v16 = vsel %vm7233_vm9, %v7224_v49, %v1276_v7  ;;  %v817_v18 = vor.u32 %v815_v61, %v814_v9  ;;  %v818_v19 = vrot.slane %v814_v9, 4  ;;  %v825_v20 = vor.u32 %v823_v3, %v822_v10  ;;  %v951_v44 = vld [vmem:[#allocation2 + $0x14] sm:$0x1] }
  0x25   : > { %v1262_v22 = vrot.slane %v1261_v14, 4  ;;  %v827_v24 = vrot.slane %v822_v10, 4  ;;  %v6163_v25 = vpack.c.bf16 %v495_v12, %v495_v12  ;;  %v625_v26 = vshrl.u32 %v6162_v15, 16  ;;  %282 = vst [vmem:[#allocation2 + $0x18] sm:$0x1] %v281_v54  ;;  %v6965_v54 = vld [vmem:[%s8948_s3 + $0x80] sm:$0xff]  }
  0x26   : > { %v826_v28 = vsel %vm7252_vm11, %v818_v19, %v825_v20  ;;  %v1025_v29 = vsel %vm7245_vm10, %v817_v18, %v1024_v5  ;;  %v628_v30 = vshll.u32 %v6162_v15, 16  ;;  %v6277_v50 = vunpack.c.h.bf16 %v6381_v21 }
  0x27   : > { %6413 = vmatpush3.bf16.msra.mxu0 %v6958_v31  ;;  %6934 = vmatpush3.bf16.msra.mxu1 %v6958_v31  ;;  %v947_v31 = vld [vmem:[#allocation2 + $0xc] sm:$0xf]  ;;  %v1267_v37 = vsel %vm7233_vm9, %v1262_v22, %v7192_v27  ;;  %1026 = vst [vmem:[#allocation2 + $0x90] sm:$0xf] %v1025_v29  ;;  %1027 = vst [vmem:[#allocation2 + $0x94] sm:$0xf] %v826_v28  ;;  %v1029_v38 = vsel %vm7171_vm3, %v827_v24, %v1028_v11 }
  0x28   : > { %6414 = vmatprep.subr.bf16.mxu0 %v6959_v35  ;;  %6927 = vmatprep.subr.bf16.mxu1 %v6959_v35  ;;  %v6276_v35 = vunpack.c.l.bf16 %v6381_v21  ;;  %v627_v39 = vrot.slane %v625_v26, 7  ;;  %v633_v40 = vshrl.u32 %v6163_v25, 16  ;;  %v5877_v42 = vcombine.low %v1267_v37, %v1277_v16  ;;  %1030 = vst [vmem:[#allocation2 + $0x98] sm:$0x1] %v1029_v38 }
  0x29   : > { %v636_v43 = vshll.u32 %v6163_v25, 16  ;;  %v370_v27 = vsel %vm7179_vm4, 0, %v369_v41  ;;  %v480_v61 = vmul.f32 %v6277_v50, %v7204_v33  ;;  %v1031_v41 = vld [vmem:[#allocation2 + $0x9c] sm:$0xf] }
  0x2a   : > { %v630_v47 = vor.u32 %v628_v30, %v627_v39  ;;  %v631_v48 = vrot.slane %v627_v39, 4  ;;  %v635_v49 = vrot.slane %v633_v40, 7  ;;  %371 = vst [vmem:[#allocation2 + $0xa4] sm:$0x1] %v370_v27  ;;  %4657 = vmatprep.mubr.bf16.mxu0 %v5877_v42  ;;  %v479_v53 = vmul.f32 %v6276_v35, %v7204_v33 }
  0x2b   : > { %6415 = vmatpush3.bf16.msra.mxu0 %v6960_v52  ;;  %6935 = vmatpush3.bf16.msra.mxu1 %v6960_v52  ;;  %v336_v52 = vld [vmem:[#allocation2 + $0x20] sm:$0x1]  ;;  %v519_v5 = vadd.f32 %v7209_v34, %v480_v61 }
  0x2c   : > { %6512 = vmatprep.subr.bf16.mxu1 %v6962_v63  ;;  %6624 = vmatprep.subr.bf16.mxu0 %v6963_v0  ;;  %v337_v55 = vsel %vm7179_vm4, 0, %v336_v52  ;;  %v638_v57 = vor.u32 %v636_v43, %v635_v49  ;;  %v640_v59 = vrot.slane %v635_v49, 4  ;;  %v948_v60 = vsel %vm7245_vm10, %v630_v47, %v947_v31  ;;  %v6977_v43 = vld [vmem:[%s8948_s3 + $0x108] sm:$0xff]  }
  0x2d   : > { %338 = vst [vmem:[#allocation2 + $0x20] sm:$0x1] %v337_v55  ;;  %949 = vst [vmem:[#allocation2 + $0xc] sm:$0xf] %v948_v60  ;;  %v518_v62 = vadd.f32 %v7209_v34, %v479_v53  ;;  %v6233_v63 = vunpack.c.h.bf16 %v6370_v36  ;;  %v457_v0 = vmul.f32 %v6232_v56, %v7204_v33  ;;  %v6187_v20 = vpack.c.bf16 %v519_v5, %v519_v5 }
  0x2e   : > { %4658 = vmatmul.mubr.bf16.vlgmr.msra.gmra.mrb[0].mxu0 %v6961_v23  ;;  %v639_v2 = vsel %vm7252_vm11, %v631_v48, %v638_v57  ;;  %v952_v3 = vsel %vm7171_vm3, %v640_v59, %v951_v44  ;;  %v1239_v6 = vld [vmem:[#allocation2 + $0x90] sm:$0xf]  ;;  %v1240_v7 = vld [vmem:[#allocation2 + $0x94] sm:$0xf]  ;;  %v6968_v59 = vld [vmem:[%s8948_s3 + $0xc8] sm:$0xff]  }
  0x2f   : > { %6625 = vmatpush3.bf16.msra.mxu0 %v6966_v45  ;;  %950 = vst [vmem:[#allocation2 + $0x10] sm:$0xf] %v639_v2  ;;  %953 = vst [vmem:[#allocation2 + $0x14] sm:$0x1] %v952_v3  ;;  %v6186_v9 = vpack.c.bf16 %v518_v62, %v518_v62  ;;  %v458_v10 = vmul.f32 %v6233_v63, %v7204_v33  ;;  %v496_v11 = vadd.f32 %v7209_v34, %v457_v0  ;;  %v1241_v12 = vld [vmem:[#allocation2 + $0x98] sm:$0x1] }
  0x30   : > { %6626 = vmatprep.subr.bf16.mxu0 %v6975_v1  ;;  %v1543_v14 = vshrl.u32 %v1239_v6, 16  ;;  %v1546_v15 = vshll.u32 %v1239_v6, 16  ;;  %v1552_v16 = vshll.u32 %v1240_v7, 16  ;;  %v1556_v18 = vshrl.u32 %v1240_v7, 16  ;;  %v6964_v47 = vld [vmem:[#allocation2 + $0x90] sm:$0xff]  }
  0x31   : > { %v1562_v19 = vshll.u32 %v1241_v12, 16  ;;  %v829_v21 = vshrl.u32 %v6186_v9, 16  ;;  %v832_v22 = vshll.u32 %v6186_v9, 16  ;;  %v837_v30 = vshrl.u32 %v6187_v20, 16  ;;  %v1035_v61 = vld [vmem:[#allocation2 + $0xa4] sm:$0x1] }
  0x32   : > { %v1545_v23 = vrot.slane %v1543_v14, 4  ;;  %v1548_v24 = vrot.slane %v1546_v15, 5  ;;  %v1554_v25 = vrot.slane %v1552_v16, 5  ;;  %v1558_v26 = vrot.slane %v1556_v18, 4  ;;  %v316_v2 = vld [vmem:[#allocation2 + $0xa8] sm:$0x1] }
  0x33   : > { %v1564_v28 = vrot.slane %v1562_v19, 5  ;;  %v831_v29 = vrot.slane %v829_v21, 7  ;;  %v840_v36 = vshll.u32 %v6187_v20, 16  ;;  %v497_v37 = vadd.f32 %v7209_v34, %v458_v10  ;;  %6627 = vmatpush3.bf16.msra.mxu0 %v6977_v43  ;;  %v372_v9 = vld [vmem:[#allocation2 + $0xb0] sm:$0x1]  ;;  %v6969_v12 = vld [vmem:[%s8948_s3 + $0x88] sm:$0xff]  }
  0x34   : > { %v1549_v31 = vor.u32 %v1548_v24, %v1545_v23  ;;  %v1559_v32 = vor.u32 %v1558_v26, %v1554_v25  ;;  %v1206_v35 = vld [vmem:[#allocation2 + $0xc] sm:$0xf]  ;;  %v7299_v42 = vpack.c.bf16 %v496_v11, %v496_v11  ;;  %v839_v60 = vrot.slane %v837_v30, 7  ;;  %v283_v23 = vld [vmem:[#allocation2 + $0x24] sm:$0x1] }
  0x35   : > { %v1279_v38 = vshrl.u32 %v1206_v35, 16  ;;  %v1282_v39 = vshll.u32 %v1206_v35, 16  ;;  %v835_v40 = vrot.slane %v831_v29, 4  ;;  %v834_v48 = vor.u32 %v832_v22, %v831_v29  ;;  %v6382_v16 = vld [vmem:[%s7167_s26 + $0x68] sm:$0xff]   ;;  %v954_v22 = vld [vmem:[#allocation2 + $0x18] sm:$0xf] }
  0x36   : > { %v1550_v44 = vrot.slane %v1549_v31, 4  ;;  %v1560_v45 = vrot.slane %v1559_v32, 4  ;;  %v1207_v46 = vld [vmem:[#allocation2 + $0x10] sm:$0xf]  ;;  %v1208_v27 = vld [vmem:[#allocation2 + $0x14] sm:$0x1]  ;;  %v7304_v49 = vpack.c.bf16 %v497_v37, %v497_v37  ;;  %v842_v5 = vor.u32 %v840_v36, %v839_v60 }
  0x37   : > { %v1281_v50 = vrot.slane %v1279_v38, 4  ;;  %v1284_v51 = vrot.slane %v1282_v39, 5  ;;  %v1288_v52 = vshll.u32 %v1207_v46, 16  ;;  %v1292_v53 = vshrl.u32 %v1207_v46, 16  ;;  %v339_v24 = vld [vmem:[#allocation2 + $0x2c] sm:$0x1] }
  0x38   : > { %v1555_v55 = vsel %vm7233_vm9, %v1550_v44, %v1554_v25  ;;  %v1565_v56 = vsel %vm7233_vm9, %v1560_v45, %v1564_v28  ;;  %v1298_v57 = vshll.u32 %v1208_v27, 16  ;;  %v844_v6 = vrot.slane %v839_v60, 4  ;;  %v6970_v28 = vld [vmem:[%s8948_s3 + $0xd0] sm:$0xff]   ;;  %v958_v30 = vld [vmem:[#allocation2 + $0x20] sm:$0x1] }
  0x39   : > { %v5889_v62 = vcombine.low %v1555_v55, %v1565_v56  ;;  %v1285_v63 = vor.u32 %v1284_v51, %v1281_v50  ;;  %v1290_v0 = vrot.slane %v1288_v52, 5  ;;  %v1294_v1 = vrot.slane %v1292_v53, 4  ;;  %v6967_v32 = vld [vmem:[#allocation2 + $0xc] sm:$0xff]  }
  0x3a   : > { %v1300_v3 = vrot.slane %v1298_v57, 5  ;;  %v1032_v7 = vsel %vm7245_vm10, %v834_v48, %v1031_v41  ;;  %v642_v14 = vshrl.u32 %v7299_v42, 16  ;;  %v645_v15 = vshll.u32 %v7299_v42, 16  ;;  %v6371_v39 = vld [vmem:[%s7167_s26 + $0x10] sm:$0xff]  }
  0x3b   : > { %4753 = vmatprep.mubr.bf16.mxu1 %v5889_v62  ;;  %v1286_v10 = vrot.slane %v1285_v63, 4  ;;  %v1295_v11 = vor.u32 %v1294_v1, %v1290_v0  ;;  %1033 = vst [vmem:[#allocation2 + $0x9c] sm:$0xf] %v1032_v7  ;;  %v843_v18 = vsel %vm7252_vm11, %v835_v40, %v842_v5  ;;  %v1036_v19 = vsel %vm7171_vm3, %v844_v6, %v1035_v61  ;;  %v6972_v48 = vld [vmem:[%s8948_s3 + $0x90] sm:$0xff]  }
  0x3c   : > { %4754 = vmatmul.mubr.bf16.vlgmr.msra.gmra.mrb[0].mxu1 %v6964_v47  ;;  %v650_v20 = vshrl.u32 %v7304_v49, 16  ;;  %v653_v21 = vshll.u32 %v7304_v49, 16  ;;  %1034 = vst [vmem:[#allocation2 + $0xa0] sm:$0xf] %v843_v18  ;;  %1037 = vst [vmem:[#allocation2 + $0xa4] sm:$0x1] %v1036_v19  ;;  %v6280_v37 = vunpack.c.l.bf16 %v6382_v16  ;;  %v6281_v38 = vunpack.c.h.bf16 %v6382_v16 }
  0x3d   : > { %v1291_v25 = vsel %vm7233_vm9, %v1286_v10, %v1290_v0  ;;  %v1296_v26 = vrot.slane %v1295_v11, 4  ;;  %6513 = vmatpush3.bf16.msra.mxu1 %v6965_v54  ;;  %v644_v29 = vrot.slane %v642_v14, 7  ;;  %v317_v31 = vsel %vm7171_vm3, 0, %v316_v2  ;;  %v6974_v49 = vld [vmem:[%s8948_s3 + $0xd8] sm:$0xff]   ;;  %v7357_v53 = vld [vmem:[%s7167_s26 + $0x70] sm:$0xff]  }
  0x3e   : > { %6514 = vmatprep.subr.bf16.mxu1 %v6968_v59  ;;  %v652_v35 = vrot.slane %v650_v20, 7  ;;  %318 = vst [vmem:[#allocation2 + $0xa8] sm:$0x1] %v317_v31  ;;  %v373_v36 = vsel %vm7179_vm4, 0, %v372_v9  ;;  %v284_v43 = vsel %vm7171_vm3, 0, %v283_v23  ;;  %v481_v27 = vmul.f32 %v6280_v37, %v7204_v33  ;;  %v6985_v0 = vld [vmem:[%s8948_s3 + $0x150] sm:$0xff]  }
  0x3f   : > { %v1301_v40 = vsel %vm7233_vm9, %v1296_v26, %v1300_v3  ;;  %v647_v41 = vor.u32 %v645_v15, %v644_v29  ;;  %v648_v42 = vrot.slane %v644_v29, 4  ;;  %374 = vst [vmem:[#allocation2 + $0xb0] sm:$0x1] %v373_v36  ;;  %285 = vst [vmem:[#allocation2 + $0x24] sm:$0x1] %v284_v43  ;;  %v482_v50 = vmul.f32 %v6281_v38, %v7204_v33  ;;  %v6976_v14 = vld [vmem:[%s8948_s3 + $0x98] sm:$0xff]  }
  0x40   : > { %v5878_v44 = vcombine.low %v1291_v25, %v1301_v40  ;;  %v655_v45 = vor.u32 %v653_v21, %v652_v35  ;;  %v657_v46 = vrot.slane %v652_v35, 4  ;;  %v340_v51 = vsel %vm7179_vm4, 0, %v339_v24  ;;  %6628 = vmatprep.subr.bf16.mxu0 %v6985_v0  ;;  %v6978_v20 = vld [vmem:[%s8948_s3 + $0xe0] sm:$0xff]   ;;  %v6982_v31 = vld [vmem:[%s8948_s3 + $0xe8] sm:$0xff]   ;;  %v6988_v40 = vld [vmem:[%s8948_s3 + $0x110] sm:$0xff]  }
  0x41   : > { %6515 = vmatpush3.bf16.msra.mxu1 %v6969_v12  ;;  %v955_v47 = vsel %vm7245_vm10, %v647_v41, %v954_v22  ;;  %v6236_v52 = vunpack.c.l.bf16 %v6371_v39  ;;  %v520_v57 = vadd.f32 %v7209_v34, %v481_v27  ;;  %341 = vst [vmem:[#allocation2 + $0x2c] sm:$0x1] %v340_v51  ;;  %v6237_v59 = vunpack.c.h.bf16 %v6371_v39  ;;  %v6980_v25 = vld [vmem:[%s8948_s3 + $0xa0] sm:$0xff]   ;;  %6629 = vmatpush3.bf16.msra.mxu0 %v6988_v40 }
  0x42   : > { %4665 = vmatprep.mubr.bf16.mxu0 %v5878_v44  ;;  %v1242_v54 = vld [vmem:[#allocation2 + $0x9c] sm:$0xf]  ;;  %6516 = vmatprep.subr.bf16.mxu1 %v6970_v28  ;;  %v656_v55 = vsel %vm7252_vm11, %v648_v42, %v655_v45  ;;  %956 = vst [vmem:[#allocation2 + $0x18] sm:$0xf] %v955_v47  ;;  %v959_v56 = vsel %vm7171_vm3, %v657_v46, %v958_v30  ;;  %v6284_v6 = vunpack.c.l.bf16 %v7357_v53  ;;  %v6285_v7 = vunpack.c.h.bf16 %v7357_v53 }
  0x43   : > { %4666 = vmatmul.mubr.bf16.gmra.mrb[4].mxu0 %v6967_v32  ;;  %v1567_v60 = vshrl.u32 %v1242_v54, 16  ;;  %v1570_v61 = vshll.u32 %v1242_v54, 16  ;;  %957 = vst [vmem:[#allocation2 + $0x1c] sm:$0xf] %v656_v55  ;;  %960 = vst [vmem:[#allocation2 + $0x20] sm:$0x1] %v959_v56  ;;  %v521_v62 = vadd.f32 %v7209_v34, %v482_v50  ;;  %v459_v63 = vmul.f32 %v6236_v52, %v7204_v33 }
  0x44   : > { %v1243_v1 = vld [vmem:[#allocation2 + $0xa0] sm:$0xf]  ;;  %v1244_v2 = vld [vmem:[#allocation2 + $0xa4] sm:$0x1]  ;;  %v6188_v3 = vpack.c.bf16 %v520_v57, %v520_v57  ;;  %v460_v5 = vmul.f32 %v6237_v59, %v7204_v33  ;;  %v483_v46 = vmul.f32 %v6284_v6, %v7204_v33  ;;  %v319_v55 = vld [vmem:[#allocation2 + $0xb4] sm:$0x1] }
  0x45   : > { %v1569_v9 = vrot.slane %v1567_v60, 4  ;;  %v1572_v10 = vrot.slane %v1570_v61, 5  ;;  %v1576_v11 = vshll.u32 %v1243_v1, 16  ;;  %v1580_v12 = vshrl.u32 %v1243_v1, 16  ;;  %6517 = vmatpush3.bf16.msra.mxu1 %v6972_v48  ;;  %v1038_v37 = vld [vmem:[#allocation2 + $0xa8] sm:$0xf] }
  0x46   : > { %v1586_v15 = vshll.u32 %v1244_v2, 16  ;;  %6518 = vmatprep.subr.bf16.mxu1 %v6974_v49  ;;  %v6189_v16 = vpack.c.bf16 %v521_v62, %v521_v62  ;;  %v846_v18 = vshrl.u32 %v6188_v3, 16  ;;  %v849_v19 = vshll.u32 %v6188_v3, 16  ;;  %v6971_v60 = vld [vmem:[#allocation2 + $0x9c] sm:$0xff]   ;;  %v1042_v2 = vld [vmem:[#allocation2 + $0xb0] sm:$0x1] }
  0x47   : > { %v1573_v21 = vor.u32 %v1572_v10, %v1569_v9  ;;  %v1578_v22 = vrot.slane %v1576_v11, 5  ;;  %v1582_v23 = vrot.slane %v1580_v12, 4  ;;  %v498_v24 = vadd.f32 %v7209_v34, %v459_v63  ;;  %v6983_v3 = vld [vmem:[%s8948_s3 + $0xa8] sm:$0xff]   ;;  %v6984_v12 = vld [vmem:[%s8948_s3 + $0xf0] sm:$0xff]  }
  0x48   : > { %v1588_v26 = vrot.slane %v1586_v15, 5  ;;  %v848_v28 = vrot.slane %v846_v18, 7  ;;  %v854_v29 = vshrl.u32 %v6189_v16, 16  ;;  %v857_v30 = vshll.u32 %v6189_v16, 16 }
  0x49   : > { %v1574_v32 = vrot.slane %v1573_v21, 4  ;;  %v1583_v35 = vor.u32 %v1582_v23, %v1578_v22  ;;  %v1209_v36 = vld [vmem:[#allocation2 + $0x18] sm:$0xf]  ;;  %6519 = vmatpush3.bf16.msra.mxu1 %v6976_v14  ;;  %v499_v38 = vadd.f32 %v7209_v34, %v460_v5  ;;  %v7386_v39 = vpack.c.bf16 %v498_v24, %v498_v24  ;;  %v375_v5 = vld [vmem:[#allocation2 + $0xbc] sm:$0x1] }
  0x4a   : > { %v1210_v41 = vld [vmem:[#allocation2 + $0x1c] sm:$0xf]  ;;  %v1211_v42 = vld [vmem:[#allocation2 + $0x20] sm:$0x1]  ;;  %v1303_v43 = vshrl.u32 %v1209_v36, 16  ;;  %v1306_v44 = vshll.u32 %v1209_v36, 16  ;;  %v851_v45 = vor.u32 %v849_v19, %v848_v28  ;;  %6520 = vmatprep.subr.bf16.mxu1 %v6978_v20  ;;  %v522_v40 = vadd.f32 %v7209_v34, %v483_v46 }
  0x4b   : > { %v1579_v27 = vsel %vm7233_vm9, %v1574_v32, %v1578_v22  ;;  %v1584_v47 = vrot.slane %v1583_v35, 4  ;;  %v1312_v48 = vshll.u32 %v1210_v41, 16  ;;  %v1316_v49 = vshrl.u32 %v1210_v41, 16  ;;  %v286_v14 = vld [vmem:[#allocation2 + $0x30] sm:$0x1]  ;;  %v6990_v41 = vld [vmem:[%s8948_s3 + $0xf8] sm:$0xff]  }
  0x4c   : > { %v1305_v50 = vrot.slane %v1303_v43, 4  ;;  %v1308_v51 = vrot.slane %v1306_v44, 5  ;;  %v1322_v52 = vshll.u32 %v1211_v42, 16  ;;  %v852_v54 = vrot.slane %v848_v28, 4  ;;  %v6987_v20 = vld [vmem:[%s8948_s3 + $0xb0] sm:$0xff]   ;;  %v6372_v28 = vld [vmem:[%s7167_s26 + $0x18] sm:$0xff]  }
  0x4d   : > { %v1589_v56 = vsel %vm7233_vm9, %v1584_v47, %v1588_v26  ;;  %v1314_v57 = vrot.slane %v1312_v48, 5  ;;  %v1318_v59 = vrot.slane %v1316_v49, 4  ;;  %v856_v61 = vrot.slane %v854_v29, 7  ;;  %6521 = vmatpush3.bf16.msra.mxu1 %v6980_v25  ;;  %v961_v25 = vld [vmem:[#allocation2 + $0x24] sm:$0xf] }
  0x4e   : > { %v5890_v62 = vcombine.low %v1579_v27, %v1589_v56  ;;  %v1309_v63 = vor.u32 %v1308_v51, %v1305_v50  ;;  %v1324_v0 = vrot.slane %v1322_v52, 5  ;;  %v1039_v1 = vsel %vm7245_vm10, %v851_v45, %v1038_v37  ;;  %6522 = vmatprep.subr.bf16.mxu1 %v6982_v31  ;;  %v342_v26 = vld [vmem:[#allocation2 + $0x38] sm:$0x1]  ;;  %v965_v35 = vld [vmem:[#allocation2 + $0x2c] sm:$0x1]  ;;  %v7436_v48 = vld [vmem:[%s7167_s26 + $0x20] sm:$0xff]  }
  0x4f   : > { %v1319_v6 = vor.u32 %v1318_v59, %v1314_v57  ;;  %v859_v9 = vor.u32 %v857_v30, %v856_v61  ;;  %v861_v10 = vrot.slane %v856_v61, 4  ;;  %1040 = vst [vmem:[#allocation2 + $0xa8] sm:$0xf] %v1039_v1  ;;  %v6167_v11 = vpack.c.bf16 %v499_v38, %v499_v38  ;;  %v6973_v30 = vld [vmem:[#allocation2 + $0x18] sm:$0xff]   ;;  %v6993_v61 = vld [vmem:[%s8948_s3 + $0x1c0] sm:$0xff]  }
  0x50   : > { %4761 = vmatprep.mubr.bf16.mxu1 %v5890_v62  ;;  %v1310_v15 = vrot.slane %v1309_v63, 4  ;;  %v659_v16 = vshrl.u32 %v7386_v39, 16  ;;  %v662_v18 = vshll.u32 %v7386_v39, 16  ;;  %v320_v19 = vsel %vm7171_vm3, 0, %v319_v55  ;;  %v6991_v27 = vld [vmem:[%s8948_s3 + $0xb8] sm:$0xff]  }
  0x51   : > { %v1320_v21 = vrot.slane %v1319_v6, 4  ;;  %4762 = vmatmul.mubr.bf16.gmra.mrb[4].mxu1 %v6971_v60  ;;  %v860_v22 = vsel %vm7252_vm11, %v852_v54, %v859_v9  ;;  %v1043_v23 = vsel %vm7171_vm3, %v861_v10, %v1042_v2  ;;  %v667_v24 = vshrl.u32 %v6167_v11, 16  ;;  %321 = vst [vmem:[#allocation2 + $0xb4] sm:$0x1] %v320_v19  ;;  %v6996_v55 = vld [vmem:[%s8948_s3 + $0x158] sm:$0xff]  }
  0x52   : > { %v1315_v29 = vsel %vm7233_vm9, %v1310_v15, %v1314_v57  ;;  %1041 = vst [vmem:[#allocation2 + $0xac] sm:$0xf] %v860_v22  ;;  %1044 = vst [vmem:[#allocation2 + $0xb0] sm:$0x1] %v1043_v23  ;;  %v661_v31 = vrot.slane %v659_v16, 7  ;;  %v670_v32 = vshll.u32 %v6167_v11, 16  ;;  %6523 = vmatpush3.bf16.msra.mxu1 %v6983_v3  ;;  %v484_v39 = vmul.f32 %v6285_v7, %v7204_v33 }
  0x53   : > { %v376_v36 = vsel %vm7179_vm4, 0, %v375_v5  ;;  %v1325_v37 = vsel %vm7233_vm9, %v1320_v21, %v1324_v0  ;;  %v669_v38 = vrot.slane %v667_v24, 7  ;;  %6524 = vmatprep.subr.bf16.mxu1 %v6984_v12  ;;  %v287_v45 = vsel %vm7171_vm3, 0, %v286_v14  ;;  %6630 = vmatprep.subr.bf16.mxu0 %v6996_v55  ;;  %v6997_v21 = vld [vmem:[%s8948_s3 + $0x118] sm:$0xff]  }
  0x54   : > { %377 = vst [vmem:[#allocation2 + $0xbc] sm:$0x1] %v376_v36  ;;  %v5879_v42 = vcombine.low %v1315_v29, %v1325_v37  ;;  %v664_v43 = vor.u32 %v662_v18, %v661_v31  ;;  %v665_v44 = vrot.slane %v661_v31, 4  ;;  %v523_v7 = vadd.f32 %v7209_v34, %v484_v39  ;;  %288 = vst [vmem:[#allocation2 + $0x30] sm:$0x1] %v287_v45 }
  0x55   : > { %v672_v47 = vor.u32 %v670_v32, %v669_v38  ;;  %v674_v53 = vrot.slane %v669_v38, 4  ;;  %v6190_v46 = vpack.c.bf16 %v522_v40, %v522_v40  ;;  %v343_v51 = vsel %vm7179_vm4, 0, %v342_v26  ;;  %6631 = vmatpush3.bf16.msra.mxu0 %v6997_v21 }
  0x56   : > { %4673 = vmatprep.mubr.bf16.mxu0 %v5879_v42  ;;  %v1245_v49 = vld [vmem:[#allocation2 + $0xa8] sm:$0xf]  ;;  %v962_v50 = vsel %vm7245_vm10, %v664_v43, %v961_v25  ;;  %v6240_v52 = vunpack.c.l.bf16 %v6372_v28  ;;  %v6241_v54 = vunpack.c.h.bf16 %v6372_v28  ;;  %6525 = vmatpush3.bf16.msra.mxu1 %v6987_v20  ;;  %344 = vst [vmem:[#allocation2 + $0x38] sm:$0x1] %v343_v51  ;;  %v6191_v62 = vpack.c.bf16 %v523_v7, %v523_v7  ;;  %v345_v51 = vld [vmem:[#allocation2 + $0x44] sm:$0x1] }
  0x57   : > { %4674 = vmatmul.mubr.bf16.gmra.mrb[8].mxu0 %v6973_v30  ;;  %v1591_v56 = vshrl.u32 %v1245_v49, 16  ;;  %v1594_v57 = vshll.u32 %v1245_v49, 16  ;;  %v673_v59 = vsel %vm7252_vm11, %v665_v44, %v672_v47  ;;  %963 = vst [vmem:[#allocation2 + $0x24] sm:$0xf] %v962_v50  ;;  %v966_v60 = vsel %vm7171_vm3, %v674_v53, %v965_v35  ;;  %6526 = vmatprep.subr.bf16.mxu1 %v6990_v41  ;;  %v289_v53 = vld [vmem:[#allocation2 + $0x3c] sm:$0x1] }
  0x58   : > { %964 = vst [vmem:[#allocation2 + $0x28] sm:$0xf] %v673_v59  ;;  %967 = vst [vmem:[#allocation2 + $0x2c] sm:$0x1] %v966_v60  ;;  %v863_v63 = vshrl.u32 %v6190_v46, 16  ;;  %v866_v0 = vshll.u32 %v6190_v46, 16  ;;  %v461_v1 = vmul.f32 %v6240_v52, %v7204_v33  ;;  %v462_v9 = vmul.f32 %v6241_v54, %v7204_v33 }
  0x59   : > { %v1246_v2 = vld [vmem:[#allocation2 + $0xac] sm:$0xf]  ;;  %v1247_v3 = vld [vmem:[#allocation2 + $0xb0] sm:$0x1]  ;;  %v1593_v5 = vrot.slane %v1591_v56, 4  ;;  %v1596_v6 = vrot.slane %v1594_v57, 5  ;;  %v6244_v10 = vunpack.c.l.bf16 %v7436_v48  ;;  %v6245_v38 = vunpack.c.h.bf16 %v7436_v48 }
  0x5a   : > { %v1600_v11 = vshll.u32 %v1246_v2, 16  ;;  %v1604_v12 = vshrl.u32 %v1246_v2, 16  ;;  %v1610_v14 = vshll.u32 %v1247_v3, 16  ;;  %v500_v15 = vadd.f32 %v7209_v34, %v461_v1  ;;  %6527 = vmatpush3.bf16.msra.mxu1 %v6991_v27  ;;  %v1045_v32 = vld [vmem:[#allocation2 + $0xb4] sm:$0xf]  ;;  %v6979_v57 = vld [vmem:[#allocation2 + $0xa8] sm:$0xff]  }
  0x5b   : > { %v1597_v16 = vor.u32 %v1596_v6, %v1593_v5  ;;  %v865_v18 = vrot.slane %v863_v63, 7  ;;  %v871_v19 = vshrl.u32 %v6191_v62, 16  ;;  %v874_v20 = vshll.u32 %v6191_v62, 16  ;;  %6736 = vmatprep.subr.bf16.mxu1 %v6993_v61  ;;  %v1049_v35 = vld [vmem:[#allocation2 + $0xbc] sm:$0x1]  ;;  %v7001_v6 = vld [vmem:[%s8948_s3 + $0x160] sm:$0xff]  }
  0x5c   : > { %v1602_v22 = vrot.slane %v1600_v11, 5  ;;  %v1606_v23 = vrot.slane %v1604_v12, 4  ;;  %v1612_v33 = vrot.slane %v1610_v14, 5  ;;  %v501_v24 = vadd.f32 %v7209_v34, %v462_v9  ;;  %v1718_v59 = vld [vmem:[#allocation2] sm:$0xe]  ;;  %6632 = vmatprep.subr.bf16.mxu0 %v7001_v6 }
  0x5d   : > { %v1598_v25 = vrot.slane %v1597_v16, 4  ;;  %v868_v26 = vor.u32 %v866_v0, %v865_v18  ;;  %v869_v28 = vrot.slane %v865_v18, 4  ;;  %v873_v29 = vrot.slane %v871_v19, 7  ;;  %v7467_v60 = vld [vmem:[#allocation2 + $0x4] sm:$0xf] }
  0x5e   : > { %v1607_v30 = vor.u32 %v1606_v23, %v1602_v22  ;;  %v1212_v31 = vld [vmem:[#allocation2 + $0x24] sm:$0xf]  ;;  %v6168_v36 = vpack.c.bf16 %v500_v15, %v500_v15  ;;  %v6169_v37 = vpack.c.bf16 %v501_v24, %v501_v24  ;;  %v290_v12 = vsel %vm7171_vm3, 0, %v289_v53  ;;  %v7483_v19 = vld [vmem:[%s8946_s1] ss:$0 sm:$0xff] }
  0x5f   : > { %v1603_v39 = vsel %vm7233_vm9, %v1598_v25, %v1602_v22  ;;  %v1213_v40 = vld [vmem:[#allocation2 + $0x28] sm:$0xf]  ;;  %v1214_v34 = vld [vmem:[#allocation2 + $0x2c] sm:$0x1]  ;;  %v1327_v41 = vshrl.u32 %v1212_v31, 16  ;;  %v1330_v42 = vshll.u32 %v1212_v31, 16  ;;  %v876_v43 = vor.u32 %v874_v20, %v873_v29 }
  0x60   : > { %v1608_v44 = vrot.slane %v1607_v30, 4  ;;  %v1336_v45 = vshll.u32 %v1213_v40, 16  ;;  %v1340_v27 = vshrl.u32 %v1213_v40, 16  ;;  %v1346_v47 = vshll.u32 %v1214_v34, 16  ;;  %291 = vst [vmem:[#allocation2 + $0x3c] sm:$0x1] %v290_v12 }
  0x61   : > { %v1329_v7 = vrot.slane %v1327_v41, 4  ;;  %v1332_v46 = vrot.slane %v1330_v42, 5  ;;  %v877_v49 = vsel %vm7252_vm11, %v869_v28, %v876_v43  ;;  %v878_v50 = vrot.slane %v873_v29, 4  ;;  %v968_v22 = vld [vmem:[#allocation2 + $0x30] sm:$0xf] }
  0x62   : > { %v1613_v52 = vsel %vm7233_vm9, %v1608_v44, %v1612_v33  ;;  %v1338_v54 = vrot.slane %v1336_v45, 5  ;;  %v1342_v55 = vrot.slane %v1340_v27, 4  ;;  %v1348_v56 = vrot.slane %v1346_v47, 5  ;;  %1048 = vst [vmem:[#allocation2 + $0xb8] sm:$0xf] %v877_v49 }
  0x63   : > { %v5891_v61 = vcombine.low %v1603_v39, %v1613_v52  ;;  %v1333_v62 = vor.u32 %v1332_v46, %v1329_v7  ;;  %v1046_v63 = vsel %vm7245_vm10, %v868_v26, %v1045_v32  ;;  %v1050_v0 = vsel %vm7171_vm3, %v878_v50, %v1049_v35  ;;  %v6981_v26 = vld [vmem:[#allocation2 + $0x24] sm:$0xff]   ;;  %v972_v48 = vld [vmem:[#allocation2 + $0x38] sm:$0x1] }
  0x64   : > { %v1343_v1 = vor.u32 %v1342_v55, %v1338_v54  ;;  %1047 = vst [vmem:[#allocation2 + $0xb4] sm:$0xf] %v1046_v63  ;;  %1051 = vst [vmem:[#allocation2 + $0xbc] sm:$0x1] %v1050_v0  ;;  %v676_v2 = vshrl.u32 %v6168_v36, 16  ;;  %v679_v3 = vshll.u32 %v6168_v36, 16  ;;  %v463_v20 = vmul.f32 %v7483_v19, %v6244_v10 }
  0x65   : > { %v684_v5 = vshrl.u32 %v6169_v37, 16  ;;  %4769 = vmatprep.mubr.bf16.mxu1 %v5891_v61  ;;  %v1334_v9 = vrot.slane %v1333_v62, 4  ;;  %v687_v11 = vshll.u32 %v6169_v37, 16  ;;  %v346_v14 = vsel %vm7179_vm4, 0, %v345_v51  ;;  %v7503_v36 = vld [vmem:[%s8947_s2] ss:$0 sm:$0xff] }
  0x66   : > { %v1344_v15 = vrot.slane %v1343_v1, 4  ;;  %4770 = vmatmul.mubr.bf16.gmra.mrb[8].mxu1 %v6979_v57  ;;  %v678_v16 = vrot.slane %v676_v2, 7  ;;  %347 = vst [vmem:[#allocation2 + $0x44] sm:$0x1] %v346_v14  ;;  %v464_v23 = vmul.f32 %v7483_v19, %v6245_v38  ;;  %v5893_v33 = vrot.slane %v1718_v59, 9  ;;  %v7003_v39 = vld [vmem:[%s8948_s3 + $0x120] sm:$0xff]  }
  0x67   : > { %v686_v18 = vrot.slane %v684_v5, 7  ;;  %v1339_v21 = vsel %vm7233_vm9, %v1334_v9, %v1338_v54  ;;  %v1819_v24 = vrot.slane %v7467_v60, 5  ;;  %v502_v37 = vadd.f32 %v7503_v36, %v463_v20  ;;  %v1720_v51 = vld [vmem:[#allocation2 + $0x8] sm:$0x1]  ;;  %6633 = vmatpush3.bf16.msra.mxu0 %v7003_v39  ;;  %v1723_v39 = vld [vmem:[#allocation2 + $0x14] sm:$0x1] }
  0x68   : > { %v1349_v25 = vsel %vm7233_vm9, %v1344_v15, %v1348_v56  ;;  %v681_v28 = vor.u32 %v679_v3, %v678_v16  ;;  %v682_v29 = vrot.slane %v678_v16, 4  ;;  %v503_v38 = vadd.f32 %v7503_v36, %v464_v23  ;;  %v292_v57 = vld [vmem:[#allocation2 + $0x48] sm:$0x1]  ;;  %v975_v3 = vld [vmem:[#allocation2 + $0x3c] sm:$0xf] }
  0x69   : > { %v689_v30 = vor.u32 %v687_v11, %v686_v18  ;;  %v5880_v31 = vcombine.low %v1339_v21, %v1349_v25  ;;  %v1249_v32 = vld [vmem:[#allocation2 + $0xb8] sm:$0xf]  ;;  %v691_v35 = vrot.slane %v686_v18, 4  ;;  %v6170_v27 = vpack.c.bf16 %v502_v37, %v502_v37  ;;  %v7521_v63 = vld [vmem:[%s7167_s26 + $0x28] sm:$0xff]  }
  0x6a   : > { %v1624_v40 = vshll.u32 %v1249_v32, 16  ;;  %v1628_v34 = vshrl.u32 %v1249_v32, 16  ;;  %v969_v42 = vsel %vm7245_vm10, %v681_v28, %v968_v22  ;;  %v6171_v47 = vpack.c.bf16 %v503_v38, %v503_v38  ;;  %v7008_v14 = vld [vmem:[%s8948_s3 + $0x168] sm:$0xff]   ;;  %v1722_v38 = vld [vmem:[#allocation2 + $0x10] sm:$0xf] }
  0x6b   : > { %v690_v41 = vsel %vm7252_vm11, %v682_v29, %v689_v30  ;;  %4681 = vmatprep.mubr.bf16.mxu0 %v5880_v31  ;;  %v1248_v43 = vld [vmem:[#allocation2 + $0xb4] sm:$0xf]  ;;  %v1250_v44 = vld [vmem:[#allocation2 + $0xbc] sm:$0x1]  ;;  %970 = vst [vmem:[#allocation2 + $0x30] sm:$0xf] %v969_v42  ;;  %v973_v45 = vsel %vm7171_vm3, %v691_v35, %v972_v48  ;;  %v7518_v53 = vsel %vm7496_vm14, %v5893_v33, %v1819_v24  ;;  %v6248_v28 = vunpack.c.l.bf16 %v7521_v63 }
  0x6c   : > { %971 = vst [vmem:[#allocation2 + $0x34] sm:$0xf] %v690_v41  ;;  %4682 = vmatmul.mubr.bf16.gmra.mrb[12].mxu0 %v6981_v26  ;;  %v1615_v7 = vshrl.u32 %v1248_v43, 16  ;;  %v1618_v46 = vshll.u32 %v1248_v43, 16  ;;  %v1626_v49 = vrot.slane %v1624_v40, 5  ;;  %v1630_v50 = vrot.slane %v1628_v34, 4  ;;  %6634 = vmatprep.subr.bf16.mxu0 %v7008_v14 }
  0x6d   : > { %974 = vst [vmem:[#allocation2 + $0x38] sm:$0x1] %v973_v45  ;;  %v1634_v52 = vshll.u32 %v1250_v44, 16  ;;  %v693_v54 = vshrl.u32 %v6170_v27, 16  ;;  %v696_v55 = vshll.u32 %v6170_v27, 16  ;;  %v701_v56 = vshrl.u32 %v6171_v47, 16 }
  0x6e   : > { %v1617_v59 = vrot.slane %v1615_v7, 4  ;;  %v1620_v60 = vrot.slane %v1618_v46, 5  ;;  %v1631_v61 = vor.u32 %v1630_v50, %v1626_v49  ;;  %v704_v62 = vshll.u32 %v6171_v47, 16  ;;  %v979_v21 = vld [vmem:[#allocation2 + $0x44] sm:$0x1]  ;;  %v6992_v35 = vld [vmem:[#allocation2 + $0xc] sm:$0xff]  }
  0x6f   : > { %v1636_v0 = vrot.slane %v1634_v52, 5  ;;  %v695_v1 = vrot.slane %v693_v54, 7  ;;  %v703_v2 = vrot.slane %v701_v56, 7  ;;  %v1821_v5 = vrot.slane %v1819_v24, 4  ;;  %v348_v26 = vld [vmem:[#allocation2 + $0x50] sm:$0x1] }
  0x70   : > { %v1621_v6 = vor.u32 %v1620_v60, %v1617_v59  ;;  %v1632_v9 = vrot.slane %v1631_v61, 4  ;;  %v1822_v11 = vrot.slane %v1720_v51, 5  ;;  %v293_v12 = vsel %vm7171_vm3, 0, %v292_v57  ;;  %v1721_v37 = vld [vmem:[#allocation2 + $0xc] sm:$0xe]  ;;  %v6986_v41 = vld [vmem:[#allocation2 + $0xb4] sm:$0xff]  }
  0x71   : > { %v698_v15 = vor.u32 %v696_v55, %v695_v1  ;;  %v699_v16 = vrot.slane %v695_v1, 4  ;;  %v706_v18 = vor.u32 %v704_v62, %v703_v2  ;;  %v708_v20 = vrot.slane %v703_v2, 4  ;;  %294 = vst [vmem:[#allocation2 + $0x48] sm:$0x1] %v293_v12  ;;  %v7009_v7 = vld [vmem:[%s8948_s3 + $0x128] sm:$0xff]  }
  0x72   : > { %v1622_v22 = vrot.slane %v1621_v6, 4  ;;  %v1637_v23 = vsel %vm7233_vm9, %v1632_v9, %v1636_v0  ;;  %v1215_v33 = vld [vmem:[#allocation2 + $0x30] sm:$0xf]  ;;  %v7532_v25 = vsel %vm7496_vm14, %v1821_v5, %v1822_v11  ;;  %v295_v52 = vld [vmem:[#allocation2 + $0x54] sm:$0x1]  ;;  %v349_v55 = vsel %vm7179_vm4, 0, %v348_v26  ;;  %6635 = vmatpush3.bf16.msra.mxu0 %v7009_v7 }
  0x73   : > { %v1216_v24 = vld [vmem:[#allocation2 + $0x34] sm:$0xf]  ;;  %v1351_v30 = vshrl.u32 %v1215_v33, 16  ;;  %v1354_v48 = vshll.u32 %v1215_v33, 16  ;;  %v707_v42 = vsel %vm7252_vm11, %v699_v16, %v706_v18  ;;  %v976_v43 = vsel %vm7245_vm10, %v698_v15, %v975_v3  ;;  %v351_v59 = vld [vmem:[#allocation2 + $0x5c] sm:$0x1] }
  0x74   : > { %v1217_v29 = vld [vmem:[#allocation2 + $0x38] sm:$0x1]  ;;  %v1360_v31 = vshll.u32 %v1216_v24, 16  ;;  %v1364_v32 = vshrl.u32 %v1216_v24, 16  ;;  %v1627_v40 = vsel %vm7233_vm9, %v1622_v22, %v1626_v49  ;;  %977 = vst [vmem:[#allocation2 + $0x3c] sm:$0xf] %v976_v43  ;;  %v980_v50 = vsel %vm7171_vm3, %v708_v20, %v979_v21 }
  0x75   : > { %v1370_v34 = vshll.u32 %v1217_v29, 16  ;;  %v5892_v44 = vcombine.low %v1627_v40, %v1637_v23  ;;  %v1353_v45 = vrot.slane %v1351_v30, 4  ;;  %v1356_v27 = vrot.slane %v1354_v48, 5  ;;  %978 = vst [vmem:[#allocation2 + $0x40] sm:$0xf] %v707_v42  ;;  %v7553_v0 = vld [vmem:[%s7167_s26 + $0x30] sm:$0xff]  }
  0x76   : > { %v1362_v47 = vrot.slane %v1360_v31, 5  ;;  %v1366_v46 = vrot.slane %v1364_v32, 4  ;;  %v5909_v51 = vcombine.low %v7518_v53, %v7532_v25  ;;  %981 = vst [vmem:[#allocation2 + $0x44] sm:$0x1] %v980_v50  ;;  %v6249_v56 = vunpack.c.h.bf16 %v7521_v63  ;;  %350 = vst [vmem:[#allocation2 + $0x50] sm:$0x1] %v349_v55 }
  0x77   : > { %v1372_v49 = vrot.slane %v1370_v34, 5  ;;  %4777 = vmatprep.mubr.bf16.mxu1 %v5892_v44  ;;  %v1357_v54 = vor.u32 %v1356_v27, %v1353_v45  ;;  %v465_v57 = vmul.f32 %v7483_v19, %v6248_v28  ;;  %v5894_v61 = vrot.slane %v1721_v37, 9  ;;  %v7560_v5 = vld [vmem:[%s7167_s26 + $0x38] sm:$0xff]   ;;  %v6989_v9 = vld [vmem:[#allocation2 + $0x30] sm:$0xff]   ;;  %v6994_v16 = vld [vmem:[%s8948_s3 + $0x180] sm:$0xff]  }
  0x78   : > { %v1367_v60 = vor.u32 %v1366_v46, %v1362_v47  ;;  %4778 = vmatmul.mubr.bf16.gmra.mrb[12].mxu1 %v6986_v41  ;;  %v1826_v53 = vrot.slane %v1722_v38, 5  ;;  %v1829_v62 = vrot.slane %v1723_v39, 5  ;;  %v466_v2 = vmul.f32 %v7483_v19, %v6249_v56  ;;  %v6998_v31 = vld [vmem:[#allocation2 + $0x18] sm:$0xff]   ;;  %v7002_v40 = vld [vmem:[%s8948_s3 + $0x1c8] sm:$0xff]   ;;  %v7015_v56 = vld [vmem:[%s8948_s3 + $0x170] sm:$0xff]  }
  0x79   : > { %v1358_v1 = vrot.slane %v1357_v54, 4  ;;  %4818 = vmatprep.mubr.bf16.mxu1 %v6992_v35  ;;  %v504_v3 = vadd.f32 %v7503_v36, %v465_v57  ;;  %v296_v63 = vsel %vm7171_vm3, 0, %v295_v52  ;;  %v352_v14 = vsel %vm7179_vm4, 0, %v351_v59  ;;  %v1724_v44 = vld [vmem:[#allocation2 + $0x18] sm:$0xe]  ;;  %v7004_v45 = vld [vmem:[%s8948_s3 + $0x188] sm:$0xff]   ;;  %6636 = vmatprep.subr.bf16.mxu0 %v7015_v56 }
  0x7a   : > { %v1368_v6 = vrot.slane %v1367_v60, 4  ;;  %v7564_v11 = vsel %vm7496_vm14, %v5894_v61, %v1826_v53  ;;  %v1828_v12 = vrot.slane %v1826_v53, 4  ;;  %297 = vst [vmem:[#allocation2 + $0x54] sm:$0x1] %v296_v63  ;;  %v505_v18 = vadd.f32 %v7503_v36, %v466_v2  ;;  %353 = vst [vmem:[#allocation2 + $0x5c] sm:$0x1] %v352_v14 }
  0x7b   : > { %v1363_v15 = vsel %vm7233_vm9, %v1358_v1, %v1362_v47  ;;  %v6172_v20 = vpack.c.bf16 %v504_v3, %v504_v3  ;;  %v6252_v21 = vunpack.c.l.bf16 %v7553_v0  ;;  %v1218_v23 = vld [vmem:[#allocation2 + $0x3c] sm:$0xf]  ;;  %v6253_v25 = vunpack.c.h.bf16 %v7553_v0  ;;  %v982_v52 = vld [vmem:[#allocation2 + $0x48] sm:$0xf]  ;;  %v7011_v53 = vld [vmem:[%s8948_s3 + $0x1d0] sm:$0xff]  }
  0x7c   : > { %v1373_v22 = vsel %vm7233_vm9, %v1368_v6, %v1372_v49  ;;  %v1219_v33 = vld [vmem:[#allocation2 + $0x40] sm:$0xf]  ;;  %v7579_v24 = vsel %vm7496_vm14, %v1828_v12, %v1829_v62  ;;  %v6256_v26 = vunpack.c.l.bf16 %v7560_v5  ;;  %v1375_v29 = vshrl.u32 %v1218_v23, 16  ;;  %v1725_v61 = vld [vmem:[#allocation2 + $0x1c] sm:$0xf]  ;;  %v7000_v1 = vld [vmem:[#allocation2 + $0x24] sm:$0xff]  }
  0x7d   : > { %v5881_v28 = vcombine.low %v1363_v15, %v1373_v22  ;;  %v1378_v30 = vshll.u32 %v1218_v23, 16  ;;  %v1384_v48 = vshll.u32 %v1219_v33, 16  ;;  %v1220_v32 = vld [vmem:[#allocation2 + $0x44] sm:$0x1]  ;;  %v1388_v35 = vshrl.u32 %v1219_v33, 16 }
  0x7e   : > { %v6173_v37 = vpack.c.bf16 %v505_v18, %v505_v18  ;;  %v710_v38 = vshrl.u32 %v6172_v20, 16  ;;  %v713_v39 = vshll.u32 %v6172_v20, 16  ;;  %v1377_v34 = vrot.slane %v1375_v29, 4  ;;  %v986_v0 = vld [vmem:[#allocation2 + $0x50] sm:$0x1] }
  0x7f   : > { %4689 = vmatprep.mubr.bf16.mxu0 %v5881_v28  ;;  %v1380_v41 = vrot.slane %v1378_v30, 5  ;;  %v1386_v42 = vrot.slane %v1384_v48, 5  ;;  %v1394_v43 = vshll.u32 %v1220_v32, 16  ;;  %v1390_v27 = vrot.slane %v1388_v35, 4  ;;  %v1726_v63 = vld [vmem:[#allocation2 + $0x20] sm:$0x1] }
  0x80   : > { %4690 = vmatmul.mubr.bf16.gmra.mrb[16].mxu0 %v6989_v9  ;;  %4819 = vmatmul.mubr.bf16.vlgmr.msra.gmra.mrb[16].mxu1 %v5909_v51  ;;  %v712_v47 = vrot.slane %v710_v38, 7  ;;  %v718_v7 = vshrl.u32 %v6173_v37, 16  ;;  %v721_v46 = vshll.u32 %v6173_v37, 16  ;;  %v5910_v54 = vcombine.low %v7564_v11, %v7579_v24  ;;  %v298_v15 = vld [vmem:[#allocation2 + $0x60] sm:$0x1]  ;;  %v7012_v18 = vld [vmem:[%s8948_s3 + $0x190] sm:$0xff]  }
  0x81   : > { %v1381_v49 = vor.u32 %v1380_v41, %v1377_v34  ;;  %v1396_v50 = vrot.slane %v1394_v43, 5  ;;  %6737 = vmatpush3.bf16.msra.mxu1 %v6994_v16  ;;  %4826 = vmatprep.mubr.bf16.mxu1 %v6998_v31  ;;  %v467_v55 = vmul.f32 %v7483_v19, %v6252_v21  ;;  %v1391_v57 = vor.u32 %v1390_v27, %v1386_v42  ;;  %v354_v16 = vld [vmem:[#allocation2 + $0x68] sm:$0x1]  ;;  %v6995_v21 = vld [vmem:[#allocation2 + $0x3c] sm:$0xff]   ;;  %v1727_v24 = vld [vmem:[#allocation2 + $0x24] sm:$0xe] }
  0x82   : > { %v715_v59 = vor.u32 %v713_v39, %v712_v47  ;;  %v716_v51 = vrot.slane %v712_v47, 4  ;;  %v720_v60 = vrot.slane %v718_v7, 7  ;;  %6738 = vmatprep.subr.bf16.mxu1 %v7002_v40  ;;  %v468_v2 = vmul.f32 %v7483_v19, %v6253_v25  ;;  %v1728_v25 = vld [vmem:[#allocation2 + $0x28] sm:$0xf]  ;;  %v7016_v31 = vld [vmem:[%s8948_s3 + $0x130] sm:$0xff]  }
  0x83   : > { %v1382_v62 = vrot.slane %v1381_v49, 4  ;;  %v506_v3 = vadd.f32 %v7503_v36, %v467_v55  ;;  %v5895_v6 = vrot.slane %v1724_v44, 9  ;;  %v1392_v9 = vrot.slane %v1391_v57, 4  ;;  %6637 = vmatpush3.bf16.msra.mxu0 %v7016_v31  ;;  %v989_v55 = vld [vmem:[#allocation2 + $0x54] sm:$0xf] }
  0x84   : > { %v723_v11 = vor.u32 %v721_v46, %v720_v60  ;;  %v725_v12 = vrot.slane %v720_v60, 4  ;;  %v983_v14 = vsel %vm7245_vm10, %v715_v59, %v982_v52  ;;  %v507_v22 = vadd.f32 %v7503_v36, %v468_v2  ;;  %v7006_v57 = vld [vmem:[#allocation2 + $0x30] sm:$0xff]   ;;  %v7633_v59 = vld [vmem:[%s7167_s26 + $0x40] sm:$0xff]  }
  0x85   : > { %v1387_v20 = vsel %vm7233_vm9, %v1382_v62, %v1386_v42  ;;  %984 = vst [vmem:[#allocation2 + $0x48] sm:$0xf] %v983_v14  ;;  %v6174_v23 = vpack.c.bf16 %v506_v3, %v506_v3  ;;  %v1833_v33 = vrot.slane %v1725_v61, 5  ;;  %6739 = vmatpush3.bf16.msra.mxu1 %v7004_v45  ;;  %v1397_v28 = vsel %vm7233_vm9, %v1392_v9, %v1396_v50  ;;  %v7019_v42 = vld [vmem:[%s8948_s3 + $0x1d8] sm:$0xff]  }
  0x86   : > { %v724_v29 = vsel %vm7252_vm11, %v716_v51, %v723_v11  ;;  %v987_v30 = vsel %vm7171_vm3, %v725_v12, %v986_v0  ;;  %v1836_v48 = vrot.slane %v1726_v63, 5  ;;  %6740 = vmatprep.subr.bf16.mxu1 %v7011_v53  ;;  %v5882_v32 = vcombine.low %v1387_v20, %v1397_v28  ;;  %v7020_v53 = vld [vmem:[%s8948_s3 + $0x198] sm:$0xff]   ;;  %v301_v28 = vld [vmem:[#allocation2 + $0x6c] sm:$0x1] }
  0x87   : > { %985 = vst [vmem:[#allocation2 + $0x4c] sm:$0xf] %v724_v29  ;;  %988 = vst [vmem:[#allocation2 + $0x50] sm:$0x1] %v987_v30  ;;  %v6175_v35 = vpack.c.bf16 %v507_v22, %v507_v22  ;;  %v727_v37 = vshrl.u32 %v6174_v23, 16  ;;  %v730_v38 = vshll.u32 %v6174_v23, 16  ;;  %v1834_v39 = vsel %vm7496_vm14, %v5895_v6, %v1833_v33 }
  0x88   : > { %4827 = vmatmul.mubr.bf16.gmra.mrb[20].mxu1 %v5910_v54  ;;  %v1835_v40 = vrot.slane %v1833_v33, 4  ;;  %v299_v34 = vsel %vm7171_vm3, 0, %v298_v15  ;;  %v355_v41 = vsel %vm7179_vm4, 0, %v354_v16  ;;  %4697 = vmatprep.mubr.bf16.mxu0 %v5882_v32  ;;  %v6257_v27 = vunpack.c.h.bf16 %v7560_v5  ;;  %v993_v3 = vld [vmem:[#allocation2 + $0x5c] sm:$0x1] }
  0x89   : > { %4834 = vmatprep.mubr.bf16.mxu1 %v7000_v1  ;;  %v729_v43 = vrot.slane %v727_v37, 7  ;;  %v735_v44 = vshrl.u32 %v6175_v35, 16  ;;  %v738_v45 = vshll.u32 %v6175_v35, 16  ;;  %300 = vst [vmem:[#allocation2 + $0x60] sm:$0x1] %v299_v34  ;;  %4698 = vmatmul.mubr.bf16.gmra.mrb[20].mxu0 %v6995_v21  ;;  %v469_v7 = vmul.f32 %v7483_v19, %v6256_v26  ;;  %v7022_v63 = vld [vmem:[%s8948_s3 + $0x178] sm:$0xff]  }
  0x8a   : > { %356 = vst [vmem:[#allocation2 + $0x68] sm:$0x1] %v355_v41  ;;  %v1837_v47 = vsel %vm7496_vm14, %v1835_v40, %v1836_v48  ;;  %v5896_v46 = vrot.slane %v1727_v24, 9  ;;  %v1840_v49 = vrot.slane %v1728_v25, 5  ;;  %6741 = vmatpush3.bf16.msra.mxu1 %v7012_v18  ;;  %v470_v60 = vmul.f32 %v7483_v19, %v6257_v27  ;;  %v1729_v22 = vld [vmem:[#allocation2 + $0x2c] sm:$0x1]  ;;  %6638 = vmatprep.subr.bf16.mxu0 %v7022_v63 }
  0x8b   : > { %v732_v50 = vor.u32 %v730_v38, %v729_v43  ;;  %v733_v52 = vrot.slane %v729_v43, 4  ;;  %v737_v54 = vrot.slane %v735_v44, 7  ;;  %v5911_v56 = vcombine.low %v1834_v39, %v1837_v47  ;;  %6742 = vmatprep.subr.bf16.mxu1 %v7019_v42  ;;  %v357_v29 = vld [vmem:[#allocation2 + $0x74] sm:$0x1]  ;;  %v7023_v30 = vld [vmem:[%s8948_s3 + $0x138] sm:$0xff]   ;;  %v7026_v37 = vld [vmem:[%s8948_s3 + $0x1e0] sm:$0xff]  }
  0x8c   : > { %v1221_v51 = vld [vmem:[#allocation2 + $0x48] sm:$0xf]  ;;  %v508_v61 = vadd.f32 %v7503_v36, %v469_v7  ;;  %v7639_v5 = vsel %vm7496_vm14, %v5896_v46, %v1840_v49  ;;  %v7641_v26 = vrot.slane %v1840_v49, 4  ;;  %v509_v12 = vadd.f32 %v7503_v36, %v470_v60  ;;  %6639 = vmatpush3.bf16.msra.mxu0 %v7023_v30  ;;  %v7666_v47 = vld [vmem:[%s8948_s3 + $0x200] sm:$0xff]  }
  0x8d   : > { %v1399_v62 = vshrl.u32 %v1221_v51, 16  ;;  %v1402_v0 = vshll.u32 %v1221_v51, 16  ;;  %v740_v1 = vor.u32 %v738_v45, %v737_v54  ;;  %v742_v2 = vrot.slane %v737_v54, 4  ;;  %v1730_v51 = vld [vmem:[#allocation2 + $0x30] sm:$0xe]  ;;  %6872 = vmatprep.subr.bf16.mxu0 %v7666_v47 }
  0x8e   : > { %v1222_v6 = vld [vmem:[#allocation2 + $0x4c] sm:$0xf]  ;;  %v1223_v9 = vld [vmem:[#allocation2 + $0x50] sm:$0x1]  ;;  %v990_v11 = vsel %vm7245_vm10, %v732_v50, %v989_v55  ;;  %v6176_v14 = vpack.c.bf16 %v508_v61, %v508_v61  ;;  %v6260_v15 = vunpack.c.l.bf16 %v7633_v59  ;;  %6743 = vmatpush3.bf16.msra.mxu1 %v7020_v53  ;;  %v6177_v25 = vpack.c.bf16 %v509_v12, %v509_v12 }
  0x8f   : > { %v1401_v16 = vrot.slane %v1399_v62, 4  ;;  %v1404_v18 = vrot.slane %v1402_v0, 5  ;;  %v1408_v20 = vshll.u32 %v1222_v6, 16  ;;  %v1412_v21 = vshrl.u32 %v1222_v6, 16  ;;  %991 = vst [vmem:[#allocation2 + $0x54] sm:$0xf] %v990_v11  ;;  %6744 = vmatprep.subr.bf16.mxu1 %v7026_v37 }
  0x90   : > { %v1418_v23 = vshll.u32 %v1223_v9, 16  ;;  %v741_v33 = vsel %vm7252_vm11, %v733_v52, %v740_v1  ;;  %v994_v24 = vsel %vm7171_vm3, %v742_v2, %v993_v3  ;;  %4835 = vmatmul.mubr.bf16.gmra.mrb[24].mxu1 %v5911_v56  ;;  %v744_v35 = vshrl.u32 %v6176_v14, 16  ;;  %v996_v41 = vld [vmem:[#allocation2 + $0x60] sm:$0xf]  ;;  %v7031_v0 = vld [vmem:[%s8948_s3 + $0x1e8] sm:$0xff]  }
  0x91   : > { %v1405_v48 = vor.u32 %v1404_v18, %v1401_v16  ;;  %v1410_v31 = vrot.slane %v1408_v20, 5  ;;  %v1414_v32 = vrot.slane %v1412_v21, 4  ;;  %992 = vst [vmem:[#allocation2 + $0x58] sm:$0xf] %v741_v33  ;;  %995 = vst [vmem:[#allocation2 + $0x5c] sm:$0x1] %v994_v24  ;;  %4842 = vmatprep.mubr.bf16.mxu1 %v7006_v57  ;;  %v6261_v50 = vunpack.c.h.bf16 %v7633_v59 }
  0x92   : > { %v1420_v38 = vrot.slane %v1418_v23, 5  ;;  %v747_v39 = vshll.u32 %v6176_v14, 16  ;;  %v752_v40 = vshrl.u32 %v6177_v25, 16  ;;  %v755_v34 = vshll.u32 %v6177_v25, 16  ;;  %v1000_v45 = vld [vmem:[#allocation2 + $0x68] sm:$0x1] }
  0x93   : > { %v1406_v42 = vrot.slane %v1405_v48, 4  ;;  %v1415_v43 = vor.u32 %v1414_v32, %v1410_v31  ;;  %v746_v44 = vrot.slane %v744_v35, 7  ;;  %v1843_v27 = vrot.slane %v1729_v22, 5  ;;  %v7028_v52 = vld [vmem:[%s8948_s3 + $0x1a0] sm:$0xff]   ;;  %v6999_v2 = vld [vmem:[#allocation2 + $0x48] sm:$0xff]  }
  0x94   : > { %v754_v7 = vrot.slane %v752_v40, 7  ;;  %v302_v46 = vsel %vm7171_vm3, 0, %v301_v28  ;;  %v358_v49 = vsel %vm7179_vm4, 0, %v357_v29  ;;  %v471_v62 = vmul.f32 %v7483_v19, %v6260_v15  ;;  %6745 = vmatpush3.bf16.msra.mxu1 %v7028_v52  ;;  %v7010_v9 = vld [vmem:[#allocation2 + $0x3c] sm:$0xff]   ;;  %v1731_v11 = vld [vmem:[#allocation2 + $0x34] sm:$0xf] }
  0x95   : > { %v1411_v54 = vsel %vm7233_vm9, %v1406_v42, %v1410_v31  ;;  %v1416_v55 = vrot.slane %v1415_v43, 4  ;;  %v749_v56 = vor.u32 %v747_v39, %v746_v44  ;;  %v750_v57 = vrot.slane %v746_v44, 4  ;;  %303 = vst [vmem:[#allocation2 + $0x6c] sm:$0x1] %v302_v46  ;;  %359 = vst [vmem:[#allocation2 + $0x74] sm:$0x1] %v358_v49  ;;  %6746 = vmatprep.subr.bf16.mxu1 %v7031_v0 }
  0x96   : > { %v1224_v60 = vld [vmem:[#allocation2 + $0x54] sm:$0xf]  ;;  %v757_v61 = vor.u32 %v755_v34, %v754_v7  ;;  %v759_v53 = vrot.slane %v754_v7, 4  ;;  %v1844_v59 = vsel %vm7496_vm14, %v7641_v26, %v1843_v27  ;;  %v1732_v33 = vld [vmem:[#allocation2 + $0x38] sm:$0x1]  ;;  %v472_v25 = vmul.f32 %v7483_v19, %v6261_v50  ;;  %v7699_v34 = vld [vmem:[%s7167_s26 + $0x48] sm:$0xff]  }
  0x97   : > { %v1421_v1 = vsel %vm7233_vm9, %v1416_v55, %v1420_v38  ;;  %v1423_v3 = vshrl.u32 %v1224_v60, 16  ;;  %v1426_v63 = vshll.u32 %v1224_v60, 16  ;;  %v997_v6 = vsel %vm7245_vm10, %v749_v56, %v996_v41  ;;  %v304_v32 = vld [vmem:[#allocation2 + $0x78] sm:$0x1]  ;;  %v360_v40 = vld [vmem:[#allocation2 + $0x80] sm:$0x1] }
  0x98   : > { %v5883_v12 = vcombine.low %v1411_v54, %v1421_v1  ;;  %v1225_v26 = vld [vmem:[#allocation2 + $0x58] sm:$0xf]  ;;  %v1226_v14 = vld [vmem:[#allocation2 + $0x5c] sm:$0x1]  ;;  %v758_v15 = vsel %vm7252_vm11, %v750_v57, %v757_v61  ;;  %998 = vst [vmem:[#allocation2 + $0x60] sm:$0xf] %v997_v6  ;;  %v1001_v16 = vsel %vm7171_vm3, %v759_v53, %v1000_v45  ;;  %v5912_v18 = vcombine.low %v7639_v5, %v1844_v59 }
  0x99   : > { %v1425_v20 = vrot.slane %v1423_v3, 4  ;;  %v1428_v21 = vrot.slane %v1426_v63, 5  ;;  %v1432_v22 = vshll.u32 %v1225_v26, 16  ;;  %v1436_v23 = vshrl.u32 %v1225_v26, 16  ;;  %999 = vst [vmem:[#allocation2 + $0x64] sm:$0xf] %v758_v15 }
  0x9a   : > { %1002 = vst [vmem:[#allocation2 + $0x68] sm:$0x1] %v1001_v16  ;;  %4705 = vmatprep.mubr.bf16.mxu0 %v5883_v12  ;;  %v1442_v24 = vshll.u32 %v1226_v14, 16  ;;  %4843 = vmatmul.mubr.bf16.gmra.mrb[28].mxu1 %v5912_v18  ;;  %v510_v28 = vadd.f32 %v7503_v36, %v471_v62  ;;  %v5897_v29 = vrot.slane %v1730_v51, 9  ;;  %v1847_v31 = vrot.slane %v1731_v11, 5  ;;  %v7014_v45 = vld [vmem:[#allocation2 + $0x48] sm:$0xff]  }
  0x9b   : > { %4706 = vmatmul.mubr.bf16.gmra.mrb[24].mxu0 %v6999_v2  ;;  %v1429_v30 = vor.u32 %v1428_v21, %v1425_v20  ;;  %v1434_v5 = vrot.slane %v1432_v22, 5  ;;  %v1438_v48 = vrot.slane %v1436_v23, 4  ;;  %4850 = vmatprep.mubr.bf16.mxu1 %v7010_v9  ;;  %v511_v37 = vadd.f32 %v7503_v36, %v472_v25  ;;  %v7033_v50 = vld [vmem:[%s8948_s3 + $0x1a8] sm:$0xff]   ;;  %v7005_v1 = vld [vmem:[#allocation2 + $0x54] sm:$0xff]   ;;  %v1733_v9 = vld [vmem:[#allocation2 + $0x3c] sm:$0xe] }
  0x9c   : > { %v1444_v35 = vrot.slane %v1442_v24, 5  ;;  %v6178_v38 = vpack.c.bf16 %v510_v28, %v510_v28  ;;  %v1850_v39 = vrot.slane %v1732_v33, 5  ;;  %v1848_v43 = vsel %vm7496_vm14, %v5897_v29, %v1847_v31  ;;  %6747 = vmatpush3.bf16.msra.mxu1 %v7033_v50  ;;  %v1003_v6 = vld [vmem:[#allocation2 + $0x6c] sm:$0xf]  ;;  %v1734_v11 = vld [vmem:[#allocation2 + $0x40] sm:$0xf] }
  0x9d   : > { %v1430_v41 = vrot.slane %v1429_v30, 4  ;;  %v1439_v42 = vor.u32 %v1438_v48, %v1434_v5  ;;  %v1849_v44 = vrot.slane %v1847_v31, 4  ;;  %v6179_v27 = vpack.c.bf16 %v511_v37, %v511_v37  ;;  %v7036_v50 = vld [vmem:[%s8948_s3 + $0x1f0] sm:$0xff]  }
  0x9e   : > { %v761_v7 = vshrl.u32 %v6178_v38, 16  ;;  %v764_v46 = vshll.u32 %v6178_v38, 16  ;;  %v305_v49 = vsel %vm7171_vm3, 0, %v304_v32  ;;  %v361_v57 = vsel %vm7179_vm4, 0, %v360_v40  ;;  %v1007_v32 = vld [vmem:[#allocation2 + $0x74] sm:$0x1]  ;;  %6748 = vmatprep.subr.bf16.mxu1 %v7036_v50 }
  0x9f   : > { %v1435_v52 = vsel %vm7233_vm9, %v1430_v41, %v1434_v5  ;;  %v1440_v54 = vrot.slane %v1439_v42, 4  ;;  %v1227_v55 = vld [vmem:[#allocation2 + $0x60] sm:$0xf]  ;;  %v1851_v56 = vsel %vm7496_vm14, %v1849_v44, %v1850_v39  ;;  %306 = vst [vmem:[#allocation2 + $0x78] sm:$0x1] %v305_v49  ;;  %v6264_v62 = vunpack.c.l.bf16 %v7699_v34  ;;  %v6379_v38 = vld [vmem:[%s7167_s26 + $0x50] sm:$0xff]  }
  0xa0   : > { %v1228_v51 = vld [vmem:[#allocation2 + $0x64] sm:$0xf]  ;;  %v1447_v61 = vshrl.u32 %v1227_v55, 16  ;;  %v1450_v53 = vshll.u32 %v1227_v55, 16  ;;  %v5913_v59 = vcombine.low %v1848_v43, %v1851_v56  ;;  %362 = vst [vmem:[#allocation2 + $0x80] sm:$0x1] %v361_v57  ;;  %v6265_v29 = vunpack.c.h.bf16 %v7699_v34 }
  0xa1   : > { %v1229_v60 = vld [vmem:[#allocation2 + $0x68] sm:$0x1]  ;;  %v1445_v0 = vsel %vm7233_vm9, %v1440_v54, %v1444_v35  ;;  %v1456_v2 = vshll.u32 %v1228_v51, 16  ;;  %v1460_v3 = vshrl.u32 %v1228_v51, 16  ;;  %v763_v15 = vrot.slane %v761_v7, 7  ;;  %v7007_v40 = vld [vmem:[#allocation2 + $0x60] sm:$0xff]  }
  0xa2   : > { %v1466_v63 = vshll.u32 %v1229_v60, 16  ;;  %v5884_v12 = vcombine.low %v1435_v52, %v1445_v0  ;;  %v1449_v26 = vrot.slane %v1447_v61, 4  ;;  %v1452_v14 = vrot.slane %v1450_v53, 5  ;;  %4851 = vmatmul.mubr.bf16.gmra.mrb[32].mxu1 %v5913_v59  ;;  %v1735_v5 = vld [vmem:[#allocation2 + $0x44] sm:$0x1] }
  0xa3   : > { %v1458_v16 = vrot.slane %v1456_v2, 5  ;;  %v1462_v18 = vrot.slane %v1460_v3, 4  ;;  %v769_v21 = vshrl.u32 %v6179_v27, 16  ;;  %4858 = vmatprep.mubr.bf16.mxu1 %v7014_v45  ;;  %v766_v23 = vor.u32 %v764_v46, %v763_v15  ;;  %v307_v44 = vld [vmem:[#allocation2 + $0x84] sm:$0x1] }
  0xa4   : > { %v1468_v20 = vrot.slane %v1466_v63, 5  ;;  %4713 = vmatprep.mubr.bf16.mxu0 %v5884_v12  ;;  %v1453_v22 = vor.u32 %v1452_v14, %v1449_v26  ;;  %v767_v33 = vrot.slane %v763_v15, 4  ;;  %v772_v24 = vshll.u32 %v6179_v27, 16  ;;  %v363_v34 = vld [vmem:[#allocation2 + $0x8c] sm:$0x1]  ;;  %v7018_v63 = vld [vmem:[#allocation2 + $0x54] sm:$0xff]  }
  0xa5   : > { %4714 = vmatmul.mubr.bf16.gmra.mrb[28].mxu0 %v7005_v1  ;;  %v1463_v25 = vor.u32 %v1462_v18, %v1458_v16  ;;  %v771_v28 = vrot.slane %v769_v21, 7  ;;  %v473_v30 = vmul.f32 %v7483_v19, %v6264_v62  ;;  %v1004_v31 = vsel %vm7245_vm10, %v766_v23, %v1003_v6  ;;  %v1736_v49 = vld [vmem:[#allocation2 + $0x48] sm:$0xe]  ;;  %v7738_v56 = vld [vmem:[#allocation2 + $0x4c] sm:$0xf] }
  0xa6   : > { %v1454_v48 = vrot.slane %v1453_v22, 4  ;;  %v5898_v35 = vrot.slane %v1733_v9, 9  ;;  %v1854_v37 = vrot.slane %v1734_v11, 5  ;;  %1005 = vst [vmem:[#allocation2 + $0x6c] sm:$0xf] %v1004_v31  ;;  %v474_v43 = vmul.f32 %v7483_v19, %v6265_v29  ;;  %v7038_v9 = vld [vmem:[%s8948_s3 + $0x1b0] sm:$0xff]  }
  0xa7   : > { %v1464_v39 = vrot.slane %v1463_v25, 4  ;;  %v774_v41 = vor.u32 %v772_v24, %v771_v28  ;;  %v776_v42 = vrot.slane %v771_v28, 4  ;;  %v512_v27 = vadd.f32 %v7503_v36, %v473_v30  ;;  %v7752_v14 = vld [vmem:[%s8946_s1] ss:$0 sm:$0xff]  ;;  %6749 = vmatpush3.bf16.msra.mxu1 %v7038_v9  ;;  %v1010_v24 = vld [vmem:[#allocation2 + $0x78] sm:$0xf] }
  0xa8   : > { %v1459_v45 = vsel %vm7233_vm9, %v1454_v48, %v1458_v16  ;;  %v1855_v7 = vsel %vm7496_vm14, %v5898_v35, %v1854_v37  ;;  %v1856_v46 = vrot.slane %v1854_v37, 4  ;;  %v513_v55 = vadd.f32 %v7503_v36, %v474_v43  ;;  %v1014_v30 = vld [vmem:[#allocation2 + $0x80] sm:$0x1] }
  0xa9   : > { %v1469_v52 = vsel %vm7233_vm9, %v1464_v39, %v1468_v20  ;;  %v775_v19 = vsel %vm7252_vm11, %v767_v33, %v774_v41  ;;  %v1008_v54 = vsel %vm7171_vm3, %v776_v42, %v1007_v32  ;;  %v6180_v51 = vpack.c.bf16 %v512_v27, %v512_v27  ;;  %v7024_v9 = vld [vmem:[#allocation2 + $0x60] sm:$0xff]  }
  0xaa   : > { %v5885_v57 = vcombine.low %v1459_v45, %v1469_v52  ;;  %1006 = vst [vmem:[#allocation2 + $0x70] sm:$0xf] %v775_v19  ;;  %1009 = vst [vmem:[#allocation2 + $0x74] sm:$0x1] %v1008_v54  ;;  %v1857_v60 = vrot.slane %v1735_v5, 5  ;;  %v308_v61 = vsel %vm7171_vm3, 0, %v307_v44  ;;  %v6181_v53 = vpack.c.bf16 %v513_v55, %v513_v55 }
  0xab   : > { %309 = vst [vmem:[#allocation2 + $0x84] sm:$0x1] %v308_v61  ;;  %v364_v59 = vsel %vm7179_vm4, 0, %v363_v34  ;;  %v6268_v62 = vunpack.c.l.bf16 %v6379_v38  ;;  %v6269_v0 = vunpack.c.h.bf16 %v6379_v38  ;;  %v778_v1 = vshrl.u32 %v6180_v51, 16  ;;  %v7761_v5 = vld [vmem:[%s8947_s2] ss:$0 sm:$0xff] }
  0xac   : > { %4721 = vmatprep.mubr.bf16.mxu0 %v5885_v57  ;;  %v781_v2 = vshll.u32 %v6180_v51, 16  ;;  %v1858_v3 = vsel %vm7496_vm14, %v1856_v46, %v1857_v60  ;;  %365 = vst [vmem:[#allocation2 + $0x8c] sm:$0x1] %v364_v59  ;;  %v5899_v6 = vrot.slane %v1736_v49, 9  ;;  %v786_v11 = vshrl.u32 %v6181_v53, 16  ;;  %v7041_v61 = vld [vmem:[%s8948_s3 + $0x1f8] sm:$0xff]  }
  0xad   : > { %4722 = vmatmul.mubr.bf16.gmra.mrb[32].mxu0 %v7007_v40  ;;  %v789_v12 = vshll.u32 %v6181_v53, 16  ;;  %v5914_v26 = vcombine.low %v1855_v7, %v1858_v3  ;;  %v475_v15 = vmul.f32 %v7752_v14, %v6268_v62  ;;  %v1230_v16 = vld [vmem:[#allocation2 + $0x6c] sm:$0xf]  ;;  %v780_v18 = vrot.slane %v778_v1, 7  ;;  %v1738_v7 = vld [vmem:[#allocation2 + $0x50] sm:$0x1]  ;;  %6750 = vmatprep.subr.bf16.mxu1 %v7041_v61 }
  0xae   : > { %v476_v20 = vmul.f32 %v7752_v14, %v6269_v0  ;;  %v1861_v21 = vrot.slane %v7738_v56, 5  ;;  %v1471_v22 = vshrl.u32 %v1230_v16, 16  ;;  %v1474_v23 = vshll.u32 %v1230_v16, 16  ;;  %v1739_v46 = vld [vmem:[#allocation2 + $0x54] sm:$0xe] }
  0xaf   : > { %v788_v33 = vrot.slane %v786_v11, 7  ;;  %4859 = vmatmul.mubr.bf16.gmra.mrb[36].mxu1 %v5914_v26  ;;  %v514_v25 = vadd.f32 %v7503_v36, %v475_v15  ;;  %v783_v28 = vor.u32 %v781_v2, %v780_v18  ;;  %v784_v29 = vrot.slane %v780_v18, 4  ;;  %v1740_v54 = vld [vmem:[#allocation2 + $0x58] sm:$0xf]  ;;  %v1741_v60 = vld [vmem:[#allocation2 + $0x5c] sm:$0x1] }
  0xb0   : > { %4866 = vmatprep.mubr.bf16.mxu1 %v7018_v63  ;;  %v515_v48 = vadd.f32 %v7761_v5, %v476_v20  ;;  %v7766_v31 = vsel %vm7496_vm14, %v5899_v6, %v1861_v21  ;;  %v1473_v37 = vrot.slane %v1471_v22, 4  ;;  %v1476_v38 = vrot.slane %v1474_v23, 5  ;;  %v2665_v22 = vld [vmem:[#allocation2 + $0xc] sm:$0xe] }
  0xb1   : > { %v1231_v32 = vld [vmem:[#allocation2 + $0x70] sm:$0xf]  ;;  %v1232_v35 = vld [vmem:[#allocation2 + $0x74] sm:$0x1]  ;;  %v791_v36 = vor.u32 %v789_v12, %v788_v33  ;;  %v6182_v39 = vpack.c.bf16 %v514_v25, %v514_v25  ;;  %v1011_v43 = vsel %vm7245_vm10, %v783_v28, %v1010_v24  ;;  %v793_v45 = vrot.slane %v788_v33, 4  ;;  %v7043_v12 = vld [vmem:[%s8948_s3 + $0x1b8] sm:$0xff]  }
  0xb2   : > { %v1480_v40 = vshll.u32 %v1231_v32, 16  ;;  %v1484_v41 = vshrl.u32 %v1231_v32, 16  ;;  %v1490_v42 = vshll.u32 %v1232_v35, 16  ;;  %v1477_v44 = vor.u32 %v1476_v38, %v1473_v37  ;;  %1012 = vst [vmem:[#allocation2 + $0x78] sm:$0xf] %v1011_v43  ;;  %v7013_v15 = vld [vmem:[#allocation2 + $0x6c] sm:$0xff]   ;;  %6751 = vmatpush3.bf16.msra.mxu1 %v7043_v12 }
  0xb3   : > { %v792_v34 = vsel %vm7252_vm11, %v784_v29, %v791_v36  ;;  %v6183_v27 = vpack.c.bf16 %v515_v48, %v515_v48  ;;  %v795_v19 = vshrl.u32 %v6182_v39, 16  ;;  %v1015_v56 = vsel %vm7171_vm3, %v793_v45, %v1014_v30  ;;  %v1017_v0 = vld [vmem:[#allocation2 + $0x84] sm:$0xf]  ;;  %v1021_v63 = vld [vmem:[#allocation2 + $0x8c] sm:$0x1] }
  0xb4   : > { %v1482_v49 = vrot.slane %v1480_v40, 5  ;;  %v1486_v50 = vrot.slane %v1484_v41, 4  ;;  %v1492_v52 = vrot.slane %v1490_v42, 5  ;;  %1013 = vst [vmem:[#allocation2 + $0x7c] sm:$0xf] %v792_v34  ;;  %v1478_v55 = vrot.slane %v1477_v44, 4 }
  0xb5   : > { %v798_v57 = vshll.u32 %v6182_v39, 16  ;;  %v803_v51 = vshrl.u32 %v6183_v27, 16  ;;  %1016 = vst [vmem:[#allocation2 + $0x80] sm:$0x1] %v1015_v56  ;;  %v797_v59 = vrot.slane %v795_v19, 7  ;;  %v806_v62 = vshll.u32 %v6183_v27, 16 }
  0xb6   : > { %v1487_v53 = vor.u32 %v1486_v50, %v1482_v49  ;;  %v1863_v1 = vrot.slane %v1861_v21, 4  ;;  %v1483_v2 = vsel %vm7233_vm9, %v1478_v55, %v1482_v49  ;;  %v1864_v6 = vrot.slane %v1738_v7, 5  ;;  %v2666_v21 = vld [vmem:[#allocation2 + $0x10] sm:$0xf]  ;;  %v2667_v40 = vld [vmem:[#allocation2 + $0x14] sm:$0x1] }
  0xb7   : > { %v805_v3 = vrot.slane %v803_v51, 7  ;;  %v5900_v11 = vrot.slane %v1739_v46, 9  ;;  %v800_v16 = vor.u32 %v798_v57, %v797_v59  ;;  %v801_v18 = vrot.slane %v797_v59, 4  ;;  %v2153_v41 = vld [vmem:[#allocation2 + $0xc] sm:$0xf] }
  0xb8   : > { %v1488_v26 = vrot.slane %v1487_v53, 4  ;;  %v1868_v20 = vrot.slane %v1740_v54, 5  ;;  %v1865_v24 = vsel %vm7496_vm14, %v1863_v1, %v1864_v6  ;;  %v1871_v25 = vrot.slane %v1741_v60, 5  ;;  %v2154_v54 = vld [vmem:[#allocation2 + $0x10] sm:$0xf] }
  0xb9   : > { %v808_v23 = vor.u32 %v806_v62, %v805_v3  ;;  %v810_v33 = vrot.slane %v805_v3, 4  ;;  %v1233_v29 = vld [vmem:[#allocation2 + $0x78] sm:$0xf]  ;;  %v1018_v30 = vsel %vm7245_vm10, %v800_v16, %v1017_v0  ;;  %v5915_v48 = vcombine.low %v7766_v31, %v1865_v24 }
  0xba   : > { %v1493_v28 = vsel %vm7233_vm9, %v1488_v26, %v1492_v52  ;;  %v1869_v32 = vsel %vm7496_vm14, %v5900_v11, %v1868_v20  ;;  %v1495_v38 = vshrl.u32 %v1233_v29, 16  ;;  %v1498_v36 = vshll.u32 %v1233_v29, 16  ;;  %1019 = vst [vmem:[#allocation2 + $0x84] sm:$0xf] %v1018_v30 }
  0xbb   : > { %v5886_v35 = vcombine.low %v1483_v2, %v1493_v28  ;;  %v1234_v37 = vld [vmem:[#allocation2 + $0x7c] sm:$0xf]  ;;  %v809_v39 = vsel %vm7252_vm11, %v801_v18, %v808_v23  ;;  %v1022_v44 = vsel %vm7171_vm3, %v810_v33, %v1021_v63  ;;  %4867 = vmatmul.mubr.bf16.gmra.mrb[40].mxu1 %v5915_v48  ;;  %v1870_v31 = vrot.slane %v1868_v20, 4  ;;  %v7025_v2 = vld [vmem:[#allocation2 + $0x6c] sm:$0xff]   ;;  %v1742_v20 = vld [vmem:[#allocation2 + $0x60] sm:$0xe] }
  0xbc   : > { %v1504_v42 = vshll.u32 %v1234_v37, 16  ;;  %v1508_v43 = vshrl.u32 %v1234_v37, 16  ;;  %1020 = vst [vmem:[#allocation2 + $0x88] sm:$0xf] %v809_v39  ;;  %v1235_v34 = vld [vmem:[#allocation2 + $0x80] sm:$0x1]  ;;  %4874 = vmatprep.mubr.bf16.mxu1 %v7024_v9 }
  0xbd   : > { %4729 = vmatprep.mubr.bf16.mxu0 %v5886_v35  ;;  %v1497_v45 = vrot.slane %v1495_v38, 4  ;;  %v1500_v27 = vrot.slane %v1498_v36, 5  ;;  %1023 = vst [vmem:[#allocation2 + $0x8c] sm:$0x1] %v1022_v44  ;;  %v5957_v7 = vrot.slane %v2665_v22, 9  ;;  %v2763_v46 = vrot.slane %v2666_v21, 5 }
  0xbe   : > { %4730 = vmatmul.mubr.bf16.gmra.mrb[36].mxu0 %v7013_v15  ;;  %v1506_v49 = vrot.slane %v1504_v42, 5  ;;  %v1510_v50 = vrot.slane %v1508_v43, 4  ;;  %v1514_v52 = vshll.u32 %v1235_v34, 16  ;;  %v1872_v19 = vsel %vm7496_vm14, %v1870_v31, %v1871_v25  ;;  %v2155_v9 = vld [vmem:[#allocation2 + $0x14] sm:$0x1]  ;;  %v7017_v23 = vld [vmem:[#allocation2 + $0x78] sm:$0xff]  }
  0xbf   : > { %v1501_v55 = vor.u32 %v1500_v27, %v1497_v45  ;;  %v5916_v56 = vcombine.low %v1869_v32, %v1872_v19  ;;  %v2765_v57 = vrot.slane %v2763_v46, 4  ;;  %v2766_v61 = vrot.slane %v2667_v40, 5  ;;  %v1743_v22 = vld [vmem:[#allocation2 + $0x64] sm:$0xf]  ;;  %v1744_v35 = vld [vmem:[#allocation2 + $0x68] sm:$0x1] }
  0xc0   : > { %v1511_v51 = vor.u32 %v1510_v50, %v1506_v49  ;;  %v1516_v60 = vrot.slane %v1514_v52, 5  ;;  %v2202_v53 = vshrl.u32 %v2153_v41, 16  ;;  %v2205_v62 = vshll.u32 %v2153_v41, 16  ;;  %v2668_v40 = vld [vmem:[#allocation2 + $0x18] sm:$0xe] }
  0xc1   : > { %v1502_v59 = vrot.slane %v1501_v55, 4  ;;  %v2211_v0 = vshll.u32 %v2154_v54, 16  ;;  %v2215_v1 = vshrl.u32 %v2154_v54, 16  ;;  %v1236_v63 = vld [vmem:[#allocation2 + $0x84] sm:$0xf]  ;;  %v7799_v6 = vsel %vm7496_vm14, %v5957_v7, %v2763_v46 }
  0xc2   : > { %v1512_v3 = vrot.slane %v1511_v51, 4  ;;  %v2204_v11 = vrot.slane %v2202_v53, 4  ;;  %v1519_v15 = vshrl.u32 %v1236_v63, 16  ;;  %v1522_v16 = vshll.u32 %v1236_v63, 16  ;;  %v2669_v41 = vld [vmem:[#allocation2 + $0x1c] sm:$0xf] }
  0xc3   : > { %v1507_v12 = vsel %vm7233_vm9, %v1502_v59, %v1506_v49  ;;  %v1237_v26 = vld [vmem:[#allocation2 + $0x88] sm:$0xf]  ;;  %v7805_v18 = vsel %vm7496_vm14, %v2765_v57, %v2766_v61  ;;  %4875 = vmatmul.mubr.bf16.gmra.mrb[44].mxu1 %v5916_v56  ;;  %v2207_v28 = vrot.slane %v2205_v62, 5  ;;  %v2213_v39 = vrot.slane %v2211_v0, 5  ;;  %v2670_v46 = vld [vmem:[#allocation2 + $0x20] sm:$0x1] }
  0xc4   : > { %v1517_v21 = vsel %vm7233_vm9, %v1512_v3, %v1516_v60  ;;  %v1238_v33 = vld [vmem:[#allocation2 + $0x8c] sm:$0x1]  ;;  %v1528_v24 = vshll.u32 %v1237_v26, 16  ;;  %v1532_v25 = vshrl.u32 %v1237_v26, 16  ;;  %v1521_v30 = vrot.slane %v1519_v15, 4  ;;  %4882 = vmatprep.mubr.bf16.mxu1 %v7025_v2  ;;  %v7029_v61 = vld [vmem:[#allocation2 + $0x78] sm:$0xff]  }
  0xc5   : > { %v5887_v29 = vcombine.low %v1507_v12, %v1517_v21  ;;  %v1524_v48 = vrot.slane %v1522_v16, 5  ;;  %v1538_v32 = vshll.u32 %v1238_v33, 16  ;;  %v2208_v36 = vor.u32 %v2207_v28, %v2204_v11  ;;  %v2156_v54 = vld [vmem:[#allocation2 + $0x18] sm:$0xf]  ;;  %v2157_v60 = vld [vmem:[#allocation2 + $0x1c] sm:$0xf] }
  0xc6   : > { %v1530_v37 = vrot.slane %v1528_v24, 5  ;;  %v1534_v38 = vrot.slane %v1532_v25, 4  ;;  %v2217_v44 = vrot.slane %v2215_v1, 4  ;;  %v2221_v31 = vshll.u32 %v2155_v9, 16  ;;  %v7021_v59 = vld [vmem:[#allocation2 + $0x84] sm:$0xff]  }
  0xc7   : > { %4737 = vmatprep.mubr.bf16.mxu0 %v5887_v29  ;;  %v1525_v42 = vor.u32 %v1524_v48, %v1521_v30  ;;  %v1540_v43 = vrot.slane %v1538_v32, 5  ;;  %v2209_v45 = vrot.slane %v2208_v36, 4  ;;  %v5901_v27 = vrot.slane %v1742_v20, 9  ;;  %v1745_v11 = vld [vmem:[#allocation2 + $0x6c] sm:$0xe] }
  0xc8   : > { %4738 = vmatmul.mubr.bf16.gmra.mrb[40].mxu0 %v7017_v23  ;;  %v1535_v34 = vor.u32 %v1534_v38, %v1530_v37  ;;  %v1875_v7 = vrot.slane %v1743_v22, 5  ;;  %v2218_v50 = vor.u32 %v2217_v44, %v2213_v39  ;;  %v2223_v52 = vrot.slane %v2221_v31, 5  ;;  %v1747_v20 = vld [vmem:[#allocation2 + $0x74] sm:$0x1]  ;;  %v2671_v22 = vld [vmem:[#allocation2 + $0x24] sm:$0xe] }
  0xc9   : > { %v1526_v49 = vrot.slane %v1525_v42, 4  ;;  %v1878_v19 = vrot.slane %v1744_v35, 5  ;;  %v5973_v56 = vcombine.low %v7799_v6, %v7805_v18  ;;  %v5958_v0 = vrot.slane %v2668_v40, 9  ;;  %v2158_v6 = vld [vmem:[#allocation2 + $0x20] sm:$0x1] }
  0xca   : > { %v1536_v55 = vrot.slane %v1535_v34, 4  ;;  %v1876_v57 = vsel %vm7496_vm14, %v5901_v27, %v1875_v7  ;;  %v1877_v51 = vrot.slane %v1875_v7, 4  ;;  %v2219_v62 = vrot.slane %v2218_v50, 4  ;;  %v1746_v18 = vld [vmem:[#allocation2 + $0x70] sm:$0xf] }
  0xcb   : > { %v1531_v53 = vsel %vm7233_vm9, %v1526_v49, %v1530_v37  ;;  %v2770_v1 = vrot.slane %v2669_v41, 5  ;;  %v2773_v63 = vrot.slane %v2670_v46, 5  ;;  %v2226_v9 = vshrl.u32 %v2156_v54, 16  ;;  %v2672_v25 = vld [vmem:[#allocation2 + $0x28] sm:$0xf] }
  0xcc   : > { %v1541_v2 = vsel %vm7233_vm9, %v1536_v55, %v1540_v43  ;;  %v1879_v3 = vsel %vm7496_vm14, %v1877_v51, %v1878_v19  ;;  %v2214_v26 = vsel %vm7233_vm9, %v2209_v45, %v2213_v39  ;;  %v2224_v15 = vsel %vm7233_vm9, %v2219_v62, %v2223_v52  ;;  %v2673_v32 = vld [vmem:[#allocation2 + $0x2c] sm:$0x1]  ;;  %v2159_v39 = vld [vmem:[#allocation2 + $0x24] sm:$0xf]  ;;  %v2160_v44 = vld [vmem:[#allocation2 + $0x28] sm:$0xf] }
  0xcd   : > { %v5888_v12 = vcombine.low %v1531_v53, %v1541_v2  ;;  %v5917_v16 = vcombine.low %v1876_v57, %v1879_v3  ;;  %v2771_v21 = vsel %vm7496_vm14, %v5958_v0, %v2770_v1  ;;  %v2772_v23 = vrot.slane %v2770_v1, 4  ;;  %v2161_v7 = vld [vmem:[#allocation2 + $0x2c] sm:$0x1]  ;;  %v7030_v57 = vld [vmem:[#allocation2 + $0x84] sm:$0xff]   ;;  %v1748_v2 = vld [vmem:[#allocation2 + $0x78] sm:$0xe] }
  0xce   : > { %v2228_v33 = vrot.slane %v2226_v9, 4  ;;  %v2229_v24 = vshll.u32 %v2156_v54, 16  ;;  %v2235_v28 = vshll.u32 %v2157_v60, 16  ;;  %v2239_v29 = vshrl.u32 %v2157_v60, 16  ;;  %v7032_v1 = vld [vmem:[%s8948_s3 + $0x208] sm:$0xff]  }
  0xcf   : > { %4745 = vmatprep.mubr.bf16.mxu0 %v5888_v12  ;;  %4883 = vmatmul.mubr.bf16.gmra.mrb[48].mxu1 %v5917_v16  ;;  %v2245_v30 = vshll.u32 %v2158_v6, 16  ;;  %v5902_v48 = vrot.slane %v1745_v11, 9  ;;  %v5941_v35 = vcombine.low %v2214_v26, %v2224_v15  ;;  %v1882_v38 = vrot.slane %v1746_v18, 5  ;;  %v1749_v9 = vld [vmem:[#allocation2 + $0x7c] sm:$0xf] }
  0xd0   : > { %4746 = vmatmul.mubr.bf16.gmra.mrb[44].mxu0 %v7021_v59  ;;  %v2231_v37 = vrot.slane %v2229_v24, 5  ;;  %4890 = vmatprep.mubr.bf16.mxu1 %v7029_v61  ;;  %v1885_v36 = vrot.slane %v1747_v20, 5  ;;  %v2774_v40 = vsel %vm7496_vm14, %v2772_v23, %v2773_v63  ;;  %v2237_v41 = vrot.slane %v2235_v28, 5  ;;  %v1750_v11 = vld [vmem:[#allocation2 + $0x80] sm:$0x1] }
  0xd1   : > { %4979 = vmatprep.mubr.bf16.mxu0 %v5973_v56  ;;  %v2241_v42 = vrot.slane %v2239_v29, 4  ;;  %v2247_v43 = vrot.slane %v2245_v30, 5  ;;  %v1883_v34 = vsel %vm7496_vm14, %v5902_v48, %v1882_v38  ;;  %v1884_v45 = vrot.slane %v1882_v38, 4  ;;  %v2674_v18 = vld [vmem:[#allocation2 + $0x30] sm:$0xe] }
  0xd2   : > { %v2232_v31 = vor.u32 %v2231_v37, %v2228_v33  ;;  %v5959_v27 = vrot.slane %v2671_v22, 9  ;;  %v2777_v49 = vrot.slane %v2672_v25, 5  ;;  %v2780_v50 = vrot.slane %v2673_v32, 5  ;;  %v2675_v20 = vld [vmem:[#allocation2 + $0x34] sm:$0xf] }
  0xd3   : > { %v2242_v46 = vor.u32 %v2241_v42, %v2237_v41  ;;  %v2250_v52 = vshrl.u32 %v2159_v39, 16  ;;  %v1886_v54 = vsel %vm7496_vm14, %v1884_v45, %v1885_v36  ;;  %v2253_v55 = vshll.u32 %v2159_v39, 16  ;;  %v2676_v24 = vld [vmem:[#allocation2 + $0x38] sm:$0x1]  ;;  %v7037_v25 = vld [vmem:[%s8948_s3 + $0x210] sm:$0xff]  }
  0xd4   : > { %v2233_v19 = vrot.slane %v2232_v31, 4  ;;  %v2259_v56 = vshll.u32 %v2160_v44, 16  ;;  %v5974_v51 = vcombine.low %v2771_v21, %v2774_v40  ;;  %v5918_v61 = vcombine.low %v1883_v34, %v1886_v54  ;;  %v2162_v38 = vld [vmem:[#allocation2 + $0x30] sm:$0xf]  ;;  %v2163_v42 = vld [vmem:[#allocation2 + $0x34] sm:$0xf] }
  0xd5   : > { %v2243_v60 = vrot.slane %v2242_v46, 4  ;;  %v2779_v53 = vrot.slane %v2777_v49, 4  ;;  %v2252_v59 = vrot.slane %v2250_v52, 4  ;;  %v2255_v62 = vrot.slane %v2253_v55, 5  ;;  %v7034_v36 = vld [vmem:[#allocation2 + $0x90] sm:$0xff]  }
  0xd6   : > { %v7831_v0 = vrot.slane %v2259_v56, 5  ;;  %v2778_v3 = vsel %vm7496_vm14, %v5959_v27, %v2777_v49  ;;  %v2263_v63 = vshrl.u32 %v2160_v44, 16  ;;  %v2269_v6 = vshll.u32 %v2161_v7, 16  ;;  %v7042_v7 = vld [vmem:[%s8948_s3 + $0x218] sm:$0xff]   ;;  %v1751_v52 = vld [vmem:[#allocation2 + $0x84] sm:$0xe] }
  0xd7   : > { %4891 = vmatmul.mubr.bf16.gmra.mrb[52].mxu1 %v5918_v61  ;;  %v2238_v12 = vsel %vm7233_vm9, %v2233_v19, %v2237_v41  ;;  %v2248_v26 = vsel %vm7233_vm9, %v2243_v60, %v2247_v43  ;;  %v2256_v15 = vor.u32 %v2255_v62, %v2252_v59  ;;  %v5903_v16 = vrot.slane %v1748_v2, 9  ;;  %v2164_v43 = vld [vmem:[#allocation2 + $0x38] sm:$0x1]  ;;  %v2677_v59 = vld [vmem:[#allocation2 + $0x3c] sm:$0xe] }
  0xd8   : > { %4980 = vmatmul.mubr.bf16.vlgmr.msra.gmra.mrb[48].mxu0 %v5941_v35  ;;  %4898 = vmatprep.mubr.bf16.mxu1 %v7030_v57  ;;  %v2781_v22 = vsel %vm7496_vm14, %v2779_v53, %v2780_v50  ;;  %v2265_v21 = vrot.slane %v2263_v63, 4  ;;  %v1889_v23 = vrot.slane %v1749_v9, 5  ;;  %v1892_v33 = vrot.slane %v1750_v11, 5  ;;  %v1752_v57 = vld [vmem:[#allocation2 + $0x88] sm:$0xf] }
  0xd9   : > { %4987 = vmatprep.mubr.bf16.mxu0 %v5974_v51  ;;  %6873 = vmatpush3.bf16.msra.mxu0 %v7666_v47  ;;  %v2257_v28 = vrot.slane %v2256_v15, 4  ;;  %v2271_v29 = vrot.slane %v2269_v6, 5  ;;  %v5960_v30 = vrot.slane %v2674_v18, 9  ;;  %v2784_v48 = vrot.slane %v2675_v20, 5  ;;  %v1753_v51 = vld [vmem:[#allocation2 + $0x8c] sm:$0x1] }
  0xda   : > { %6874 = vmatprep.subr.bf16.mxu0 %v7032_v1  ;;  %v2266_v32 = vor.u32 %v2265_v21, %v7831_v0  ;;  %v1890_v47 = vsel %vm7496_vm14, %v5903_v16, %v1889_v23  ;;  %v1891_v35 = vrot.slane %v1889_v23, 4  ;;  %v2787_v37 = vrot.slane %v2676_v24, 5  ;;  %v2679_v63 = vld [vmem:[#allocation2 + $0x44] sm:$0x1]  ;;  %v7869_v15 = vld [vmem:[%s7167_s26 + $0x78] sm:$0xff]  }
  0xdb   : > { %v5942_v39 = vcombine.low %v2238_v12, %v2248_v26  ;;  %v5975_v40 = vcombine.low %v2778_v3, %v2781_v22  ;;  %v2786_v41 = vrot.slane %v2784_v48, 4  ;;  %v2274_v44 = vshrl.u32 %v2162_v38, 16  ;;  %v2678_v3 = vld [vmem:[#allocation2 + $0x40] sm:$0xf]  ;;  %v2165_v26 = vld [vmem:[#allocation2 + $0x3c] sm:$0xf] }
  0xdc   : > { %v2267_v31 = vrot.slane %v2266_v32, 4  ;;  %v1893_v34 = vsel %vm7496_vm14, %v1891_v35, %v1892_v33  ;;  %v2277_v45 = vshll.u32 %v2162_v38, 16  ;;  %v2283_v27 = vshll.u32 %v2163_v42, 16  ;;  %v2166_v21 = vld [vmem:[#allocation2 + $0x40] sm:$0xf] }
  0xdd   : > { %6875 = vmatpush3.bf16.msra.mxu0 %v7032_v1  ;;  %v5919_v46 = vcombine.low %v1890_v47, %v1893_v34  ;;  %v2276_v49 = vrot.slane %v2274_v44, 4  ;;  %v2287_v50 = vshrl.u32 %v2163_v42, 16  ;;  %v2262_v19 = vsel %vm7233_vm9, %v2257_v28, %v7831_v0  ;;  %v7035_v23 = vld [vmem:[#allocation2 + $0x9c] sm:$0xff]   ;;  %v1754_v34 = vld [vmem:[#allocation2 + $0x90] sm:$0xe] }
  0xde   : > { %6876 = vmatprep.subr.bf16.mxu0 %v7037_v25  ;;  %v2272_v54 = vsel %vm7233_vm9, %v2267_v31, %v2271_v29  ;;  %v2279_v55 = vrot.slane %v2277_v45, 5  ;;  %v7861_v56 = vrot.slane %v2283_v27, 5  ;;  %v2293_v61 = vshll.u32 %v2164_v43, 16  ;;  %v7045_v33 = vld [vmem:[%s8948_s3 + $0x220] sm:$0xff]   ;;  %v1755_v45 = vld [vmem:[#allocation2 + $0x94] sm:$0xf] }
  0xdf   : > { %4899 = vmatmul.mubr.bf16.gmra.mrb[56].mxu1 %v5919_v46  ;;  %v2289_v60 = vrot.slane %v2287_v50, 4  ;;  %v5904_v53 = vrot.slane %v1751_v52, 9  ;;  %v2785_v62 = vsel %vm7496_vm14, %v5960_v30, %v2784_v48  ;;  %v1896_v1 = vrot.slane %v1752_v57, 5  ;;  %v2167_v30 = vld [vmem:[#allocation2 + $0x44] sm:$0x1] }
  0xe0   : > { %4988 = vmatmul.mubr.bf16.gmra.mrb[52].mxu0 %v5942_v39  ;;  %v2280_v0 = vor.u32 %v2279_v55, %v2276_v49  ;;  %4906 = vmatprep.mubr.bf16.mxu1 %v7034_v36  ;;  %v1899_v2 = vrot.slane %v1753_v51, 5  ;;  %v5943_v6 = vcombine.low %v2262_v19, %v2272_v54  ;;  %v2788_v9 = vsel %vm7496_vm14, %v2786_v41, %v2787_v37  ;;  %v7048_v37 = vld [vmem:[%s8948_s3 + $0x228] sm:$0xff]   ;;  %v1756_v49 = vld [vmem:[#allocation2 + $0x98] sm:$0x1]  ;;  %v2693_v4 = vld [vmem:[#allocation2 + $0x7c] sm:$0xf] }
  0xe1   : > { %4995 = vmatprep.mubr.bf16.mxu0 %v5975_v40  ;;  %v2290_v11 = vor.u32 %v2289_v60, %v7861_v56  ;;  %v2791_v12 = vrot.slane %v2678_v3, 5  ;;  %6877 = vmatpush3.bf16.msra.mxu0 %v7037_v25  ;;  %v2295_v16 = vrot.slane %v2293_v61, 5  ;;  %v1897_v18 = vsel %vm7496_vm14, %v5904_v53, %v1896_v1  ;;  %v2680_v19 = vld [vmem:[#allocation2 + $0x48] sm:$0xe]  ;;  %v2681_v51 = vld [vmem:[#allocation2 + $0x4c] sm:$0xf] }
  0xe2   : > { %v1898_v20 = vrot.slane %v1896_v1, 4  ;;  %v5961_v22 = vrot.slane %v2677_v59, 9  ;;  %6878 = vmatprep.subr.bf16.mxu0 %v7042_v7  ;;  %v2281_v24 = vrot.slane %v2280_v0, 4  ;;  %v2794_v29 = vrot.slane %v2679_v63, 5  ;;  %v2682_v59 = vld [vmem:[#allocation2 + $0x50] sm:$0x1] }
  0xe3   : > { %v2291_v28 = vrot.slane %v2290_v11, 4  ;;  %v2298_v25 = vshrl.u32 %v2165_v26, 16  ;;  %v5976_v48 = vcombine.low %v2785_v62, %v2788_v9  ;;  %v2301_v47 = vshll.u32 %v2165_v26, 16  ;;  %v7039_v0 = vld [vmem:[#allocation2 + $0xa8] sm:$0xff]   ;;  %v7051_v1 = vld [vmem:[%s8948_s3 + $0x230] sm:$0xff]  }
  0xe4   : > { %v1900_v32 = vsel %vm7496_vm14, %v1898_v20, %v1899_v2  ;;  %v2307_v35 = vshll.u32 %v2166_v21, 16  ;;  %v2793_v36 = vrot.slane %v2791_v12, 4  ;;  %v6288_v42 = vunpack.c.l.bf16 %v7869_v15 }
  0xe5   : > { %v5920_v38 = vcombine.low %v1897_v18, %v1900_v32  ;;  %v2300_v39 = vrot.slane %v2298_v25, 4  ;;  %6879 = vmatpush3.bf16.msra.mxu0 %v7042_v7  ;;  %v2303_v40 = vrot.slane %v2301_v47, 5  ;;  %v2286_v43 = vsel %vm7233_vm9, %v2281_v24, %v7861_v56  ;;  %v2169_v18 = vld [vmem:[#allocation2 + $0x4c] sm:$0xf]  ;;  %v7054_v25 = vld [vmem:[%s8948_s3 + $0x238] sm:$0xff]  }
  0xe6   : > { %v7881_v41 = vrot.slane %v2307_v35, 5  ;;  %6880 = vmatprep.subr.bf16.mxu0 %v7045_v33  ;;  %v2311_v44 = vshrl.u32 %v2166_v21, 16  ;;  %v2317_v31 = vshll.u32 %v2167_v30, 16  ;;  %v6289_v27 = vunpack.c.h.bf16 %v7869_v15  ;;  %v2170_v21 = vld [vmem:[#allocation2 + $0x50] sm:$0x1] }
  0xe7   : > { %4907 = vmatmul.mubr.bf16.gmra.mrb[60].mxu1 %v5920_v38  ;;  %v2296_v7 = vsel %vm7233_vm9, %v2291_v28, %v2295_v16  ;;  %v2304_v46 = vor.u32 %v2303_v40, %v2300_v39  ;;  %v5905_v50 = vrot.slane %v1754_v34, 9  ;;  %v1903_v52 = vrot.slane %v1755_v45, 5  ;;  %v2168_v16 = vld [vmem:[#allocation2 + $0x48] sm:$0xf]  ;;  %v2683_v45 = vld [vmem:[#allocation2 + $0x54] sm:$0xe] }
  0xe8   : > { %4996 = vmatmul.mubr.bf16.gmra.mrb[56].mxu0 %v5943_v6  ;;  %4914 = vmatprep.mubr.bf16.mxu1 %v7035_v23  ;;  %v2792_v54 = vsel %vm7496_vm14, %v5961_v22, %v2791_v12  ;;  %v2795_v55 = vsel %vm7496_vm14, %v2793_v36, %v2794_v29  ;;  %v2313_v56 = vrot.slane %v2311_v44, 4  ;;  %v1906_v57 = vrot.slane %v1756_v49, 5  ;;  %v1759_v44 = vld [vmem:[#allocation2 + $0xa4] sm:$0x1] }
  0xe9   : > { %5003 = vmatprep.mubr.bf16.mxu0 %v5976_v48  ;;  %6881 = vmatpush3.bf16.msra.mxu0 %v7045_v33  ;;  %v2319_v60 = vrot.slane %v2317_v31, 5  ;;  %v1904_v61 = vsel %vm7496_vm14, %v5905_v50, %v1903_v52  ;;  %v1905_v53 = vrot.slane %v1903_v52, 4  ;;  %v2798_v62 = vrot.slane %v2681_v51, 5  ;;  %v2684_v50 = vld [vmem:[#allocation2 + $0x58] sm:$0xf] }
  0xea   : > { %6882 = vmatprep.subr.bf16.mxu0 %v7048_v37  ;;  %v5944_v2 = vcombine.low %v2286_v43, %v2296_v7  ;;  %v2305_v3 = vrot.slane %v2304_v46, 4  ;;  %v2314_v63 = vor.u32 %v2313_v56, %v7881_v41  ;;  %v5962_v6 = vrot.slane %v2680_v19, 9  ;;  %v2685_v52 = vld [vmem:[#allocation2 + $0x5c] sm:$0x1]  ;;  %v2171_v51 = vld [vmem:[#allocation2 + $0x54] sm:$0xf] }
  0xeb   : > { %v5977_v9 = vcombine.low %v2792_v54, %v2795_v55  ;;  %v1907_v11 = vsel %vm7496_vm14, %v1905_v53, %v1906_v57  ;;  %v2800_v12 = vrot.slane %v2798_v62, 4  ;;  %v2801_v26 = vrot.slane %v2682_v59, 5  ;;  %v2172_v59 = vld [vmem:[#allocation2 + $0x58] sm:$0xf] }
  0xec   : > { %v2315_v20 = vrot.slane %v2314_v63, 4  ;;  %v5921_v22 = vcombine.low %v1904_v61, %v1907_v11  ;;  %v2322_v23 = vshrl.u32 %v2168_v16, 16  ;;  %v2325_v33 = vshll.u32 %v2168_v16, 16 }
  0xed   : > { %6883 = vmatpush3.bf16.msra.mxu0 %v7048_v37  ;;  %v2331_v24 = vshll.u32 %v2169_v18, 16  ;;  %v2335_v28 = vshrl.u32 %v2169_v18, 16  ;;  %v2341_v29 = vshll.u32 %v2170_v21, 16  ;;  %v485_v30 = vmul.f32 %v7752_v14, %v6288_v42  ;;  %v1757_v37 = vld [vmem:[#allocation2 + $0x9c] sm:$0xe] }
  0xee   : > { %6884 = vmatprep.subr.bf16.mxu0 %v7051_v1  ;;  %v2310_v48 = vsel %vm7233_vm9, %v2305_v3, %v7881_v41  ;;  %v2320_v32 = vsel %vm7233_vm9, %v2315_v20, %v2319_v60  ;;  %v2324_v47 = vrot.slane %v2322_v23, 4  ;;  %v2327_v35 = vrot.slane %v2325_v33, 5  ;;  %v1758_v42 = vld [vmem:[#allocation2 + $0xa0] sm:$0xf]  ;;  %v7040_v3 = vld [vmem:[#allocation2 + $0xb4] sm:$0xff]  }
  0xef   : > { %4915 = vmatmul.mubr.bf16.gmra.mrb[64].mxu1 %v5921_v22  ;;  %v2799_v38 = vsel %vm7496_vm14, %v5962_v6, %v2798_v62  ;;  %v2333_v36 = vrot.slane %v2331_v24, 5  ;;  %v2337_v39 = vrot.slane %v2335_v28, 4  ;;  %v2343_v40 = vrot.slane %v2341_v29, 5  ;;  %v2173_v62 = vld [vmem:[#allocation2 + $0x5c] sm:$0x1] }
  0xf0   : > { %5004 = vmatmul.mubr.bf16.gmra.mrb[60].mxu0 %v5944_v2  ;;  %4922 = vmatprep.mubr.bf16.mxu1 %v7039_v0  ;;  %v2802_v43 = vsel %vm7496_vm14, %v2800_v12, %v2801_v26  ;;  %v2328_v41 = vor.u32 %v2327_v35, %v2324_v47  ;;  %v5906_v31 = vrot.slane %v1757_v37, 9  ;;  %v1910_v34 = vrot.slane %v1758_v42, 5  ;;  %v1760_v21 = vld [vmem:[#allocation2 + $0xa8] sm:$0xe]  ;;  %v1761_v28 = vld [vmem:[#allocation2 + $0xac] sm:$0xf] }
  0xf1   : > { %5011 = vmatprep.mubr.bf16.mxu0 %v5977_v9  ;;  %6885 = vmatpush3.bf16.msra.mxu0 %v7051_v1  ;;  %v5945_v7 = vcombine.low %v2310_v48, %v2320_v32  ;;  %v2338_v46 = vor.u32 %v2337_v39, %v2333_v36  ;;  %v1913_v49 = vrot.slane %v1759_v44, 5  ;;  %v5963_v19 = vrot.slane %v2683_v45, 9  ;;  %v1762_v29 = vld [vmem:[#allocation2 + $0xb0] sm:$0x1]  ;;  %v2686_v35 = vld [vmem:[#allocation2 + $0x60] sm:$0xe] }
  0xf2   : > { %6886 = vmatprep.subr.bf16.mxu0 %v7054_v25  ;;  %v2329_v54 = vrot.slane %v2328_v41, 4  ;;  %v1911_v55 = vsel %vm7496_vm14, %v5906_v31, %v1910_v34  ;;  %v1912_v56 = vrot.slane %v1910_v34, 4  ;;  %v2805_v57 = vrot.slane %v2684_v50, 5  ;;  %v2687_v39 = vld [vmem:[#allocation2 + $0x64] sm:$0xf] }
  0xf3   : > { %v5978_v60 = vcombine.low %v2799_v38, %v2802_v43  ;;  %v2339_v61 = vrot.slane %v2338_v46, 4  ;;  %v2808_v53 = vrot.slane %v2685_v52, 5  ;;  %v486_v63 = vmul.f32 %v7752_v14, %v6289_v27 }
  0xf4   : > { %v2334_v0 = vsel %vm7233_vm9, %v2329_v54, %v2333_v36  ;;  %v1914_v1 = vsel %vm7496_vm14, %v1912_v56, %v1913_v49  ;;  %v2807_v2 = vrot.slane %v2805_v57, 4  ;;  %v2346_v11 = vshrl.u32 %v2171_v51, 16  ;;  %v2175_v54 = vld [vmem:[#allocation2 + $0x64] sm:$0xf] }
  0xf5   : > { %6887 = vmatpush3.bf16.msra.mxu0 %v7054_v25  ;;  %v2344_v6 = vsel %vm7233_vm9, %v2339_v61, %v2343_v40  ;;  %v5922_v9 = vcombine.low %v1911_v55, %v1914_v1  ;;  %v2349_v12 = vshll.u32 %v2171_v51, 16  ;;  %v2806_v26 = vsel %vm7496_vm14, %v5963_v19, %v2805_v57  ;;  %v2688_v40 = vld [vmem:[#allocation2 + $0x68] sm:$0x1] }
  0xf6   : > { %v2355_v16 = vshll.u32 %v2172_v59, 16  ;;  %v2359_v18 = vshrl.u32 %v2172_v59, 16  ;;  %v524_v20 = vadd.f32 %v7761_v5, %v485_v30  ;;  %v2809_v14 = vsel %vm7496_vm14, %v2807_v2, %v2808_v53  ;;  %v2176_v55 = vld [vmem:[#allocation2 + $0x68] sm:$0x1]  ;;  %v322_v53 = vld [vmem:[#allocation2 + $0xc0] sm:$0x1] }
  0xf7   : > { %4923 = vmatmul.mubr.bf16.gmra.mrb[68].mxu1 %v5922_v9  ;;  %v2348_v15 = vrot.slane %v2346_v11, 4  ;;  %v2351_v27 = vrot.slane %v2349_v12, 5  ;;  %v2365_v22 = vshll.u32 %v2173_v62, 16  ;;  %v5946_v23 = vcombine.low %v2334_v0, %v2344_v6  ;;  %v1763_v2 = vld [vmem:[#allocation2 + $0xb4] sm:$0xe] }
  0xf8   : > { %5012 = vmatmul.mubr.bf16.gmra.mrb[64].mxu0 %v5945_v7  ;;  %v2357_v33 = vrot.slane %v2355_v16, 5  ;;  %v2361_v24 = vrot.slane %v2359_v18, 4  ;;  %4930 = vmatprep.mubr.bf16.mxu1 %v7040_v3  ;;  %v525_v25 = vadd.f32 %v7761_v5, %v486_v63  ;;  %v5907_v30 = vrot.slane %v1760_v21, 9  ;;  %v2174_v5 = vld [vmem:[#allocation2 + $0x60] sm:$0xf] }
  0xf9   : > { %5019 = vmatprep.mubr.bf16.mxu0 %v5978_v60  ;;  %v2352_v48 = vor.u32 %v2351_v27, %v2348_v15  ;;  %v2367_v32 = vrot.slane %v2365_v22, 5  ;;  %v1917_v47 = vrot.slane %v1761_v28, 5  ;;  %v5979_v37 = vcombine.low %v2806_v26, %v2809_v14  ;;  %v1764_v11 = vld [vmem:[#allocation2 + $0xb8] sm:$0xf]  ;;  %v1765_v14 = vld [vmem:[#allocation2 + $0xbc] sm:$0x1] }
  0xfa   : > { %v2362_v38 = vor.u32 %v2361_v24, %v2357_v33  ;;  %v1920_v36 = vrot.slane %v1762_v29, 5  ;;  %v5964_v42 = vrot.slane %v2686_v35, 9  ;;  %v2812_v31 = vrot.slane %v2687_v39, 5 }
  0xfb   : > { %v2353_v43 = vrot.slane %v2352_v48, 4  ;;  %v1918_v41 = vsel %vm7496_vm14, %v5907_v30, %v1917_v47  ;;  %v1919_v44 = vrot.slane %v1917_v47, 4  ;;  %v2815_v45 = vrot.slane %v2688_v40, 5  ;;  %v2690_v48 = vld [vmem:[#allocation2 + $0x70] sm:$0xf] }
  0xfc   : > { %v2363_v34 = vrot.slane %v2362_v38, 4  ;;  %v6192_v7 = vpack.c.bf16 %v524_v20, %v524_v20  ;;  %v6193_v46 = vpack.c.bf16 %v525_v25, %v525_v25  ;;  %v2813_v52 = vsel %vm7496_vm14, %v5964_v42, %v2812_v31  ;;  %v2177_v42 = vld [vmem:[#allocation2 + $0x6c] sm:$0xf] }
  0xfd   : > { %v2358_v49 = vsel %vm7233_vm9, %v2353_v43, %v2357_v33  ;;  %v1921_v50 = vsel %vm7496_vm14, %v1919_v44, %v1920_v36  ;;  %v2814_v19 = vrot.slane %v2812_v31, 4  ;;  %v2370_v60 = vshrl.u32 %v2174_v5, 16 }
  0xfe   : > { %v2368_v57 = vsel %vm7233_vm9, %v2363_v34, %v2367_v32  ;;  %v5923_v51 = vcombine.low %v1918_v41, %v1921_v50  ;;  %v2373_v61 = vshll.u32 %v2174_v5, 16  ;;  %v2379_v0 = vshll.u32 %v2175_v54, 16  ;;  %v2178_v34 = vld [vmem:[#allocation2 + $0x70] sm:$0xf]  ;;  %v3098_v50 = vld [vmem:[#allocation2 + $0x18] sm:$0xf] }
  0xff   : > { %v5947_v59 = vcombine.low %v2358_v49, %v2368_v57  ;;  %v2816_v62 = vsel %vm7496_vm14, %v2814_v19, %v2815_v45  ;;  %v2383_v1 = vshrl.u32 %v2175_v54, 16  ;;  %v2372_v63 = vrot.slane %v2370_v60, 4  ;;  %v2179_v45 = vld [vmem:[#allocation2 + $0x74] sm:$0x1] }
 0x100   : > { %5020 = vmatmul.mubr.bf16.gmra.mrb[68].mxu0 %v5946_v23  ;;  %4931 = vmatmul.mubr.bf16.gmra.mrb[72].mxu1 %v5923_v51  ;;  %v5980_v3 = vcombine.low %v2813_v52, %v2816_v62  ;;  %v2375_v6 = vrot.slane %v2373_v61, 5  ;;  %v2389_v9 = vshll.u32 %v2176_v55, 16  ;;  %v2381_v26 = vrot.slane %v2379_v0, 5  ;;  %v2689_v23 = vld [vmem:[#allocation2 + $0x6c] sm:$0xe] }
 0x101   : > { %v7940_v56 = vpop.f32.mrb[0].mxu0  ;;  %5027 = vmatprep.mubr.bf16.mxu0 %v5979_v37  ;;  %v2385_v16 = vrot.slane %v2383_v1, 4  ;;  %v323_v18 = vsel %vm7171_vm3, 0, %v322_v53  ;;  %v880_v20 = vshrl.u32 %v6192_v7, 16  ;;  %v883_v22 = vshll.u32 %v6192_v7, 16 }
 0x102   : > { %v7946_v12 = vpop.f32.mrb[1].mxu0  ;;  %v2376_v15 = vor.u32 %v2375_v6, %v2372_v63  ;;  %v2391_v27 = vrot.slane %v2389_v9, 5  ;;  %324 = vst [vmem:[#allocation2 + $0xc0] sm:$0x1] %v323_v18  ;;  %v888_v21 = vshrl.u32 %v6193_v46, 16  ;;  %v891_v29 = vshll.u32 %v6193_v46, 16 }
 0x103   : > { %v7950_v33 = vpop.f32.mrb[2].mxu0  ;;  %v2386_v24 = vor.u32 %v2385_v16, %v2381_v26  ;;  %v882_v28 = vrot.slane %v880_v20, 7  ;;  %v5908_v25 = vrot.slane %v1763_v2, 9  ;;  %v1924_v35 = vrot.slane %v1764_v11, 5  ;;  %v2691_v37 = vld [vmem:[#allocation2 + $0x74] sm:$0x1] }
 0x104   : > { %v7952_v32 = vpop.f32.mrb[3].mxu0  ;;  %v2377_v30 = vrot.slane %v2376_v15, 4  ;;  %v7954_v47 = vrot.slane %v888_v21, 7  ;;  %v1927_v39 = vrot.slane %v1765_v14, 5  ;;  %v5965_v40 = vrot.slane %v2689_v23, 9 }
 0x105   : > { %v2387_v38 = vrot.slane %v2386_v24, 4  ;;  %v886_v36 = vrot.slane %v882_v28, 4  ;;  %v885_v41 = vor.u32 %v883_v22, %v882_v28  ;;  %v7961_v31 = vsel %vm7496_vm14, %v5908_v25, %v1924_v35  ;;  %v3100_v2 = vld [vmem:[#allocation2 + $0x20] sm:$0x1]  ;;  %v2180_v25 = vld [vmem:[#allocation2 + $0x78] sm:$0xf] }
 0x106   : > { %v2382_v43 = vsel %vm7233_vm9, %v2377_v30, %v2381_v26  ;;  %v893_v44 = vor.u32 %v891_v29, %v7954_v47  ;;  %v1926_v7 = vrot.slane %v1924_v35, 4  ;;  %v2819_v46 = vrot.slane %v2690_v48, 5  ;;  %v2694_v21 = vld [vmem:[#allocation2 + $0x80] sm:$0x1] }
 0x107   : > { %v2392_v5 = vsel %vm7233_vm9, %v2387_v38, %v2391_v27  ;;  %v2822_v49 = vrot.slane %v2691_v37, 5  ;;  %v2394_v54 = vshrl.u32 %v2177_v42, 16  ;;  %v2397_v55 = vshll.u32 %v2177_v42, 16 }
 0x108   : > { %5028 = vmatmul.mubr.bf16.gmra.mrb[72].mxu0 %v5947_v59  ;;  %v5948_v52 = vcombine.low %v2382_v43, %v2392_v5  ;;  %v894_v19 = vsel %vm7252_vm11, %v886_v36, %v893_v44  ;;  %v7969_v51 = vsel %vm7496_vm14, %v1926_v7, %v1927_v39  ;;  %v2820_v60 = vsel %vm7496_vm14, %v5965_v40, %v2819_v46  ;;  %v3099_v59 = vld [vmem:[#allocation2 + $0x1c] sm:$0xf] }
 0x109   : > { %5035 = vmatprep.mubr.bf16.mxu0 %v5980_v3  ;;  %v1052_v57 = vld [vmem:[#allocation2 + $0xc0] sm:$0xf]  ;;  %1055 = vst [vmem:[#allocation2 + $0xc4] sm:$0xf] %v894_v19  ;;  %v2821_v61 = vrot.slane %v2819_v46, 4  ;;  %v2403_v53 = vshll.u32 %v2178_v34, 16  ;;  %v5924_v8 = vcombine.low %v7961_v31, %v7969_v51 }
 0x10a   : > { %v1053_v62 = vsel %vm7245_vm10, %v885_v41, %v1052_v57  ;;  %v2396_v0 = vrot.slane %v2394_v54, 4  ;;  %v2399_v1 = vrot.slane %v2397_v55, 5  ;;  %v2692_v3 = vld [vmem:[#allocation2 + $0x78] sm:$0xe]  ;;  %v2407_v9 = vshrl.u32 %v2178_v34, 16 }
 0x10b   : > { %1054 = vst [vmem:[#allocation2 + $0xc0] sm:$0xf] %v1053_v62  ;;  %v2823_v63 = vsel %vm7496_vm14, %v2821_v61, %v2822_v49  ;;  %v2405_v6 = vrot.slane %v2403_v53, 5  ;;  %v2413_v11 = vshll.u32 %v2179_v45, 16  ;;  %v3147_v18 = vshrl.u32 %v3098_v50, 16 }
 0x10c   : > { %v5981_v26 = vcombine.low %v2820_v60, %v2823_v63  ;;  %v2400_v16 = vor.u32 %v2399_v1, %v2396_v0  ;;  %v3150_v20 = vshll.u32 %v3098_v50, 16  ;;  %v2409_v14 = vrot.slane %v2407_v9, 4  ;;  %v2181_v43 = vld [vmem:[#allocation2 + $0x7c] sm:$0xf]  ;;  %v2182_v34 = vld [vmem:[#allocation2 + $0x80] sm:$0x1] }
 0x10d   : > { %v2415_v15 = vrot.slane %v2413_v11, 5  ;;  %v3156_v27 = vshll.u32 %v3099_v59, 16  ;;  %v3160_v22 = vshrl.u32 %v3099_v59, 16  ;;  %v3149_v24 = vrot.slane %v3147_v18, 4  ;;  %v3101_v51 = vld [vmem:[#allocation2 + $0x24] sm:$0xf] }
 0x10e   : > { %v2401_v23 = vrot.slane %v2400_v16, 4  ;;  %v3152_v28 = vrot.slane %v3150_v20, 5  ;;  %v3166_v29 = vshll.u32 %v3100_v2, 16  ;;  %v2410_v48 = vor.u32 %v2409_v14, %v2405_v6  ;;  %v3102_v0 = vld [vmem:[#allocation2 + $0x28] sm:$0xf] }
 0x10f   : > { %v3158_v30 = vrot.slane %v3156_v27, 5  ;;  %v3162_v35 = vrot.slane %v3160_v22, 4  ;;  %v5966_v37 = vrot.slane %v2692_v3, 9  ;;  %v7979_v38 = vpop.f32.mrb[0].mxu1  ;;  %v2826_v42 = vrot.slane %v2693_v4, 5  ;;  %v7046_v4 = vld [vmem:[#allocation2 + $0x18] sm:$0xff]  }
 0x110   : > { %5036 = vmatmul.mubr.bf16.gmra.mrb[76].mxu0 %v5948_v52  ;;  %v2406_v36 = vsel %vm7233_vm9, %v2401_v23, %v2405_v6  ;;  %v3153_v39 = vor.u32 %v3152_v28, %v3149_v24  ;;  %v3168_v40 = vrot.slane %v3166_v29, 5  ;;  %v2411_v41 = vrot.slane %v2410_v48, 4  ;;  %v7983_v5 = vpop.f32.mrb[1].mxu1  ;;  %v3103_v1 = vld [vmem:[#allocation2 + $0x2c] sm:$0x1] }
 0x111   : > { %5043 = vmatprep.mubr.bf16.mxu0 %v5981_v26  ;;  %v3163_v44 = vor.u32 %v3162_v35, %v3158_v30  ;;  %v2829_v31 = vrot.slane %v2694_v21, 5  ;;  %v2418_v45 = vshrl.u32 %v2180_v25, 16  ;;  %v2827_v49 = vsel %vm7496_vm14, %v5966_v37, %v2826_v42  ;;  %v7989_v60 = vpop.f32.mrb[2].mxu1  ;;  %v2695_v20 = vld [vmem:[#allocation2 + $0x84] sm:$0xe] }
 0x112   : > { %v7044_v7 = vld [vmem:[#allocation2 + $0xc0] sm:$0xff]   ;;  %v3154_v46 = vrot.slane %v3153_v39, 4  ;;  %v2828_v50 = vrot.slane %v2826_v42, 4  ;;  %v2421_v52 = vshll.u32 %v2180_v25, 16  ;;  %v2416_v19 = vsel %vm7233_vm9, %v2411_v41, %v2415_v15  ;;  %v7995_v2 = vpop.f32.mrb[3].mxu1 }
 0x113   : > { %v3164_v54 = vrot.slane %v3163_v44, 4  ;;  %v2420_v55 = vrot.slane %v2418_v45, 4  ;;  %v2427_v57 = vshll.u32 %v2181_v43, 16  ;;  %4938 = vmatprep.mubr.bf16.mxu1 %v7044_v7  ;;  %v5949_v61 = vcombine.low %v2406_v36, %v2416_v19  ;;  %v2696_v21 = vld [vmem:[#allocation2 + $0x88] sm:$0xf] }
 0x114   : > { %v3159_v53 = vsel %vm7233_vm9, %v3154_v46, %v3158_v30  ;;  %v2830_v59 = vsel %vm7496_vm14, %v2828_v50, %v2829_v31  ;;  %v2423_v62 = vrot.slane %v2421_v52, 5  ;;  %4939 = vmatmul.mubr.bf16.gmra.mrb[76].mxu1 %v5924_v8  ;;  %v2431_v9 = vshrl.u32 %v2181_v43, 16  ;;  %v2697_v29 = vld [vmem:[#allocation2 + $0x8c] sm:$0x1]  ;;  %v2183_v37 = vld [vmem:[#allocation2 + $0x84] sm:$0xf] }
 0x115   : > { %v3169_v3 = vsel %vm7233_vm9, %v3164_v54, %v3168_v40  ;;  %v5982_v63 = vcombine.low %v2827_v49, %v2830_v59  ;;  %v2429_v6 = vrot.slane %v2427_v57, 5  ;;  %v2437_v16 = vshll.u32 %v2182_v34, 16  ;;  %v2184_v41 = vld [vmem:[#allocation2 + $0x88] sm:$0xf]  ;;  %v2185_v50 = vld [vmem:[#allocation2 + $0x8c] sm:$0x1] }
 0x116   : > { %v6005_v11 = vcombine.low %v3159_v53, %v3169_v3  ;;  %v2424_v26 = vor.u32 %v2423_v62, %v2420_v55  ;;  %v3171_v18 = vshrl.u32 %v3101_v51, 16  ;;  %v2433_v14 = vrot.slane %v2431_v9, 4  ;;  %v7999_v36 = vpop.f32.mrb[4].mxu0  ;;  %v3104_v53 = vld [vmem:[#allocation2 + $0x30] sm:$0xf] }
 0x117   : > { %v3174_v15 = vshll.u32 %v3101_v51, 16  ;;  %v3180_v27 = vshll.u32 %v3102_v0, 16  ;;  %v3184_v22 = vshrl.u32 %v3102_v0, 16  ;;  %v2439_v23 = vrot.slane %v2437_v16, 5  ;;  %v8003_v44 = vpop.f32.mrb[5].mxu0 }
 0x118   : > { %5044 = vmatmul.mubr.bf16.gmra.mrb[80].mxu0 %v5949_v61  ;;  %5140 = vmatprep.mubr.bf16.mxu1 %v6005_v11  ;;  %v2425_v8 = vrot.slane %v2424_v26, 4  ;;  %v3173_v24 = vrot.slane %v3171_v18, 4  ;;  %v3190_v28 = vshll.u32 %v3103_v1, 16  ;;  %v2434_v25 = vor.u32 %v2433_v14, %v2429_v6  ;;  %v8007_v54 = vpop.f32.mrb[6].mxu0  ;;  %v7047_v26 = vld [vmem:[#allocation2 + $0x24] sm:$0xff]  }
 0x119   : > { %5051 = vmatprep.mubr.bf16.mxu0 %v5982_v63  ;;  %v3176_v48 = vrot.slane %v3174_v15, 5  ;;  %v3182_v30 = vrot.slane %v3180_v27, 5  ;;  %v3186_v35 = vrot.slane %v3184_v22, 4  ;;  %v5967_v42 = vrot.slane %v2695_v20, 9  ;;  %v8011_v59 = vpop.f32.mrb[7].mxu0 }
 0x11a   : > { %v2430_v39 = vsel %vm7233_vm9, %v2425_v8, %v2429_v6  ;;  %v3192_v40 = vrot.slane %v3190_v28, 5  ;;  %v2833_v43 = vrot.slane %v2696_v21, 5  ;;  %v2435_v31 = vrot.slane %v2434_v25, 4  ;;  %v3105_v63 = vld [vmem:[#allocation2 + $0x34] sm:$0xf] }
 0x11b   : > { %v3177_v34 = vor.u32 %v3176_v48, %v3173_v24  ;;  %v3187_v45 = vor.u32 %v3186_v35, %v3182_v30  ;;  %v2836_v7 = vrot.slane %v2697_v29, 5  ;;  %v2442_v52 = vshrl.u32 %v2183_v37, 16  ;;  %v3106_v18 = vld [vmem:[#allocation2 + $0x38] sm:$0x1]  ;;  %v2698_v27 = vld [vmem:[#allocation2 + $0x90] sm:$0xe] }
 0x11c   : > { %v2834_v46 = vsel %vm7496_vm14, %v5967_v42, %v2833_v43  ;;  %v2835_v49 = vrot.slane %v2833_v43, 4  ;;  %v2445_v19 = vshll.u32 %v2183_v37, 16  ;;  %5141 = vmatmul.mubr.bf16.vlgmr.msra.gmra.mrb[80].mxu1 %v7046_v4  ;;  %v2440_v55 = vsel %vm7233_vm9, %v2435_v31, %v2439_v23  ;;  %v2699_v22 = vld [vmem:[#allocation2 + $0x94] sm:$0xf]  ;;  %v2700_v28 = vld [vmem:[#allocation2 + $0x98] sm:$0x1] }
 0x11d   : > { %v3178_v57 = vrot.slane %v3177_v34, 4  ;;  %v3188_v51 = vrot.slane %v3187_v45, 4  ;;  %v2451_v61 = vshll.u32 %v2184_v41, 16  ;;  %v5950_v62 = vcombine.low %v2430_v39, %v2440_v55  ;;  %v2186_v35 = vld [vmem:[#allocation2 + $0x90] sm:$0xf] }
 0x11e   : > { %v2837_v0 = vsel %vm7496_vm14, %v2835_v49, %v2836_v7  ;;  %v2444_v1 = vrot.slane %v2442_v52, 4  ;;  %v2447_v3 = vrot.slane %v2445_v19, 5  ;;  %v2455_v14 = vshrl.u32 %v2184_v41, 16  ;;  %v2187_v43 = vld [vmem:[#allocation2 + $0x94] sm:$0xf] }
 0x11f   : > { %v3183_v6 = vsel %vm7233_vm9, %v3178_v57, %v3182_v30  ;;  %v3193_v9 = vsel %vm7233_vm9, %v3188_v51, %v3192_v40  ;;  %v5983_v11 = vcombine.low %v2834_v46, %v2837_v0  ;;  %v2453_v16 = vrot.slane %v2451_v61, 5  ;;  %v2188_v19 = vld [vmem:[#allocation2 + $0x98] sm:$0x1] }
 0x120   : > { %5052 = vmatmul.mubr.bf16.gmra.mrb[84].mxu0 %v5950_v62  ;;  %v6006_v20 = vcombine.low %v3183_v6, %v3193_v9  ;;  %v2448_v4 = vor.u32 %v2447_v3, %v2444_v1  ;;  %v2461_v15 = vshll.u32 %v2185_v50, 16  ;;  %v3195_v21 = vshrl.u32 %v3104_v53, 16  ;;  %v3107_v1 = vld [vmem:[#allocation2 + $0x3c] sm:$0xf] }
 0x121   : > { %5059 = vmatprep.mubr.bf16.mxu0 %v5983_v11  ;;  %v3198_v8 = vshll.u32 %v3104_v53, 16  ;;  %v3204_v23 = vshll.u32 %v3105_v63, 16  ;;  %v3208_v24 = vshrl.u32 %v3105_v63, 16  ;;  %v2457_v25 = vrot.slane %v2455_v14, 4 }
 0x122   : > { %5148 = vmatprep.mubr.bf16.mxu1 %v6006_v20  ;;  %v2449_v29 = vrot.slane %v2448_v4, 4  ;;  %v2463_v48 = vrot.slane %v2461_v15, 5  ;;  %v3214_v30 = vshll.u32 %v3106_v18, 16  ;;  %v3197_v37 = vrot.slane %v3195_v21, 4  ;;  %v7049_v15 = vld [vmem:[#allocation2 + $0x30] sm:$0xff]  }
 0x123   : > { %v3200_v39 = vrot.slane %v3198_v8, 5  ;;  %v3206_v40 = vrot.slane %v3204_v23, 5  ;;  %v3210_v42 = vrot.slane %v3208_v24, 4  ;;  %v2458_v31 = vor.u32 %v2457_v25, %v2453_v16  ;;  %v2701_v24 = vld [vmem:[#allocation2 + $0x9c] sm:$0xe] }
 0x124   : > { %v2454_v41 = vsel %vm7233_vm9, %v2449_v29, %v2453_v16  ;;  %v3216_v34 = vrot.slane %v3214_v30, 5  ;;  %v5968_v45 = vrot.slane %v2698_v27, 9  ;;  %5149 = vmatmul.mubr.bf16.gmra.mrb[84].mxu1 %v7047_v26  ;;  %v2840_v49 = vrot.slane %v2699_v22, 5  ;;  %v8023_v3 = vpop.f32.mrb[4].mxu1  ;;  %v3108_v26 = vld [vmem:[#allocation2 + $0x40] sm:$0xf] }
 0x125   : > { %v3201_v7 = vor.u32 %v3200_v39, %v3197_v37  ;;  %v3211_v46 = vor.u32 %v3210_v42, %v3206_v40  ;;  %v2843_v50 = vrot.slane %v2700_v28, 5  ;;  %v2459_v52 = vrot.slane %v2458_v31, 4  ;;  %v8027_v16 = vpop.f32.mrb[5].mxu1  ;;  %v3109_v27 = vld [vmem:[#allocation2 + $0x44] sm:$0x1] }
 0x126   : > { %v2466_v55 = vshrl.u32 %v2186_v35, 16  ;;  %v2469_v57 = vshll.u32 %v2186_v35, 16  ;;  %v2475_v51 = vshll.u32 %v2187_v43, 16  ;;  %v2841_v62 = vsel %vm7496_vm14, %v5968_v45, %v2840_v49  ;;  %v2702_v28 = vld [vmem:[#allocation2 + $0xa0] sm:$0xf]  ;;  %v8035_v29 = vpop.f32.mrb[6].mxu1 }
 0x127   : > { %v3202_v61 = vrot.slane %v3201_v7, 4  ;;  %v3212_v53 = vrot.slane %v3211_v46, 4  ;;  %v2842_v0 = vrot.slane %v2840_v49, 4  ;;  %v2464_v63 = vsel %vm7233_vm9, %v2459_v52, %v2463_v48  ;;  %v2189_v7 = vld [vmem:[#allocation2 + $0x9c] sm:$0xf] }
 0x128   : > { %v2468_v6 = vrot.slane %v2466_v55, 4  ;;  %v2471_v9 = vrot.slane %v2469_v57, 5  ;;  %v2477_v11 = vrot.slane %v2475_v51, 5  ;;  %v5951_v18 = vcombine.low %v2454_v41, %v2464_v63  ;;  %v2703_v41 = vld [vmem:[#allocation2 + $0xa4] sm:$0x1] }
 0x129   : > { %v3207_v20 = vsel %vm7233_vm9, %v3202_v61, %v3206_v40  ;;  %v3217_v4 = vsel %vm7233_vm9, %v3212_v53, %v3216_v34  ;;  %v2844_v14 = vsel %vm7496_vm14, %v2842_v0, %v2843_v50  ;;  %v2479_v23 = vshrl.u32 %v2187_v43, 16  ;;  %v8039_v53 = vpop.f32.mrb[7].mxu1 }
 0x12a   : > { %v6007_v22 = vcombine.low %v3207_v20, %v3217_v4  ;;  %v5984_v21 = vcombine.low %v2841_v62, %v2844_v14  ;;  %v2472_v8 = vor.u32 %v2471_v9, %v2468_v6  ;;  %5060 = vmatmul.mubr.bf16.gmra.mrb[88].mxu0 %v5951_v18  ;;  %v2485_v25 = vshll.u32 %v2188_v19, 16  ;;  %v2190_v19 = vld [vmem:[#allocation2 + $0xa0] sm:$0xf]  ;;  %v8041_v6 = vpop.f32.mrb[8].mxu0  ;;  %v2191_v18 = vld [vmem:[#allocation2 + $0xa4] sm:$0x1] }
 0x12b   : > { %v3219_v48 = vshrl.u32 %v3107_v1, 16  ;;  %v3222_v30 = vshll.u32 %v3107_v1, 16  ;;  %v3228_v35 = vshll.u32 %v3108_v26, 16  ;;  %v2481_v39 = vrot.slane %v2479_v23, 4  ;;  %v8045_v4 = vpop.f32.mrb[9].mxu0 }
 0x12c   : > { %5156 = vmatprep.mubr.bf16.mxu1 %v6007_v22  ;;  %5067 = vmatprep.mubr.bf16.mxu0 %v5984_v21  ;;  %v2473_v37 = vrot.slane %v2472_v8, 4  ;;  %v3232_v40 = vshrl.u32 %v3108_v26, 16  ;;  %v3238_v42 = vshll.u32 %v3109_v27, 16  ;;  %v2487_v31 = vrot.slane %v2485_v25, 5  ;;  %v3110_v21 = vld [vmem:[#allocation2 + $0x48] sm:$0xf] }
 0x12d   : > { %5157 = vmatmul.mubr.bf16.gmra.mrb[88].mxu1 %v7049_v15  ;;  %v3221_v34 = vrot.slane %v3219_v48, 4  ;;  %v3224_v43 = vrot.slane %v3222_v30, 5  ;;  %v3230_v45 = vrot.slane %v3228_v35, 5  ;;  %v2482_v49 = vor.u32 %v2481_v39, %v2477_v11  ;;  %v8049_v8 = vpop.f32.mrb[10].mxu0  ;;  %v3111_v48 = vld [vmem:[#allocation2 + $0x4c] sm:$0xf] }
 0x12e   : > { %v2478_v46 = vsel %vm7233_vm9, %v2473_v37, %v2477_v11  ;;  %v3234_v50 = vrot.slane %v3232_v40, 4  ;;  %v3240_v52 = vrot.slane %v3238_v42, 5  ;;  %v5969_v57 = vrot.slane %v2701_v24, 9  ;;  %v3112_v30 = vld [vmem:[#allocation2 + $0x50] sm:$0x1]  ;;  %v8055_v35 = vpop.f32.mrb[11].mxu0 }
 0x12f   : > { %v3225_v55 = vor.u32 %v3224_v43, %v3221_v34  ;;  %v2847_v51 = vrot.slane %v2702_v28, 5  ;;  %v2850_v61 = vrot.slane %v2703_v41, 5  ;;  %v2483_v62 = vrot.slane %v2482_v49, 4  ;;  %v7050_v40 = vld [vmem:[#allocation2 + $0x3c] sm:$0xff]   ;;  %v2705_v34 = vld [vmem:[#allocation2 + $0xac] sm:$0xf] }
 0x130   : > { %v3235_v0 = vor.u32 %v3234_v50, %v3230_v45  ;;  %v2490_v1 = vshrl.u32 %v2189_v7, 16  ;;  %v2493_v63 = vshll.u32 %v2189_v7, 16  ;;  %v2499_v20 = vshll.u32 %v2190_v19, 16  ;;  %v2706_v49 = vld [vmem:[#allocation2 + $0xb0] sm:$0x1] }
 0x131   : > { %v3226_v9 = vrot.slane %v3225_v55, 4  ;;  %v2848_v26 = vsel %vm7496_vm14, %v5969_v57, %v2847_v51  ;;  %v2849_v11 = vrot.slane %v2847_v51, 4  ;;  %v2488_v14 = vsel %vm7233_vm9, %v2483_v62, %v2487_v31  ;;  %v2704_v31 = vld [vmem:[#allocation2 + $0xa8] sm:$0xe] }
 0x132   : > { %v3236_v15 = vrot.slane %v3235_v0, 4  ;;  %v2492_v27 = vrot.slane %v2490_v1, 4  ;;  %v2495_v22 = vrot.slane %v2493_v63, 5  ;;  %v5952_v23 = vcombine.low %v2478_v46, %v2488_v14 }
 0x133   : > { %v3231_v24 = vsel %vm7233_vm9, %v3226_v9, %v3230_v45  ;;  %v2851_v28 = vsel %vm7496_vm14, %v2849_v11, %v2850_v61  ;;  %v2501_v25 = vrot.slane %v2499_v20, 5  ;;  %v2503_v41 = vshrl.u32 %v2190_v19, 16  ;;  %v2192_v61 = vld [vmem:[#allocation2 + $0xa8] sm:$0xf] }
 0x134   : > { %v3241_v37 = vsel %vm7233_vm9, %v3236_v15, %v3240_v52  ;;  %v5985_v39 = vcombine.low %v2848_v26, %v2851_v28  ;;  %v2496_v42 = vor.u32 %v2495_v22, %v2492_v27  ;;  %5068 = vmatmul.mubr.bf16.gmra.mrb[92].mxu0 %v5952_v23  ;;  %v2509_v45 = vshll.u32 %v2191_v18, 16  ;;  %v2193_v15 = vld [vmem:[#allocation2 + $0xac] sm:$0xf] }
 0x135   : > { %v6008_v43 = vcombine.low %v3231_v24, %v3241_v37  ;;  %v3243_v7 = vshrl.u32 %v3110_v21, 16  ;;  %v3246_v46 = vshll.u32 %v3110_v21, 16  ;;  %v2505_v55 = vrot.slane %v2503_v41, 4  ;;  %v2194_v24 = vld [vmem:[#allocation2 + $0xb0] sm:$0x1] }
 0x136   : > { %5075 = vmatprep.mubr.bf16.mxu0 %v5985_v39  ;;  %v2497_v50 = vrot.slane %v2496_v42, 4  ;;  %v3252_v57 = vshll.u32 %v3111_v48, 16  ;;  %v3256_v51 = vshrl.u32 %v3111_v48, 16  ;;  %v2511_v52 = vrot.slane %v2509_v45, 5 }
 0x137   : > { %5164 = vmatprep.mubr.bf16.mxu1 %v6008_v43  ;;  %v3245_v62 = vrot.slane %v3243_v7, 4  ;;  %v3248_v0 = vrot.slane %v3246_v46, 5  ;;  %v3262_v1 = vshll.u32 %v3112_v30, 16  ;;  %v2506_v63 = vor.u32 %v2505_v55, %v2501_v25  ;;  %v3114_v7 = vld [vmem:[#allocation2 + $0x58] sm:$0xf] }
 0x138   : > { %5165 = vmatmul.mubr.bf16.gmra.mrb[92].mxu1 %v7050_v40  ;;  %v2502_v19 = vsel %vm7233_vm9, %v2497_v50, %v2501_v25  ;;  %v3254_v9 = vrot.slane %v3252_v57, 5  ;;  %v3258_v26 = vrot.slane %v3256_v51, 4  ;;  %v5970_v20 = vrot.slane %v2704_v31, 9  ;;  %v3113_v40 = vld [vmem:[#allocation2 + $0x54] sm:$0xf] }
 0x139   : > { %v3249_v11 = vor.u32 %v3248_v0, %v3245_v62  ;;  %v3264_v18 = vrot.slane %v3262_v1, 5  ;;  %v2854_v14 = vrot.slane %v2705_v34, 5  ;;  %v8061_v27 = vpop.f32.mrb[8].mxu1  ;;  %v2507_v22 = vrot.slane %v2506_v63, 4  ;;  %v7052_v34 = vld [vmem:[#allocation2 + $0x48] sm:$0xff]  }
 0x13a   : > { %v3259_v21 = vor.u32 %v3258_v26, %v3254_v9  ;;  %v2857_v23 = vrot.slane %v2706_v49, 5  ;;  %v2514_v28 = vshrl.u32 %v2192_v61, 16  ;;  %v8063_v48 = vpop.f32.mrb[9].mxu1  ;;  %v2517_v39 = vshll.u32 %v2192_v61, 16  ;;  %v3115_v51 = vld [vmem:[#allocation2 + $0x5c] sm:$0x1] }
 0x13b   : > { %v3250_v30 = vrot.slane %v3249_v11, 4  ;;  %v2855_v25 = vsel %vm7496_vm14, %v5970_v20, %v2854_v14  ;;  %v2856_v37 = vrot.slane %v2854_v14, 4  ;;  %v8067_v42 = vpop.f32.mrb[10].mxu1  ;;  %v2512_v41 = vsel %vm7233_vm9, %v2507_v22, %v2511_v52  ;;  %v2707_v63 = vld [vmem:[#allocation2 + $0xb4] sm:$0xe] }
 0x13c   : > { %v3260_v31 = vrot.slane %v3259_v21, 4  ;;  %v2516_v43 = vrot.slane %v2514_v28, 4  ;;  %v2523_v45 = vshll.u32 %v2193_v15, 16  ;;  %v8071_v46 = vpop.f32.mrb[11].mxu1  ;;  %v5953_v49 = vcombine.low %v2502_v19, %v2512_v41  ;;  %v2709_v14 = vld [vmem:[#allocation2 + $0xbc] sm:$0x1] }
 0x13d   : > { %v3255_v50 = vsel %vm7233_vm9, %v3250_v30, %v3254_v9  ;;  %v2858_v55 = vsel %vm7496_vm14, %v2856_v37, %v2857_v23  ;;  %v2519_v57 = vrot.slane %v2517_v39, 5  ;;  %v2527_v1 = vshrl.u32 %v2193_v15, 16  ;;  %v2708_v9 = vld [vmem:[#allocation2 + $0xb8] sm:$0xf] }
 0x13e   : > { %v3265_v52 = vsel %vm7233_vm9, %v3260_v31, %v3264_v18  ;;  %v5986_v62 = vcombine.low %v2855_v25, %v2858_v55  ;;  %v2525_v0 = vrot.slane %v2523_v45, 5  ;;  %5076 = vmatmul.mubr.bf16.gmra.mrb[96].mxu0 %v5953_v49  ;;  %v2533_v11 = vshll.u32 %v2194_v24, 16 }
 0x13f   : > { %v8077_v61 = vpop.f32.mrb[12].mxu0  ;;  %v6009_v26 = vcombine.low %v3255_v50, %v3265_v52  ;;  %v2520_v19 = vor.u32 %v2519_v57, %v2516_v43  ;;  %v3267_v20 = vshrl.u32 %v3113_v40, 16  ;;  %v2529_v22 = vrot.slane %v2527_v1, 4  ;;  %v2195_v43 = vld [vmem:[#allocation2 + $0xb4] sm:$0xf] }
 0x140   : > { %5083 = vmatprep.mubr.bf16.mxu0 %v5986_v62  ;;  %v3270_v21 = vshll.u32 %v3113_v40, 16  ;;  %v3276_v23 = vshll.u32 %v3114_v7, 16  ;;  %v3280_v28 = vshrl.u32 %v3114_v7, 16  ;;  %v2535_v37 = vrot.slane %v2533_v11, 5  ;;  %v8081_v24 = vpop.f32.mrb[13].mxu0 }
 0x141   : > { %5172 = vmatprep.mubr.bf16.mxu1 %v6009_v26  ;;  %v2521_v30 = vrot.slane %v2520_v19, 4  ;;  %v3269_v18 = vrot.slane %v3267_v20, 4  ;;  %v3286_v25 = vshll.u32 %v3115_v51, 16  ;;  %v2530_v15 = vor.u32 %v2529_v22, %v2525_v0  ;;  %v2196_v7 = vld [vmem:[#allocation2 + $0xb8] sm:$0xf]  ;;  %v8085_v55 = vpop.f32.mrb[14].mxu0 }
 0x142   : > { %5173 = vmatmul.mubr.bf16.gmra.mrb[96].mxu1 %v7052_v34  ;;  %v3272_v39 = vrot.slane %v3270_v21, 5  ;;  %v3278_v41 = vrot.slane %v3276_v23, 5  ;;  %v3282_v31 = vrot.slane %v3280_v28, 4  ;;  %v5971_v40 = vrot.slane %v2707_v63, 9  ;;  %v2197_v62 = vld [vmem:[#allocation2 + $0xbc] sm:$0x1] }
 0x143   : > { %v2526_v45 = vsel %vm7233_vm9, %v2521_v30, %v2525_v0  ;;  %v3288_v49 = vrot.slane %v3286_v25, 5  ;;  %v2861_v50 = vrot.slane %v2708_v9, 5  ;;  %v2531_v57 = vrot.slane %v2530_v15, 4  ;;  %v3116_v20 = vld [vmem:[#allocation2 + $0x60] sm:$0xf]  ;;  %v8089_v22 = vpop.f32.mrb[15].mxu0 }
 0x144   : > { %v3273_v52 = vor.u32 %v3272_v39, %v3269_v18  ;;  %v3283_v51 = vor.u32 %v3282_v31, %v3278_v41  ;;  %v2864_v34 = vrot.slane %v2709_v14, 5  ;;  %v2538_v19 = vshrl.u32 %v2195_v43, 16  ;;  %v3117_v23 = vld [vmem:[#allocation2 + $0x64] sm:$0xf]  ;;  %v7053_v31 = vld [vmem:[#allocation2 + $0x54] sm:$0xff]  }
 0x145   : > { %v2862_v1 = vsel %vm7496_vm14, %v5971_v40, %v2861_v50  ;;  %v2863_v26 = vrot.slane %v2861_v50, 4  ;;  %v2541_v11 = vshll.u32 %v2195_v43, 16  ;;  %v2536_v0 = vsel %vm7233_vm9, %v2531_v57, %v2535_v37  ;;  %v3118_v37 = vld [vmem:[#allocation2 + $0x68] sm:$0x1] }
 0x146   : > { %v3274_v63 = vrot.slane %v3273_v52, 4  ;;  %v3284_v9 = vrot.slane %v3283_v51, 4  ;;  %v2547_v21 = vshll.u32 %v2196_v7, 16  ;;  %v5954_v28 = vcombine.low %v2526_v45, %v2536_v0 }
 0x147   : > { %v2865_v14 = vsel %vm7496_vm14, %v2863_v26, %v2864_v34  ;;  %v2540_v30 = vrot.slane %v2538_v19, 4  ;;  %v2543_v18 = vrot.slane %v2541_v11, 5  ;;  %v2551_v57 = vshrl.u32 %v2196_v7, 16  ;;  %v378_v19 = vld [vmem:[#allocation2 + $0xc8] sm:$0x1] }
 0x148   : > { %v3279_v25 = vsel %vm7233_vm9, %v3274_v63, %v3278_v41  ;;  %v3289_v15 = vsel %vm7233_vm9, %v3284_v9, %v3288_v49  ;;  %v5987_v39 = vcombine.low %v2862_v1, %v2865_v14  ;;  %v2549_v43 = vrot.slane %v2547_v21, 5  ;;  %5084 = vmatmul.mubr.bf16.gmra.mrb[100].mxu0 %v5954_v28  ;;  %v2198_v21 = vld [vmem:[#allocation2 + $0xc0] sm:$0xf] }
 0x149   : > { %v6010_v40 = vcombine.low %v3279_v25, %v3289_v15  ;;  %v2544_v50 = vor.u32 %v2543_v18, %v2540_v30  ;;  %v2557_v45 = vshll.u32 %v2197_v62, 16  ;;  %v3291_v52 = vshrl.u32 %v3116_v20, 16  ;;  %v2199_v15 = vld [vmem:[#allocation2 + $0xc4] sm:$0xf] }
 0x14a   : > { %5091 = vmatprep.mubr.bf16.mxu0 %v5987_v39  ;;  %v3294_v51 = vshll.u32 %v3116_v20, 16  ;;  %v3300_v34 = vshll.u32 %v3117_v23, 16  ;;  %v3304_v26 = vshrl.u32 %v3117_v23, 16  ;;  %v2553_v11 = vrot.slane %v2551_v57, 4 }
 0x14b   : > { %5180 = vmatprep.mubr.bf16.mxu1 %v6010_v40  ;;  %v2545_v41 = vrot.slane %v2544_v50, 4  ;;  %v3310_v0 = vshll.u32 %v3118_v37, 16  ;;  %v3293_v49 = vrot.slane %v3291_v52, 4  ;;  %v2559_v14 = vrot.slane %v2557_v45, 5  ;;  %v8107_v37 = vpop.f32.mrb[12].mxu1  ;;  %v7055_v52 = vld [vmem:[#allocation2 + $0x60] sm:$0xff]  }
 0x14c   : > { %5181 = vmatmul.mubr.bf16.gmra.mrb[100].mxu1 %v7053_v31  ;;  %v3296_v1 = vrot.slane %v3294_v51, 5  ;;  %v3302_v63 = vrot.slane %v3300_v34, 5  ;;  %v3306_v9 = vrot.slane %v3304_v26, 4  ;;  %v2554_v28 = vor.u32 %v2553_v11, %v2549_v43  ;;  %v8109_v57 = vpop.f32.mrb[13].mxu1  ;;  %v3119_v26 = vld [vmem:[#allocation2 + $0x6c] sm:$0xf] }
 0x14d   : > { %v379_v7 = vsel %vm7179_vm4, 0, %v378_v19  ;;  %v2550_v62 = vsel %vm7233_vm9, %v2545_v41, %v2549_v43  ;;  %v3312_v30 = vrot.slane %v3310_v0, 5  ;;  %v8105_v25 = vadd.f32 %v7946_v12, %v7940_v56  ;;  %v2710_v41 = vld [vmem:[#allocation2 + $0xc0] sm:$0xe]  ;;  %v2711_v11 = vld [vmem:[#allocation2 + $0xc4] sm:$0xf] }
 0x14e   : > { %v3297_v20 = vor.u32 %v3296_v1, %v3293_v49  ;;  %v3307_v23 = vor.u32 %v3306_v9, %v3302_v63  ;;  %380 = vst [vmem:[#allocation2 + $0xc8] sm:$0x1] %v379_v7  ;;  %v2555_v18 = vrot.slane %v2554_v28, 4  ;;  %v2562_v39 = vshrl.u32 %v2198_v21, 16  ;;  %v8118_v49 = vpop.f32.mrb[14].mxu1 }
 0x14f   : > { %v2565_v31 = vshll.u32 %v2198_v21, 16  ;;  %v895_v43 = vrot.slane %v7954_v47, 4  ;;  %v2571_v0 = vshll.u32 %v2199_v15, 16  ;;  %v2575_v1 = vshrl.u32 %v2199_v15, 16  ;;  %v3120_v21 = vld [vmem:[#allocation2 + $0x70] sm:$0xf] }
 0x150   : > { %v3298_v40 = vrot.slane %v3297_v20, 4  ;;  %v3308_v50 = vrot.slane %v3307_v23, 4  ;;  %v2560_v45 = vsel %vm7233_vm9, %v2555_v18, %v2559_v14  ;;  %v2564_v51 = vrot.slane %v2562_v39, 4  ;;  %v3121_v28 = vld [vmem:[#allocation2 + $0x74] sm:$0x1]  ;;  %v8124_v14 = vpop.f32.mrb[15].mxu1 }
 0x151   : > { %v2567_v34 = vrot.slane %v2565_v31, 5  ;;  %v5955_v56 = vcombine.low %v2550_v62, %v2560_v45  ;;  %v8122_v9 = vadd.f32 %v7952_v32, %v7950_v33  ;;  %v8128_v7 = vadd.f32 %v7983_v5, %v7979_v38  ;;  %v3611_v23 = vld [vmem:[#allocation2 + $0x1c] sm:$0xf]  ;;  %v3610_v5 = vld [vmem:[#allocation2 + $0x18] sm:$0xe] }
 0x152   : > { %v3303_v12 = vsel %vm7233_vm9, %v3298_v40, %v3302_v63  ;;  %v3313_v19 = vsel %vm7233_vm9, %v3308_v50, %v3312_v30  ;;  %v8132_v62 = vadd.f32 %v7995_v2, %v7989_v60  ;;  %v3315_v20 = vshrl.u32 %v3119_v26, 16  ;;  %v3612_v45 = vld [vmem:[#allocation2 + $0x20] sm:$0x1] }
 0x153   : > { %v6011_v47 = vcombine.low %v3303_v12, %v3313_v19  ;;  %5092 = vmatmul.mubr.bf16.gmra.mrb[104].mxu0 %v5955_v56  ;;  %v2568_v63 = vor.u32 %v2567_v34, %v2564_v51  ;;  %8968 = vst [vmem:[#allocation6_spill] sm:$0xff] %v8128_v7  ;;  %v8134_v33 = vrot.slane %v2571_v0, 5  ;;  %v2577_v32 = vrot.slane %v2575_v1, 4  ;;  %v8136_v15 = vpop.f32.mrb[16].mxu0 }
 0x154   : > { %8969 = vst [vmem:[#allocation7_spill] sm:$0xff] %v8132_v62  ;;  %v3318_v18 = vshll.u32 %v3119_v26, 16  ;;  %v3317_v38 = vrot.slane %v3315_v20, 4  ;;  %v8140_v31 = vpop.f32.mrb[17].mxu0  ;;  %v5972_v60 = vrot.slane %v2710_v41, 9  ;;  %v2868_v2 = vrot.slane %v2711_v11, 5 }
 0x155   : > { %5188 = vmatprep.mubr.bf16.mxu1 %v6011_v47  ;;  %v1056_v30 = vld [vmem:[#allocation2 + $0xc8] sm:$0x1]  ;;  %v3324_v50 = vshll.u32 %v3120_v21, 16  ;;  %v8142_v51 = vrot.slane %v2568_v63, 4  ;;  %v3328_v34 = vshrl.u32 %v3120_v21, 16  ;;  %v3334_v26 = vshll.u32 %v3121_v28, 16 }
 0x156   : > { %v1057_v39 = vsel %vm7171_vm3, %v895_v43, %v1056_v30  ;;  %5189 = vmatmul.mubr.bf16.gmra.mrb[104].mxu1 %v7055_v52  ;;  %v3320_v40 = vrot.slane %v3318_v18, 5  ;;  %v3708_v56 = vrot.slane %v3611_v23, 5  ;;  %v2578_v12 = vor.u32 %v2577_v32, %v8134_v33  ;;  %v8145_v0 = vpop.f32.mrb[18].mxu0  ;;  %v8147_v41 = vld [vmem:[#allocation2 + $0x28] sm:$0xf]  ;;  %v8159_v32 = vpop.f32.mrb[16].mxu1 }
 0x157   : > { %1058 = vst [vmem:[#allocation2 + $0xc8] sm:$0x1] %v1057_v39  ;;  %v3326_v43 = vrot.slane %v3324_v50, 5  ;;  %v6021_v52 = vrot.slane %v3610_v5, 9  ;;  %v3330_v47 = vrot.slane %v3328_v34, 4  ;;  %v3711_v20 = vrot.slane %v3612_v45, 5 }
 0x158   : > { %v3321_v19 = vor.u32 %v3320_v40, %v3317_v38  ;;  %v3710_v1 = vrot.slane %v3708_v56, 4  ;;  %v8149_v11 = vpop.f32.mrb[19].mxu0  ;;  %v2869_v63 = vsel %vm7496_vm14, %v5972_v60, %v2868_v2  ;;  %v8155_v28 = vadd.f32 %v8003_v44, %v7999_v36  ;;  %v3613_v23 = vld [vmem:[#allocation2 + $0x24] sm:$0xe]  ;;  %v8157_v30 = vld [vmem:[#allocation2 + $0x2c] sm:$0x1] }
 0x159   : > { %v2870_v18 = vrot.slane %v2868_v2, 4  ;;  %v3331_v39 = vor.u32 %v3330_v47, %v3326_v43  ;;  %v3336_v38 = vrot.slane %v3334_v26, 5  ;;  %v8163_v5 = vadd.f32 %v8011_v59, %v8007_v54  ;;  %v3122_v40 = vld [vmem:[#allocation2 + $0x78] sm:$0xf]  ;;  %v8165_v50 = vpop.f32.mrb[17].mxu1  ;;  %v7056_v26 = vld [vmem:[#allocation2 + $0x6c] sm:$0xff]  }
 0x15a   : > { %v3322_v21 = vrot.slane %v3321_v19, 4  ;;  %v2574_v36 = vsel %vm7233_vm9, %v8142_v51, %v8134_v33  ;;  %v2579_v44 = vrot.slane %v2578_v12, 4  ;;  %v3709_v60 = vsel %vm7496_vm14, %v6021_v52, %v3708_v56  ;;  %v3123_v12 = vld [vmem:[#allocation2 + $0x7c] sm:$0xf] }
 0x15b   : > { %v3715_v2 = vrot.slane %v8147_v41, 5  ;;  %v3332_v59 = vrot.slane %v3331_v39, 4  ;;  %v3712_v19 = vsel %vm7496_vm14, %v3710_v1, %v3711_v20  ;;  %v8180_v47 = vadd.f32 %v8027_v16, %v8023_v3  ;;  %v8186_v41 = vpop.f32.mrb[18].mxu1  ;;  %v3124_v20 = vld [vmem:[#allocation2 + $0x80] sm:$0x1] }
 0x15c   : > { %v3327_v54 = vsel %vm7233_vm9, %v3322_v21, %v3326_v43  ;;  %v8184_v56 = vadd.f32 %v8039_v53, %v8035_v29  ;;  %v3339_v52 = vshrl.u32 %v3122_v40, 16  ;;  %v6022_v21 = vrot.slane %v3613_v23, 9  ;;  %v8191_v3 = vpop.f32.mrb[19].mxu1 }
 0x15d   : > { %8970 = vst [vmem:[#allocation8_spill] sm:$0xff] %v8180_v47  ;;  %v3337_v43 = vsel %vm7233_vm9, %v3332_v59, %v3336_v38  ;;  %v3718_v1 = vrot.slane %v8157_v30, 5  ;;  %v3342_v39 = vshll.u32 %v3122_v40, 16  ;;  %v6037_v53 = vcombine.low %v3709_v60, %v3712_v19  ;;  %v8195_v47 = vpop.f32.mrb[20].mxu0  ;;  %v3618_v59 = vld [vmem:[#allocation2 + $0x38] sm:$0x1] }
 0x15e   : > { %v2712_v45 = vld [vmem:[#allocation2 + $0xc8] sm:$0x1]  ;;  %8971 = vst [vmem:[#allocation9_spill] sm:$0xff] %v8184_v56  ;;  %v6012_v29 = vcombine.low %v3327_v54, %v3337_v43  ;;  %v3617_v56 = vld [vmem:[#allocation2 + $0x34] sm:$0xf]  ;;  %v3717_v7 = vrot.slane %v3715_v2, 4 }
 0x15f   : > { %v2200_v34 = vld [vmem:[#allocation2 + $0xc8] sm:$0x1]  ;;  %v2871_v33 = vrot.slane %v2712_v45, 5  ;;  %v3341_v38 = vrot.slane %v3339_v52, 4  ;;  %v3344_v23 = vrot.slane %v3342_v39, 5  ;;  %v3348_v40 = vshll.u32 %v3123_v12, 16 }
 0x160   : > { %v2581_v51 = vshll.u32 %v2200_v34, 16  ;;  %v3616_v34 = vld [vmem:[#allocation2 + $0x30] sm:$0xe]  ;;  %5196 = vmatprep.mubr.bf16.mxu1 %v6012_v29  ;;  %v3352_v13 = vshrl.u32 %v3123_v12, 16  ;;  %v3358_v17 = vshll.u32 %v3124_v20, 16  ;;  %v8199_v54 = vpop.f32.mrb[21].mxu0  ;;  %v3716_v52 = vsel %vm7496_vm14, %v6022_v21, %v3715_v2 }
 0x161   : > { %v2872_v16 = vsel %vm7496_vm14, %v2870_v18, %v2871_v33  ;;  %v3619_v18 = vld [vmem:[#allocation2 + $0x3c] sm:$0xe]  ;;  %v3620_v33 = vld [vmem:[#allocation2 + $0x40] sm:$0xf]  ;;  %5197 = vmatmul.mubr.bf16.gmra.mrb[108].mxu1 %v7056_v26  ;;  %v3345_v19 = vor.u32 %v3344_v23, %v3341_v38  ;;  %v3350_v43 = vrot.slane %v3348_v40, 5  ;;  %v3719_v12 = vsel %vm7496_vm14, %v3717_v7, %v3718_v1  ;;  %v8216_v7 = vpop.f32.mrb[22].mxu0 }
 0x162   : > { %v2583_v45 = vrot.slane %v2581_v51, 5  ;;  %v5988_v62 = vcombine.low %v2869_v63, %v2872_v16  ;;  %v6023_v63 = vrot.slane %v3616_v34, 9  ;;  %v3722_v51 = vrot.slane %v3617_v56, 5  ;;  %v3621_v16 = vld [vmem:[#allocation2 + $0x44] sm:$0x1] }
 0x163   : > { %v3354_v39 = vrot.slane %v3352_v13, 4  ;;  %v3346_v20 = vrot.slane %v3345_v19, 4  ;;  %v3360_v13 = vrot.slane %v3358_v17, 5  ;;  %v3729_v56 = vrot.slane %v3620_v33, 5  ;;  %v3125_v21 = vld [vmem:[#allocation2 + $0x84] sm:$0xf] }
 0x164   : > { %v2584_v30 = vsel %vm7233_vm9, %v2579_v44, %v2583_v45  ;;  %5099 = vmatprep.mubr.bf16.mxu0 %v5988_v62  ;;  %v3725_v44 = vrot.slane %v3618_v59, 5  ;;  %v3724_v45 = vrot.slane %v3722_v51, 4  ;;  %v8207_v62 = vadd.f32 %v8045_v4, %v8041_v6  ;;  %v3126_v34 = vld [vmem:[#allocation2 + $0x88] sm:$0xf]  ;;  %v8226_v17 = vpop.f32.mrb[20].mxu1 }
 0x165   : > { %v5956_v60 = vcombine.low %v2574_v36, %v2584_v30  ;;  %v8212_v36 = vld [vmem:[%s8949_s4] ss:$0 sm:$0xff]  ;;  %v3355_v2 = vor.u32 %v3354_v39, %v3350_v43  ;;  %v3723_v26 = vsel %vm7496_vm14, %v6023_v63, %v3722_v51  ;;  %v6024_v6 = vrot.slane %v3619_v18, 9  ;;  %v3127_v30 = vld [vmem:[#allocation2 + $0x8c] sm:$0x1]  ;;  %v8230_v33 = vpop.f32.mrb[21].mxu1 }
 0x166   : > { %v3726_v1 = vsel %vm7496_vm14, %v3724_v45, %v3725_v44  ;;  %v3732_v4 = vrot.slane %v3621_v16, 5  ;;  %v8222_v29 = vadd.f32 %v8055_v35, %v8049_v8  ;;  %v3351_v38 = vsel %vm7233_vm9, %v3346_v20, %v3350_v43  ;;  %v3622_v40 = vld [vmem:[#allocation2 + $0x48] sm:$0xe]  ;;  %v3623_v19 = vld [vmem:[#allocation2 + $0x4c] sm:$0xf]  ;;  %v8240_v51 = vpop.f32.mrb[22].mxu1 }
 0x167   : > { %5100 = vmatmul.mubr.bf16.gmra.mrb[108].mxu0 %v5956_v60  ;;  %v3356_v23 = vrot.slane %v3355_v2, 4  ;;  %v3731_v59 = vrot.slane %v3729_v56, 4  ;;  %v6038_v18 = vcombine.low %v3716_v52, %v3719_v12  ;;  %v8234_v60 = vadd.f32 %v8063_v48, %v8061_v27  ;;  %v3624_v63 = vld [vmem:[#allocation2 + $0x50] sm:$0x1]  ;;  %v7057_v39 = vld [vmem:[#allocation2 + $0x78] sm:$0xff]   ;;  %v8244_v12 = vpop.f32.mrb[23].mxu1 }
 0x168   : > { %6888 = vmatprep.mubr.bf16.mxu0 %v6037_v53  ;;  %v8224_v53 = vpop.f32.mrb[23].mxu0  ;;  %v8238_v8 = vadd.f32 %v8071_v46, %v8067_v42  ;;  %v3363_v35 = vshrl.u32 %v3125_v21, 16  ;;  %v6039_v44 = vcombine.low %v3723_v26, %v3726_v1  ;;  %v3366_v16 = vshll.u32 %v3125_v21, 16  ;;  %v8260_v45 = vpop.f32.mrb[24].mxu1  ;;  %v3626_v1 = vld [vmem:[#allocation2 + $0x58] sm:$0xf] }
 0x169   : > { %8972 = vst [vmem:[#allocation10_spill] sm:$0xff] %v8234_v60  ;;  %v3361_v43 = vsel %vm7233_vm9, %v3356_v23, %v3360_v13  ;;  %v3372_v52 = vshll.u32 %v3126_v34, 16  ;;  %v8248_v27 = vadd.f32 %v8105_v25, %v8212_v36  ;;  %v8252_v42 = vsel %vm7496_vm14, %v6024_v6, %v3729_v56  ;;  %v3625_v6 = vld [vmem:[#allocation2 + $0x54] sm:$0xe] }
 0x16a   : > { %8973 = vst [vmem:[#allocation11_spill] sm:$0xff] %v8238_v8  ;;  %v6013_v48 = vcombine.low %v3351_v38, %v3361_v43  ;;  %v8256_v46 = vsel %vm7496_vm14, %v3731_v59, %v3732_v4  ;;  %v3365_v2 = vrot.slane %v3363_v35, 4  ;;  %v3368_v13 = vrot.slane %v3366_v16, 5 }
 0x16b   : > { %v3374_v26 = vrot.slane %v3372_v52, 5  ;;  %v3376_v21 = vshrl.u32 %v3126_v34, 16  ;;  %v3382_v25 = vshll.u32 %v3127_v30, 16  ;;  %v6025_v38 = vrot.slane %v3622_v40, 9  ;;  %v3627_v34 = vld [vmem:[#allocation2 + $0x5c] sm:$0x1] }
 0x16c   : > { %5204 = vmatprep.mubr.bf16.mxu1 %v6013_v48  ;;  %v3736_v23 = vrot.slane %v3623_v19, 5  ;;  %v3739_v56 = vrot.slane %v3624_v63, 5  ;;  %v8264_v4 = vadd.f32 %v8122_v9, %v8212_v36  ;;  %v3369_v59 = vor.u32 %v3368_v13, %v3365_v2  ;;  %v8272_v30 = vpop.f32.mrb[25].mxu1  ;;  %v3129_v48 = vld [vmem:[#allocation2 + $0x94] sm:$0xf] }
 0x16d   : > { %5205 = vmatmul.mubr.bf16.gmra.mrb[112].mxu1 %v7057_v39  ;;  %v3378_v43 = vrot.slane %v3376_v21, 4  ;;  %v8268_v35 = vadd.f32 %v8081_v24, %v8077_v61  ;;  %v6040_v40 = vcombine.low %v8252_v42, %v8256_v46  ;;  %v3743_v63 = vrot.slane %v3626_v1, 5  ;;  %v3128_v39 = vld [vmem:[#allocation2 + $0x90] sm:$0xf]  ;;  %v8282_v13 = vpop.f32.mrb[26].mxu1 }
 0x16e   : > { %v8258_v20 = vpop.f32.mrb[24].mxu0  ;;  %v3737_v9 = vsel %vm7496_vm14, %v6025_v38, %v3736_v23  ;;  %v3738_v19 = vrot.slane %v3736_v23, 4  ;;  %v3370_v16 = vrot.slane %v3369_v59, 4  ;;  %v3384_v61 = vrot.slane %v3382_v25, 5  ;;  %v3130_v38 = vld [vmem:[#allocation2 + $0x98] sm:$0x1] }
 0x16f   : > { %6889 = vmatmul.mubr.bf16.vlgmr.msra.gmra.mrb[112].mxu0 %v6038_v18  ;;  %v8270_v18 = vpop.f32.mrb[25].mxu0  ;;  %v3379_v52 = vor.u32 %v3378_v43, %v3374_v26  ;;  %v6026_v24 = vrot.slane %v3625_v6, 9  ;;  %v3745_v46 = vrot.slane %v3743_v63, 4  ;;  %v3746_v21 = vrot.slane %v3627_v34, 5  ;;  %v8290_v23 = vpop.f32.mrb[27].mxu1  ;;  %v7058_v59 = vld [vmem:[#allocation2 + $0x84] sm:$0xff]  }
 0x170   : > { %6892 = vmatprep.mubr.bf16.mxu0 %v6039_v44  ;;  %v8278_v44 = vpop.f32.mrb[26].mxu0  ;;  %v3740_v42 = vsel %vm7496_vm14, %v3738_v19, %v3739_v56  ;;  %v8288_v1 = vadd.f32 %v8089_v22, %v8085_v55  ;;  %v3375_v25 = vsel %vm7233_vm9, %v3370_v16, %v3374_v26  ;;  %v8296_v8 = vadd.f32 %v8109_v57, %v8107_v37  ;;  %v3628_v56 = vld [vmem:[#allocation2 + $0x60] sm:$0xe]  ;;  %v8298_v19 = vpop.f32.mrb[28].mxu1 }
 0x171   : > { %v8280_v2 = vpop.f32.mrb[27].mxu0  ;;  %v3380_v6 = vrot.slane %v3379_v52, 4  ;;  %v6041_v43 = vcombine.low %v3737_v9, %v3740_v42  ;;  %8975 = vst [vmem:[#allocation13_spill] sm:$0xff] %v8298_v19  ;;  %v8302_v55 = vadd.f32 %v8155_v28, %v8212_v36  ;;  %v8306_v22 = vadd.f32 %v8163_v5, %v8212_v36  ;;  %v3629_v9 = vld [vmem:[#allocation2 + $0x64] sm:$0xf]  ;;  %v8312_v16 = vpop.f32.mrb[29].mxu1 }
 0x172   : > { %8974 = vst [vmem:[#allocation12_spill] sm:$0xff] %v8296_v8  ;;  %v8310_v26 = vadd.f32 %v8124_v14, %v8118_v49  ;;  %v3387_v34 = vshrl.u32 %v3128_v39, 16  ;;  %8977 = vst [vmem:[#allocation15_spill] sm:$0xff] %v8312_v16  ;;  %v8316_v37 = vadd.f32 %v8207_v62, %v8212_v36  ;;  %v3744_v28 = vsel %vm7496_vm14, %v6026_v24, %v3743_v63  ;;  %v3630_v52 = vld [vmem:[#allocation2 + $0x68] sm:$0x1]  ;;  %v8322_v8 = vpop.f32.mrb[30].mxu1 }
 0x173   : > { %v3385_v57 = vsel %vm7233_vm9, %v3380_v6, %v3384_v61  ;;  %v3390_v5 = vshll.u32 %v3128_v39, 16  ;;  %v3631_v42 = vld [vmem:[#allocation2 + $0x6c] sm:$0xe]  ;;  %8978 = vst [vmem:[#allocation16_spill] sm:$0xff] %v8322_v8  ;;  %v3747_v14 = vsel %vm7496_vm14, %v3745_v46, %v3746_v21  ;;  %v3396_v60 = vshll.u32 %v3129_v48, 16  ;;  %v8328_v19 = vpop.f32.mrb[31].mxu1 }
 0x174   : > { %8976 = vst [vmem:[#allocation14_spill] sm:$0xff] %v8310_v26  ;;  %v6014_v49 = vcombine.low %v3375_v25, %v3385_v57  ;;  %v3389_v26 = vrot.slane %v3387_v34, 4  ;;  %v3632_v62 = vld [vmem:[#allocation2 + $0x70] sm:$0xf]  ;;  %8979 = vst [vmem:[#allocation17_spill] sm:$0xff] %v8328_v19  ;;  %v3400_v63 = vshrl.u32 %v3129_v48, 16  ;;  %v8336_v21 = vadd.f32 %v8140_v31, %v8136_v15 }
 0x175   : > { %v3392_v61 = vrot.slane %v3390_v5, 5  ;;  %v3406_v39 = vshll.u32 %v3130_v38, 16  ;;  %v6027_v24 = vrot.slane %v3628_v56, 9  ;;  %v8332_v8 = vpop.f32.mrb[32].mxu1  ;;  %v3750_v25 = vrot.slane %v3629_v9, 5 }
 0x176   : > { %8980 = vst [vmem:[#allocation18_spill] sm:$0xff] %v8332_v8  ;;  %5212 = vmatprep.mubr.bf16.mxu1 %v6014_v49  ;;  %v3753_v46 = vrot.slane %v3630_v52, 5  ;;  %v3633_v34 = vld [vmem:[#allocation2 + $0x74] sm:$0x1]  ;;  %v3402_v38 = vrot.slane %v3400_v63, 4  ;;  %v6028_v56 = vrot.slane %v3631_v42, 9  ;;  %v8346_v31 = vadd.f32 %v8149_v11, %v8145_v0 }
 0x177   : > { %6893 = vmatmul.mubr.bf16.gmra.mrb[116].mxu0 %v6040_v40  ;;  %v3398_v40 = vrot.slane %v3396_v60, 5  ;;  %5213 = vmatmul.mubr.bf16.gmra.mrb[116].mxu1 %v7058_v59  ;;  %v3393_v48 = vor.u32 %v3392_v61, %v3389_v26  ;;  %v3408_v19 = vrot.slane %v3406_v39, 5  ;;  %v3751_v60 = vsel %vm7496_vm14, %v6027_v24, %v3750_v25  ;;  %v3131_v59 = vld [vmem:[#allocation2 + $0x9c] sm:$0xf]  ;;  %v8356_v61 = vpop.f32.mrb[33].mxu1  ;;  %v7059_v39 = vld [vmem:[#allocation2 + $0x90] sm:$0xff]  }
 0x178   : > { %v8326_v16 = vpop.f32.mrb[28].mxu0  ;;  %6896 = vmatprep.mubr.bf16.mxu0 %v6041_v43  ;;  %v6042_v43 = vcombine.low %v3744_v28, %v3747_v14  ;;  %v3752_v9 = vrot.slane %v3750_v25, 4  ;;  %v3757_v52 = vrot.slane %v3632_v62, 5  ;;  %v3760_v15 = vrot.slane %v3633_v34, 5  ;;  %v3132_v62 = vld [vmem:[#allocation2 + $0xa0] sm:$0xf] }
 0x179   : > { %v8330_v6 = vpop.f32.mrb[29].mxu0  ;;  %v3394_v49 = vrot.slane %v3393_v48, 4  ;;  %v3403_v8 = vor.u32 %v3402_v38, %v3398_v40  ;;  %v6530_v14 = vadd.f32 %v8165_v50, %v8159_v32  ;;  %v8360_v63 = vadd.f32 %v8222_v29, %v8212_v36  ;;  %v3133_v25 = vld [vmem:[#allocation2 + $0xa4] sm:$0x1]  ;;  %v8364_v34 = vpop.f32.mrb[34].mxu1 }
 0x17a   : > { %v8338_v57 = vpop.f32.mrb[30].mxu0  ;;  %v3754_v26 = vsel %vm7496_vm14, %v3752_v9, %v3753_v46  ;;  %v8352_v28 = vsel %vm7496_vm14, %v6028_v56, %v3757_v52  ;;  %v3759_v42 = vrot.slane %v3757_v52, 4  ;;  %v3634_v46 = vld [vmem:[#allocation2 + $0x78] sm:$0xe]  ;;  %v6533_v29 = vadd.f32 %v8191_v3, %v8186_v41  ;;  %v3635_v38 = vld [vmem:[#allocation2 + $0x7c] sm:$0xf] }
 0x17b   : > { %v8340_v5 = vpop.f32.mrb[31].mxu0  ;;  %v3399_v0 = vsel %vm7233_vm9, %v3394_v49, %v3398_v40  ;;  %v3404_v11 = vrot.slane %v3403_v8, 4  ;;  %v6043_v24 = vcombine.low %v3751_v60, %v3754_v26  ;;  %v8369_v50 = vadd.f32 %v6530_v14, %v8248_v27  ;;  %v3636_v40 = vld [vmem:[#allocation2 + $0x80] sm:$0x1]  ;;  %v3637_v52 = vld [vmem:[#allocation2 + $0x84] sm:$0xe] }
 0x17c   : > { %v3761_v32 = vsel %vm7496_vm14, %v3759_v42, %v3760_v15  ;;  %v3411_v48 = vshrl.u32 %v3131_v59, 16  ;;  %v3414_v60 = vshll.u32 %v3131_v59, 16  ;;  %v3420_v9 = vshll.u32 %v3132_v62, 16  ;;  %v8380_v27 = vpop.f32.mrb[35].mxu1  ;;  %v3638_v42 = vld [vmem:[#allocation2 + $0x88] sm:$0xf] }
 0x17d   : > { %8981 = vst [vmem:[#allocation19_spill] sm:$0xff] %v8369_v50  ;;  %v3409_v56 = vsel %vm7233_vm9, %v3404_v11, %v3408_v19  ;;  %v8383_v41 = vadd.f32 %v6533_v29, %v8264_v4  ;;  %v3424_v26 = vshrl.u32 %v3132_v62, 16  ;;  %v3430_v59 = vshll.u32 %v3133_v25, 16  ;;  %v3639_v29 = vld [vmem:[#allocation2 + $0x8c] sm:$0x1] }
 0x17e   : > { %v6015_v15 = vcombine.low %v3399_v0, %v3409_v56  ;;  %v3413_v3 = vrot.slane %v3411_v48, 4  ;;  %v3416_v11 = vrot.slane %v3414_v60, 5  ;;  %v3764_v56 = vrot.slane %v3635_v38, 5 }
 0x17f   : > { %6897 = vmatmul.mubr.bf16.gmra.mrb[120].mxu0 %v6042_v43  ;;  %v6044_v43 = vcombine.low %v8352_v28, %v3761_v32  ;;  %8982 = vst [vmem:[#allocation20_spill] sm:$0xff] %v8383_v41  ;;  %v3422_v28 = vrot.slane %v3420_v9, 5  ;;  %v3426_v0 = vrot.slane %v3424_v26, 4  ;;  %v3767_v4 = vrot.slane %v3636_v40, 5 }
 0x180   : > { %v8373_v8 = vpop.f32.mrb[32].mxu0  ;;  %6900 = vmatprep.mubr.bf16.mxu0 %v6043_v24  ;;  %v6029_v24 = vrot.slane %v3634_v46, 9  ;;  %5220 = vmatprep.mubr.bf16.mxu1 %v6015_v15  ;;  %v8395_v62 = vadd.f32 %v8199_v54, %v8195_v47  ;;  %v8401_v60 = vadd.f32 %v8268_v35, %v8212_v36  ;;  %v3417_v25 = vor.u32 %v3416_v11, %v3413_v3 }
 0x181   : > { %v8378_v49 = vpop.f32.mrb[33].mxu0  ;;  %5221 = vmatmul.mubr.bf16.gmra.mrb[120].mxu1 %v7059_v39  ;;  %v6030_v46 = vrot.slane %v3637_v52, 9  ;;  %v3771_v9 = vrot.slane %v3638_v42, 5  ;;  %v3427_v15 = vor.u32 %v3426_v0, %v3422_v28  ;;  %v3432_v38 = vrot.slane %v3430_v59, 5  ;;  %v3134_v42 = vld [vmem:[#allocation2 + $0xa8] sm:$0xf] }
 0x182   : > { %v8385_v14 = vpop.f32.mrb[34].mxu0  ;;  %v8387_v19 = vpop.f32.mrb[36].mxu1  ;;  %v3765_v40 = vsel %vm7496_vm14, %v6029_v24, %v3764_v56  ;;  %v3766_v47 = vrot.slane %v3764_v56, 4  ;;  %v3418_v54 = vrot.slane %v3417_v25, 4  ;;  %v8413_v52 = vadd.f32 %v8224_v53, %v8216_v7  ;;  %v3135_v0 = vld [vmem:[#allocation2 + $0xac] sm:$0xf] }
 0x183   : > { %v8389_v32 = vpop.f32.mrb[35].mxu0  ;;  %v8391_v50 = vpop.f32.mrb[37].mxu1  ;;  %v3772_v26 = vsel %vm7496_vm14, %v6030_v46, %v3771_v9  ;;  %v3428_v35 = vrot.slane %v3427_v15, 4  ;;  %v6536_v3 = vadd.f32 %v8230_v33, %v8226_v17  ;;  %v3136_v56 = vld [vmem:[#allocation2 + $0xb0] sm:$0x1]  ;;  %v8425_v7 = vadd.f32 %v8288_v1, %v8212_v36  ;;  %v7060_v17 = vld [vmem:[#allocation2 + $0x9c] sm:$0xff]  }
 0x184   : > { %8983 = vst [vmem:[#allocation21_spill] sm:$0xff] %v8391_v50  ;;  %v8397_v48 = vpop.f32.mrb[38].mxu1  ;;  %v3774_v50 = vrot.slane %v3639_v29, 5  ;;  %v3768_v39 = vsel %vm7496_vm14, %v3766_v47, %v3767_v4  ;;  %v3423_v11 = vsel %vm7233_vm9, %v3418_v54, %v3422_v28  ;;  %v3640_v4 = vld [vmem:[#allocation2 + $0x90] sm:$0xe]  ;;  %v3438_v25 = vshll.u32 %v3134_v42, 16 }
 0x185   : > { %8984 = vst [vmem:[#allocation22_spill] sm:$0xff] %v8397_v48  ;;  %v8403_v41 = vpop.f32.mrb[39].mxu1  ;;  %v3773_v48 = vrot.slane %v3771_v9, 4  ;;  %v6045_v59 = vcombine.low %v3765_v40, %v3768_v39  ;;  %v3433_v53 = vsel %vm7233_vm9, %v3428_v35, %v3432_v38  ;;  %v8430_v28 = vadd.f32 %v6536_v3, %v8302_v55  ;;  %v3641_v29 = vld [vmem:[#allocation2 + $0x94] sm:$0xf] }
 0x186   : > { %v3643_v46 = vld [vmem:[#allocation2 + $0x9c] sm:$0xe]  ;;  %v3444_v1 = vshll.u32 %v3135_v0, 16  ;;  %v3448_v9 = vshrl.u32 %v3135_v0, 16  ;;  %v3454_v15 = vshll.u32 %v3136_v56, 16  ;;  %v6031_v40 = vrot.slane %v3640_v4, 9 }
 0x187   : > { %6901 = vmatmul.mubr.bf16.gmra.mrb[124].mxu0 %v6044_v43  ;;  %v3775_v24 = vsel %vm7496_vm14, %v3773_v48, %v3774_v50  ;;  %v6539_v43 = vadd.f32 %v8244_v12, %v8240_v51  ;;  %v3642_v50 = vld [vmem:[#allocation2 + $0x98] sm:$0x1]  ;;  %v6016_v48 = vcombine.low %v3423_v11, %v3433_v53  ;;  %v3435_v12 = vshrl.u32 %v3134_v42, 16  ;;  %v3644_v38 = vld [vmem:[#allocation2 + $0xa0] sm:$0xf] }
 0x188   : > { %v6046_v33 = vcombine.low %v3772_v26, %v3775_v24  ;;  %6904 = vmatprep.mubr.bf16.mxu0 %v6045_v59  ;;  %v3440_v54 = vrot.slane %v3438_v25, 5  ;;  %v3778_v55 = vrot.slane %v3641_v29, 5  ;;  %v3781_v26 = vrot.slane %v3642_v50, 5  ;;  %v3645_v35 = vld [vmem:[#allocation2 + $0xa4] sm:$0x1] }
 0x189   : > { %v8433_v51 = vadd.f32 %v6539_v43, %v8306_v22  ;;  %5228 = vmatprep.mubr.bf16.mxu1 %v6016_v48  ;;  %v3437_v47 = vrot.slane %v3435_v12, 4  ;;  %v8437_v39 = vadd.f32 %v8336_v21, %v8212_v36  ;;  %v3446_v22 = vrot.slane %v3444_v1, 5  ;;  %v3138_v12 = vld [vmem:[#allocation2 + $0xb8] sm:$0xf] }
 0x18a   : > { %5229 = vmatmul.mubr.bf16.gmra.mrb[124].mxu1 %v7060_v17  ;;  %v3450_v3 = vrot.slane %v3448_v9, 4  ;;  %v8441_v42 = vadd.f32 %v8270_v18, %v8258_v20  ;;  %v3779_v59 = vsel %vm7496_vm14, %v6031_v40, %v3778_v55  ;;  %v3780_v24 = vrot.slane %v3778_v55, 4  ;;  %v3137_v17 = vld [vmem:[#allocation2 + $0xb4] sm:$0xf]  ;;  %v3139_v40 = vld [vmem:[#allocation2 + $0xbc] sm:$0x1] }
 0x18b   : > { %8985 = vst [vmem:[#allocation23_spill] sm:$0xff] %v8433_v51  ;;  %v3441_v11 = vor.u32 %v3440_v54, %v3437_v47  ;;  %v6032_v43 = vrot.slane %v3643_v46, 9  ;;  %v3456_v4 = vrot.slane %v3454_v15, 5  ;;  %v3785_v21 = vrot.slane %v3644_v38, 5  ;;  %v3646_v54 = vld [vmem:[#allocation2 + $0xa8] sm:$0xe] }
 0x18c   : > { %v3451_v56 = vor.u32 %v3450_v3, %v3446_v22  ;;  %v3788_v53 = vrot.slane %v3645_v35, 5  ;;  %v3782_v20 = vsel %vm7496_vm14, %v3780_v24, %v3781_v26  ;;  %v8453_v18 = vadd.f32 %v8280_v2, %v8278_v44  ;;  %v3647_v55 = vld [vmem:[#allocation2 + $0xac] sm:$0xf] }
 0x18d   : > { %v3442_v50 = vrot.slane %v3441_v11, 4  ;;  %v6542_v48 = vadd.f32 %v8272_v30, %v8260_v45  ;;  %v6047_v1 = vcombine.low %v3779_v59, %v3782_v20  ;;  %v3786_v9 = vsel %vm7496_vm14, %v6032_v43, %v3785_v21  ;;  %v7061_v3 = vld [vmem:[#allocation2 + $0xa8] sm:$0xff]   ;;  %v3648_v59 = vld [vmem:[#allocation2 + $0xb0] sm:$0x1] }
 0x18e   : > { %v8445_v0 = vpop.f32.mrb[40].mxu1  ;;  %v3452_v46 = vrot.slane %v3451_v56, 4  ;;  %v3787_v15 = vrot.slane %v3785_v21, 4  ;;  %v8469_v44 = vadd.f32 %v8346_v31, %v8212_v36  ;;  %v6545_v2 = vadd.f32 %v8290_v23, %v8282_v13  ;;  %v3649_v56 = vld [vmem:[#allocation2 + $0xb4] sm:$0xe] }
 0x18f   : > { %6905 = vmatmul.mubr.bf16.gmra.mrb[128].mxu0 %v6046_v33  ;;  %v8447_v29 = vpop.f32.mrb[41].mxu1  ;;  %v3447_v45 = vsel %vm7233_vm9, %v3442_v50, %v3446_v22  ;;  %v8474_v30 = vadd.f32 %v6542_v48, %v8316_v37  ;;  %v3459_v11 = vshrl.u32 %v3137_v17, 16  ;;  %v3462_v22 = vshll.u32 %v3137_v17, 16  ;;  %v3650_v21 = vld [vmem:[#allocation2 + $0xb8] sm:$0xf] }
 0x190   : > { %v8459_v25 = vpop.f32.mrb[42].mxu1  ;;  %v3457_v35 = vsel %vm7233_vm9, %v3452_v46, %v3456_v4  ;;  %6908 = vmatprep.mubr.bf16.mxu0 %v6047_v1  ;;  %v3789_v31 = vsel %vm7496_vm14, %v3787_v15, %v3788_v53  ;;  %v8487_v13 = vadd.f32 %v6545_v2, %v8360_v63  ;;  %v3468_v23 = vshll.u32 %v3138_v12, 16  ;;  %v3651_v46 = vld [vmem:[#allocation2 + $0xbc] sm:$0x1] }
 0x191   : > { %v8457_v33 = vpop.f32.mrb[36].mxu0  ;;  %v8465_v47 = vpop.f32.mrb[43].mxu1  ;;  %8986 = vst [vmem:[#allocation24_spill] sm:$0xff] %v8474_v30  ;;  %v6017_v24 = vcombine.low %v3447_v45, %v3457_v35  ;;  %v6048_v43 = vcombine.low %v3786_v9, %v3789_v31  ;;  %v3461_v50 = vrot.slane %v3459_v11, 4  ;;  %v3464_v4 = vrot.slane %v3462_v22, 5 }
 0x192   : > { %v8463_v38 = vpop.f32.mrb[37].mxu0  ;;  %8987 = vst [vmem:[#allocation25_spill] sm:$0xff] %v8487_v13  ;;  %v3472_v20 = vshrl.u32 %v3138_v12, 16  ;;  %v3478_v48 = vshll.u32 %v3139_v40, 16  ;;  %v3470_v53 = vrot.slane %v3468_v23, 5  ;;  %v6033_v1 = vrot.slane %v3646_v54, 9 }
 0x193   : > { %v8478_v26 = vpop.f32.mrb[38].mxu0  ;;  %5236 = vmatprep.mubr.bf16.mxu1 %v6017_v24  ;;  %v3792_v17 = vrot.slane %v3647_v55, 5  ;;  %v3795_v15 = vrot.slane %v3648_v59, 5  ;;  %v8493_v9 = vadd.f32 %v8395_v62, %v8212_v36  ;;  %v3465_v63 = vor.u32 %v3464_v4, %v3461_v50  ;;  %v3140_v59 = vld [vmem:[#allocation2 + $0xc0] sm:$0xf] }
 0x194   : > { %v8484_v37 = vpop.f32.mrb[39].mxu0  ;;  %5237 = vmatmul.mubr.bf16.gmra.mrb[128].mxu1 %v7061_v3  ;;  %v3474_v45 = vrot.slane %v3472_v20, 4  ;;  %v8497_v12 = vadd.f32 %v8330_v6, %v8326_v16  ;;  %v6034_v55 = vrot.slane %v3649_v56, 9  ;;  %v3799_v35 = vrot.slane %v3650_v21, 5  ;;  %v8988_v20 = vld [vmem:[#allocation13_spill] sm:$0xff] }
 0x195   : > { %v3793_v2 = vsel %vm7496_vm14, %v6033_v1, %v3792_v17  ;;  %v3794_v54 = vrot.slane %v3792_v17, 4  ;;  %v3466_v62 = vrot.slane %v3465_v63, 4  ;;  %v3480_v3 = vrot.slane %v3478_v48, 5  ;;  %v8989_v48 = vld [vmem:[#allocation15_spill] sm:$0xff]  ;;  %v3141_v1 = vld [vmem:[#allocation2 + $0xc4] sm:$0xf] }
 0x196   : > { %v8489_v30 = vpop.f32.mrb[44].mxu1  ;;  %v3475_v11 = vor.u32 %v3474_v45, %v3470_v53  ;;  %v3802_v22 = vrot.slane %v3651_v46, 5  ;;  %v3800_v6 = vsel %vm7496_vm14, %v6034_v55, %v3799_v35  ;;  %v6463_v23 = vadd.f32 %v8340_v5, %v8338_v57  ;;  %v7062_v63 = vld [vmem:[#allocation2 + $0xb4] sm:$0xff]   ;;  %v8991_v45 = vld [vmem:[#allocation17_spill] sm:$0xff] }
 0x197   : > { %6909 = vmatmul.mubr.bf16.gmra.mrb[132].mxu0 %v6048_v43  ;;  %v8499_v40 = vpop.f32.mrb[45].mxu1  ;;  %v3796_v16 = vsel %vm7496_vm14, %v3794_v54, %v3795_v15  ;;  %v3801_v43 = vrot.slane %v3799_v35, 4  ;;  %v3471_v21 = vsel %vm7233_vm9, %v3466_v62, %v3470_v53  ;;  %v6548_v46 = vadd.f32 %v8989_v48, %v8988_v20  ;;  %v8990_v5 = vld [vmem:[#allocation16_spill] sm:$0xff]  ;;  %v3142_v53 = vld [vmem:[#allocation2 + $0xc8] sm:$0x1] }
 0x198   : > { %v8503_v31 = vpop.f32.mrb[46].mxu1  ;;  %v3476_v50 = vrot.slane %v3475_v11, 4  ;;  %v6049_v4 = vcombine.low %v3793_v2, %v3796_v16  ;;  %v8523_v15 = vadd.f32 %v8413_v52, %v8212_v36  ;;  %v6551_v54 = vadd.f32 %v8991_v45, %v8990_v5  ;;  %v3652_v16 = vld [vmem:[#allocation2 + $0xc0] sm:$0xe]  ;;  %v3653_v20 = vld [vmem:[#allocation2 + $0xc4] sm:$0xf] }
 0x199   : > { %v8505_v24 = vpop.f32.mrb[47].mxu1  ;;  %v3803_v57 = vsel %vm7496_vm14, %v3801_v43, %v3802_v22  ;;  %v3483_v55 = vshrl.u32 %v3140_v59, 16  ;;  %v8534_v11 = vadd.f32 %v6548_v46, %v8401_v60  ;;  %v3486_v52 = vshll.u32 %v3140_v59, 16  ;;  %v3654_v60 = vld [vmem:[#allocation2 + $0xc8] sm:$0x1] }
 0x19a   : > { %v3481_v35 = vsel %vm7233_vm9, %v3476_v50, %v3480_v3  ;;  %6912 = vmatprep.mubr.bf16.mxu0 %v6049_v4  ;;  %v6050_v62 = vcombine.low %v3800_v6, %v3803_v57  ;;  %v8539_v43 = vadd.f32 %v6551_v54, %v8425_v7  ;;  %v3492_v45 = vshll.u32 %v3141_v1, 16  ;;  %v381_v7 = vld [vmem:[#allocation2 + $0xd4] sm:$0x1]  ;;  %v8555_v57 = vld [vmem:[#allocation2 + $0xcc] sm:$0xe] }
 0x19b   : > { %v8513_v56 = vpop.f32.mrb[40].mxu0  ;;  %v6018_v22 = vcombine.low %v3471_v21, %v3481_v35  ;;  %v3485_v5 = vrot.slane %v3483_v55, 4  ;;  %v3488_v13 = vrot.slane %v3486_v52, 5  ;;  %v3496_v51 = vshrl.u32 %v3141_v1, 16  ;;  %v8557_v54 = vld [vmem:[#allocation2 + $0xd0] sm:$0xf] }
 0x19c   : > { %v8519_v17 = vpop.f32.mrb[41].mxu0  ;;  %v3502_v3 = vshll.u32 %v3142_v53, 16  ;;  %v6466_v6 = vadd.f32 %v8378_v49, %v8373_v8  ;;  %v3494_v59 = vrot.slane %v3492_v45, 5  ;;  %v8545_v50 = vadd.f32 %v8389_v32, %v8385_v14 }
 0x19d   : > { %v8529_v2 = vpop.f32.mrb[42].mxu0  ;;  %5244 = vmatprep.mubr.bf16.mxu1 %v6018_v22  ;;  %v6035_v21 = vrot.slane %v3652_v16, 9  ;;  %v3806_v4 = vrot.slane %v3653_v20, 5  ;;  %v8549_v46 = vadd.f32 %v8441_v42, %v8212_v36  ;;  %v8553_v1 = vadd.f32 %v8453_v18, %v8212_v36  ;;  %v325_v20 = vld [vmem:[#allocation2 + $0xcc] sm:$0x1] }
 0x19e   : > { %v8536_v48 = vpop.f32.mrb[43].mxu0  ;;  %5245 = vmatmul.mubr.bf16.gmra.mrb[132].mxu1 %v7062_v63  ;;  %v3489_v8 = vor.u32 %v3488_v13, %v3485_v5  ;;  %v3498_v49 = vrot.slane %v3496_v51, 4  ;;  %v3504_v32 = vrot.slane %v3502_v3, 5  ;;  %v3809_v42 = vrot.slane %v3654_v60, 5  ;;  %v8992_v63 = vld [vmem:[#allocation18_spill] sm:$0xff] }
 0x19f   : > { %6913 = vmatmul.mubr.bf16.gmra.mrb[136].mxu0 %v6050_v62  ;;  %v3807_v53 = vsel %vm7496_vm14, %v6035_v21, %v3806_v4  ;;  %v3808_v55 = vrot.slane %v3806_v4, 4  ;;  %v6554_v51 = vadd.f32 %v8356_v61, %v8992_v63  ;;  %v382_v16 = vsel %vm7179_vm4, 0, %v381_v7  ;;  %v3144_v21 = vld [vmem:[#allocation2 + $0xd0] sm:$0xf] }
 0x1a0   : > { %v3490_v18 = vrot.slane %v3489_v8, 4  ;;  %v3499_v52 = vor.u32 %v3498_v49, %v3494_v59  ;;  %v8573_v45 = vadd.f32 %v8497_v12, %v8212_v36  ;;  %v8576_v3 = vadd.f32 %v6463_v23, %v8212_v36  ;;  %383 = vst [vmem:[#allocation2 + $0xd4] sm:$0x1] %v382_v16 }
 0x1a1   : > { %v3810_v60 = vsel %vm7496_vm14, %v3808_v55, %v3809_v42  ;;  %v6557_v61 = vadd.f32 %v8380_v27, %v8364_v34  ;;  %v8587_v63 = vadd.f32 %v6554_v51, %v8437_v39  ;;  %v6036_v13 = vrot.slane %v8555_v57, 9  ;;  %v8996_v51 = vld [vmem:[#allocation22_spill] sm:$0xff] }
 0x1a2   : > { %v8559_v14 = vpop.f32.mrb[48].mxu1  ;;  %v3495_v8 = vsel %vm7233_vm9, %v3490_v18, %v3494_v59  ;;  %v3500_v49 = vrot.slane %v3499_v52, 4  ;;  %v6051_v12 = vcombine.low %v3807_v53, %v3810_v60  ;;  %v3813_v55 = vrot.slane %v8557_v54, 5  ;;  %v7063_v59 = vld [vmem:[#allocation2 + $0xc0] sm:$0xff]  }
 0x1a3   : > { %v6482_v35 = vpop.f32.mrb[44].mxu0  ;;  %v8563_v62 = vpop.f32.mrb[49].mxu1  ;;  %v8592_v42 = vadd.f32 %v6557_v61, %v8469_v44  ;;  %v326_v27 = vsel %vm7171_vm3, 0, %v325_v20  ;;  %v3516_v53 = vshll.u32 %v3144_v21, 16  ;;  %v3520_v39 = vshrl.u32 %v3144_v21, 16  ;;  %v8995_v44 = vld [vmem:[#allocation21_spill] sm:$0xff] }
 0x1a4   : > { %v6483_v22 = vpop.f32.mrb[45].mxu0  ;;  %v8569_v5 = vpop.f32.mrb[50].mxu1  ;;  %v3505_v16 = vsel %vm7233_vm9, %v3500_v49, %v3504_v32  ;;  %6916 = vmatprep.mubr.bf16.mxu0 %v6051_v12  ;;  %327 = vst [vmem:[#allocation2 + $0xcc] sm:$0x1] %v326_v27  ;;  %v6472_v18 = vadd.f32 %v8463_v38, %v8457_v33  ;;  %v6475_v54 = vadd.f32 %v8484_v37, %v8478_v26  ;;  %v3815_v33 = vrot.slane %v3813_v55, 4 }
 0x1a5   : > { %v6485_v4 = vpop.f32.mrb[46].mxu0  ;;  %v8582_v7 = vpop.f32.mrb[51].mxu1  ;;  %v6019_v57 = vcombine.low %v3495_v8, %v3505_v16  ;;  %v6560_v52 = vadd.f32 %v8995_v44, %v8387_v19  ;;  %v6563_v20 = vadd.f32 %v8403_v41, %v8996_v51  ;;  %v4724_v32 = vadd.f32 %v6466_v6, %v8212_v36 }
 0x1a6   : > { %v6486_v23 = vpop.f32.mrb[47].mxu0  ;;  %v8607_v60 = vrot.slane %v3516_v53, 5  ;;  %v3522_v61 = vrot.slane %v3520_v39, 4  ;;  %v6478_v21 = vadd.f32 %v8519_v17, %v8513_v56  ;;  %v6481_v41 = vadd.f32 %v8536_v48, %v8529_v2 }
 0x1a7   : > { %5252 = vmatprep.mubr.bf16.mxu1 %v6019_v57  ;;  %v8612_v38 = vadd.f32 %v6560_v52, %v8493_v9  ;;  %v8615_v26 = vadd.f32 %v6563_v20, %v8523_v15  ;;  %v4727_v6 = vadd.f32 %v8545_v50, %v8212_v36  ;;  %v3657_v8 = vld [vmem:[#allocation2 + $0xd4] sm:$0x1]  ;;  %v6566_v9 = vadd.f32 %v8447_v29, %v8445_v0 }
 0x1a8   : > { %5253 = vmatmul.mubr.bf16.gmra.mrb[136].mxu1 %v7063_v59  ;;  %v3145_v56 = vld [vmem:[#allocation2 + $0xd4] sm:$0x1]  ;;  %v3523_v17 = vor.u32 %v3522_v61, %v8607_v60  ;;  %v6569_v15 = vadd.f32 %v8465_v47, %v8459_v25  ;;  %v3814_v2 = vsel %vm7496_vm14, %v6036_v13, %v3813_v55  ;;  %v3816_v48 = vrot.slane %v3657_v8, 5 }
 0x1a9   : > { %v3526_v27 = vshll.u32 %v3145_v56, 16  ;;  %v8628_v16 = vadd.f32 %v6483_v22, %v6482_v35  ;;  %v4732_v53 = vadd.f32 %v6472_v18, %v8212_v36  ;;  %v8632_v39 = vadd.f32 %v6566_v9, %v8549_v46 }
 0x1aa   : > { %v6582_v49 = vpop.f32.mrb[52].mxu1  ;;  %v8635_v0 = vadd.f32 %v6569_v15, %v8553_v1  ;;  %v8637_v29 = vadd.f32 %v6486_v23, %v6485_v4  ;;  %v3817_v47 = vsel %vm7496_vm14, %v3815_v33, %v3816_v48  ;;  %v4735_v35 = vadd.f32 %v6475_v54, %v8212_v36 }
 0x1ab   : > { %v6640_v19 = vpop.f32.mrb[48].mxu0  ;;  %v6583_v37 = vpop.f32.mrb[53].mxu1  ;;  %v3143_v13 = vld [vmem:[#allocation2 + $0xcc] sm:$0xf]  ;;  %v4740_v22 = vadd.f32 %v6478_v21, %v8212_v36  ;;  %v6572_v55 = vadd.f32 %v8499_v40, %v8489_v30  ;;  %v6052_v18 = vcombine.low %v3814_v2, %v3817_v47  ;;  %v3524_v44 = vrot.slane %v3523_v17, 4  ;;  %v8997_v30 = vld [vmem:[#allocation19_spill] sm:$0xff] }
 0x1ac   : > { %v6641_v12 = vpop.f32.mrb[49].mxu0  ;;  %v6585_v34 = vpop.f32.mrb[54].mxu1  ;;  %v3507_v46 = vshrl.u32 %v3143_v13, 16  ;;  %v3510_v57 = vshll.u32 %v3143_v13, 16  ;;  %v3528_v1 = vrot.slane %v3526_v27, 5  ;;  %v6575_v10 = vadd.f32 %v8505_v24, %v8503_v31  ;;  %v8998_v24 = vld [vmem:[#allocation20_spill] sm:$0xff] }
 0x1ad   : > { %v6643_v50 = vpop.f32.mrb[50].mxu0  ;;  %v6586_v59 = vpop.f32.mrb[55].mxu1  ;;  %v8646_v4 = vadd.f32 %v6572_v55, %v8573_v45  ;;  %v6642_v23 = vadd.f32 %v6641_v12, %v6640_v19  ;;  %6917 = vmatmul.mubr.bf16.gmra.mrb[140].mxu0 %v6052_v18  ;;  %v6578_v20 = vadd.f32 %v8563_v62, %v8559_v14  ;;  %v6581_v45 = vadd.f32 %v8582_v7, %v8569_v5  ;;  %v8999_v13 = vld [vmem:[#allocation23_spill] sm:$0xff] }
 0x1ae   : > { %v6644_v25 = vpop.f32.mrb[51].mxu0  ;;  %v3509_v52 = vrot.slane %v3507_v46, 4  ;;  %v3512_v54 = vrot.slane %v3510_v57, 5  ;;  %v8656_v61 = vadd.f32 %v6575_v10, %v8576_v3  ;;  %v6584_v33 = vadd.f32 %v6583_v37, %v6582_v49 }
 0x1af   : > { %v6645_v51 = vadd.f32 %v6644_v25, %v6643_v50  ;;  %v8653_v40 = vadd.f32 %v6642_v23, %v8997_v30  ;;  %v8663_v56 = vadd.f32 %v6578_v20, %v4724_v32  ;;  %v6587_v14 = vadd.f32 %v6586_v59, %v6585_v34  ;;  %v7064_v25 = vld [vmem:[#allocation2 + $0xcc] sm:$0xff]  }
 0x1b0   : > { %v3513_v31 = vor.u32 %v3512_v54, %v3509_v52  ;;  %v8665_v15 = vadd.f32 %v6581_v45, %v4727_v6  ;;  %v8667_v12 = vadd.f32 %v6584_v33, %v4732_v53  ;;  %v3529_v7 = vsel %vm7233_vm9, %v3524_v44, %v3528_v1  ;;  %v8692_v1 = vld [vmem:[%s8949_s4] ss:$0 sm:$0xff]  ;;  %v9000_v54 = vld [vmem:[#allocation24_spill] sm:$0xff] }
 0x1b1   : > { %v8661_v8 = vadd.f32 %v6645_v51, %v8998_v24  ;;  %v4743_v49 = vadd.f32 %v6481_v41, %v8212_v36  ;;  %v8672_v32 = vadd.f32 %v6587_v14, %v4735_v35  ;;  %v4751_v23 = vadd.f32 %v8692_v1, %v8637_v29 }
 0x1b2   : > { %v6588_v19 = vpop.f32.mrb[56].mxu1  ;;  %v3514_v5 = vrot.slane %v3513_v31, 4 }
 0x1b3   : > { %v6646_v21 = vpop.f32.mrb[52].mxu0  ;;  %v6589_v62 = vpop.f32.mrb[57].mxu1 }
 0x1b4   : > { %v6647_v17 = vpop.f32.mrb[53].mxu0  ;;  %v6590_v2 = vadd.f32 %v6589_v62, %v6588_v19  ;;  %v6591_v48 = vpop.f32.mrb[58].mxu1  ;;  %v3519_v53 = vsel %vm7233_vm9, %v3514_v5, %v8607_v60 }
 0x1b5   : > { %v6648_v9 = vadd.f32 %v6647_v17, %v6646_v21  ;;  %v6649_v3 = vpop.f32.mrb[54].mxu0  ;;  %v6592_v27 = vpop.f32.mrb[59].mxu1  ;;  %v6020_v47 = vcombine.low %v3519_v53, %v3529_v7  ;;  %v9002_v17 = vld [vmem:[#allocation6_spill] sm:$0xff] }
 0x1b6   : > { %v6650_v37 = vpop.f32.mrb[55].mxu0  ;;  %v8677_v50 = vadd.f32 %v6590_v2, %v4740_v22  ;;  %v6593_v59 = vadd.f32 %v6592_v27, %v6591_v48  ;;  %v4748_v22 = vadd.f32 %v8628_v16, %v8212_v36  ;;  %v9001_v16 = vld [vmem:[#allocation25_spill] sm:$0xff]  ;;  %v4756_v29 = vadd.f32 %v8692_v1, %v9002_v17  ;;  %v9003_v2 = vld [vmem:[#allocation7_spill] sm:$0xff] }
 0x1b7   : > { %v8675_v34 = vadd.f32 %v6648_v9, %v8430_v28  ;;  %v6651_v6 = vadd.f32 %v6650_v37, %v6649_v3  ;;  %5260 = vmatprep.mubr.bf16.mxu1 %v6020_v47  ;;  %v4759_v48 = vadd.f32 %v8692_v1, %v9003_v2 }
 0x1b8   : > { %v8685_v41 = vadd.f32 %v6593_v59, %v4743_v49  ;;  %5261 = vmatmul.mubr.bf16.gmra.mrb[140].mxu1 %v7064_v25 }
 0x1b9   : > { %v8683_v55 = vadd.f32 %v6651_v6, %v8999_v13 }
 0x1ba   : > { %v6594_v18 = vpop.f32.mrb[60].mxu1 }
 0x1bb   : > { %v6652_v35 = vpop.f32.mrb[56].mxu0  ;;  %v6595_v46 = vpop.f32.mrb[61].mxu1 }
 0x1bc   : > { %v6653_v28 = vpop.f32.mrb[57].mxu0  ;;  %v6596_v58 = vadd.f32 %v6595_v46, %v6594_v18  ;;  %v6597_v60 = vpop.f32.mrb[62].mxu1  ;;  %v9004_v46 = vld [vmem:[#allocation8_spill] sm:$0xff] }
 0x1bd   : > { %v6654_v57 = vadd.f32 %v6653_v28, %v6652_v35  ;;  %v6655_v44 = vpop.f32.mrb[58].mxu0  ;;  %v6598_v52 = vpop.f32.mrb[63].mxu1 }
 0x1be   : > { %v6656_v10 = vpop.f32.mrb[59].mxu0  ;;  %v8699_v30 = vadd.f32 %v6596_v58, %v4748_v22  ;;  %v6599_v36 = vadd.f32 %v6598_v52, %v6597_v60  ;;  %v4764_v22 = vadd.f32 %v8692_v1, %v9004_v46 }
 0x1bf   : > { %v8697_v51 = vadd.f32 %v6654_v57, %v9000_v54  ;;  %v6657_v20 = vadd.f32 %v6656_v10, %v6655_v44 }
 0x1c0   : > { %v8704_v45 = vadd.f32 %v6599_v36, %v4751_v23  ;;  %v9005_v23 = vld [vmem:[#allocation9_spill] sm:$0xff] }
 0x1c1   : > { %v8702_v21 = vadd.f32 %v6657_v20, %v9001_v16  ;;  %v4767_v10 = vadd.f32 %v8692_v1, %v9005_v23 }
 0x1c2   : > { %v6600_v19 = vpop.f32.mrb[64].mxu1 }
 0x1c3   : > { %v6658_v33 = vpop.f32.mrb[60].mxu0  ;;  %v6601_v24 = vpop.f32.mrb[65].mxu1 }
 0x1c4   : > { %v6659_v31 = vpop.f32.mrb[61].mxu0  ;;  %v6602_v9 = vadd.f32 %v6601_v24, %v6600_v19  ;;  %v6603_v3 = vpop.f32.mrb[66].mxu1 }
 0x1c5   : > { %v6660_v14 = vadd.f32 %v6659_v31, %v6658_v33  ;;  %v6661_v62 = vpop.f32.mrb[62].mxu0  ;;  %v6604_v7 = vpop.f32.mrb[67].mxu1 }
 0x1c6   : > { %v6662_v5 = vpop.f32.mrb[63].mxu0  ;;  %v8713_v27 = vadd.f32 %v6602_v9, %v4756_v29  ;;  %v6605_v6 = vadd.f32 %v6604_v7, %v6603_v3  ;;  %v9006_v29 = vld [vmem:[#allocation10_spill] sm:$0xff] }
 0x1c7   : > { %v8711_v49 = vadd.f32 %v6660_v14, %v8534_v11  ;;  %v6663_v37 = vadd.f32 %v6662_v5, %v6661_v62  ;;  %v4772_v14 = vadd.f32 %v8692_v1, %v9006_v29 }
 0x1c8   : > { %v8718_v53 = vadd.f32 %v6605_v6, %v4759_v48  ;;  %v9007_v48 = vld [vmem:[#allocation11_spill] sm:$0xff] }
 0x1c9   : > { %v8716_v59 = vadd.f32 %v6663_v37, %v8539_v43  ;;  %v4775_v5 = vadd.f32 %v8692_v1, %v9007_v48 }
 0x1ca   : > { %v6606_v13 = vpop.f32.mrb[68].mxu1 }
 0x1cb   : > { %v6664_v25 = vpop.f32.mrb[64].mxu0  ;;  %v6607_v28 = vpop.f32.mrb[69].mxu1 }
 0x1cc   : > { %v6665_v47 = vpop.f32.mrb[65].mxu0  ;;  %v6608_v57 = vadd.f32 %v6607_v28, %v6606_v13  ;;  %v6609_v44 = vpop.f32.mrb[70].mxu1 }
 0x1cd   : > { %v6666_v35 = vadd.f32 %v6665_v47, %v6664_v25  ;;  %v6667_v18 = vpop.f32.mrb[66].mxu0  ;;  %v6610_v43 = vpop.f32.mrb[71].mxu1 }
 0x1ce   : > { %v6668_v11 = vpop.f32.mrb[67].mxu0  ;;  %v8727_v52 = vadd.f32 %v6608_v57, %v4764_v22  ;;  %v6611_v54 = vadd.f32 %v6610_v43, %v6609_v44 }
 0x1cf   : > { %v8723_v58 = vadd.f32 %v6666_v35, %v8587_v63  ;;  %v6669_v60 = vadd.f32 %v6668_v11, %v6667_v18 }
 0x1d0   : > { %v8732_v36 = vadd.f32 %v6611_v54, %v4767_v10 }
 0x1d1   : > { %v8730_v20 = vadd.f32 %v6669_v60, %v8592_v42 }
 0x1d3   : > { %v6670_v16 = vpop.f32.mrb[68].mxu0  ;;  %v6612_v24 = vpop.f32.mrb[72].mxu1 }
 0x1d4   : > { %v6671_v33 = vpop.f32.mrb[69].mxu0  ;;  %v6613_v17 = vpop.f32.mrb[73].mxu1 }
 0x1d5   : > { %v6672_v19 = vadd.f32 %v6671_v33, %v6670_v16  ;;  %v6673_v31 = vpop.f32.mrb[70].mxu0  ;;  %v6614_v3 = vadd.f32 %v6613_v17, %v6612_v24  ;;  %v6615_v2 = vpop.f32.mrb[74].mxu1  ;;  %v9008_v33 = vld [vmem:[#allocation12_spill] sm:$0xff] }
 0x1d6   : > { %v6674_v63 = vpop.f32.mrb[71].mxu0  ;;  %v6616_v42 = vpop.f32.mrb[75].mxu1 }
 0x1d7   : > { %v8737_v62 = vadd.f32 %v6672_v19, %v8612_v38  ;;  %v6675_v9 = vadd.f32 %v6674_v63, %v6673_v31  ;;  %v8744_v37 = vadd.f32 %v6614_v3, %v4772_v14  ;;  %v6617_v6 = vadd.f32 %v6616_v42, %v6615_v2  ;;  %v9009_v14 = vld [vmem:[#allocation14_spill] sm:$0xff] }
 0x1d8   : > { %v4780_v19 = vadd.f32 %v8692_v1, %v9008_v33 }
 0x1d9   : > { %v8742_v7 = vadd.f32 %v6675_v9, %v8615_v26  ;;  %v8746_v47 = vadd.f32 %v6617_v6, %v4775_v5 }
 0x1db   : > { %v6676_v25 = vpop.f32.mrb[72].mxu0 }
 0x1dc   : > { %v6677_v13 = vpop.f32.mrb[73].mxu0 }
 0x1dd   : > { %v6678_v35 = vadd.f32 %v6677_v13, %v6676_v25  ;;  %v6679_v38 = vpop.f32.mrb[74].mxu0 }
 0x1de   : > { %v6680_v18 = vpop.f32.mrb[75].mxu0 }
 0x1df   : > { %v8749_v28 = vadd.f32 %v6678_v35, %v8632_v39  ;;  %v6681_v46 = vadd.f32 %v6680_v18, %v6679_v38 }
 0x1e1   : > { %v8752_v22 = vadd.f32 %v6681_v46, %v8635_v0 }
 0x1e3   : > { %v6682_v11 = vpop.f32.mrb[76].mxu0 }
 0x1e4   : > { %v6683_v26 = vpop.f32.mrb[77].mxu0 }
 0x1e5   : > { %v6684_v57 = vadd.f32 %v6683_v26, %v6682_v11  ;;  %v6685_v44 = vpop.f32.mrb[78].mxu0 }
 0x1e6   : > { %v6686_v60 = vpop.f32.mrb[79].mxu0 }
 0x1e7   : > { %v8755_v43 = vadd.f32 %v6684_v57, %v8646_v4  ;;  %v6687_v23 = vadd.f32 %v6686_v60, %v6685_v44  ;;  %v6618_v54 = vpop.f32.mrb[76].mxu1  ;;  %v4783_v4 = vadd.f32 %v8692_v1, %v9009_v14 }
 0x1e8   : > { %v6619_v16 = vpop.f32.mrb[77].mxu1 }
 0x1e9   : > { %v8758_v10 = vadd.f32 %v6687_v23, %v8656_v61  ;;  %v6620_v0 = vadd.f32 %v6619_v16, %v6618_v54  ;;  %v6621_v31 = vpop.f32.mrb[78].mxu1 }
 0x1ea   : > { %v6622_v17 = vpop.f32.mrb[79].mxu1 }
 0x1eb   : > { %v6688_v39 = vpop.f32.mrb[80].mxu0  ;;  %v8764_v9 = vadd.f32 %v6620_v0, %v4780_v19  ;;  %v6623_v3 = vadd.f32 %v6622_v17, %v6621_v31 }
 0x1ec   : > { %v6689_v24 = vpop.f32.mrb[81].mxu0 }
 0x1ed   : > { %v6690_v63 = vadd.f32 %v6689_v24, %v6688_v39  ;;  %v6691_v29 = vpop.f32.mrb[82].mxu0  ;;  %v8769_v48 = vadd.f32 %v6623_v3, %v4783_v4 }
 0x1ee   : > { %v6692_v61 = vpop.f32.mrb[83].mxu0 }
 0x1ef   : > { %v8767_v2 = vadd.f32 %v6690_v63, %v8663_v56  ;;  %v6693_v42 = vadd.f32 %v6692_v61, %v6691_v29  ;;  %v6752_v6 = vpop.f32.mrb[80].mxu1 }
 0x1f0   : > { %v6753_v25 = vpop.f32.mrb[81].mxu1 }
 0x1f1   : > { %v8772_v5 = vadd.f32 %v6693_v42, %v8665_v15  ;;  %v6754_v13 = vadd.f32 %v6753_v25, %v6752_v6  ;;  %v6755_v35 = vpop.f32.mrb[82].mxu1 }
 0x1f2   : > { %v6756_v18 = vpop.f32.mrb[83].mxu1 }
 0x1f3   : > { %v6694_v38 = vpop.f32.mrb[84].mxu0  ;;  %v6757_v46 = vadd.f32 %v6756_v18, %v6755_v35  ;;  %v8775_v11 = vadd.f32 %v6754_v13, %v8653_v40 }
 0x1f4   : > { %v6695_v1 = vpop.f32.mrb[85].mxu0 }
 0x1f5   : > { %v6696_v26 = vadd.f32 %v6695_v1, %v6694_v38  ;;  %v6697_v56 = vpop.f32.mrb[86].mxu0  ;;  %v8778_v44 = vadd.f32 %v6757_v46, %v8661_v8 }
 0x1f6   : > { %v6698_v57 = vpop.f32.mrb[87].mxu0 }
 0x1f7   : > { %v8781_v15 = vadd.f32 %v6696_v26, %v8667_v12  ;;  %v6699_v60 = vadd.f32 %v6698_v57, %v6697_v56  ;;  %v6758_v23 = vpop.f32.mrb[84].mxu1 }
 0x1f8   : > { %v6759_v16 = vpop.f32.mrb[85].mxu1 }
 0x1f9   : > { %v8784_v54 = vadd.f32 %v6699_v60, %v8672_v32  ;;  %v6760_v39 = vadd.f32 %v6759_v16, %v6758_v23  ;;  %v6761_v33 = vpop.f32.mrb[86].mxu1 }
 0x1fa   : > { %v6762_v19 = vpop.f32.mrb[87].mxu1 }
 0x1fb   : > { %v6763_v40 = vadd.f32 %v6762_v19, %v6761_v33  ;;  %v8787_v0 = vadd.f32 %v6760_v39, %v8675_v34 }
 0x1fd   : > { %v6700_v31 = vpop.f32.mrb[88].mxu0  ;;  %v8790_v8 = vadd.f32 %v6763_v40, %v8683_v55 }
 0x1fe   : > { %v6701_v24 = vpop.f32.mrb[89].mxu0 }
 0x1ff   : > { %v6702_v12 = vadd.f32 %v6701_v24, %v6700_v31  ;;  %v6703_v63 = vpop.f32.mrb[90].mxu0 }
 0x200   : > { %v6764_v17 = vpop.f32.mrb[88].mxu1  ;;  %v6704_v29 = vpop.f32.mrb[91].mxu0 }
 0x201   : > { %v6765_v14 = vpop.f32.mrb[89].mxu1  ;;  %v8793_v32 = vadd.f32 %v6702_v12, %v8677_v50  ;;  %v6705_v4 = vadd.f32 %v6704_v29, %v6703_v63 }
 0x202   : > { %v6766_v3 = vadd.f32 %v6765_v14, %v6764_v17  ;;  %v6767_v61 = vpop.f32.mrb[90].mxu1 }
 0x203   : > { %v6768_v42 = vpop.f32.mrb[91].mxu1  ;;  %v8796_v34 = vadd.f32 %v6705_v4, %v8685_v41 }
 0x204   : > { %v6769_v6 = vadd.f32 %v6768_v42, %v6767_v61  ;;  %v8799_v55 = vadd.f32 %v6766_v3, %v8697_v51 }
 0x206   : > { %v8802_v25 = vadd.f32 %v6769_v6, %v8702_v21 }
 0x207   : > { %v6706_v13 = vpop.f32.mrb[92].mxu0 }
 0x208   : > { %v6707_v35 = vpop.f32.mrb[93].mxu0 }
 0x209   : > { %v6708_v38 = vadd.f32 %v6707_v35, %v6706_v13  ;;  %v6709_v18 = vpop.f32.mrb[94].mxu0 }
 0x20a   : > { %v6710_v50 = vpop.f32.mrb[95].mxu0 }
 0x20b   : > { %v6770_v1 = vpop.f32.mrb[92].mxu1  ;;  %v8805_v46 = vadd.f32 %v6708_v38, %v8699_v30  ;;  %v6711_v26 = vadd.f32 %v6710_v50, %v6709_v18 }
 0x20c   : > { %v6771_v56 = vpop.f32.mrb[93].mxu1 }
 0x20d   : > { %v6772_v41 = vadd.f32 %v6771_v56, %v6770_v1  ;;  %v6773_v57 = vpop.f32.mrb[94].mxu1  ;;  %v8808_v60 = vadd.f32 %v6711_v26, %v8704_v45 }
 0x20e   : > { %v6774_v51 = vpop.f32.mrb[95].mxu1 }
 0x20f   : > { %v6775_v23 = vadd.f32 %v6774_v51, %v6773_v57  ;;  %v8811_v21 = vadd.f32 %v6772_v41, %v8711_v49 }
 0x211   : > { %v8814_v16 = vadd.f32 %v6775_v23, %v8716_v59  ;;  %v6712_v39 = vpop.f32.mrb[96].mxu0 }
 0x212   : > { %v6713_v33 = vpop.f32.mrb[97].mxu0 }
 0x213   : > { %v6714_v19 = vadd.f32 %v6713_v33, %v6712_v39  ;;  %v6715_v30 = vpop.f32.mrb[98].mxu0 }
 0x214   : > { %v6716_v40 = vpop.f32.mrb[99].mxu0 }
 0x215   : > { %v6776_v31 = vpop.f32.mrb[96].mxu1  ;;  %v8817_v24 = vadd.f32 %v6714_v19, %v8713_v27  ;;  %v6717_v12 = vadd.f32 %v6716_v40, %v6715_v30 }
 0x216   : > { %v6777_v45 = vpop.f32.mrb[97].mxu1 }
 0x217   : > { %v6778_v63 = vadd.f32 %v6777_v45, %v6776_v31  ;;  %v6779_v17 = vpop.f32.mrb[98].mxu1  ;;  %v8820_v29 = vadd.f32 %v6717_v12, %v8718_v53 }
 0x218   : > { %v6780_v49 = vpop.f32.mrb[99].mxu1 }
 0x219   : > { %v6781_v14 = vadd.f32 %v6780_v49, %v6779_v17  ;;  %v8823_v59 = vadd.f32 %v6778_v63, %v8723_v58 }
 0x21b   : > { %v8826_v4 = vadd.f32 %v6781_v14, %v8730_v20  ;;  %v6718_v3 = vpop.f32.mrb[100].mxu0 }
 0x21c   : > { %v6719_v61 = vpop.f32.mrb[101].mxu0 }
 0x21d   : > { %v6720_v42 = vadd.f32 %v6719_v61, %v6718_v3  ;;  %v6721_v27 = vpop.f32.mrb[102].mxu0 }
 0x21e   : > { %v6722_v6 = vpop.f32.mrb[103].mxu0 }
 0x21f   : > { %v6782_v13 = vpop.f32.mrb[100].mxu1  ;;  %v8829_v35 = vadd.f32 %v6720_v42, %v8727_v52  ;;  %v6723_v38 = vadd.f32 %v6722_v6, %v6721_v27 }
 0x220   : > { %v6783_v53 = vpop.f32.mrb[101].mxu1 }
 0x221   : > { %v6784_v18 = vadd.f32 %v6783_v53, %v6782_v13  ;;  %v6785_v50 = vpop.f32.mrb[102].mxu1  ;;  %v8832_v1 = vadd.f32 %v6723_v38, %v8732_v36 }
 0x222   : > { %v6786_v58 = vpop.f32.mrb[103].mxu1 }
 0x223   : > { %v6787_v26 = vadd.f32 %v6786_v58, %v6785_v50  ;;  %v8835_v20 = vadd.f32 %v6784_v18, %v8737_v62 }
 0x225   : > { %v8838_v56 = vadd.f32 %v6787_v26, %v8742_v7 }
 0x226   : > { %v6724_v41 = vpop.f32.mrb[104].mxu0 }
 0x227   : > { %v6725_v57 = vpop.f32.mrb[105].mxu0 }
 0x228   : > { %v6726_v51 = vadd.f32 %v6725_v57, %v6724_v41  ;;  %v6727_v52 = vpop.f32.mrb[106].mxu0 }
 0x229   : > { %v6788_v23 = vpop.f32.mrb[104].mxu1  ;;  %v6728_v39 = vpop.f32.mrb[107].mxu0 }
 0x22a   : > { %v6789_v33 = vpop.f32.mrb[105].mxu1  ;;  %v8841_v19 = vadd.f32 %v6726_v51, %v8744_v37  ;;  %v6729_v36 = vadd.f32 %v6728_v39, %v6727_v52 }
 0x22b   : > { %v6790_v30 = vadd.f32 %v6789_v33, %v6788_v23  ;;  %v6791_v40 = vpop.f32.mrb[106].mxu1 }
 0x22c   : > { %v6792_v31 = vpop.f32.mrb[107].mxu1  ;;  %v8844_v62 = vadd.f32 %v6729_v36, %v8746_v47 }
 0x22d   : > { %v6793_v12 = vadd.f32 %v6792_v31, %v6791_v40  ;;  %v8847_v7 = vadd.f32 %v6790_v30, %v8749_v28 }
 0x22f   : > { %v8850_v45 = vadd.f32 %v6793_v12, %v8752_v22 }
 0x234   : > { %v6794_v63 = vpop.f32.mrb[108].mxu1 }
 0x235   : > { %v6795_v17 = vpop.f32.mrb[109].mxu1 }
 0x236   : > { %v6796_v14 = vadd.f32 %v6795_v17, %v6794_v63  ;;  %v6797_v37 = vpop.f32.mrb[110].mxu1 }
 0x237   : > { %v6798_v61 = vpop.f32.mrb[111].mxu1 }
 0x238   : > { %v6799_v6 = vadd.f32 %v6798_v61, %v6797_v37  ;;  %v8853_v47 = vadd.f32 %v6796_v14, %v8755_v43 }
 0x23a   : > { %v6730_v49 = vpop.f32.mrb[108].mxu0  ;;  %v8859_v22 = vadd.f32 %v6799_v6, %v8758_v10 }
 0x23b   : > { %v6731_v3 = vpop.f32.mrb[109].mxu0 }
 0x23c   : > { %v6732_v42 = vadd.f32 %v6731_v3, %v6730_v49  ;;  %v6733_v27 = vpop.f32.mrb[110].mxu0 }
 0x23d   : > { %v6734_v13 = vpop.f32.mrb[111].mxu0 }
 0x23e   : > { %v8856_v28 = vadd.f32 %v6732_v42, %v8764_v9  ;;  %v6735_v38 = vadd.f32 %v6734_v13, %v6733_v27 }
 0x240   : > { %v8862_v53 = vadd.f32 %v6735_v38, %v8769_v48  ;;  %v6800_v26 = vpop.f32.mrb[112].mxu1 }
 0x241   : > { %v6801_v57 = vpop.f32.mrb[113].mxu1 }
 0x242   : > { %v6890_v18 = vpop.f32.mrb[112].mxu0  ;;  %v6802_v52 = vadd.f32 %v6801_v57, %v6800_v26  ;;  %v6803_v23 = vpop.f32.mrb[114].mxu1 }
 0x243   : > { %v5312_v50 = vadd.f32 %v6890_v18, %v8787_v0  ;;  %v5303_v58 = vpop.f32.mrb[113].mxu0  ;;  %v6804_v48 = vpop.f32.mrb[115].mxu1 }
 0x244   : > { %v5304_v43 = vadd.f32 %v5303_v58, %v8775_v11  ;;  %v6891_v41 = vpop.f32.mrb[114].mxu0  ;;  %v6805_v30 = vadd.f32 %v6804_v48, %v6803_v23  ;;  %v8869_v0 = vadd.f32 %v6802_v52, %v8767_v2 }
 0x245   : > { %v5315_v9 = vadd.f32 %v6891_v41, %v8790_v8  ;;  %v5306_v51 = vpop.f32.mrb[115].mxu0  ;;  %v5432_v33 = vmax.f32 %v5312_v50, 0.0 }
 0x246   : > { %v5430_v10 = vmax.f32 %v5304_v43, 0.0  ;;  %v5307_v39 = vadd.f32 %v5306_v51, %v8778_v44  ;;  %v8879_v40 = vadd.f32 %v6805_v30, %v8772_v5 }
 0x247   : > { %v5433_v36 = vmax.f32 %v5315_v9, 0.0  ;;  %v5501_v14 = vmul.f32 %v5432_v33, %v5432_v33 }
 0x248   : > { %v5431_v11 = vmax.f32 %v5307_v39, 0.0  ;;  %v5499_v44 = vmul.f32 %v5430_v10, %v5430_v10 }
 0x249   : > { %v6298_v8 = vpack.c.bf16 %v5433_v36, %v5432_v33  ;;  %v5502_v27 = vmul.f32 %v5433_v36, %v5433_v36 }
 0x24a   : > { %v5462_v31 = vadd.f32 %v5431_v11, %v5430_v10  ;;  %v5500_v12 = vmul.f32 %v5431_v11, %v5431_v11  ;;  %v6293_v63 = vpack.c.bf16 %v5431_v11, %v5430_v10  ;;  %v6894_v17 = vpop.f32.mrb[116].mxu0  ;;  %v6806_v13 = vpop.f32.mrb[116].mxu1 }
 0x24b   : > { %6385 = vst [vmem:[%s8876_s25 + $0x8] sm:$0xff] %v6298_v8   ;;  %v5328_v2 = vadd.f32 %v6894_v17, %v8811_v21  ;;  %v5319_v49 = vpop.f32.mrb[117].mxu0  ;;  %v6807_v26 = vpop.f32.mrb[117].mxu1 }
 0x24c   : > { %v5463_v37 = vadd.f32 %v5462_v31, %v5432_v33  ;;  %v5531_v3 = vadd.f32 %v5500_v12, %v5499_v44  ;;  %6294 = vst [vmem:[%s8876_s25] sm:$0xff] %v6293_v63   ;;  %v5320_v61 = vadd.f32 %v5319_v49, %v8799_v55  ;;  %v6895_v42 = vpop.f32.mrb[118].mxu0  ;;  %v6808_v41 = vadd.f32 %v6807_v26, %v6806_v13  ;;  %v6809_v57 = vpop.f32.mrb[118].mxu1 }
 0x24d   : > { %v5331_v5 = vadd.f32 %v6895_v42, %v8814_v16  ;;  %v5322_v6 = vpop.f32.mrb[119].mxu0  ;;  %v5436_v21 = vmax.f32 %v5328_v2, 0.0  ;;  %v6810_v23 = vpop.f32.mrb[119].mxu1 }
 0x24e   : > { %v5532_v38 = vadd.f32 %v5531_v3, %v5501_v14  ;;  %v5434_v18 = vmax.f32 %v5320_v61, 0.0  ;;  %v5464_v50 = vadd.f32 %v5463_v37, %v5433_v36  ;;  %v5323_v58 = vadd.f32 %v5322_v6, %v8802_v25 }
 0x24f   : > { %v5437_v43 = vmax.f32 %v5331_v5, 0.0  ;;  %v6811_v10 = vadd.f32 %v6810_v23, %v6809_v57  ;;  %v8888_v39 = vadd.f32 %v6808_v41, %v8781_v15  ;;  %v5505_v31 = vmul.f32 %v5436_v21, %v5436_v21 }
 0x250   : > { %v5465_v9 = vadd.f32 %v5464_v50, %v5434_v18  ;;  %v5503_v51 = vmul.f32 %v5434_v18, %v5434_v18  ;;  %v5533_v55 = vadd.f32 %v5532_v38, %v5502_v27  ;;  %v5435_v52 = vmax.f32 %v5323_v58, 0.0 }
 0x251   : > { %v6308_v16 = vpack.c.bf16 %v5437_v43, %v5436_v21  ;;  %v8893_v44 = vadd.f32 %v6811_v10, %v8784_v54  ;;  %v5506_v2 = vmul.f32 %v5437_v43, %v5437_v43 }
 0x252   : > { %v5534_v48 = vadd.f32 %v5533_v55, %v5503_v51  ;;  %v5466_v33 = vadd.f32 %v5465_v9, %v5435_v52  ;;  %v5504_v25 = vmul.f32 %v5435_v52, %v5435_v52  ;;  %v6303_v36 = vpack.c.bf16 %v5435_v52, %v5434_v18  ;;  %v6898_v30 = vpop.f32.mrb[120].mxu0 }
 0x253   : > { %6387 = vst [vmem:[%s8876_s25 + $0x18] sm:$0xff] %v6308_v16   ;;  %v5344_v11 = vadd.f32 %v6898_v30, %v8835_v20  ;;  %v5335_v8 = vpop.f32.mrb[121].mxu0 }
 0x254   : > { %v5467_v12 = vadd.f32 %v5466_v33, %v5436_v21  ;;  %v5535_v63 = vadd.f32 %v5534_v48, %v5504_v25  ;;  %6386 = vst [vmem:[%s8876_s25 + $0x10] sm:$0xff] %v6303_v36   ;;  %v5336_v17 = vadd.f32 %v5335_v8, %v8823_v59  ;;  %v6899_v15 = vpop.f32.mrb[122].mxu0  ;;  %v6812_v54 = vpop.f32.mrb[120].mxu1 }
 0x255   : > { %v5347_v49 = vadd.f32 %v6899_v15, %v8838_v56  ;;  %v5338_v14 = vpop.f32.mrb[123].mxu0  ;;  %v5440_v42 = vmax.f32 %v5344_v11, 0.0  ;;  %v6813_v18 = vpop.f32.mrb[121].mxu1 }
 0x256   : > { %v5536_v37 = vadd.f32 %v5535_v63, %v5505_v31  ;;  %v5438_v3 = vmax.f32 %v5336_v17, 0.0  ;;  %v5468_v61 = vadd.f32 %v5467_v12, %v5437_v43  ;;  %v5339_v20 = vadd.f32 %v5338_v14, %v8826_v4  ;;  %v6815_v58 = vpop.f32.mrb[122].mxu1 }
 0x257   : > { %v5441_v27 = vmax.f32 %v5347_v49, 0.0  ;;  %v6814_v50 = vadd.f32 %v6813_v18, %v6812_v54  ;;  %v6816_v57 = vpop.f32.mrb[123].mxu1  ;;  %v5509_v52 = vmul.f32 %v5440_v42, %v5440_v42 }
 0x258   : > { %v5469_v5 = vadd.f32 %v5468_v61, %v5438_v3  ;;  %v5507_v6 = vmul.f32 %v5438_v3, %v5438_v3  ;;  %v5537_v13 = vadd.f32 %v5536_v37, %v5506_v2  ;;  %v5439_v38 = vmax.f32 %v5339_v20, 0.0 }
 0x259   : > { %v6318_v59 = vpack.c.bf16 %v5441_v27, %v5440_v42  ;;  %v6817_v51 = vadd.f32 %v6816_v57, %v6815_v58  ;;  %v8902_v55 = vadd.f32 %v6814_v50, %v8793_v32  ;;  %v5510_v33 = vmul.f32 %v5441_v27, %v5441_v27 }
 0x25a   : > { %v5538_v56 = vadd.f32 %v5537_v13, %v5507_v6  ;;  %v5470_v26 = vadd.f32 %v5469_v5, %v5439_v38  ;;  %v5508_v21 = vmul.f32 %v5439_v38, %v5439_v38  ;;  %v6313_v41 = vpack.c.bf16 %v5439_v38, %v5438_v3  ;;  %v6902_v43 = vpop.f32.mrb[124].mxu0 }
 0x25b   : > { %6389 = vst [vmem:[%s8876_s25 + $0x28] sm:$0xff] %v6318_v59   ;;  %v5360_v4 = vadd.f32 %v6902_v43, %v8853_v47  ;;  %v5351_v9 = vpop.f32.mrb[125].mxu0  ;;  %v8908_v30 = vadd.f32 %v6817_v51, %v8796_v34 }
 0x25c   : > { %v5471_v23 = vadd.f32 %v5470_v26, %v5440_v42  ;;  %v5539_v16 = vadd.f32 %v5538_v56, %v5508_v21  ;;  %6388 = vst [vmem:[%s8876_s25 + $0x20] sm:$0xff] %v6313_v41   ;;  %v5352_v10 = vadd.f32 %v5351_v9, %v8847_v7  ;;  %v6903_v48 = vpop.f32.mrb[126].mxu0 }
 0x25d   : > { %v5363_v25 = vadd.f32 %v6903_v48, %v8859_v22  ;;  %v5354_v36 = vpop.f32.mrb[127].mxu0  ;;  %v5444_v31 = vmax.f32 %v5360_v4, 0.0  ;;  %v6818_v2 = vpop.f32.mrb[124].mxu1 }
 0x25e   : > { %v5540_v47 = vadd.f32 %v5539_v16, %v5509_v52  ;;  %v5442_v11 = vmax.f32 %v5352_v10, 0.0  ;;  %v5472_v8 = vadd.f32 %v5471_v23, %v5441_v27  ;;  %v5355_v32 = vadd.f32 %v5354_v36, %v8850_v45  ;;  %v6819_v22 = vpop.f32.mrb[125].mxu1 }
 0x25f   : > { %v5445_v12 = vmax.f32 %v5363_v25, 0.0  ;;  %v6821_v20 = vpop.f32.mrb[126].mxu1  ;;  %v5513_v42 = vmul.f32 %v5444_v31, %v5444_v31  ;;  %v6820_v45 = vadd.f32 %v6819_v22, %v6818_v2 }
 0x260   : > { %v5473_v63 = vadd.f32 %v5472_v8, %v5442_v11  ;;  %v5511_v17 = vmul.f32 %v5442_v11, %v5442_v11  ;;  %v5541_v15 = vadd.f32 %v5540_v47, %v5510_v33  ;;  %v5443_v7 = vmax.f32 %v5355_v32, 0.0  ;;  %v6822_v5 = vpop.f32.mrb[127].mxu1 }
 0x261   : > { %v6328_v49 = vpack.c.bf16 %v5445_v12, %v5444_v31  ;;  %v6823_v18 = vadd.f32 %v6822_v5, %v6821_v20  ;;  %v5514_v50 = vmul.f32 %v5445_v12, %v5445_v12  ;;  %v5231_v26 = vadd.f32 %v6820_v45, %v8805_v46 }
 0x262   : > { %v5542_v14 = vadd.f32 %v5541_v15, %v5511_v17  ;;  %v5474_v37 = vadd.f32 %v5473_v63, %v5443_v7  ;;  %v5512_v34 = vmul.f32 %v5443_v7, %v5443_v7  ;;  %v6323_v3 = vpack.c.bf16 %v5443_v7, %v5442_v11  ;;  %v6906_v61 = vpop.f32.mrb[128].mxu0 }
 0x263   : > { %6391 = vst [vmem:[%s8876_s25 + $0x38] sm:$0xff] %v6328_v49   ;;  %v5376_v27 = vadd.f32 %v6906_v61, %v8888_v39  ;;  %v5367_v54 = vpop.f32.mrb[129].mxu0  ;;  %v5234_v9 = vadd.f32 %v6823_v18, %v8808_v60 }
 0x264   : > { %v5475_v6 = vadd.f32 %v5474_v37, %v5444_v31  ;;  %v5543_v13 = vadd.f32 %v5542_v14, %v5512_v34  ;;  %6390 = vst [vmem:[%s8876_s25 + $0x30] sm:$0xff] %v6323_v3   ;;  %v5368_v38 = vadd.f32 %v5367_v54, %v8869_v0  ;;  %v6907_v59 = vpop.f32.mrb[130].mxu0 }
 0x265   : > { %v5379_v58 = vadd.f32 %v6907_v59, %v8893_v44  ;;  %v5370_v56 = vpop.f32.mrb[131].mxu0  ;;  %v5448_v57 = vmax.f32 %v5376_v27, 0.0 }
 0x266   : > { %v5544_v21 = vadd.f32 %v5543_v13, %v5513_v42  ;;  %v5446_v41 = vmax.f32 %v5368_v38, 0.0  ;;  %v5476_v43 = vadd.f32 %v5475_v6, %v5445_v12  ;;  %v5371_v39 = vadd.f32 %v5370_v56, %v8879_v40 }
 0x267   : > { %v5449_v4 = vmax.f32 %v5379_v58, 0.0  ;;  %v6824_v33 = vpop.f32.mrb[128].mxu1  ;;  %v5517_v36 = vmul.f32 %v5448_v57, %v5448_v57 }
 0x268   : > { %v5477_v51 = vadd.f32 %v5476_v43, %v5446_v41  ;;  %v5515_v0 = vmul.f32 %v5446_v41, %v5446_v41  ;;  %v5545_v52 = vadd.f32 %v5544_v21, %v5514_v50  ;;  %v5447_v23 = vmax.f32 %v5371_v39, 0.0  ;;  %v6825_v40 = vpop.f32.mrb[129].mxu1 }
 0x269   : > { %v6338_v16 = vpack.c.bf16 %v5449_v4, %v5448_v57  ;;  %v6826_v60 = vadd.f32 %v6825_v40, %v6824_v33  ;;  %v6827_v31 = vpop.f32.mrb[130].mxu1  ;;  %v5518_v17 = vmul.f32 %v5449_v4, %v5449_v4 }
 0x26a   : > { %v5546_v44 = vadd.f32 %v5545_v52, %v5515_v0  ;;  %v5478_v10 = vadd.f32 %v5477_v51, %v5447_v23  ;;  %v5516_v48 = vmul.f32 %v5447_v23, %v5447_v23  ;;  %v6333_v46 = vpack.c.bf16 %v5447_v23, %v5446_v41  ;;  %v6910_v25 = vpop.f32.mrb[132].mxu0  ;;  %v6828_v15 = vpop.f32.mrb[131].mxu1 }
 0x26b   : > { %6393 = vst [vmem:[%s8876_s25 + $0x48] sm:$0xff] %v6338_v16   ;;  %v5392_v47 = vadd.f32 %v6910_v25, %v5231_v26  ;;  %v5383_v11 = vpop.f32.mrb[133].mxu0  ;;  %v6829_v37 = vadd.f32 %v6828_v15, %v6827_v31  ;;  %v5239_v20 = vadd.f32 %v6826_v60, %v8817_v24 }
 0x26c   : > { %v5479_v8 = vadd.f32 %v5478_v10, %v5448_v57  ;;  %v5547_v32 = vadd.f32 %v5546_v44, %v5516_v48  ;;  %6392 = vst [vmem:[%s8876_s25 + $0x40] sm:$0xff] %v6333_v46   ;;  %v5384_v12 = vadd.f32 %v5383_v11, %v8902_v55  ;;  %v6911_v63 = vpop.f32.mrb[134].mxu0 }
 0x26d   : > { %v5395_v7 = vadd.f32 %v6911_v63, %v5234_v9  ;;  %v5386_v2 = vpop.f32.mrb[135].mxu0  ;;  %v5452_v34 = vmax.f32 %v5392_v47, 0.0  ;;  %v5242_v55 = vadd.f32 %v6829_v37, %v8820_v29 }
 0x26e   : > { %v5548_v49 = vadd.f32 %v5547_v32, %v5517_v36  ;;  %v5450_v22 = vmax.f32 %v5384_v12, 0.0  ;;  %v5480_v14 = vadd.f32 %v5479_v8, %v5449_v4  ;;  %v5387_v61 = vadd.f32 %v5386_v2, %v8908_v30 }
 0x26f   : > { %v5453_v3 = vmax.f32 %v5395_v7, 0.0  ;;  %v5521_v26 = vmul.f32 %v5452_v34, %v5452_v34 }
 0x270   : > { %v5481_v42 = vadd.f32 %v5480_v14, %v5450_v22  ;;  %v5519_v45 = vmul.f32 %v5450_v22, %v5450_v22  ;;  %v5549_v27 = vadd.f32 %v5548_v49, %v5518_v17  ;;  %v5451_v5 = vmax.f32 %v5387_v61, 0.0 }
 0x271   : > { %v6348_v54 = vpack.c.bf16 %v5453_v3, %v5452_v34  ;;  %v6830_v58 = vpop.f32.mrb[132].mxu1  ;;  %v5522_v9 = vmul.f32 %v5453_v3, %v5453_v3 }
 0x272   : > { %v5550_v6 = vadd.f32 %v5549_v27, %v5519_v45  ;;  %v6914_v13 = vpop.f32.mrb[136].mxu0  ;;  %v5482_v38 = vadd.f32 %v5481_v42, %v5451_v5  ;;  %v5520_v18 = vmul.f32 %v5451_v5, %v5451_v5  ;;  %v6343_v59 = vpack.c.bf16 %v5451_v5, %v5450_v22  ;;  %v6831_v41 = vpop.f32.mrb[133].mxu1 }
 0x273   : > { %6395 = vst [vmem:[%s8876_s25 + $0x58] sm:$0xff] %v6348_v54   ;;  %v5399_v50 = vpop.f32.mrb[137].mxu0  ;;  %v6832_v29 = vadd.f32 %v6831_v41, %v6830_v58  ;;  %v6833_v39 = vpop.f32.mrb[134].mxu1 }
 0x274   : > { %v5400_v56 = vadd.f32 %v5399_v50, %v5239_v20  ;;  %v6915_v30 = vpop.f32.mrb[138].mxu0  ;;  %v5483_v24 = vadd.f32 %v5482_v38, %v5452_v34  ;;  %v5551_v21 = vadd.f32 %v5550_v6, %v5520_v18  ;;  %6394 = vst [vmem:[%s8876_s25 + $0x50] sm:$0xff] %v6343_v59   ;;  %v6834_v52 = vpop.f32.mrb[135].mxu1 }
 0x275   : > { %v5402_v43 = vpop.f32.mrb[139].mxu0  ;;  %v5247_v23 = vadd.f32 %v6832_v29, %v8829_v35  ;;  %v6835_v44 = vadd.f32 %v6834_v52, %v6833_v39 }
 0x276   : > { %v5454_v57 = vmax.f32 %v5400_v56, 0.0  ;;  %v5403_v4 = vadd.f32 %v5402_v43, %v5242_v55  ;;  %v5552_v51 = vadd.f32 %v5551_v21, %v5521_v26  ;;  %v5484_v0 = vadd.f32 %v5483_v24, %v5453_v3 }
 0x277   : > { %v5408_v33 = vadd.f32 %v6914_v13, %v5247_v23  ;;  %v5250_v25 = vadd.f32 %v6835_v44, %v8832_v1 }
 0x278   : > { %v5523_v16 = vmul.f32 %v5454_v57, %v5454_v57  ;;  %v5455_v10 = vmax.f32 %v5403_v4, 0.0  ;;  %v5485_v48 = vadd.f32 %v5484_v0, %v5454_v57  ;;  %v5553_v46 = vadd.f32 %v5552_v51, %v5522_v9 }
 0x279   : > { %v5456_v8 = vmax.f32 %v5408_v33, 0.0  ;;  %v5411_v32 = vadd.f32 %v6915_v30, %v5250_v25 }
 0x27a   : > { %v5524_v36 = vmul.f32 %v5455_v10, %v5455_v10  ;;  %v6353_v40 = vpack.c.bf16 %v5455_v10, %v5454_v57  ;;  %v5554_v47 = vadd.f32 %v5553_v46, %v5523_v16  ;;  %v5486_v11 = vadd.f32 %v5485_v48, %v5455_v10 }
 0x27b   : > { %v5525_v31 = vmul.f32 %v5456_v8, %v5456_v8  ;;  %v5457_v12 = vmax.f32 %v5411_v32, 0.0  ;;  %v6836_v63 = vpop.f32.mrb[136].mxu1 }
 0x27c   : > { %6396 = vst [vmem:[%s8876_s25 + $0x60] sm:$0xff] %v6353_v40   ;;  %v5555_v60 = vadd.f32 %v5554_v47, %v5524_v36  ;;  %v5487_v35 = vadd.f32 %v5486_v11, %v5456_v8  ;;  %v6837_v17 = vpop.f32.mrb[137].mxu1 }
 0x27d   : > { %v5526_v15 = vmul.f32 %v5457_v12, %v5457_v12  ;;  %v6358_v7 = vpack.c.bf16 %v5457_v12, %v5456_v8  ;;  %v6838_v49 = vadd.f32 %v6837_v17, %v6836_v63  ;;  %v6839_v22 = vpop.f32.mrb[138].mxu1 }
 0x27e   : > { %v5556_v2 = vadd.f32 %v5555_v60, %v5525_v31  ;;  %v6840_v1 = vpop.f32.mrb[139].mxu1  ;;  %v5488_v14 = vadd.f32 %v5487_v35, %v5457_v12 }
 0x27f   : > { %6397 = vst [vmem:[%s8876_s25 + $0x68] sm:$0xff] %v6358_v7   ;;  %v6841_v37 = vadd.f32 %v6840_v1, %v6839_v22  ;;  %v5255_v34 = vadd.f32 %v6838_v49, %v8841_v19 }
 0x280   : > { %v5557_v3 = vadd.f32 %v5556_v2, %v5526_v15  ;;  %v6918_v61 = vpop.f32.mrb[140].mxu0 }
 0x281   : > { %v5258_v20 = vadd.f32 %v6841_v37, %v8844_v62  ;;  %v5415_v42 = vpop.f32.mrb[141].mxu0 }
 0x282   : > { %v5416_v45 = vadd.f32 %v5415_v42, %v5255_v34  ;;  %v6919_v27 = vpop.f32.mrb[142].mxu0 }
 0x283   : > { %v5418_v55 = vpop.f32.mrb[143].mxu0 }
 0x284   : > { %v5458_v54 = vmax.f32 %v5416_v45, 0.0  ;;  %v5419_v5 = vadd.f32 %v5418_v55, %v5258_v20 }
 0x286   : > { %v5489_v6 = vadd.f32 %v5488_v14, %v5458_v54  ;;  %v5527_v13 = vmul.f32 %v5458_v54, %v5458_v54  ;;  %v5459_v38 = vmax.f32 %v5419_v5, 0.0 }
 0x288   : > { %v5558_v18 = vadd.f32 %v5557_v3, %v5527_v13  ;;  %v5490_v59 = vadd.f32 %v5489_v6, %v5459_v38  ;;  %v5528_v50 = vmul.f32 %v5459_v38, %v5459_v38  ;;  %v6363_v58 = vpack.c.bf16 %v5459_v38, %v5458_v54 }
 0x28a   : > { %v5559_v56 = vadd.f32 %v5558_v18, %v5528_v50  ;;  %6398 = vst [vmem:[%s8876_s25 + $0x70] sm:$0xff] %v6363_v58  }
 0x28b   : > { %v6842_v19 = vpop.f32.mrb[140].mxu1 }
 0x28c   : > { %v6843_v30 = vpop.f32.mrb[141].mxu1 }
 0x28d   : > { %v6844_v26 = vadd.f32 %v6843_v30, %v6842_v19  ;;  %v6845_v24 = vpop.f32.mrb[142].mxu1 }
 0x28e   : > { %v6846_v62 = vpop.f32.mrb[143].mxu1 }
 0x28f   : > { %v5263_v21 = vadd.f32 %v6844_v26, %v8856_v28  ;;  %v6847_v41 = vadd.f32 %v6846_v62, %v6845_v24 }
 0x291   : > { %v5424_v43 = vadd.f32 %v6918_v61, %v5263_v21  ;;  %v5266_v29 = vadd.f32 %v6847_v41, %v8862_v53 }
 0x293   : > { %v5460_v39 = vmax.f32 %v5424_v43, 0.0  ;;  %v5427_v57 = vadd.f32 %v6919_v27, %v5266_v29 }
 0x295   : > { %v5491_v4 = vadd.f32 %v5490_v59, %v5460_v39  ;;  %v5529_v9 = vmul.f32 %v5460_v39, %v5460_v39  ;;  %v5461_v51 = vmax.f32 %v5427_v57, 0.0 }
 0x297   : > { %v5560_v0 = vadd.f32 %v5559_v56, %v5529_v9  ;;  %v5492_v52 = vadd.f32 %v5491_v4, %v5461_v51  ;;  %v5530_v23 = vmul.f32 %v5461_v51, %v5461_v51  ;;  %v6368_v16 = vpack.c.bf16 %v5461_v51, %v5460_v39 }
 0x299   : > { %v5493_v44 = vrot.slane %v5492_v52, 4  ;;  %v5561_v10 = vadd.f32 %v5560_v0, %v5530_v23  ;;  %6399 = vst [vmem:[%s8876_s25 + $0x78] sm:$0xff] %v6368_v16  }
 0x29b   : > { %v5494_v48 = vadd.f32 %v5493_v44, %v5492_v52  ;;  %v5562_v46 = vrot.slane %v5561_v10, 4 }
 0x29d   : > { %v5495_v28 = vrot.slane %v5494_v48, 2  ;;  %v5563_v33 = vadd.f32 %v5562_v46, %v5561_v10 }
 0x29f   : > { %v5496_v25 = vadd.f32 %v5495_v28, %v5494_v48  ;;  %v5564_v36 = vrot.slane %v5563_v33, 2 }
 0x2a1   : > { %v5497_v53 = vrot.slane %v5496_v25, 1  ;;  %v5565_v40 = vadd.f32 %v5564_v36, %v5563_v33 }
 0x2a3   : > { %v5566_v47 = vrot.slane %v5565_v40, 1  ;;  %v5498_v11 = vadd.f32 %v5497_v53, %v5496_v25 }
 0x2a5   : > { %v5567_v8 = vadd.f32 %v5566_v47, %v5565_v40 }
 0x2a7   : > { %v5569_v32 = vsel %vm271_vm0, %v5498_v11, %v5567_v8 }
 0x2a8   : > { %5570 = vst [vmem:[%s262_s29] sm:$0x3] %v5569_v32 }
 0x2a9 PF: > { %s17_s21 = sadd.s32 1, %s7076_s21  }
 0x2aa   : > { %p14_p4 = scmp.ge.s32.totalorder %s17_s21, 4  }
 0x2ac   :  { %16 = sbr.rel (!%p14_p4) target bundleno = 1 (0x1), region = 85 }

</bundles_post_ra>
